<compile_context>
chip_gen: v7x
topology: tpu7x:2x2x1
jax: 0.10.0
libtpu: 0.0.40
codegen_flags: <defaults>
</compile_context>

<pallas_src>
import functools

import jax
import jax.numpy as jnp
from jax import lax
from jax.experimental import pallas as pl
from jax.experimental.pallas import tpu as pltpu

CPAD = 128          # channel / lane padding (also padded latent width)
BN_EPS = 1e-5


# ----------------------------------------------------------------------------
# Pallas kernels
# ----------------------------------------------------------------------------
def _mm_bn_relu_kernel(a_ref, w_ref, g_ref, b_ref, o_ref, *, groups, cpad, rows):
    """(M,K)@(K,G*C) -> BatchNorm (batch stats pooled over M rows and the G
    phase column-blocks) -> ReLU.  Conv bias omitted (cancelled by BN mean)."""
    acc = jnp.dot(a_ref[...], w_ref[...], preferred_element_type=jnp.float32)
    s1 = jnp.sum(acc, axis=0, keepdims=True)          # (1, G*C)
    s2 = jnp.sum(acc * acc, axis=0, keepdims=True)    # (1, G*C)
    if groups > 1:                                    # pool stats across phases
        s1g, s2g = s1[:, 0:cpad], s2[:, 0:cpad]
        for g in range(1, groups):
            s1g = s1g + s1[:, g * cpad:(g + 1) * cpad]
            s2g = s2g + s2[:, g * cpad:(g + 1) * cpad]
        s1, s2 = s1g, s2g
    inv_cnt = 1.0 / float(rows * groups)
    mean = s1 * inv_cnt
    var = jnp.maximum(s2 * inv_cnt - mean * mean, 0.0)   # biased batch variance
    scale = g_ref[...] * lax.rsqrt(var + BN_EPS)          # (1, C), f32
    shift = b_ref[...] - mean * scale
    if groups > 1:
        scale = jnp.concatenate([scale] * groups, axis=1)
        shift = jnp.concatenate([shift] * groups, axis=1)
    o_ref[...] = jnp.maximum(acc * scale + shift, 0.0).astype(o_ref.dtype)


def _mm_bias_kernel(a_ref, w_ref, b_ref, o_ref, *, activation):
    acc = jnp.dot(a_ref[...], w_ref[...], preferred_element_type=jnp.float32)
    acc = acc + b_ref[...]
    if activation == "tanh":
        acc = jnp.tanh(acc)
    o_ref[...] = acc.astype(o_ref.dtype)


def _latent_kernel(a_ref, w_ref, b_ref, eps_ref, mu_ref, lv_ref, z_ref, *, zpad):
    """Fused mu/logvar Linear + reparameterization: z = mu + eps*exp(0.5*lv)."""
    acc = jnp.dot(a_ref[...], w_ref[...], preferred_element_type=jnp.float32)
    acc = acc + b_ref[...]
    mu = acc[:, :zpad]
    lv = acc[:, zpad:]
    mu_ref[...] = mu
    lv_ref[...] = lv
    z_ref[...] = (mu + eps_ref[...] * jnp.exp(0.5 * lv)).astype(z_ref.dtype)


# ----------------------------------------------------------------------------
# Pallas wrappers
# ----------------------------------------------------------------------------
def fused_conv_bn_relu(cols, wmat, gamma, beta, *, groups, out_dtype=jnp.bfloat16):
    M, K = cols.shape
    NO = wmat.shape[1]
    kernel = functools.partial(_mm_bn_relu_kernel, groups=groups, cpad=CPAD, rows=M)
    return pl.pallas_call(
        kernel,
        out_shape=jax.ShapeDtypeStruct((M, NO), out_dtype),
        grid=(1,),
        in_specs=[
            pl.BlockSpec((M, K), lambda i: (0, 0)),
            pl.BlockSpec((K, NO), lambda i: (0, 0)),
            pl.BlockSpec((1, CPAD), lambda i: (0, 0)),
            pl.BlockSpec((1, CPAD), lambda i: (0, 0)),
        ],
        out_specs=pl.BlockSpec((M, NO), lambda i: (0, 0)),
        compiler_params=pltpu.CompilerParams(dimension_semantics=("arbitrary",)),
    )(cols, wmat, gamma, beta)


def _pick_tile(M):
    if M > 256:
        for cand in (256, 128, 64, 32, 16, 8):
            if M % cand == 0:
                return cand
    return M


def matmul_bias(a, w, bias, *, activation="none", out_dtype=jnp.float32):
    """(M,K)@(K,N)+bias[N] (+tanh), tiled over M so the grid pipelines / can
    shard across the two v7x TensorCores."""
    M, K = a.shape
    NO = w.shape[1]
    tm = _pick_tile(M)
    kernel = functools.partial(_mm_bias_kernel, activation=activation)
    return pl.pallas_call(
        kernel,
        out_shape=jax.ShapeDtypeStruct((M, NO), out_dtype),
        grid=(M // tm,),
        in_specs=[
            pl.BlockSpec((tm, K), lambda i: (i, 0)),
            pl.BlockSpec((K, NO), lambda i: (0, 0)),
            pl.BlockSpec((1, NO), lambda i: (0, 0)),
        ],
        out_specs=pl.BlockSpec((tm, NO), lambda i: (i, 0)),
        compiler_params=pltpu.CompilerParams(dimension_semantics=("parallel",)),
    )(a, w, bias)


def latent_reparam(flat, w, bias, eps, *, zpad):
    B, K = flat.shape
    kernel = functools.partial(_latent_kernel, zpad=zpad)
    return pl.pallas_call(
        kernel,
        out_shape=(jax.ShapeDtypeStruct((B, zpad), jnp.float32),
                   jax.ShapeDtypeStruct((B, zpad), jnp.float32),
                   jax.ShapeDtypeStruct((B, zpad), jnp.bfloat16)),
        grid=(1,),
        in_specs=[
            pl.BlockSpec((B, K), lambda i: (0, 0)),
            pl.BlockSpec((K, 2 * zpad), lambda i: (0, 0)),
            pl.BlockSpec((1, 2 * zpad), lambda i: (0, 0)),
            pl.BlockSpec((B, zpad), lambda i: (0, 0)),
        ],
        out_specs=(
            pl.BlockSpec((B, zpad), lambda i: (0, 0)),
            pl.BlockSpec((B, zpad), lambda i: (0, 0)),
            pl.BlockSpec((B, zpad), lambda i: (0, 0)),
        ),
        compiler_params=pltpu.CompilerParams(dimension_semantics=("arbitrary",)),
    )(flat, w, bias, eps)


# ----------------------------------------------------------------------------
# Plain-JAX glue (NHWC, channels padded to CPAD)
# ----------------------------------------------------------------------------
def im2col_nhwc(x, k, stride, pad_lo, pad_hi):
    """NHWC im2col without stack/transpose; K ordered (kh, kw, c)."""
    N, H, W, C = x.shape
    xp = jnp.pad(x, ((0, 0), (pad_lo, pad_hi), (pad_lo, pad_hi), (0, 0)))
    Ho = (H + pad_lo + pad_hi - k) // stride + 1
    Wo = (W + pad_lo + pad_hi - k) // stride + 1
    taps = [xp[:, kh:kh + stride * Ho:stride, kw:kw + stride * Wo:stride, :]
            for kh in range(k) for kw in range(k)]
    cols = jnp.concatenate(taps, axis=-1).reshape(N * Ho * Wo, k * k * C)
    return cols, Ho, Wo


def conv_transpose_taps(h):
    """4 shifted taps of the un-dilated input for the sub-pixel decomposition
    of ConvTranspose2d(3, stride=2, padding=1, output_padding=1)."""
    N, H, W, C = h.shape
    z_col = jnp.zeros((N, H, 1, C), h.dtype)
    z_row = jnp.zeros((N, 1, W, C), h.dtype)
    t00 = h                                                    # in[a,   b  ]
    t01 = jnp.concatenate([h[:, :, 1:, :], z_col], axis=2)     # in[a,   b+1]
    t10 = jnp.concatenate([h[:, 1:, :, :], z_row], axis=1)     # in[a+1, b  ]
    t11 = jnp.concatenate([t10[:, :, 1:, :], z_col], axis=2)   # in[a+1, b+1]
    return jnp.concatenate([t00, t01, t10, t11], axis=-1).reshape(N * H * W, 4 * C)


def convtranspose_bn_relu(h, layer):
    """ConvTranspose2d(3,s2,p1,op1) + BN + ReLU as one fused Pallas matmul."""
    N, H, W, _ = h.shape
    cols = conv_transpose_taps(h)
    y = fused_conv_bn_relu(cols, layer["w"], layer["gamma"], layer["beta"], groups=4)
    # pixel shuffle: column blocks are phases (r,s) = (0,0),(0,1),(1,0),(1,1)
    y = y.reshape(N, H, W, 2, 2, CPAD).transpose(0, 1, 3, 2, 4, 5)
    return y.reshape(N, 2 * H, 2 * W, CPAD)


# ----------------------------------------------------------------------------
# Parameters: torch-layout init + one-time packing (pad, permute, cast bf16)
# ----------------------------------------------------------------------------
def init_raw_params(key, n_channel, hidden_dims, z_dim, img_size):
    nb = img_size // (2 ** len(hidden_dims))
    flat = hidden_dims[-1] * nb * nb
    keys = iter(jax.random.split(key, 64))

    def rnd(shape, scale=0.05):
        return scale * jax.random.normal(next(keys), shape, jnp.float32)

    p = {"encoder": [], "decoder": []}
    cur = n_channel
    for h in hidden_dims:
        p["encoder"].append(dict(w=rnd((h, cur, 3, 3)), b=rnd((h,)),
                                 gamma=jnp.ones((h,)), beta=jnp.zeros((h,))))
        cur = h
    p["w_mu"], p["b_mu"] = rnd((flat, z_dim)), rnd((z_dim,))
    p["w_lv"], p["b_lv"] = rnd((flat, z_dim)), rnd((z_dim,))
    p["w_dec_in"], p["b_dec_in"] = rnd((z_dim, flat)), rnd((flat,))
    rev = list(reversed(hidden_dims))
    cur = rev[0]
    for h in rev[1:]:
        p["decoder"].append(dict(w=rnd((cur, h, 3, 3)), b=rnd((h,)),
                                 gamma=jnp.ones((h,)), beta=jnp.zeros((h,))))
        cur = h
    p["final_ct"] = dict(w=rnd((cur, cur, 3, 3)), b=rnd((cur,)),
                         gamma=jnp.ones((cur,)), beta=jnp.zeros((cur,)))
    p["final_conv"] = dict(w=rnd((n_channel, cur, 3, 3)), b=rnd((n_channel,)))
    return p


def _pack_conv_w(w):      # (Cout,Cin,3,3) -> (9*CPAD, CPAD) bf16, K=(kh,kw,ci)
    cout, cin = w.shape[:2]
    w = jnp.transpose(w, (2, 3, 1, 0))
    w = jnp.pad(w, ((0, 0), (0, 0), (0, CPAD - cin), (0, CPAD - cout)))
    return w.reshape(9 * CPAD, CPAD).astype(jnp.bfloat16)


def _pack_convtrans_w(w):  # (Cin,Cout,3,3) -> (4*CPAD, 4*CPAD) bf16 phase weight
    cin, cout = w.shape[:2]

    def blk(kh, kw):
        return jnp.pad(w[:, :, kh, kw], ((0, CPAD - cin), (0, CPAD - cout)))

    zero = jnp.zeros((CPAD, CPAD), jnp.float32)
    # rows: taps in[a,b], in[a,b+1], in[a+1,b], in[a+1,b+1]
    # cols: output phases (r,s) = (0,0),(0,1),(1,0),(1,1)
    row0 = jnp.concatenate([blk(1, 1), blk(1, 2), blk(2, 1), blk(2, 2)], axis=1)
    row1 = jnp.concatenate([zero,      blk(1, 0), zero,      blk(2, 0)], axis=1)
    row2 = jnp.concatenate([zero,      zero,      blk(0, 1), blk(0, 2)], axis=1)
    row3 = jnp.concatenate([zero,      zero,      zero,      blk(0, 0)], axis=1)
    return jnp.concatenate([row0, row1, row2, row3], axis=0).astype(jnp.bfloat16)


def _pack_vec(v):
    return jnp.pad(v.astype(jnp.float32), (0, CPAD - v.shape[0])).reshape(1, CPAD)


def _pack_latent_w(w_mu, w_lv, b_mu, b_lv, c_feat, nb, z_dim, zpad):
    # torch flatten index c*nb*nb + y*nb + x  ->  ours y*nb*CPAD + x*CPAD + c
    w = jnp.concatenate([jnp.pad(w_mu, ((0, 0), (0, zpad - z_dim))),
                         jnp.pad(w_lv, ((0, 0), (0, zpad - z_dim)))], axis=1)
    w = w.reshape(c_feat, nb, nb, 2 * zpad).transpose(1, 2, 0, 3)
    w = jnp.pad(w, ((0, 0), (0, 0), (0, CPAD - c_feat), (0, 0)))
    w = w.reshape(nb * nb * CPAD, 2 * zpad).astype(jnp.bfloat16)
    b = jnp.concatenate([jnp.pad(b_mu, (0, zpad - z_dim)),
                         jnp.pad(b_lv, (0, zpad - z_dim))])
    return w, b.reshape(1, 2 * zpad).astype(jnp.float32)


def _pack_decin_w(w, b, c_feat, nb, z_dim, zpad):
    w = w.reshape(z_dim, c_feat, nb, nb).transpose(0, 2, 3, 1)
    w = jnp.pad(w, ((0, zpad - z_dim), (0, 0), (0, 0), (0, CPAD - c_feat)))
    w = w.reshape(zpad, nb * nb * CPAD).astype(jnp.bfloat16)
    b = b.reshape(c_feat, nb, nb).transpose(1, 2, 0)
    b = jnp.pad(b, ((0, 0), (0, 0), (0, CPAD - c_feat)))
    return w, b.reshape(1, nb * nb * CPAD).astype(jnp.float32)


def pack_params(raw, n_channel, hidden_dims, z_dim, img_size):
    nb = img_size // (2 ** len(hidden_dims))
    p = {"encoder": [], "decoder": []}
    for lyr in raw["encoder"]:          # conv bias dropped: cancelled by BN
        p["encoder"].append(dict(w=_pack_conv_w(lyr["w"]),
                                 gamma=_pack_vec(lyr["gamma"]),
                                 beta=_pack_vec(lyr["beta"])))
    p["w_mulv"], p["b_mulv"] = _pack_latent_w(
        raw["w_mu"], raw["w_lv"], raw["b_mu"], raw["b_lv"],
        hidden_dims[-1], nb, z_dim, CPAD)
    p["w_dec_in"], p["b_dec_in"] = _pack_decin_w(
        raw["w_dec_in"], raw["b_dec_in"], hidden_dims[-1], nb, z_dim, CPAD)
    for lyr in raw["decoder"]:
        p["decoder"].append(dict(w=_pack_convtrans_w(lyr["w"]),
                                 gamma=_pack_vec(lyr["gamma"]),
                                 beta=_pack_vec(lyr["beta"])))
    p["final_ct"] = dict(w=_pack_convtrans_w(raw["final_ct"]["w"]),
                         gamma=_pack_vec(raw["final_ct"]["gamma"]),
                         beta=_pack_vec(raw["final_ct"]["beta"]))
    p["final_conv_w"] = _pack_conv_w(raw["final_conv"]["w"])
    p["final_conv_b"] = _pack_vec(raw["final_conv"]["b"])
    return p


# ----------------------------------------------------------------------------
# Forward (static shape config captured in a closure -> jit-safe)
# ----------------------------------------------------------------------------
def build_forward(n_channel, hidden_dims, z_dim, img_size):
    nb = img_size // (2 ** len(hidden_dims))

    def forward(params, x_nchw, eps):
        N = x_nchw.shape[0]
        # NCHW -> NHWC, pad channels to CPAD, cast to bf16 (once)
        h = jnp.transpose(x_nchw, (0, 2, 3, 1))
        h = jnp.pad(h, ((0, 0), (0, 0), (0, 0), (0, CPAD - n_channel)))
        h = h.astype(jnp.bfloat16)

        # --- encoder: Conv(3,s2,p1) + BN + ReLU fused ---------------------
        for lyr in params["encoder"]:
            cols, Ho, Wo = im2col_nhwc(h, 3, 2, 1, 1)
            y = fused_conv_bn_relu(cols, lyr["w"], lyr["gamma"], lyr["beta"],
                                   groups=1)
            h = y.reshape(N, Ho, Wo, CPAD)

        flat = h.reshape(N, nb * nb * CPAD)

        # --- mu / logvar / reparameterize (one fused kernel) --------------
        mu_p, lv_p, z = latent_reparam(flat, params["w_mulv"],
                                       params["b_mulv"], eps, zpad=CPAD)
        mu, logvar = mu_p[:, :z_dim], lv_p[:, :z_dim]

        # --- decoder input Linear ------------------------------------------
        d = matmul_bias(z, params["w_dec_in"], params["b_dec_in"],
                        activation="none", out_dtype=jnp.bfloat16)
        h = d.reshape(N, nb, nb, CPAD)

        # --- decoder: ConvTranspose + BN + ReLU (sub-pixel, fused) ---------
        for lyr in params["decoder"]:
            h = convtranspose_bn_relu(h, lyr)
        h = convtranspose_bn_relu(h, params["final_ct"])

        # --- final Conv(3,s1,p1) + bias + Tanh ------------------------------
        cols, Ho, Wo = im2col_nhwc(h, 3, 1, 1, 1)
        y = matmul_bias(cols, params["final_conv_w"], params["final_conv_b"],
                        activation="tanh", out_dtype=jnp.float32)
        y = y.reshape(N, Ho, Wo, CPAD)[..., :n_channel]
        recon = jnp.transpose(y, (0, 3, 1, 2))     # back to NCHW once
        return recon, mu, logvar

    return forward


# ----------------------------------------------------------------------------
if __name__ == "__main__":
    n_channel, hidden_dims, z_dim, img_size = 4, [32, 64], 16, 16
    batch = 2

    key = jax.random.PRNGKey(0)
    k_params, k_x, k_eps = jax.random.split(key, 3)

    raw = init_raw_params(k_params, n_channel, hidden_dims, z_dim, img_size)
    params = pack_params(raw, n_channel, hidden_dims, z_dim, img_size)

    x = jax.random.normal(k_x, (batch, n_channel, img_size, img_size), jnp.float32)
    eps = jax.random.normal(k_eps, (batch, CPAD), jnp.float32)

    fwd = jax.jit(build_forward(n_channel, hidden_dims, z_dim, img_size))
    recon, mu, logvar = fwd(params, x, eps)
    jax.block_until_ready((recon, mu, logvar))

    assert recon.shape == (batch, n_channel, img_size, img_size), recon.shape
    assert mu.shape == (batch, z_dim) and logvar.shape == (batch, z_dim)
    assert bool(jnp.all(jnp.isfinite(recon))) and bool(jnp.all(jnp.abs(recon) <= 1.0))
    assert bool(jnp.all(jnp.isfinite(mu))) and bool(jnp.all(jnp.isfinite(logvar)))
    print("KERNEL_OK")
</pallas_src>

<mosaic_0001>
module attributes {stable_mosaic.version = 11 : i64} {
  func.func @_mm_bn_relu_kernel(%arg0: i32, %arg1: memref<128x1152xbf16, #tpu.memory_space<vmem>>, %arg2: memref<1152x128xbf16, #tpu.memory_space<vmem>>, %arg3: memref<1x128xf32, #tpu.memory_space<vmem>>, %arg4: memref<1x128xf32, #tpu.memory_space<vmem>>, %arg5: memref<128x128xbf16, #tpu.memory_space<vmem>>) attributes {dimension_semantics = [#tpu.dimension_semantics<arbitrary>], iteration_bounds = array<i64: 1>, scalar_prefetch = 0 : i64, scratch_operands = 0 : i64, tpu.core_type = #tpu.core_type<tc>, window_params = [{pipeline_mode = #tpu.pipeline_mode<synchronous>, transform_indices = @transform_0, window_bounds = array<i64: 128, 1152>}, {pipeline_mode = #tpu.pipeline_mode<synchronous>, transform_indices = @transform_1, window_bounds = array<i64: 1152, 128>}, {pipeline_mode = #tpu.pipeline_mode<synchronous>, transform_indices = @transform_2, window_bounds = array<i64: 1, 128>}, {pipeline_mode = #tpu.pipeline_mode<synchronous>, transform_indices = @transform_3, window_bounds = array<i64: 1, 128>}, {pipeline_mode = #tpu.pipeline_mode<synchronous>, transform_indices = @transform_4, window_bounds = array<i64: 128, 128>}]} {
    %c0 = arith.constant 0 : index
    %c0_0 = arith.constant 0 : index
    %0 = vector.load %arg1[%c0, %c0_0] : memref<128x1152xbf16, #tpu.memory_space<vmem>>, vector<128x1152xbf16>
    %c0_1 = arith.constant 0 : index
    %c0_2 = arith.constant 0 : index
    %1 = vector.load %arg2[%c0_1, %c0_2] : memref<1152x128xbf16, #tpu.memory_space<vmem>>, vector<1152x128xbf16>
    %cst = arith.constant dense<0.000000e+00> : vector<128x128xf32>
    %2 = tpu.matmul %0, %1, %cst {dimension_numbers = #tpu.dot_dimension_numbers<[1], [0], [0], [1], [0, 0, 1, 1], [], []>} : vector<128x1152xbf16>, vector<1152x128xbf16>, vector<128x128xf32> -> vector<128x128xf32>
    %cst_3 = arith.constant dense<0.000000e+00> : vector<128xf32>
    %3 = vector.multi_reduction <add>, %2, %cst_3 [0] : vector<128x128xf32> to vector<128xf32>
    %4 = vector.shape_cast %3 : vector<128xf32> to vector<1x128xf32>
    %5 = arith.mulf %2, %2 : vector<128x128xf32>
    %cst_4 = arith.constant dense<0.000000e+00> : vector<128xf32>
    %6 = vector.multi_reduction <add>, %5, %cst_4 [0] : vector<128x128xf32> to vector<128xf32>
    %7 = vector.shape_cast %6 : vector<128xf32> to vector<1x128xf32>
    %cst_5 = arith.constant 7.812500e-03 : f32
    %8 = vector.broadcast %cst_5 : f32 to vector<1x128xf32>
    %9 = arith.mulf %4, %8 : vector<1x128xf32>
    %cst_6 = arith.constant 7.812500e-03 : f32
    %10 = vector.broadcast %cst_6 : f32 to vector<1x128xf32>
    %11 = arith.mulf %7, %10 : vector<1x128xf32>
    %12 = arith.mulf %9, %9 : vector<1x128xf32>
    %13 = arith.subf %11, %12 : vector<1x128xf32>
    %cst_7 = arith.constant 0.000000e+00 : f32
    %14 = vector.broadcast %cst_7 : f32 to vector<1x128xf32>
    %15 = arith.maximumf %13, %14 : vector<1x128xf32>
    %c0_8 = arith.constant 0 : index
    %c0_9 = arith.constant 0 : index
    %16 = vector.load %arg3[%c0_8, %c0_9] : memref<1x128xf32, #tpu.memory_space<vmem>>, vector<1x128xf32>
    %cst_10 = arith.constant 9.99999974E-6 : f32
    %17 = vector.broadcast %cst_10 : f32 to vector<1x128xf32>
    %18 = arith.addf %15, %17 : vector<1x128xf32>
    %19 = math.rsqrt %18 : vector<1x128xf32>
    %20 = arith.mulf %16, %19 : vector<1x128xf32>
    %c0_11 = arith.constant 0 : index
    %c0_12 = arith.constant 0 : index
    %21 = vector.load %arg4[%c0_11, %c0_12] : memref<1x128xf32, #tpu.memory_space<vmem>>, vector<1x128xf32>
    %22 = arith.mulf %9, %20 : vector<1x128xf32>
    %23 = arith.subf %21, %22 : vector<1x128xf32>
    %24 = vector.broadcast %20 : vector<1x128xf32> to vector<128x128xf32>
    %25 = arith.mulf %2, %24 : vector<128x128xf32>
    %26 = vector.broadcast %23 : vector<1x128xf32> to vector<128x128xf32>
    %27 = arith.addf %25, %26 : vector<128x128xf32>
    %cst_13 = arith.constant 0.000000e+00 : f32
    %28 = vector.broadcast %cst_13 : f32 to vector<128x128xf32>
    %29 = arith.maximumf %27, %28 : vector<128x128xf32>
    %30 = arith.truncf %29 : vector<128x128xf32> to vector<128x128xbf16>
    %c0_14 = arith.constant 0 : index
    %c0_15 = arith.constant 0 : index
    %31 = vector.load %arg5[%c0_14, %c0_15] : memref<128x128xbf16, #tpu.memory_space<vmem>>, vector<128x128xbf16>
    tpu.vector_store %arg5[%c0_14, %c0_15], %30 {strides = array<i32>} : memref<128x128xbf16, #tpu.memory_space<vmem>>, vector<128x128xbf16>,
    return
  }
  func.func @transform_0(%arg0: i32) -> (i32, i32) {
    %c0_i32 = arith.constant 0 : i32
    %c0_i32_0 = arith.constant 0 : i32
    %c0_i32_1 = arith.constant 0 : i32
    return %c0_i32, %c0_i32_0 : i32, i32
  }
  func.func @transform_1(%arg0: i32) -> (i32, i32) {
    %c0_i32 = arith.constant 0 : i32
    %c0_i32_0 = arith.constant 0 : i32
    %c0_i32_1 = arith.constant 0 : i32
    return %c0_i32, %c0_i32_0 : i32, i32
  }
  func.func @transform_2(%arg0: i32) -> (i32, i32) {
    %c0_i32 = arith.constant 0 : i32
    %c0_i32_0 = arith.constant 0 : i32
    %c0_i32_1 = arith.constant 0 : i32
    return %c0_i32, %c0_i32_0 : i32, i32
  }
  func.func @transform_3(%arg0: i32) -> (i32, i32) {
    %c0_i32 = arith.constant 0 : i32
    %c0_i32_0 = arith.constant 0 : i32
    %c0_i32_1 = arith.constant 0 : i32
    return %c0_i32, %c0_i32_0 : i32, i32
  }
  func.func @transform_4(%arg0: i32) -> (i32, i32) {
    %c0_i32 = arith.constant 0 : i32
    %c0_i32_0 = arith.constant 0 : i32
    %c0_i32_1 = arith.constant 0 : i32
    return %c0_i32, %c0_i32_0 : i32, i32
  }
}

module attributes {stable_mosaic.version = 11 : i64} {
  func.func @_mm_bn_relu_kernel(%arg0: i32, %arg1: memref<32x1152xbf16, #tpu.memory_space<vmem>>, %arg2: memref<1152x128xbf16, #tpu.memory_space<vmem>>, %arg3: memref<1x128xf32, #tpu.memory_space<vmem>>, %arg4: memref<1x128xf32, #tpu.memory_space<vmem>>, %arg5: memref<32x128xbf16, #tpu.memory_space<vmem>>) attributes {dimension_semantics = [#tpu.dimension_semantics<arbitrary>], iteration_bounds = array<i64: 1>, scalar_prefetch = 0 : i64, scratch_operands = 0 : i64, tpu.core_type = #tpu.core_type<tc>, window_params = [{pipeline_mode = #tpu.pipeline_mode<synchronous>, transform_indices = @transform_0, window_bounds = array<i64: 32, 1152>}, {pipeline_mode = #tpu.pipeline_mode<synchronous>, transform_indices = @transform_1, window_bounds = array<i64: 1152, 128>}, {pipeline_mode = #tpu.pipeline_mode<synchronous>, transform_indices = @transform_2, window_bounds = array<i64: 1, 128>}, {pipeline_mode = #tpu.pipeline_mode<synchronous>, transform_indices = @transform_3, window_bounds = array<i64: 1, 128>}, {pipeline_mode = #tpu.pipeline_mode<synchronous>, transform_indices = @transform_4, window_bounds = array<i64: 32, 128>}]} {
    %c0 = arith.constant 0 : index
    %c0_0 = arith.constant 0 : index
    %0 = vector.load %arg1[%c0, %c0_0] : memref<32x1152xbf16, #tpu.memory_space<vmem>>, vector<32x1152xbf16>
    %c0_1 = arith.constant 0 : index
    %c0_2 = arith.constant 0 : index
    %1 = vector.load %arg2[%c0_1, %c0_2] : memref<1152x128xbf16, #tpu.memory_space<vmem>>, vector<1152x128xbf16>
    %cst = arith.constant dense<0.000000e+00> : vector<32x128xf32>
    %2 = tpu.matmul %0, %1, %cst {dimension_numbers = #tpu.dot_dimension_numbers<[1], [0], [0], [1], [0, 0, 1, 1], [], []>} : vector<32x1152xbf16>, vector<1152x128xbf16>, vector<32x128xf32> -> vector<32x128xf32>
    %cst_3 = arith.constant dense<0.000000e+00> : vector<128xf32>
    %3 = vector.multi_reduction <add>, %2, %cst_3 [0] : vector<32x128xf32> to vector<128xf32>
    %4 = vector.shape_cast %3 : vector<128xf32> to vector<1x128xf32>
    %5 = arith.mulf %2, %2 : vector<32x128xf32>
    %cst_4 = arith.constant dense<0.000000e+00> : vector<128xf32>
    %6 = vector.multi_reduction <add>, %5, %cst_4 [0] : vector<32x128xf32> to vector<128xf32>
    %7 = vector.shape_cast %6 : vector<128xf32> to vector<1x128xf32>
    %cst_5 = arith.constant 3.125000e-02 : f32
    %8 = vector.broadcast %cst_5 : f32 to vector<1x128xf32>
    %9 = arith.mulf %4, %8 : vector<1x128xf32>
    %cst_6 = arith.constant 3.125000e-02 : f32
    %10 = vector.broadcast %cst_6 : f32 to vector<1x128xf32>
    %11 = arith.mulf %7, %10 : vector<1x128xf32>
    %12 = arith.mulf %9, %9 : vector<1x128xf32>
    %13 = arith.subf %11, %12 : vector<1x128xf32>
    %cst_7 = arith.constant 0.000000e+00 : f32
    %14 = vector.broadcast %cst_7 : f32 to vector<1x128xf32>
    %15 = arith.maximumf %13, %14 : vector<1x128xf32>
    %c0_8 = arith.constant 0 : index
    %c0_9 = arith.constant 0 : index
    %16 = vector.load %arg3[%c0_8, %c0_9] : memref<1x128xf32, #tpu.memory_space<vmem>>, vector<1x128xf32>
    %cst_10 = arith.constant 9.99999974E-6 : f32
    %17 = vector.broadcast %cst_10 : f32 to vector<1x128xf32>
    %18 = arith.addf %15, %17 : vector<1x128xf32>
    %19 = math.rsqrt %18 : vector<1x128xf32>
    %20 = arith.mulf %16, %19 : vector<1x128xf32>
    %c0_11 = arith.constant 0 : index
    %c0_12 = arith.constant 0 : index
    %21 = vector.load %arg4[%c0_11, %c0_12] : memref<1x128xf32, #tpu.memory_space<vmem>>, vector<1x128xf32>
    %22 = arith.mulf %9, %20 : vector<1x128xf32>
    %23 = arith.subf %21, %22 : vector<1x128xf32>
    %24 = vector.broadcast %20 : vector<1x128xf32> to vector<32x128xf32>
    %25 = arith.mulf %2, %24 : vector<32x128xf32>
    %26 = vector.broadcast %23 : vector<1x128xf32> to vector<32x128xf32>
    %27 = arith.addf %25, %26 : vector<32x128xf32>
    %cst_13 = arith.constant 0.000000e+00 : f32
    %28 = vector.broadcast %cst_13 : f32 to vector<32x128xf32>
    %29 = arith.maximumf %27, %28 : vector<32x128xf32>
    %30 = arith.truncf %29 : vector<32x128xf32> to vector<32x128xbf16>
    %c0_14 = arith.constant 0 : index
    %c0_15 = arith.constant 0 : index
    %31 = vector.load %arg5[%c0_14, %c0_15] : memref<32x128xbf16, #tpu.memory_space<vmem>>, vector<32x128xbf16>
    tpu.vector_store %arg5[%c0_14, %c0_15], %30 {strides = array<i32>} : memref<32x128xbf16, #tpu.memory_space<vmem>>, vector<32x128xbf16>,
    return
  }
  func.func @transform_0(%arg0: i32) -> (i32, i32) {
    %c0_i32 = arith.constant 0 : i32
    %c0_i32_0 = arith.constant 0 : i32
    %c0_i32_1 = arith.constant 0 : i32
    return %c0_i32, %c0_i32_0 : i32, i32
  }
  func.func @transform_1(%arg0: i32) -> (i32, i32) {
    %c0_i32 = arith.constant 0 : i32
    %c0_i32_0 = arith.constant 0 : i32
    %c0_i32_1 = arith.constant 0 : i32
    return %c0_i32, %c0_i32_0 : i32, i32
  }
  func.func @transform_2(%arg0: i32) -> (i32, i32) {
    %c0_i32 = arith.constant 0 : i32
    %c0_i32_0 = arith.constant 0 : i32
    %c0_i32_1 = arith.constant 0 : i32
    return %c0_i32, %c0_i32_0 : i32, i32
  }
  func.func @transform_3(%arg0: i32) -> (i32, i32) {
    %c0_i32 = arith.constant 0 : i32
    %c0_i32_0 = arith.constant 0 : i32
    %c0_i32_1 = arith.constant 0 : i32
    return %c0_i32, %c0_i32_0 : i32, i32
  }
  func.func @transform_4(%arg0: i32) -> (i32, i32) {
    %c0_i32 = arith.constant 0 : i32
    %c0_i32_0 = arith.constant 0 : i32
    %c0_i32_1 = arith.constant 0 : i32
    return %c0_i32, %c0_i32_0 : i32, i32
  }
}

module attributes {stable_mosaic.version = 11 : i64} {
  func.func @_latent_kernel(%arg0: i32, %arg1: memref<2x2048xbf16, #tpu.memory_space<vmem>>, %arg2: memref<2048x256xbf16, #tpu.memory_space<vmem>>, %arg3: memref<1x256xf32, #tpu.memory_space<vmem>>, %arg4: memref<2x128xf32, #tpu.memory_space<vmem>>, %arg5: memref<2x128xf32, #tpu.memory_space<vmem>>, %arg6: memref<2x128xf32, #tpu.memory_space<vmem>>, %arg7: memref<2x128xbf16, #tpu.memory_space<vmem>>) attributes {dimension_semantics = [#tpu.dimension_semantics<arbitrary>], iteration_bounds = array<i64: 1>, scalar_prefetch = 0 : i64, scratch_operands = 0 : i64, tpu.core_type = #tpu.core_type<tc>, window_params = [{pipeline_mode = #tpu.pipeline_mode<synchronous>, transform_indices = @transform_0, window_bounds = array<i64: 2, 2048>}, {pipeline_mode = #tpu.pipeline_mode<synchronous>, transform_indices = @transform_1, window_bounds = array<i64: 2048, 256>}, {pipeline_mode = #tpu.pipeline_mode<synchronous>, transform_indices = @transform_2, window_bounds = array<i64: 1, 256>}, {pipeline_mode = #tpu.pipeline_mode<synchronous>, transform_indices = @transform_3, window_bounds = array<i64: 2, 128>}, {pipeline_mode = #tpu.pipeline_mode<synchronous>, transform_indices = @transform_4, window_bounds = array<i64: 2, 128>}, {pipeline_mode = #tpu.pipeline_mode<synchronous>, transform_indices = @transform_5, window_bounds = array<i64: 2, 128>}, {pipeline_mode = #tpu.pipeline_mode<synchronous>, transform_indices = @transform_6, window_bounds = array<i64: 2, 128>}]} {
    %c0 = arith.constant 0 : index
    %c0_0 = arith.constant 0 : index
    %0 = vector.load %arg1[%c0, %c0_0] : memref<2x2048xbf16, #tpu.memory_space<vmem>>, vector<2x2048xbf16>
    %c0_1 = arith.constant 0 : index
    %c0_2 = arith.constant 0 : index
    %1 = vector.load %arg2[%c0_1, %c0_2] : memref<2048x256xbf16, #tpu.memory_space<vmem>>, vector<2048x256xbf16>
    %cst = arith.constant dense<0.000000e+00> : vector<2x256xf32>
    %2 = tpu.matmul %0, %1, %cst {dimension_numbers = #tpu.dot_dimension_numbers<[1], [0], [0], [1], [0, 0, 1, 1], [], []>} : vector<2x2048xbf16>, vector<2048x256xbf16>, vector<2x256xf32> -> vector<2x256xf32>
    %c0_3 = arith.constant 0 : index
    %c0_4 = arith.constant 0 : index
    %3 = vector.load %arg3[%c0_3, %c0_4] : memref<1x256xf32, #tpu.memory_space<vmem>>, vector<1x256xf32>
    %4 = vector.broadcast %3 : vector<1x256xf32> to vector<2x256xf32>
    %5 = arith.addf %2, %4 : vector<2x256xf32>
    %6 = vector.extract_strided_slice %5 {offsets = [0, 0], sizes = [2, 128], strides = [1, 1]} : vector<2x256xf32> to vector<2x128xf32>
    %7 = vector.extract_strided_slice %5 {offsets = [0, 128], sizes = [2, 128], strides = [1, 1]} : vector<2x256xf32> to vector<2x128xf32>
    %c0_5 = arith.constant 0 : index
    %c0_6 = arith.constant 0 : index
    %8 = vector.load %arg5[%c0_5, %c0_6] : memref<2x128xf32, #tpu.memory_space<vmem>>, vector<2x128xf32>
    tpu.vector_store %arg5[%c0_5, %c0_6], %6 {strides = array<i32>} : memref<2x128xf32, #tpu.memory_space<vmem>>, vector<2x128xf32>,
    %c0_7 = arith.constant 0 : index
    %c0_8 = arith.constant 0 : index
    %9 = vector.load %arg6[%c0_7, %c0_8] : memref<2x128xf32, #tpu.memory_space<vmem>>, vector<2x128xf32>
    tpu.vector_store %arg6[%c0_7, %c0_8], %7 {strides = array<i32>} : memref<2x128xf32, #tpu.memory_space<vmem>>, vector<2x128xf32>,
    %c0_9 = arith.constant 0 : index
    %c0_10 = arith.constant 0 : index
    %10 = vector.load %arg4[%c0_9, %c0_10] : memref<2x128xf32, #tpu.memory_space<vmem>>, vector<2x128xf32>
    %cst_11 = arith.constant 5.000000e-01 : f32
    %11 = vector.broadcast %cst_11 : f32 to vector<2x128xf32>
    %12 = arith.mulf %11, %7 : vector<2x128xf32>
    %13 = math.exp %12 : vector<2x128xf32>
    %14 = arith.mulf %10, %13 : vector<2x128xf32>
    %15 = arith.addf %6, %14 : vector<2x128xf32>
    %16 = arith.truncf %15 : vector<2x128xf32> to vector<2x128xbf16>
    %c0_12 = arith.constant 0 : index
    %c0_13 = arith.constant 0 : index
    %17 = vector.load %arg7[%c0_12, %c0_13] : memref<2x128xbf16, #tpu.memory_space<vmem>>, vector<2x128xbf16>
    tpu.vector_store %arg7[%c0_12, %c0_13], %16 {strides = array<i32>} : memref<2x128xbf16, #tpu.memory_space<vmem>>, vector<2x128xbf16>,
    return
  }
  func.func @transform_0(%arg0: i32) -> (i32, i32) {
    %c0_i32 = arith.constant 0 : i32
    %c0_i32_0 = arith.constant 0 : i32
    %c0_i32_1 = arith.constant 0 : i32
    return %c0_i32, %c0_i32_0 : i32, i32
  }
  func.func @transform_1(%arg0: i32) -> (i32, i32) {
    %c0_i32 = arith.constant 0 : i32
    %c0_i32_0 = arith.constant 0 : i32
    %c0_i32_1 = arith.constant 0 : i32
    return %c0_i32, %c0_i32_0 : i32, i32
  }
  func.func @transform_2(%arg0: i32) -> (i32, i32) {
    %c0_i32 = arith.constant 0 : i32
    %c0_i32_0 = arith.constant 0 : i32
    %c0_i32_1 = arith.constant 0 : i32
    return %c0_i32, %c0_i32_0 : i32, i32
  }
  func.func @transform_3(%arg0: i32) -> (i32, i32) {
    %c0_i32 = arith.constant 0 : i32
    %c0_i32_0 = arith.constant 0 : i32
    %c0_i32_1 = arith.constant 0 : i32
    return %c0_i32, %c0_i32_0 : i32, i32
  }
  func.func @transform_4(%arg0: i32) -> (i32, i32) {
    %c0_i32 = arith.constant 0 : i32
    %c0_i32_0 = arith.constant 0 : i32
    %c0_i32_1 = arith.constant 0 : i32
    return %c0_i32, %c0_i32_0 : i32, i32
  }
  func.func @transform_5(%arg0: i32) -> (i32, i32) {
    %c0_i32 = arith.constant 0 : i32
    %c0_i32_0 = arith.constant 0 : i32
    %c0_i32_1 = arith.constant 0 : i32
    return %c0_i32, %c0_i32_0 : i32, i32
  }
  func.func @transform_6(%arg0: i32) -> (i32, i32) {
    %c0_i32 = arith.constant 0 : i32
    %c0_i32_0 = arith.constant 0 : i32
    %c0_i32_1 = arith.constant 0 : i32
    return %c0_i32, %c0_i32_0 : i32, i32
  }
}

module attributes {stable_mosaic.version = 11 : i64} {
  func.func @_mm_bias_kernel(%arg0: i32, %arg1: memref<2x128xbf16, #tpu.memory_space<vmem>>, %arg2: memref<128x2048xbf16, #tpu.memory_space<vmem>>, %arg3: memref<1x2048xf32, #tpu.memory_space<vmem>>, %arg4: memref<2x2048xbf16, #tpu.memory_space<vmem>>) attributes {dimension_semantics = [#tpu.dimension_semantics<parallel>], iteration_bounds = array<i64: 1>, scalar_prefetch = 0 : i64, scratch_operands = 0 : i64, tpu.core_type = #tpu.core_type<tc>, window_params = [{transform_indices = @transform_0, window_bounds = array<i64: 2, 128>}, {pipeline_mode = #tpu.pipeline_mode<synchronous>, transform_indices = @transform_1, window_bounds = array<i64: 128, 2048>}, {pipeline_mode = #tpu.pipeline_mode<synchronous>, transform_indices = @transform_2, window_bounds = array<i64: 1, 2048>}, {transform_indices = @transform_3, window_bounds = array<i64: 2, 2048>}]} {
    %c0 = arith.constant 0 : index
    %c0_0 = arith.constant 0 : index
    %0 = vector.load %arg1[%c0, %c0_0] : memref<2x128xbf16, #tpu.memory_space<vmem>>, vector<2x128xbf16>
    %c0_1 = arith.constant 0 : index
    %c0_2 = arith.constant 0 : index
    %1 = vector.load %arg2[%c0_1, %c0_2] : memref<128x2048xbf16, #tpu.memory_space<vmem>>, vector<128x2048xbf16>
    %cst = arith.constant dense<0.000000e+00> : vector<2x2048xf32>
    %2 = tpu.matmul %0, %1, %cst {dimension_numbers = #tpu.dot_dimension_numbers<[1], [0], [0], [1], [0, 0, 1, 1], [], []>} : vector<2x128xbf16>, vector<128x2048xbf16>, vector<2x2048xf32> -> vector<2x2048xf32>
    %c0_3 = arith.constant 0 : index
    %c0_4 = arith.constant 0 : index
    %3 = vector.load %arg3[%c0_3, %c0_4] : memref<1x2048xf32, #tpu.memory_space<vmem>>, vector<1x2048xf32>
    %4 = vector.broadcast %3 : vector<1x2048xf32> to vector<2x2048xf32>
    %5 = arith.addf %2, %4 : vector<2x2048xf32>
    %6 = arith.truncf %5 : vector<2x2048xf32> to vector<2x2048xbf16>
    %c0_5 = arith.constant 0 : index
    %c0_6 = arith.constant 0 : index
    %7 = vector.load %arg4[%c0_5, %c0_6] : memref<2x2048xbf16, #tpu.memory_space<vmem>>, vector<2x2048xbf16>
    tpu.vector_store %arg4[%c0_5, %c0_6], %6 {strides = array<i32>} : memref<2x2048xbf16, #tpu.memory_space<vmem>>, vector<2x2048xbf16>,
    return
  }
  func.func @transform_0(%arg0: i32) -> (i32, i32) {
    %c0_i32 = arith.constant 0 : i32
    %c0_i32_0 = arith.constant 0 : i32
    return %arg0, %c0_i32 : i32, i32
  }
  func.func @transform_1(%arg0: i32) -> (i32, i32) {
    %c0_i32 = arith.constant 0 : i32
    %c0_i32_0 = arith.constant 0 : i32
    %c0_i32_1 = arith.constant 0 : i32
    return %c0_i32, %c0_i32_0 : i32, i32
  }
  func.func @transform_2(%arg0: i32) -> (i32, i32) {
    %c0_i32 = arith.constant 0 : i32
    %c0_i32_0 = arith.constant 0 : i32
    %c0_i32_1 = arith.constant 0 : i32
    return %c0_i32, %c0_i32_0 : i32, i32
  }
  func.func @transform_3(%arg0: i32) -> (i32, i32) {
    %c0_i32 = arith.constant 0 : i32
    %c0_i32_0 = arith.constant 0 : i32
    return %arg0, %c0_i32 : i32, i32
  }
}

module attributes {stable_mosaic.version = 11 : i64} {
  func.func @_mm_bn_relu_kernel(%arg0: i32, %arg1: memref<32x512xbf16, #tpu.memory_space<vmem>>, %arg2: memref<512x512xbf16, #tpu.memory_space<vmem>>, %arg3: memref<1x128xf32, #tpu.memory_space<vmem>>, %arg4: memref<1x128xf32, #tpu.memory_space<vmem>>, %arg5: memref<32x512xbf16, #tpu.memory_space<vmem>>) attributes {dimension_semantics = [#tpu.dimension_semantics<arbitrary>], iteration_bounds = array<i64: 1>, scalar_prefetch = 0 : i64, scratch_operands = 0 : i64, tpu.core_type = #tpu.core_type<tc>, window_params = [{pipeline_mode = #tpu.pipeline_mode<synchronous>, transform_indices = @transform_0, window_bounds = array<i64: 32, 512>}, {pipeline_mode = #tpu.pipeline_mode<synchronous>, transform_indices = @transform_1, window_bounds = array<i64: 512, 512>}, {pipeline_mode = #tpu.pipeline_mode<synchronous>, transform_indices = @transform_2, window_bounds = array<i64: 1, 128>}, {pipeline_mode = #tpu.pipeline_mode<synchronous>, transform_indices = @transform_3, window_bounds = array<i64: 1, 128>}, {pipeline_mode = #tpu.pipeline_mode<synchronous>, transform_indices = @transform_4, window_bounds = array<i64: 32, 512>}]} {
    %c0 = arith.constant 0 : index
    %c0_0 = arith.constant 0 : index
    %0 = vector.load %arg1[%c0, %c0_0] : memref<32x512xbf16, #tpu.memory_space<vmem>>, vector<32x512xbf16>
    %c0_1 = arith.constant 0 : index
    %c0_2 = arith.constant 0 : index
    %1 = vector.load %arg2[%c0_1, %c0_2] : memref<512x512xbf16, #tpu.memory_space<vmem>>, vector<512x512xbf16>
    %cst = arith.constant dense<0.000000e+00> : vector<32x512xf32>
    %2 = tpu.matmul %0, %1, %cst {dimension_numbers = #tpu.dot_dimension_numbers<[1], [0], [0], [1], [0, 0, 1, 1], [], []>} : vector<32x512xbf16>, vector<512x512xbf16>, vector<32x512xf32> -> vector<32x512xf32>
    %cst_3 = arith.constant dense<0.000000e+00> : vector<512xf32>
    %3 = vector.multi_reduction <add>, %2, %cst_3 [0] : vector<32x512xf32> to vector<512xf32>
    %4 = vector.shape_cast %3 : vector<512xf32> to vector<1x512xf32>
    %5 = arith.mulf %2, %2 : vector<32x512xf32>
    %cst_4 = arith.constant dense<0.000000e+00> : vector<512xf32>
    %6 = vector.multi_reduction <add>, %5, %cst_4 [0] : vector<32x512xf32> to vector<512xf32>
    %7 = vector.shape_cast %6 : vector<512xf32> to vector<1x512xf32>
    %8 = vector.extract_strided_slice %4 {offsets = [0, 0], sizes = [1, 128], strides = [1, 1]} : vector<1x512xf32> to vector<1x128xf32>
    %9 = vector.extract_strided_slice %7 {offsets = [0, 0], sizes = [1, 128], strides = [1, 1]} : vector<1x512xf32> to vector<1x128xf32>
    %10 = vector.extract_strided_slice %4 {offsets = [0, 128], sizes = [1, 128], strides = [1, 1]} : vector<1x512xf32> to vector<1x128xf32>
    %11 = arith.addf %8, %10 : vector<1x128xf32>
    %12 = vector.extract_strided_slice %7 {offsets = [0, 128], sizes = [1, 128], strides = [1, 1]} : vector<1x512xf32> to vector<1x128xf32>
    %13 = arith.addf %9, %12 : vector<1x128xf32>
    %14 = vector.extract_strided_slice %4 {offsets = [0, 256], sizes = [1, 128], strides = [1, 1]} : vector<1x512xf32> to vector<1x128xf32>
    %15 = arith.addf %11, %14 : vector<1x128xf32>
    %16 = vector.extract_strided_slice %7 {offsets = [0, 256], sizes = [1, 128], strides = [1, 1]} : vector<1x512xf32> to vector<1x128xf32>
    %17 = arith.addf %13, %16 : vector<1x128xf32>
    %18 = vector.extract_strided_slice %4 {offsets = [0, 384], sizes = [1, 128], strides = [1, 1]} : vector<1x512xf32> to vector<1x128xf32>
    %19 = arith.addf %15, %18 : vector<1x128xf32>
    %20 = vector.extract_strided_slice %7 {offsets = [0, 384], sizes = [1, 128], strides = [1, 1]} : vector<1x512xf32> to vector<1x128xf32>
    %21 = arith.addf %17, %20 : vector<1x128xf32>
    %cst_5 = arith.constant 7.812500e-03 : f32
    %22 = vector.broadcast %cst_5 : f32 to vector<1x128xf32>
    %23 = arith.mulf %19, %22 : vector<1x128xf32>
    %cst_6 = arith.constant 7.812500e-03 : f32
    %24 = vector.broadcast %cst_6 : f32 to vector<1x128xf32>
    %25 = arith.mulf %21, %24 : vector<1x128xf32>
    %26 = arith.mulf %23, %23 : vector<1x128xf32>
    %27 = arith.subf %25, %26 : vector<1x128xf32>
    %cst_7 = arith.constant 0.000000e+00 : f32
    %28 = vector.broadcast %cst_7 : f32 to vector<1x128xf32>
    %29 = arith.maximumf %27, %28 : vector<1x128xf32>
    %c0_8 = arith.constant 0 : index
    %c0_9 = arith.constant 0 : index
    %30 = vector.load %arg3[%c0_8, %c0_9] : memref<1x128xf32, #tpu.memory_space<vmem>>, vector<1x128xf32>
    %cst_10 = arith.constant 9.99999974E-6 : f32
    %31 = vector.broadcast %cst_10 : f32 to vector<1x128xf32>
    %32 = arith.addf %29, %31 : vector<1x128xf32>
    %33 = math.rsqrt %32 : vector<1x128xf32>
    %34 = arith.mulf %30, %33 : vector<1x128xf32>
    %c0_11 = arith.constant 0 : index
    %c0_12 = arith.constant 0 : index
    %35 = vector.load %arg4[%c0_11, %c0_12] : memref<1x128xf32, #tpu.memory_space<vmem>>, vector<1x128xf32>
    %36 = arith.mulf %23, %34 : vector<1x128xf32>
    %37 = arith.subf %35, %36 : vector<1x128xf32>
    %38 = tpu.concatenate %34, %34, %34, %34 in 1 : vector<1x128xf32>, vector<1x128xf32>, vector<1x128xf32>, vector<1x128xf32> -> vector<1x512xf32>
    %39 = tpu.concatenate %37, %37, %37, %37 in 1 : vector<1x128xf32>, vector<1x128xf32>, vector<1x128xf32>, vector<1x128xf32> -> vector<1x512xf32>
    %40 = vector.broadcast %38 : vector<1x512xf32> to vector<32x512xf32>
    %41 = arith.mulf %2, %40 : vector<32x512xf32>
    %42 = vector.broadcast %39 : vector<1x512xf32> to vector<32x512xf32>
    %43 = arith.addf %41, %42 : vector<32x512xf32>
    %cst_13 = arith.constant 0.000000e+00 : f32
    %44 = vector.broadcast %cst_13 : f32 to vector<32x512xf32>
    %45 = arith.maximumf %43, %44 : vector<32x512xf32>
    %46 = arith.truncf %45 : vector<32x512xf32> to vector<32x512xbf16>
    %c0_14 = arith.constant 0 : index
    %c0_15 = arith.constant 0 : index
    %47 = vector.load %arg5[%c0_14, %c0_15] : memref<32x512xbf16, #tpu.memory_space<vmem>>, vector<32x512xbf16>
    tpu.vector_store %arg5[%c0_14, %c0_15], %46 {strides = array<i32>} : memref<32x512xbf16, #tpu.memory_space<vmem>>, vector<32x512xbf16>,
    return
  }
  func.func @transform_0(%arg0: i32) -> (i32, i32) {
    %c0_i32 = arith.constant 0 : i32
    %c0_i32_0 = arith.constant 0 : i32
    %c0_i32_1 = arith.constant 0 : i32
    return %c0_i32, %c0_i32_0 : i32, i32
  }
  func.func @transform_1(%arg0: i32) -> (i32, i32) {
    %c0_i32 = arith.constant 0 : i32
    %c0_i32_0 = arith.constant 0 : i32
    %c0_i32_1 = arith.constant 0 : i32
    return %c0_i32, %c0_i32_0 : i32, i32
  }
  func.func @transform_2(%arg0: i32) -> (i32, i32) {
    %c0_i32 = arith.constant 0 : i32
    %c0_i32_0 = arith.constant 0 : i32
    %c0_i32_1 = arith.constant 0 : i32
    return %c0_i32, %c0_i32_0 : i32, i32
  }
  func.func @transform_3(%arg0: i32) -> (i32, i32) {
    %c0_i32 = arith.constant 0 : i32
    %c0_i32_0 = arith.constant 0 : i32
    %c0_i32_1 = arith.constant 0 : i32
    return %c0_i32, %c0_i32_0 : i32, i32
  }
  func.func @transform_4(%arg0: i32) -> (i32, i32) {
    %c0_i32 = arith.constant 0 : i32
    %c0_i32_0 = arith.constant 0 : i32
    %c0_i32_1 = arith.constant 0 : i32
    return %c0_i32, %c0_i32_0 : i32, i32
  }
}

module attributes {stable_mosaic.version = 11 : i64} {
  func.func @_mm_bn_relu_kernel(%arg0: i32, %arg1: memref<128x512xbf16, #tpu.memory_space<vmem>>, %arg2: memref<512x512xbf16, #tpu.memory_space<vmem>>, %arg3: memref<1x128xf32, #tpu.memory_space<vmem>>, %arg4: memref<1x128xf32, #tpu.memory_space<vmem>>, %arg5: memref<128x512xbf16, #tpu.memory_space<vmem>>) attributes {dimension_semantics = [#tpu.dimension_semantics<arbitrary>], iteration_bounds = array<i64: 1>, scalar_prefetch = 0 : i64, scratch_operands = 0 : i64, tpu.core_type = #tpu.core_type<tc>, window_params = [{pipeline_mode = #tpu.pipeline_mode<synchronous>, transform_indices = @transform_0, window_bounds = array<i64: 128, 512>}, {pipeline_mode = #tpu.pipeline_mode<synchronous>, transform_indices = @transform_1, window_bounds = array<i64: 512, 512>}, {pipeline_mode = #tpu.pipeline_mode<synchronous>, transform_indices = @transform_2, window_bounds = array<i64: 1, 128>}, {pipeline_mode = #tpu.pipeline_mode<synchronous>, transform_indices = @transform_3, window_bounds = array<i64: 1, 128>}, {pipeline_mode = #tpu.pipeline_mode<synchronous>, transform_indices = @transform_4, window_bounds = array<i64: 128, 512>}]} {
    %c0 = arith.constant 0 : index
    %c0_0 = arith.constant 0 : index
    %0 = vector.load %arg1[%c0, %c0_0] : memref<128x512xbf16, #tpu.memory_space<vmem>>, vector<128x512xbf16>
    %c0_1 = arith.constant 0 : index
    %c0_2 = arith.constant 0 : index
    %1 = vector.load %arg2[%c0_1, %c0_2] : memref<512x512xbf16, #tpu.memory_space<vmem>>, vector<512x512xbf16>
    %cst = arith.constant dense<0.000000e+00> : vector<128x512xf32>
    %2 = tpu.matmul %0, %1, %cst {dimension_numbers = #tpu.dot_dimension_numbers<[1], [0], [0], [1], [0, 0, 1, 1], [], []>} : vector<128x512xbf16>, vector<512x512xbf16>, vector<128x512xf32> -> vector<128x512xf32>
    %cst_3 = arith.constant dense<0.000000e+00> : vector<512xf32>
    %3 = vector.multi_reduction <add>, %2, %cst_3 [0] : vector<128x512xf32> to vector<512xf32>
    %4 = vector.shape_cast %3 : vector<512xf32> to vector<1x512xf32>
    %5 = arith.mulf %2, %2 : vector<128x512xf32>
    %cst_4 = arith.constant dense<0.000000e+00> : vector<512xf32>
    %6 = vector.multi_reduction <add>, %5, %cst_4 [0] : vector<128x512xf32> to vector<512xf32>
    %7 = vector.shape_cast %6 : vector<512xf32> to vector<1x512xf32>
    %8 = vector.extract_strided_slice %4 {offsets = [0, 0], sizes = [1, 128], strides = [1, 1]} : vector<1x512xf32> to vector<1x128xf32>
    %9 = vector.extract_strided_slice %7 {offsets = [0, 0], sizes = [1, 128], strides = [1, 1]} : vector<1x512xf32> to vector<1x128xf32>
    %10 = vector.extract_strided_slice %4 {offsets = [0, 128], sizes = [1, 128], strides = [1, 1]} : vector<1x512xf32> to vector<1x128xf32>
    %11 = arith.addf %8, %10 : vector<1x128xf32>
    %12 = vector.extract_strided_slice %7 {offsets = [0, 128], sizes = [1, 128], strides = [1, 1]} : vector<1x512xf32> to vector<1x128xf32>
    %13 = arith.addf %9, %12 : vector<1x128xf32>
    %14 = vector.extract_strided_slice %4 {offsets = [0, 256], sizes = [1, 128], strides = [1, 1]} : vector<1x512xf32> to vector<1x128xf32>
    %15 = arith.addf %11, %14 : vector<1x128xf32>
    %16 = vector.extract_strided_slice %7 {offsets = [0, 256], sizes = [1, 128], strides = [1, 1]} : vector<1x512xf32> to vector<1x128xf32>
    %17 = arith.addf %13, %16 : vector<1x128xf32>
    %18 = vector.extract_strided_slice %4 {offsets = [0, 384], sizes = [1, 128], strides = [1, 1]} : vector<1x512xf32> to vector<1x128xf32>
    %19 = arith.addf %15, %18 : vector<1x128xf32>
    %20 = vector.extract_strided_slice %7 {offsets = [0, 384], sizes = [1, 128], strides = [1, 1]} : vector<1x512xf32> to vector<1x128xf32>
    %21 = arith.addf %17, %20 : vector<1x128xf32>
    %cst_5 = arith.constant 0.001953125 : f32
    %22 = vector.broadcast %cst_5 : f32 to vector<1x128xf32>
    %23 = arith.mulf %19, %22 : vector<1x128xf32>
    %cst_6 = arith.constant 0.001953125 : f32
    %24 = vector.broadcast %cst_6 : f32 to vector<1x128xf32>
    %25 = arith.mulf %21, %24 : vector<1x128xf32>
    %26 = arith.mulf %23, %23 : vector<1x128xf32>
    %27 = arith.subf %25, %26 : vector<1x128xf32>
    %cst_7 = arith.constant 0.000000e+00 : f32
    %28 = vector.broadcast %cst_7 : f32 to vector<1x128xf32>
    %29 = arith.maximumf %27, %28 : vector<1x128xf32>
    %c0_8 = arith.constant 0 : index
    %c0_9 = arith.constant 0 : index
    %30 = vector.load %arg3[%c0_8, %c0_9] : memref<1x128xf32, #tpu.memory_space<vmem>>, vector<1x128xf32>
    %cst_10 = arith.constant 9.99999974E-6 : f32
    %31 = vector.broadcast %cst_10 : f32 to vector<1x128xf32>
    %32 = arith.addf %29, %31 : vector<1x128xf32>
    %33 = math.rsqrt %32 : vector<1x128xf32>
    %34 = arith.mulf %30, %33 : vector<1x128xf32>
    %c0_11 = arith.constant 0 : index
    %c0_12 = arith.constant 0 : index
    %35 = vector.load %arg4[%c0_11, %c0_12] : memref<1x128xf32, #tpu.memory_space<vmem>>, vector<1x128xf32>
    %36 = arith.mulf %23, %34 : vector<1x128xf32>
    %37 = arith.subf %35, %36 : vector<1x128xf32>
    %38 = tpu.concatenate %34, %34, %34, %34 in 1 : vector<1x128xf32>, vector<1x128xf32>, vector<1x128xf32>, vector<1x128xf32> -> vector<1x512xf32>
    %39 = tpu.concatenate %37, %37, %37, %37 in 1 : vector<1x128xf32>, vector<1x128xf32>, vector<1x128xf32>, vector<1x128xf32> -> vector<1x512xf32>
    %40 = vector.broadcast %38 : vector<1x512xf32> to vector<128x512xf32>
    %41 = arith.mulf %2, %40 : vector<128x512xf32>
    %42 = vector.broadcast %39 : vector<1x512xf32> to vector<128x512xf32>
    %43 = arith.addf %41, %42 : vector<128x512xf32>
    %cst_13 = arith.constant 0.000000e+00 : f32
    %44 = vector.broadcast %cst_13 : f32 to vector<128x512xf32>
    %45 = arith.maximumf %43, %44 : vector<128x512xf32>
    %46 = arith.truncf %45 : vector<128x512xf32> to vector<128x512xbf16>
    %c0_14 = arith.constant 0 : index
    %c0_15 = arith.constant 0 : index
    %47 = vector.load %arg5[%c0_14, %c0_15] : memref<128x512xbf16, #tpu.memory_space<vmem>>, vector<128x512xbf16>
    tpu.vector_store %arg5[%c0_14, %c0_15], %46 {strides = array<i32>} : memref<128x512xbf16, #tpu.memory_space<vmem>>, vector<128x512xbf16>,
    return
  }
  func.func @transform_0(%arg0: i32) -> (i32, i32) {
    %c0_i32 = arith.constant 0 : i32
    %c0_i32_0 = arith.constant 0 : i32
    %c0_i32_1 = arith.constant 0 : i32
    return %c0_i32, %c0_i32_0 : i32, i32
  }
  func.func @transform_1(%arg0: i32) -> (i32, i32) {
    %c0_i32 = arith.constant 0 : i32
    %c0_i32_0 = arith.constant 0 : i32
    %c0_i32_1 = arith.constant 0 : i32
    return %c0_i32, %c0_i32_0 : i32, i32
  }
  func.func @transform_2(%arg0: i32) -> (i32, i32) {
    %c0_i32 = arith.constant 0 : i32
    %c0_i32_0 = arith.constant 0 : i32
    %c0_i32_1 = arith.constant 0 : i32
    return %c0_i32, %c0_i32_0 : i32, i32
  }
  func.func @transform_3(%arg0: i32) -> (i32, i32) {
    %c0_i32 = arith.constant 0 : i32
    %c0_i32_0 = arith.constant 0 : i32
    %c0_i32_1 = arith.constant 0 : i32
    return %c0_i32, %c0_i32_0 : i32, i32
  }
  func.func @transform_4(%arg0: i32) -> (i32, i32) {
    %c0_i32 = arith.constant 0 : i32
    %c0_i32_0 = arith.constant 0 : i32
    %c0_i32_1 = arith.constant 0 : i32
    return %c0_i32, %c0_i32_0 : i32, i32
  }
}

module attributes {stable_mosaic.version = 11 : i64} {
  func.func @_mm_bias_kernel(%arg0: i32, %arg1: memref<256x1152xbf16, #tpu.memory_space<vmem>>, %arg2: memref<1152x128xbf16, #tpu.memory_space<vmem>>, %arg3: memref<1x128xf32, #tpu.memory_space<vmem>>, %arg4: memref<256x128xf32, #tpu.memory_space<vmem>>) attributes {dimension_semantics = [#tpu.dimension_semantics<parallel>], iteration_bounds = array<i64: 2>, scalar_prefetch = 0 : i64, scratch_operands = 0 : i64, tpu.core_type = #tpu.core_type<tc>, window_params = [{transform_indices = @transform_0, window_bounds = array<i64: 256, 1152>}, {pipeline_mode = #tpu.pipeline_mode<synchronous>, transform_indices = @transform_1, window_bounds = array<i64: 1152, 128>}, {pipeline_mode = #tpu.pipeline_mode<synchronous>, transform_indices = @transform_2, window_bounds = array<i64: 1, 128>}, {transform_indices = @transform_3, window_bounds = array<i64: 256, 128>}]} {
    %c0 = arith.constant 0 : index
    %c0_0 = arith.constant 0 : index
    %0 = vector.load %arg1[%c0, %c0_0] : memref<256x1152xbf16, #tpu.memory_space<vmem>>, vector<256x1152xbf16>
    %c0_1 = arith.constant 0 : index
    %c0_2 = arith.constant 0 : index
    %1 = vector.load %arg2[%c0_1, %c0_2] : memref<1152x128xbf16, #tpu.memory_space<vmem>>, vector<1152x128xbf16>
    %cst = arith.constant dense<0.000000e+00> : vector<256x128xf32>
    %2 = tpu.matmul %0, %1, %cst {dimension_numbers = #tpu.dot_dimension_numbers<[1], [0], [0], [1], [0, 0, 1, 1], [], []>} : vector<256x1152xbf16>, vector<1152x128xbf16>, vector<256x128xf32> -> vector<256x128xf32>
    %c0_3 = arith.constant 0 : index
    %c0_4 = arith.constant 0 : index
    %3 = vector.load %arg3[%c0_3, %c0_4] : memref<1x128xf32, #tpu.memory_space<vmem>>, vector<1x128xf32>
    %4 = vector.broadcast %3 : vector<1x128xf32> to vector<256x128xf32>
    %5 = arith.addf %2, %4 : vector<256x128xf32>
    %6 = math.tanh %5 : vector<256x128xf32>
    %c0_5 = arith.constant 0 : index
    %c0_6 = arith.constant 0 : index
    %7 = vector.load %arg4[%c0_5, %c0_6] : memref<256x128xf32, #tpu.memory_space<vmem>>, vector<256x128xf32>
    tpu.vector_store %arg4[%c0_5, %c0_6], %6 {strides = array<i32>} : memref<256x128xf32, #tpu.memory_space<vmem>>, vector<256x128xf32>,
    return
  }
  func.func @transform_0(%arg0: i32) -> (i32, i32) {
    %c0_i32 = arith.constant 0 : i32
    %c0_i32_0 = arith.constant 0 : i32
    return %arg0, %c0_i32 : i32, i32
  }
  func.func @transform_1(%arg0: i32) -> (i32, i32) {
    %c0_i32 = arith.constant 0 : i32
    %c0_i32_0 = arith.constant 0 : i32
    %c0_i32_1 = arith.constant 0 : i32
    return %c0_i32, %c0_i32_0 : i32, i32
  }
  func.func @transform_2(%arg0: i32) -> (i32, i32) {
    %c0_i32 = arith.constant 0 : i32
    %c0_i32_0 = arith.constant 0 : i32
    %c0_i32_1 = arith.constant 0 : i32
    return %c0_i32, %c0_i32_0 : i32, i32
  }
  func.func @transform_3(%arg0: i32) -> (i32, i32) {
    %c0_i32 = arith.constant 0 : i32
    %c0_i32_0 = arith.constant 0 : i32
    return %arg0, %c0_i32 : i32, i32
  }
}

</mosaic_0001>

<bundles_post_ra>
// kernel: forward.8
= control target key start
LH: loop header
LB: loop body
LE: loop exit
PB: predicated region body
PF: predicated region fallthrough
CT: control target
= control target key end

     0   :  { %s1691_s1 = inlined_call_operand.vmem [shape: bf16[1152,128], index: 1, kind: input, shape index: {}]   ;;  %s1692_s0 = inlined_call_operand.vmem [shape: bf16[32,1152], index: 0, kind: input, shape index: {}]   ;;  %s1693_s2 = inlined_call_operand.vmem [shape: f32[1,128], index: 2, kind: input, shape index: {}]   ;;  %s1694_s3 = inlined_call_operand.vmem [shape: f32[1,128], index: 3, kind: input, shape index: {}]   ;;  %s1695_s4 = inlined_call_operand.vmem [shape: bf16[32,128], index: 4, kind: output, shape index: {}]  }
   0x1   :  { %v1284_v0 = vld [vmem:[%s1691_s1 + $0x40] sm:$0xff]   ;;  %v1288_v4 = vld [vmem:[%s1691_s1 + $0x48] sm:$0xff]   ;;  %v1292_v8 = vld [vmem:[%s1691_s1 + $0x50] sm:$0xff]  }
   0x2   :  { %v1285_v1 = vld [vmem:[%s1691_s1 + $0xc0] sm:$0xff]   ;;  %1142 = vmatprep.subr.bf16.mxu0 %v1284_v0  ;;  %v1289_v5 = vld [vmem:[%s1691_s1 + $0xc8] sm:$0xff]   ;;  %v1293_v9 = vld [vmem:[%s1691_s1 + $0xd0] sm:$0xff]  }
   0x3   :  { %v1286_v2 = vld [vmem:[%s1691_s1] sm:$0xff]   ;;  %1170 = vmatprep.subr.bf16.mxu1 %v1285_v1  ;;  %v1290_v6 = vld [vmem:[%s1691_s1 + $0x8] sm:$0xff]   ;;  %v1294_v10 = vld [vmem:[%s1691_s1 + $0x10] sm:$0xff]  }
   0x4   :  { %v1287_v3 = vld [vmem:[%s1691_s1 + $0x80] sm:$0xff]   ;;  %1143 = vmatpush3.bf16.msra.mxu0 %v1286_v2  ;;  %v1291_v7 = vld [vmem:[%s1691_s1 + $0x88] sm:$0xff]   ;;  %v1295_v11 = vld [vmem:[%s1691_s1 + $0x90] sm:$0xff]  }
   0x5   :  { %1171 = vmatpush3.bf16.msra.mxu1 %v1287_v3  ;;  %1144 = vmatprep.subr.bf16.mxu0 %v1288_v4  ;;  %v1296_v12 = vld [vmem:[%s1691_s1 + $0x58] sm:$0xff]   ;;  %v1300_v16 = vld [vmem:[%s1691_s1 + $0x60] sm:$0xff]   ;;  %v1304_v20 = vld [vmem:[%s1691_s1 + $0x68] sm:$0xff]  }
   0x6   :  { %1172 = vmatprep.subr.bf16.mxu1 %v1289_v5  ;;  %v1297_v13 = vld [vmem:[%s1691_s1 + $0xd8] sm:$0xff]   ;;  %v1301_v17 = vld [vmem:[%s1691_s1 + $0xe0] sm:$0xff]   ;;  %v1305_v21 = vld [vmem:[%s1691_s1 + $0xe8] sm:$0xff]  }
   0x7   :  { %v1298_v14 = vld [vmem:[%s1691_s1 + $0x18] sm:$0xff]   ;;  %v1302_v18 = vld [vmem:[%s1691_s1 + $0x20] sm:$0xff]   ;;  %v1306_v22 = vld [vmem:[%s1691_s1 + $0x28] sm:$0xff]  }
   0x8   :  { %1145 = vmatpush3.bf16.msra.mxu0 %v1290_v6  ;;  %v1299_v15 = vld [vmem:[%s1691_s1 + $0x98] sm:$0xff]   ;;  %v1303_v19 = vld [vmem:[%s1691_s1 + $0xa0] sm:$0xff]   ;;  %v1307_v23 = vld [vmem:[%s1691_s1 + $0xa8] sm:$0xff]  }
   0x9   :  { %1173 = vmatpush3.bf16.msra.mxu1 %v1291_v7  ;;  %1146 = vmatprep.subr.bf16.mxu0 %v1292_v8  ;;  %v1308_v24 = vld [vmem:[%s1691_s1 + $0x70] sm:$0xff]   ;;  %v1312_v28 = vld [vmem:[%s1691_s1 + $0x78] sm:$0xff]   ;;  %v1316_v32 = vld [vmem:[%s1692_s0] ss:$36 sps:$4 sm:$0xff]  }
   0xa   :  { %1174 = vmatprep.subr.bf16.mxu1 %v1293_v9  ;;  %v1309_v25 = vld [vmem:[%s1691_s1 + $0xf0] sm:$0xff]   ;;  %v1313_v29 = vld [vmem:[%s1691_s1 + $0xf8] sm:$0xff]   ;;  %v1318_v33 = vld [vmem:[%s1692_s0 + $0x4] ss:$36 sps:$4 sm:$0xff]  }
   0xb   :  { %v1310_v26 = vld [vmem:[%s1691_s1 + $0x30] sm:$0xff]   ;;  %v1314_v30 = vld [vmem:[%s1691_s1 + $0x38] sm:$0xff]   ;;  %v1319_v34 = vld [vmem:[%s1692_s0 + $0x8] ss:$36 sps:$4 sm:$0xff]   ;;  %738 = vmatprep.mubr.bf16.mxu0 %v1318_v33 }
   0xc   :  { %1147 = vmatpush3.bf16.msra.mxu0 %v1294_v10  ;;  %v1311_v27 = vld [vmem:[%s1691_s1 + $0xb0] sm:$0xff]   ;;  %v1315_v31 = vld [vmem:[%s1691_s1 + $0xb8] sm:$0xff]   ;;  %v1322_v36 = vld [vmem:[%s1691_s1 + $0x140] sm:$0xff]  }
   0xd   :  { %1175 = vmatpush3.bf16.msra.mxu1 %v1295_v11  ;;  %1148 = vmatprep.subr.bf16.mxu0 %v1296_v12  ;;  %v1321_v35 = vld [vmem:[%s1692_s0 + $0xc] ss:$36 sps:$4 sm:$0xff]   ;;  %v1323_v37 = vld [vmem:[%s1691_s1 + $0x100] sm:$0xff]   ;;  %v1334_v48 = vld [vmem:[%s1691_s1 + $0x158] sm:$0xff]  }
   0xe   :  { %1176 = vmatprep.subr.bf16.mxu1 %v1297_v13  ;;  %787 = vmatprep.mubr.bf16.mxu1 %v1321_v35  ;;  %v1324_v38 = vld [vmem:[%s1691_s1 + $0x1c0] sm:$0xff]   ;;  %v1326_v40 = vld [vmem:[%s1691_s1 + $0x148] sm:$0xff]   ;;  %v1330_v44 = vld [vmem:[%s1691_s1 + $0x150] sm:$0xff]  }
   0xf   :  { %v1325_v39 = vld [vmem:[%s1691_s1 + $0x180] sm:$0xff]   ;;  %v1327_v41 = vld [vmem:[%s1691_s1 + $0x108] sm:$0xff]   ;;  %v1331_v45 = vld [vmem:[%s1691_s1 + $0x110] sm:$0xff]  }
  0x10   :  { %1149 = vmatpush3.bf16.msra.mxu0 %v1298_v14  ;;  %v1328_v42 = vld [vmem:[%s1691_s1 + $0x1c8] sm:$0xff]   ;;  %v1332_v46 = vld [vmem:[%s1691_s1 + $0x1d0] sm:$0xff]   ;;  %v1335_v49 = vld [vmem:[%s1691_s1 + $0x118] sm:$0xff]  }
  0x11   :  { %1177 = vmatpush3.bf16.msra.mxu1 %v1299_v15  ;;  %1150 = vmatprep.subr.bf16.mxu0 %v1300_v16  ;;  %v1329_v43 = vld [vmem:[%s1691_s1 + $0x188] sm:$0xff]   ;;  %v1333_v47 = vld [vmem:[%s1691_s1 + $0x190] sm:$0xff]   ;;  %v1336_v50 = vld [vmem:[%s1691_s1 + $0x1d8] sm:$0xff]  }
  0x12   :  { %1178 = vmatprep.subr.bf16.mxu1 %v1301_v17  ;;  %v1337_v51 = vld [vmem:[%s1691_s1 + $0x198] sm:$0xff]   ;;  %v1338_v52 = vld [vmem:[%s1691_s1 + $0x160] sm:$0xff]   ;;  %v1342_v56 = vld [vmem:[%s1691_s1 + $0x168] sm:$0xff]  }
  0x13   :  { %v1339_v53 = vld [vmem:[%s1691_s1 + $0x120] sm:$0xff]   ;;  %v1343_v57 = vld [vmem:[%s1692_s0 + $0x4c] ss:$36 sps:$4 sm:$0xff]   ;;  %v1345_v58 = vld [vmem:[%s1692_s0 + $0x54] ss:$36 sps:$4 sm:$0xff]  }
  0x14   :  { %1151 = vmatpush3.bf16.msra.mxu0 %v1302_v18  ;;  %v1340_v54 = vld [vmem:[%s1691_s1 + $0x1e0] sm:$0xff]   ;;  %v1347_v59 = vld [vmem:[%s1691_s1 + $0x128] sm:$0xff]   ;;  %v1349_v61 = vld [vmem:[%s1692_s0 + $0x50] ss:$36 sps:$4 sm:$0xff]  }
  0x15   :  { %1179 = vmatpush3.bf16.msra.mxu1 %v1303_v19  ;;  %1152 = vmatprep.subr.bf16.mxu0 %v1304_v20  ;;  %v1341_v55 = vld [vmem:[%s1691_s1 + $0x1a0] sm:$0xff]   ;;  %v1348_v60 = vld [vmem:[%s1692_s0 + $0x48] ss:$36 sps:$4 sm:$0xff]   ;;  %v1352_v0 = vld [vmem:[%s1691_s1 + $0x170] sm:$0xff]  }
  0x16   :  { %1180 = vmatprep.subr.bf16.mxu1 %v1305_v21  ;;  %v1350_v62 = vld [vmem:[%s1691_s1 + $0x1e8] sm:$0xff]   ;;  %v1353_v1 = vld [vmem:[%s1691_s1 + $0x130] sm:$0xff]   ;;  %v1356_v4 = vld [vmem:[%s1691_s1 + $0x178] sm:$0xff]  }
  0x17   :  { %v1351_v63 = vld [vmem:[%s1691_s1 + $0x1a8] sm:$0xff]   ;;  %v1354_v2 = vld [vmem:[%s1691_s1 + $0x1f0] sm:$0xff]   ;;  %v1357_v5 = vld [vmem:[%s1691_s1 + $0x138] sm:$0xff]  }
  0x18   :  { %1153 = vmatpush3.bf16.msra.mxu0 %v1306_v22  ;;  %v1355_v3 = vld [vmem:[%s1691_s1 + $0x1b0] sm:$0xff]   ;;  %v1358_v6 = vld [vmem:[%s1691_s1 + $0x1f8] sm:$0xff]   ;;  %v1363_v10 = vld [vmem:[%s1691_s1 + $0x200] sm:$0xff]  }
  0x19   :  { %1181 = vmatpush3.bf16.msra.mxu1 %v1307_v23  ;;  %1154 = vmatprep.subr.bf16.mxu0 %v1308_v24  ;;  %v1359_v7 = vld [vmem:[%s1692_s0 + $0x10] ss:$36 sps:$4 sm:$0xff]   ;;  %v1362_v9 = vld [vmem:[%s1691_s1 + $0x1b8] sm:$0xff]   ;;  %v1367_v13 = vld [vmem:[%s1691_s1 + $0x208] sm:$0xff]  }
  0x1a   :  { %1182 = vmatprep.subr.bf16.mxu1 %v1309_v25  ;;  %v1361_v8 = vld [vmem:[%s1692_s0 + $0x14] ss:$36 sps:$4 sm:$0xff]   ;;  %v1366_v12 = vld [vmem:[%s1692_s0 + $0x1c] ss:$36 sps:$4 sm:$0xff]   ;;  %v1372_v17 = vld [vmem:[%s1692_s0 + $0x64] ss:$36 sps:$4 sm:$0xff]  }
  0x1b   :  { %v1364_v11 = vld [vmem:[%s1692_s0 + $0x18] ss:$36 sps:$4 sm:$0xff]   ;;  %v1371_v16 = vld [vmem:[%s1691_s1 + $0x210] sm:$0xff]   ;;  %v1374_v18 = vld [vmem:[%s1692_s0 + $0x60] ss:$36 sps:$4 sm:$0xff]  }
  0x1c   :  { %1155 = vmatpush3.bf16.msra.mxu0 %v1310_v26  ;;  %v1368_v14 = vld [vmem:[%s1692_s0 + $0x5c] ss:$36 sps:$4 sm:$0xff]   ;;  %v1377_v22 = vld [vmem:[%s1691_s1 + $0x228] sm:$0xff]   ;;  %v1378_v23 = vld [vmem:[%s1691_s1 + $0x230] sm:$0xff]  }
  0x1d   :  { %1183 = vmatpush3.bf16.msra.mxu1 %v1311_v27  ;;  %1156 = vmatprep.subr.bf16.mxu0 %v1312_v28  ;;  %v1370_v15 = vld [vmem:[%s1692_s0 + $0x58] ss:$36 sps:$4 sm:$0xff]   ;;  %v1376_v20 = vld [vmem:[%s1691_s1 + $0x220] sm:$0xff]   ;;  %v1381_v25 = vld [vmem:[%s1692_s0 + $0x68] ss:$36 sps:$4 sm:$0xff]  }
  0x1e   :  { %1184 = vmatprep.subr.bf16.mxu1 %v1313_v29  ;;  %v1375_v19 = vld [vmem:[%s1691_s1 + $0x218] sm:$0xff]   ;;  %v1380_v21 = vld [vmem:[%s1692_s0 + $0x20] ss:$36 sps:$4 sm:$0xff]  }
  0x1f   :  { %v1379_v24 = vld [vmem:[%s1691_s1 + $0x238] sm:$0xff]  }
  0x20   :  { %1157 = vmatpush3.bf16.msra.mxu0 %v1314_v30 }
  0x21   :  { %1185 = vmatpush3.bf16.msra.mxu1 %v1315_v31  ;;  %1198 = vmatprep.subr.bf16.mxu0 %v1322_v36 }
  0x22   :  { %1226 = vmatprep.subr.bf16.mxu1 %v1324_v38 }
  0x23   :  { %739 = vmatmul.mubr.bf16.vlgmr.msra.gmra.mrb[0].mxu0 %v1316_v32 }
  0x24   :  { %788 = vmatmul.mubr.bf16.vlgmr.msra.gmra.mrb[0].mxu1 %v1319_v34  ;;  %1199 = vmatpush3.bf16.msra.mxu0 %v1323_v37 }
  0x25   :  { %1227 = vmatpush3.bf16.msra.mxu1 %v1325_v39  ;;  %1200 = vmatprep.subr.bf16.mxu0 %v1326_v40 }
  0x26   :  { %1228 = vmatprep.subr.bf16.mxu1 %v1328_v42  ;;  %746 = vmatprep.mubr.bf16.mxu0 %v1343_v57 }
  0x27   :  { %795 = vmatprep.mubr.bf16.mxu1 %v1345_v58 }
  0x28   :  { %1201 = vmatpush3.bf16.msra.mxu0 %v1327_v41 }
  0x29   :  { %1229 = vmatpush3.bf16.msra.mxu1 %v1329_v43  ;;  %1202 = vmatprep.subr.bf16.mxu0 %v1330_v44 }
  0x2a   :  { %1230 = vmatprep.subr.bf16.mxu1 %v1332_v46 }
  0x2b   :  { %747 = vmatmul.mubr.bf16.gmra.mrb[4].mxu0 %v1348_v60 }
  0x2c   :  { %1203 = vmatpush3.bf16.msra.mxu0 %v1331_v45  ;;  %796 = vmatmul.mubr.bf16.gmra.mrb[4].mxu1 %v1349_v61 }
  0x2d   :  { %1231 = vmatpush3.bf16.msra.mxu1 %v1333_v47  ;;  %1204 = vmatprep.subr.bf16.mxu0 %v1334_v48 }
  0x2e   :  { %1232 = vmatprep.subr.bf16.mxu1 %v1336_v50  ;;  %836 = vmatprep.mubr.bf16.mxu0 %v1361_v8 }
  0x2f   :  { %885 = vmatprep.mubr.bf16.mxu1 %v1366_v12 }
  0x30   :  { %1205 = vmatpush3.bf16.msra.mxu0 %v1335_v49 }
  0x31   :  { %1233 = vmatpush3.bf16.msra.mxu1 %v1337_v51  ;;  %1206 = vmatprep.subr.bf16.mxu0 %v1338_v52 }
  0x32   :  { %1234 = vmatprep.subr.bf16.mxu1 %v1340_v54 }
  0x34   :  { %1207 = vmatpush3.bf16.msra.mxu0 %v1339_v53 }
  0x35   :  { %1235 = vmatpush3.bf16.msra.mxu1 %v1341_v55  ;;  %1208 = vmatprep.subr.bf16.mxu0 %v1342_v56 }
  0x36   :  { %1236 = vmatprep.subr.bf16.mxu1 %v1350_v62 }
  0x38   :  { %1209 = vmatpush3.bf16.msra.mxu0 %v1347_v59 }
  0x39   :  { %1237 = vmatpush3.bf16.msra.mxu1 %v1351_v63  ;;  %1210 = vmatprep.subr.bf16.mxu0 %v1352_v0 }
  0x3a   :  { %1238 = vmatprep.subr.bf16.mxu1 %v1354_v2 }
  0x3c   :  { %1211 = vmatpush3.bf16.msra.mxu0 %v1353_v1 }
  0x3d   :  { %1239 = vmatpush3.bf16.msra.mxu1 %v1355_v3  ;;  %1212 = vmatprep.subr.bf16.mxu0 %v1356_v4 }
  0x3e   :  { %1240 = vmatprep.subr.bf16.mxu1 %v1358_v6 }
  0x40   :  { %1213 = vmatpush3.bf16.msra.mxu0 %v1357_v5 }
  0x41   :  { %1241 = vmatpush3.bf16.msra.mxu1 %v1362_v9  ;;  %1264 = vmatprep.subr.bf16.mxu0 %v1363_v10 }
  0x43   :  { %837 = vmatmul.mubr.bf16.vlgmr.msra.gmra.mrb[8].mxu0 %v1359_v7 }
  0x44   :  { %1265 = vmatpush3.bf16.msra.mxu0 %v1363_v10  ;;  %886 = vmatmul.mubr.bf16.vlgmr.msra.gmra.mrb[8].mxu1 %v1364_v11 }
  0x45   :  { %1266 = vmatprep.subr.bf16.mxu0 %v1367_v13  ;;  %844 = vmatprep.mubr.bf16.mxu0 %v1368_v14 }
  0x46   :  { %893 = vmatprep.mubr.bf16.mxu1 %v1372_v17 }
  0x48   :  { %1267 = vmatpush3.bf16.msra.mxu0 %v1367_v13 }
  0x49   :  { %1268 = vmatprep.subr.bf16.mxu0 %v1371_v16 }
  0x4b   :  { %845 = vmatmul.mubr.bf16.gmra.mrb[12].mxu0 %v1370_v15 }
  0x4c   :  { %1269 = vmatpush3.bf16.msra.mxu0 %v1371_v16  ;;  %894 = vmatmul.mubr.bf16.gmra.mrb[12].mxu1 %v1374_v18 }
  0x4d   :  { %1270 = vmatprep.subr.bf16.mxu0 %v1375_v19  ;;  %1280 = vmatprep.mubr.bf16.mxu0 %v1380_v21 }
  0x50   :  { %1271 = vmatpush3.bf16.msra.mxu0 %v1375_v19 }
  0x51   :  { %1272 = vmatprep.subr.bf16.mxu0 %v1376_v20 }
  0x54   :  { %1273 = vmatpush3.bf16.msra.mxu0 %v1376_v20 }
  0x55   :  { %1274 = vmatprep.subr.bf16.mxu0 %v1377_v22 }
  0x58   :  { %1275 = vmatpush3.bf16.msra.mxu0 %v1377_v22 }
  0x59   :  { %1276 = vmatprep.subr.bf16.mxu0 %v1378_v23 }
  0x5c   :  { %1277 = vmatpush3.bf16.msra.mxu0 %v1378_v23 }
  0x5d   :  { %1278 = vmatprep.subr.bf16.mxu0 %v1379_v24 }
  0x60   :  { %1279 = vmatpush3.bf16.msra.mxu0 %v1379_v24 }
  0x63   :  { %1281 = vmatmul.mubr.bf16.vlgmr.msra.gmra.mrb[16].mxu0 %v1381_v25 }
  0xf6   :  { %v1158_v26 = vpop.f32.mrb[0].mxu0 }
  0xf7   :  { %v1186_v27 = vpop.f32.mrb[0].mxu1  ;;  %v1159_v28 = vpop.f32.mrb[1].mxu0 }
  0xf8   :  { %v1160_v29 = vadd.f32 %v1159_v28, %v1158_v26  ;;  %v1187_v30 = vpop.f32.mrb[1].mxu1  ;;  %v1161_v31 = vpop.f32.mrb[2].mxu0 }
  0xf9   :  { %v1188_v32 = vadd.f32 %v1187_v30, %v1186_v27  ;;  %v1189_v33 = vpop.f32.mrb[2].mxu1  ;;  %v1162_v34 = vpop.f32.mrb[3].mxu0 }
  0xfa   :  { %v1163_v35 = vadd.f32 %v1162_v34, %v1161_v31  ;;  %v1190_v36 = vpop.f32.mrb[3].mxu1 }
  0xfb   :  { %v790_v37 = vadd.f32 %v1188_v32, %v1160_v29  ;;  %v1191_v38 = vadd.f32 %v1190_v36, %v1189_v33 }
  0xfd   :  { %v793_v39 = vadd.f32 %v1191_v38, %v1163_v35 }
  0xfe   :  { %v1164_v40 = vpop.f32.mrb[4].mxu0 }
  0xff   :  { %v1192_v41 = vpop.f32.mrb[4].mxu1  ;;  %v1165_v42 = vpop.f32.mrb[5].mxu0 }
 0x100   :  { %v1193_v43 = vpop.f32.mrb[5].mxu1  ;;  %v1166_v44 = vadd.f32 %v1165_v42, %v1164_v40  ;;  %v1167_v46 = vpop.f32.mrb[6].mxu0 }
 0x101   :  { %v1194_v45 = vadd.f32 %v1193_v43, %v1192_v41  ;;  %v1195_v47 = vpop.f32.mrb[6].mxu1  ;;  %v1168_v48 = vpop.f32.mrb[7].mxu0 }
 0x102   :  { %v1196_v49 = vpop.f32.mrb[7].mxu1  ;;  %v1169_v51 = vadd.f32 %v1168_v48, %v1167_v46 }
 0x103   :  { %v798_v50 = vadd.f32 %v1194_v45, %v1166_v44  ;;  %v1197_v52 = vadd.f32 %v1196_v49, %v1195_v47 }
 0x105   :  { %v801_v53 = vadd.f32 %v1197_v52, %v1169_v51 }
 0x116   :  { %v1214_v54 = vpop.f32.mrb[8].mxu0 }
 0x117   :  { %v1215_v55 = vpop.f32.mrb[9].mxu0  ;;  %v1242_v58 = vpop.f32.mrb[8].mxu1 }
 0x118   :  { %v1216_v56 = vadd.f32 %v1215_v55, %v1214_v54  ;;  %v1217_v57 = vpop.f32.mrb[10].mxu0  ;;  %v1243_v62 = vpop.f32.mrb[9].mxu1 }
 0x119   :  { %v1218_v59 = vpop.f32.mrb[11].mxu0  ;;  %v1244_v63 = vadd.f32 %v1243_v62, %v1242_v58  ;;  %v1245_v0 = vpop.f32.mrb[10].mxu1  ;;  %v986_v58 = vlaneseq }
 0x11a   :  { %v839_v60 = vadd.f32 %v1216_v56, %v790_v37  ;;  %v1219_v61 = vadd.f32 %v1218_v59, %v1217_v57  ;;  %v1246_v2 = vpop.f32.mrb[11].mxu1 }
 0x11b   :  { %v1247_v3 = vadd.f32 %v1246_v2, %v1245_v0  ;;  %v987_v59 = vshrl.u32 %v986_v58, 7  ;;  %v982_v0 = vld [vmem:[%s1694_s3] sm:$0x1] }
 0x11c   :  { %v842_v1 = vadd.f32 %v1219_v61, %v793_v39  ;;  %v888_v4 = vadd.f32 %v1244_v63, %v839_v60  ;;  %v978_v60 = vld [vmem:[%s1693_s2] sm:$0x1] }
 0x11d   :  { %v988_v61 = vsub.s32 0, %v987_v59 }
 0x11e   :  { %v1220_v5 = vpop.f32.mrb[12].mxu0  ;;  %v891_v7 = vadd.f32 %v1247_v3, %v842_v1 }
 0x11f   :  { %v1221_v6 = vpop.f32.mrb[13].mxu0  ;;  %v1248_v10 = vpop.f32.mrb[12].mxu1 }
 0x120   :  { %v1222_v8 = vadd.f32 %v1221_v6, %v1220_v5  ;;  %v1223_v9 = vpop.f32.mrb[14].mxu0  ;;  %v1249_v14 = vpop.f32.mrb[13].mxu1 }
 0x121   :  { %v1224_v11 = vpop.f32.mrb[15].mxu0  ;;  %v1250_v15 = vadd.f32 %v1249_v14, %v1248_v10  ;;  %v1251_v16 = vpop.f32.mrb[14].mxu1 }
 0x122   :  { %v847_v12 = vadd.f32 %v1222_v8, %v798_v50  ;;  %v1225_v13 = vadd.f32 %v1224_v11, %v1223_v9  ;;  %v1252_v18 = vpop.f32.mrb[15].mxu1 }
 0x123   :  { %v1253_v19 = vadd.f32 %v1252_v18, %v1251_v16 }
 0x124   :  { %v850_v17 = vadd.f32 %v1225_v13, %v801_v53  ;;  %v896_v20 = vadd.f32 %v1250_v15, %v847_v12 }
 0x126   :  { %v899_v21 = vadd.f32 %v1253_v19, %v850_v17 }
 0x136   :  { %v1282_v22 = vpop.f32.mrb[16].mxu0 }
 0x137   :  { %v945_v23 = vadd.f32 %v1282_v22, %v896_v20  ;;  %v936_v24 = vpop.f32.mrb[17].mxu0 }
 0x138   :  { %v937_v25 = vadd.f32 %v936_v24, %v888_v4  ;;  %v1283_v26 = vpop.f32.mrb[18].mxu0 }
 0x139   :  { %v948_v27 = vadd.f32 %v1283_v26, %v899_v21  ;;  %v939_v28 = vpop.f32.mrb[19].mxu0  ;;  %v962_v33 = vmul.f32 %v945_v23, %v945_v23 }
 0x13a   :  { %v940_v29 = vadd.f32 %v939_v28, %v891_v7  ;;  %v960_v30 = vmul.f32 %v937_v25, %v937_v25 }
 0x13b   :  { %v963_v36 = vmul.f32 %v948_v27, %v948_v27 }
 0x13c   :  { %v951_v31 = vadd.f32 %v940_v29, %v937_v25  ;;  %v961_v32 = vmul.f32 %v940_v29, %v940_v29 }
 0x13e   :  { %v952_v34 = vadd.f32 %v951_v31, %v945_v23  ;;  %v964_v35 = vadd.f32 %v961_v32, %v960_v30 }
 0x140   :  { %v953_v37 = vadd.f32 %v952_v34, %v948_v27  ;;  %v965_v38 = vadd.f32 %v964_v35, %v962_v33 }
 0x142   :  { %v954_v39 = vrot.slane %v953_v37, 4  ;;  %v966_v40 = vadd.f32 %v965_v38, %v963_v36 }
 0x144   :  { %v955_v41 = vadd.f32 %v954_v39, %v953_v37  ;;  %v967_v42 = vrot.slane %v966_v40, 4 }
 0x146   :  { %v956_v43 = vrot.slane %v955_v41, 2  ;;  %v968_v44 = vadd.f32 %v967_v42, %v966_v40 }
 0x148   :  { %v957_v45 = vadd.f32 %v956_v43, %v955_v41  ;;  %v969_v46 = vrot.slane %v968_v44, 2 }
 0x14a   :  { %v958_v47 = vrot.slane %v957_v45, 1  ;;  %v970_v48 = vadd.f32 %v969_v46, %v968_v44 }
 0x14c   :  { %v959_v49 = vadd.f32 %v958_v47, %v957_v45  ;;  %v971_v50 = vrot.slane %v970_v48, 1 }
 0x14e   :  { %v972_v51 = vadd.f32 %v971_v50, %v970_v48  ;;  %v973_v52 = vmul.f32 0.03125, %v959_v49 }
 0x150   :  { %v974_v53 = vmul.f32 0.03125, %v972_v51  ;;  %v975_v54 = vmul.f32 %v973_v52, %v973_v52 }
 0x152   :  { %v976_v55 = vsub.f32 %v974_v53, %v975_v54 }
 0x154   :  { %v977_v56 = vmax.f32 %v976_v55, 0.0 }
 0x156   :  { %v979_v57 = vadd.f32 1e-05, %v977_v56 }
 0x158   :  { %1382 = vrsqrt.f32 %v979_v57 }
 0x162   :  { %v1383_v62 = vpop.eup %1382 }
 0x163   :  { %v981_v63 = vmul.f32 %v1383_v62, %v978_v60 }
 0x165   :  { %v983_v1 = vmul.f32 %v981_v63, %v973_v52  ;;  %v989_v2 = vrot.slane %v981_v63, %v988_v61 }
 0x167   :  { %v984_v3 = vsub.f32 %v982_v0, %v983_v1  ;;  %v991_v4 = vmul.f32 %v989_v2, %v937_v25  ;;  %v992_v5 = vmul.f32 %v989_v2, %v940_v29  ;;  %v993_v6 = vmul.f32 %v989_v2, %v945_v23 }
 0x168   :  { %v994_v7 = vmul.f32 %v989_v2, %v948_v27 }
 0x169   :  { %v999_v8 = vrot.slane %v984_v3, %v988_v61 }
 0x16b   :  { %v1001_v9 = vadd.f32 %v999_v8, %v991_v4  ;;  %v1002_v10 = vadd.f32 %v999_v8, %v992_v5  ;;  %v1003_v11 = vadd.f32 %v999_v8, %v993_v6  ;;  %v1004_v12 = vadd.f32 %v999_v8, %v994_v7 }
 0x16d   :  { %v1005_v13 = vmax.f32 %v1001_v9, 0.0  ;;  %v1006_v14 = vmax.f32 %v1002_v10, 0.0  ;;  %v1007_v15 = vmax.f32 %v1003_v11, 0.0  ;;  %v1008_v16 = vmax.f32 %v1004_v12, 0.0 }
 0x16f   :  { %v1134_v17 = vpack.c.bf16 %v1006_v14, %v1005_v13  ;;  %v1139_v18 = vpack.c.bf16 %v1008_v16, %v1007_v15 }
 0x171   :  { %1135 = vst [vmem:[%s1695_s4] sm:$0xff] %v1134_v17   ;;  %1141 = vst [vmem:[%s1695_s4 + $0x8] sm:$0xff] %v1139_v18  }

// kernel: forward.7
= control target key start
LH: loop header
LB: loop body
LE: loop exit
PB: predicated region body
PF: predicated region fallthrough
CT: control target
= control target key end

     0   :  { %s3120_s1 = inlined_call_operand.vmem [shape: bf16[1152,128], index: 1, kind: input, shape index: {}]   ;;  %s3121_s0 = inlined_call_operand.vmem [shape: bf16[128,1152], index: 0, kind: input, shape index: {}]   ;;  %s3122_s2 = inlined_call_operand.vmem [shape: f32[1,128], index: 2, kind: input, shape index: {}]   ;;  %s3123_s3 = inlined_call_operand.vmem [shape: f32[1,128], index: 3, kind: input, shape index: {}]   ;;  %s3124_s4 = inlined_call_operand.vmem [shape: bf16[128,128], index: 4, kind: output, shape index: {}]  }
   0x1   :  { %v2284_v0 = vld [vmem:[%s3120_s1 + $0x40] sm:$0xff]   ;;  %v2288_v4 = vld [vmem:[%s3120_s1 + $0x48] sm:$0xff]   ;;  %v2292_v8 = vld [vmem:[%s3120_s1 + $0x50] sm:$0xff]  }
   0x2   :  { %v2285_v1 = vld [vmem:[%s3120_s1 + $0xc0] sm:$0xff]   ;;  %1964 = vmatprep.subr.bf16.mxu0 %v2284_v0  ;;  %v2289_v5 = vld [vmem:[%s3120_s1 + $0xc8] sm:$0xff]   ;;  %v2293_v9 = vld [vmem:[%s3120_s1 + $0xd0] sm:$0xff]  }
   0x3   :  { %v2286_v2 = vld [vmem:[%s3120_s1] sm:$0xff]   ;;  %2028 = vmatprep.subr.bf16.mxu1 %v2285_v1  ;;  %v2290_v6 = vld [vmem:[%s3120_s1 + $0x8] sm:$0xff]   ;;  %v2294_v10 = vld [vmem:[%s3120_s1 + $0x10] sm:$0xff]  }
   0x4   :  { %v2287_v3 = vld [vmem:[%s3120_s1 + $0x80] sm:$0xff]   ;;  %1965 = vmatpush3.bf16.msra.mxu0 %v2286_v2  ;;  %v2291_v7 = vld [vmem:[%s3120_s1 + $0x88] sm:$0xff]   ;;  %v2295_v11 = vld [vmem:[%s3120_s1 + $0x90] sm:$0xff]  }
   0x5   :  { %2029 = vmatpush3.bf16.msra.mxu1 %v2287_v3  ;;  %1966 = vmatprep.subr.bf16.mxu0 %v2288_v4  ;;  %v2296_v12 = vld [vmem:[%s3120_s1 + $0x58] sm:$0xff]   ;;  %v2300_v16 = vld [vmem:[%s3120_s1 + $0x60] sm:$0xff]   ;;  %v2304_v20 = vld [vmem:[%s3120_s1 + $0x68] sm:$0xff]  }
   0x6   :  { %2030 = vmatprep.subr.bf16.mxu1 %v2289_v5  ;;  %v2297_v13 = vld [vmem:[%s3120_s1 + $0xd8] sm:$0xff]   ;;  %v2301_v17 = vld [vmem:[%s3120_s1 + $0xe0] sm:$0xff]   ;;  %v2305_v21 = vld [vmem:[%s3120_s1 + $0xe8] sm:$0xff]  }
   0x7   :  { %v2298_v14 = vld [vmem:[%s3120_s1 + $0x18] sm:$0xff]   ;;  %v2302_v18 = vld [vmem:[%s3120_s1 + $0x20] sm:$0xff]   ;;  %v2306_v22 = vld [vmem:[%s3120_s1 + $0x28] sm:$0xff]  }
   0x8   :  { %1967 = vmatpush3.bf16.msra.mxu0 %v2290_v6  ;;  %v2299_v15 = vld [vmem:[%s3120_s1 + $0x98] sm:$0xff]   ;;  %v2303_v19 = vld [vmem:[%s3120_s1 + $0xa0] sm:$0xff]   ;;  %v2307_v23 = vld [vmem:[%s3120_s1 + $0xa8] sm:$0xff]  }
   0x9   :  { %2031 = vmatpush3.bf16.msra.mxu1 %v2291_v7  ;;  %1968 = vmatprep.subr.bf16.mxu0 %v2292_v8  ;;  %v2308_v24 = vld [vmem:[%s3120_s1 + $0x70] sm:$0xff]   ;;  %v2312_v28 = vld [vmem:[%s3120_s1 + $0x78] sm:$0xff]   ;;  %v2316_v32 = vld [vmem:[%s3121_s0] ss:$36 sps:$4 sm:$0xff]  }
   0xa   :  { %2032 = vmatprep.subr.bf16.mxu1 %v2293_v9  ;;  %v2309_v25 = vld [vmem:[%s3120_s1 + $0xf0] sm:$0xff]   ;;  %v2313_v29 = vld [vmem:[%s3120_s1 + $0xf8] sm:$0xff]   ;;  %v2318_v33 = vld [vmem:[%s3121_s0 + $0x4] ss:$36 sps:$4 sm:$0xff]  }
   0xb   :  { %v2310_v26 = vld [vmem:[%s3120_s1 + $0x30] sm:$0xff]   ;;  %v2314_v30 = vld [vmem:[%s3120_s1 + $0x38] sm:$0xff]   ;;  %v2319_v34 = vld [vmem:[%s3121_s0 + $0x8] ss:$36 sps:$4 sm:$0xff]   ;;  %1074 = vmatprep.mubr.bf16.mxu0 %v2318_v33 }
   0xc   :  { %1969 = vmatpush3.bf16.msra.mxu0 %v2294_v10  ;;  %v2311_v27 = vld [vmem:[%s3120_s1 + $0xb0] sm:$0xff]   ;;  %v2315_v31 = vld [vmem:[%s3120_s1 + $0xb8] sm:$0xff]   ;;  %v2322_v36 = vld [vmem:[%s3120_s1 + $0x140] sm:$0xff]  }
   0xd   :  { %2033 = vmatpush3.bf16.msra.mxu1 %v2295_v11  ;;  %1970 = vmatprep.subr.bf16.mxu0 %v2296_v12  ;;  %v2321_v35 = vld [vmem:[%s3121_s0 + $0xc] ss:$36 sps:$4 sm:$0xff]   ;;  %v2323_v37 = vld [vmem:[%s3120_s1 + $0x100] sm:$0xff]   ;;  %v2326_v39 = vld [vmem:[%s3121_s0 + $0x54] ss:$36 sps:$4 sm:$0xff]  }
   0xe   :  { %2034 = vmatprep.subr.bf16.mxu1 %v2297_v13  ;;  %1171 = vmatprep.mubr.bf16.mxu1 %v2321_v35  ;;  %v2324_v38 = vld [vmem:[%s3121_s0 + $0x4c] ss:$36 sps:$4 sm:$0xff]   ;;  %v2332_v44 = vld [vmem:[%s3121_s0 + $0x94] ss:$36 sps:$4 sm:$0xff]   ;;  %v2334_v45 = vld [vmem:[%s3121_s0 + $0x9c] ss:$36 sps:$4 sm:$0xff]  }
   0xf   :  { %v2328_v40 = vld [vmem:[%s3121_s0 + $0x48] ss:$36 sps:$4 sm:$0xff]   ;;  %v2329_v41 = vld [vmem:[%s3121_s0 + $0x50] ss:$36 sps:$4 sm:$0xff]   ;;  %v2339_v47 = vld [vmem:[%s3120_s1 + $0x1c0] sm:$0xff]  }
  0x10   :  { %1971 = vmatpush3.bf16.msra.mxu0 %v2298_v14  ;;  %v2330_v42 = vld [vmem:[%s3120_s1 + $0x148] sm:$0xff]   ;;  %v2338_v46 = vld [vmem:[%s3120_s1 + $0x150] sm:$0xff]   ;;  %v2341_v50 = vld [vmem:[%s3120_s1 + $0x180] sm:$0xff]  }
  0x11   :  { %2035 = vmatpush3.bf16.msra.mxu1 %v2299_v15  ;;  %1972 = vmatprep.subr.bf16.mxu0 %v2300_v16  ;;  %v2331_v43 = vld [vmem:[%s3120_s1 + $0x108] sm:$0xff]   ;;  %v2336_v48 = vld [vmem:[%s3121_s0 + $0x90] ss:$36 sps:$4 sm:$0xff]   ;;  %v2337_v51 = vld [vmem:[%s3121_s0 + $0x98] ss:$36 sps:$4 sm:$0xff]  }
  0x12   :  { %2036 = vmatprep.subr.bf16.mxu1 %v2301_v17  ;;  %v2340_v49 = vld [vmem:[%s3120_s1 + $0x110] sm:$0xff]   ;;  %v2342_v52 = vld [vmem:[%s3121_s0 + $0xdc] ss:$36 sps:$4 sm:$0xff]   ;;  %v2344_v53 = vld [vmem:[%s3121_s0 + $0xe4] ss:$36 sps:$4 sm:$0xff]  }
  0x13   :  { %v2348_v54 = vld [vmem:[%s3120_s1 + $0x158] sm:$0xff]   ;;  %v2349_v55 = vld [vmem:[%s3120_s1 + $0x1c8] sm:$0xff]   ;;  %v2347_v59 = vld [vmem:[%s3121_s0 + $0xe0] ss:$36 sps:$4 sm:$0xff]  }
  0x14   :  { %1973 = vmatpush3.bf16.msra.mxu0 %v2302_v18  ;;  %v2350_v56 = vld [vmem:[%s3120_s1 + $0x118] sm:$0xff]   ;;  %v2351_v57 = vld [vmem:[%s3120_s1 + $0x188] sm:$0xff]   ;;  %v2358_v62 = vld [vmem:[%s3120_s1 + $0x160] sm:$0xff]  }
  0x15   :  { %2037 = vmatpush3.bf16.msra.mxu1 %v2303_v19  ;;  %1974 = vmatprep.subr.bf16.mxu0 %v2304_v20  ;;  %v2346_v58 = vld [vmem:[%s3121_s0 + $0xd8] ss:$36 sps:$4 sm:$0xff]   ;;  %v2352_v60 = vld [vmem:[%s3121_s0 + $0x124] ss:$36 sps:$4 sm:$0xff]   ;;  %v2354_v61 = vld [vmem:[%s3121_s0 + $0x12c] ss:$36 sps:$4 sm:$0xff]  }
  0x16   :  { %2038 = vmatprep.subr.bf16.mxu1 %v2305_v21  ;;  %v2359_v63 = vld [vmem:[%s3120_s1 + $0x1d0] sm:$0xff]   ;;  %v2360_v0 = vld [vmem:[%s3120_s1 + $0x120] sm:$0xff]   ;;  %v2357_v3 = vld [vmem:[%s3121_s0 + $0x128] ss:$36 sps:$4 sm:$0xff]  }
  0x17   :  { %v2361_v1 = vld [vmem:[%s3120_s1 + $0x190] sm:$0xff]   ;;  %v2356_v2 = vld [vmem:[%s3121_s0 + $0x120] ss:$36 sps:$4 sm:$0xff]   ;;  %v2368_v6 = vld [vmem:[%s3120_s1 + $0x168] sm:$0xff]  }
  0x18   :  { %1975 = vmatpush3.bf16.msra.mxu0 %v2306_v22  ;;  %v2362_v4 = vld [vmem:[%s3121_s0 + $0x16c] ss:$36 sps:$4 sm:$0xff]   ;;  %v2364_v5 = vld [vmem:[%s3121_s0 + $0x174] ss:$36 sps:$4 sm:$0xff]   ;;  %v2374_v14 = vld [vmem:[%s3121_s0 + $0x1bc] ss:$36 sps:$4 sm:$0xff]  }
  0x19   :  { %2039 = vmatpush3.bf16.msra.mxu1 %v2307_v23  ;;  %1976 = vmatprep.subr.bf16.mxu0 %v2308_v24  ;;  %v2369_v7 = vld [vmem:[%s3120_s1 + $0x1d8] sm:$0xff]   ;;  %v2370_v8 = vld [vmem:[%s3120_s1 + $0x128] sm:$0xff]   ;;  %v2367_v11 = vld [vmem:[%s3121_s0 + $0x170] ss:$36 sps:$4 sm:$0xff]  }
  0x1a   :  { %2040 = vmatprep.subr.bf16.mxu1 %v2309_v25  ;;  %v2371_v9 = vld [vmem:[%s3120_s1 + $0x198] sm:$0xff]   ;;  %v2366_v10 = vld [vmem:[%s3121_s0 + $0x168] ss:$36 sps:$4 sm:$0xff]   ;;  %v2378_v13 = vld [vmem:[%s3120_s1 + $0x170] sm:$0xff]  }
  0x1b   :  { %v2372_v12 = vld [vmem:[%s3121_s0 + $0x1b4] ss:$36 sps:$4 sm:$0xff]   ;;  %v2379_v15 = vld [vmem:[%s3120_s1 + $0x1e0] sm:$0xff]   ;;  %v2382_v18 = vld [vmem:[%s3120_s1 + $0x1e8] sm:$0xff]  }
  0x1c   :  { %1977 = vmatpush3.bf16.msra.mxu0 %v2310_v26  ;;  %v2380_v16 = vld [vmem:[%s3120_s1 + $0x130] sm:$0xff]   ;;  %v2381_v17 = vld [vmem:[%s3120_s1 + $0x1a0] sm:$0xff]   ;;  %v2383_v19 = vld [vmem:[%s3120_s1 + $0x1a8] sm:$0xff]  }
  0x1d   :  { %2041 = vmatpush3.bf16.msra.mxu1 %v2311_v27  ;;  %1978 = vmatprep.subr.bf16.mxu0 %v2312_v28  ;;  %v2376_v20 = vld [vmem:[%s3121_s0 + $0x1b0] ss:$36 sps:$4 sm:$0xff]   ;;  %v2377_v21 = vld [vmem:[%s3121_s0 + $0x1b8] ss:$36 sps:$4 sm:$0xff]   ;;  %v2386_v23 = vld [vmem:[%s3121_s0 + $0x204] ss:$36 sps:$4 sm:$0xff]  }
  0x1e   :  { %2042 = vmatprep.subr.bf16.mxu1 %v2313_v29  ;;  %v2384_v22 = vld [vmem:[%s3121_s0 + $0x1fc] ss:$36 sps:$4 sm:$0xff]   ;;  %v2391_v25 = vld [vmem:[%s3120_s1 + $0x1f0] sm:$0xff]  }
  0x1f   :  { %v2390_v24 = vld [vmem:[%s3120_s1 + $0x178] sm:$0xff]   ;;  %v2393_v27 = vld [vmem:[%s3120_s1 + $0x1b0] sm:$0xff]  }
  0x20   :  { %1979 = vmatpush3.bf16.msra.mxu0 %v2314_v30  ;;  %v2392_v26 = vld [vmem:[%s3120_s1 + $0x138] sm:$0xff]   ;;  %v2389_v30 = vld [vmem:[%s3121_s0 + $0x200] ss:$36 sps:$4 sm:$0xff]   ;;  %v2396_v35 = vld [vmem:[%s3121_s0 + $0x10] ss:$36 sps:$4 sm:$0xff]  }
  0x21   :  { %2043 = vmatpush3.bf16.msra.mxu1 %v2315_v31  ;;  %2092 = vmatprep.subr.bf16.mxu0 %v2322_v36  ;;  %v2394_v28 = vld [vmem:[%s3120_s1 + $0x1f8] sm:$0xff]  }
  0x22   :  { %2156 = vmatprep.subr.bf16.mxu1 %v2339_v47  ;;  %v2388_v29 = vld [vmem:[%s3121_s0 + $0x1f8] ss:$36 sps:$4 sm:$0xff]   ;;  %v2414_v47 = vld [vmem:[%s3121_s0 + $0xa0] ss:$36 sps:$4 sm:$0xff]  }
  0x23   :  { %1075 = vmatmul.mubr.bf16.vlgmr.msra.gmra.mrb[0].mxu0 %v2316_v32  ;;  %v2395_v31 = vld [vmem:[%s3120_s1 + $0x1b8] sm:$0xff]   ;;  %v2402_v32 = vld [vmem:[%s3120_s1 + $0x200] sm:$0xff]  }
  0x24   :  { %1172 = vmatmul.mubr.bf16.vlgmr.msra.gmra.mrb[0].mxu1 %v2319_v34  ;;  %2093 = vmatpush3.bf16.msra.mxu0 %v2323_v37  ;;  %v2398_v33 = vld [vmem:[%s3121_s0 + $0x14] ss:$36 sps:$4 sm:$0xff]   ;;  %v2401_v34 = vld [vmem:[%s3121_s0 + $0x1c] ss:$36 sps:$4 sm:$0xff]  }
  0x25   :  { %1082 = vmatprep.mubr.bf16.mxu0 %v2324_v38  ;;  %1179 = vmatprep.mubr.bf16.mxu1 %v2326_v39  ;;  %v2399_v36 = vld [vmem:[%s3121_s0 + $0x18] ss:$36 sps:$4 sm:$0xff]   ;;  %v2405_v38 = vld [vmem:[%s3121_s0 + $0x64] ss:$36 sps:$4 sm:$0xff]  }
  0x26   :  { %2094 = vmatprep.subr.bf16.mxu0 %v2330_v42  ;;  %2157 = vmatpush3.bf16.msra.mxu1 %v2341_v50  ;;  %v2403_v37 = vld [vmem:[%s3121_s0 + $0x5c] ss:$36 sps:$4 sm:$0xff]   ;;  %v2409_v39 = vld [vmem:[%s3120_s1 + $0x208] sm:$0xff]   ;;  %v2419_v50 = vld [vmem:[%s3121_s0 + $0xf4] ss:$36 sps:$4 sm:$0xff]  }
  0x27   :  { %2158 = vmatprep.subr.bf16.mxu1 %v2349_v55  ;;  %v2408_v42 = vld [vmem:[%s3121_s0 + $0x60] ss:$36 sps:$4 sm:$0xff]   ;;  %v2424_v55 = vld [vmem:[%s3121_s0 + $0x134] ss:$36 sps:$4 sm:$0xff]  }
  0x28   :  { %2095 = vmatpush3.bf16.msra.mxu0 %v2331_v43  ;;  %v2410_v43 = vld [vmem:[%s3121_s0 + $0xa4] ss:$36 sps:$4 sm:$0xff]  }
  0x29   :  { %2096 = vmatprep.subr.bf16.mxu0 %v2338_v46  ;;  %v2430_v46 = vld [vmem:[%s3120_s1 + $0x220] sm:$0xff]  }
  0x2a   :  { %2159 = vmatpush3.bf16.msra.mxu1 %v2351_v57  ;;  %v2451_v57 = vld [vmem:[%s3120_s1 + $0x238] sm:$0xff]  }
  0x2b   :  { %1083 = vmatmul.mubr.bf16.gmra.mrb[4].mxu0 %v2328_v40  ;;  %2160 = vmatprep.subr.bf16.mxu1 %v2359_v63  ;;  %v2416_v40 = vld [vmem:[%s3120_s1 + $0x210] sm:$0xff]   ;;  %v2436_v63 = vld [vmem:[%s3121_s0 + $0x180] ss:$36 sps:$4 sm:$0xff]  }
  0x2c   :  { %1180 = vmatmul.mubr.bf16.gmra.mrb[4].mxu1 %v2329_v41  ;;  %1090 = vmatprep.mubr.bf16.mxu0 %v2332_v44  ;;  %v2407_v41 = vld [vmem:[%s3121_s0 + $0x58] ss:$36 sps:$4 sm:$0xff]   ;;  %v2412_v44 = vld [vmem:[%s3121_s0 + $0xac] ss:$36 sps:$4 sm:$0xff]  }
  0x2d   :  { %1187 = vmatprep.mubr.bf16.mxu1 %v2334_v45  ;;  %2097 = vmatpush3.bf16.msra.mxu0 %v2340_v49  ;;  %v2423_v45 = vld [vmem:[%s3120_s1 + $0x218] sm:$0xff]   ;;  %v2417_v49 = vld [vmem:[%s3121_s0 + $0xec] ss:$36 sps:$4 sm:$0xff]  }
  0x2e   :  { %2098 = vmatprep.subr.bf16.mxu0 %v2348_v54  ;;  %2161 = vmatpush3.bf16.msra.mxu1 %v2361_v1  ;;  %v2422_v54 = vld [vmem:[%s3121_s0 + $0xf0] ss:$36 sps:$4 sm:$0xff]  }
  0x2f   :  { %2162 = vmatprep.subr.bf16.mxu1 %v2369_v7  ;;  %v2440_v1 = vld [vmem:[%s3121_s0 + $0x1cc] ss:$36 sps:$4 sm:$0xff]  }
  0x30   :  { %v2450_v7 = vld [vmem:[%s3121_s0 + $0x210] ss:$36 sps:$4 sm:$0xff]  }
  0x31   :  { %2099 = vmatpush3.bf16.msra.mxu0 %v2350_v56  ;;  %v2426_v56 = vld [vmem:[%s3121_s0 + $0x13c] ss:$36 sps:$4 sm:$0xff]  }
  0x32   :  { %2100 = vmatprep.subr.bf16.mxu0 %v2358_v62  ;;  %2163 = vmatpush3.bf16.msra.mxu1 %v2371_v9  ;;  %v2435_v62 = vld [vmem:[%s3121_s0 + $0x178] ss:$36 sps:$4 sm:$0xff]   ;;  %v2453_v9 = vld [vmem:[%s3121_s0 + $0x140] ss:$36 sps:$4 sm:$0xff]  }
  0x33   :  { %1091 = vmatmul.mubr.bf16.gmra.mrb[8].mxu0 %v2336_v48  ;;  %2164 = vmatprep.subr.bf16.mxu1 %v2379_v15  ;;  %v2415_v48 = vld [vmem:[%s3121_s0 + $0xa8] ss:$36 sps:$4 sm:$0xff]   ;;  %v2459_v15 = vld [vmem:[%s3121_s0 + $0x218] ss:$36 sps:$4 sm:$0xff]  }
  0x34   :  { %1188 = vmatmul.mubr.bf16.gmra.mrb[8].mxu1 %v2337_v51  ;;  %1098 = vmatprep.mubr.bf16.mxu0 %v2342_v52  ;;  %v2437_v51 = vld [vmem:[%s3120_s1 + $0x228] sm:$0xff]  }
  0x35   :  { %1195 = vmatprep.mubr.bf16.mxu1 %v2344_v53  ;;  %2101 = vmatpush3.bf16.msra.mxu0 %v2360_v0  ;;  %v2421_v52 = vld [vmem:[%s3121_s0 + $0xe8] ss:$36 sps:$4 sm:$0xff]   ;;  %v2444_v53 = vld [vmem:[%s3120_s1 + $0x230] sm:$0xff]  }
  0x36   :  { %2102 = vmatprep.subr.bf16.mxu0 %v2368_v6  ;;  %2165 = vmatpush3.bf16.msra.mxu1 %v2381_v17  ;;  %v2438_v0 = vld [vmem:[%s3121_s0 + $0x1c4] ss:$36 sps:$4 sm:$0xff]  }
  0x37   :  { %2166 = vmatprep.subr.bf16.mxu1 %v2382_v18  ;;  %v2449_v6 = vld [vmem:[%s3121_s0 + $0x208] ss:$36 sps:$4 sm:$0xff]  }
  0x39   :  { %2103 = vmatpush3.bf16.msra.mxu0 %v2370_v8  ;;  %v2452_v8 = vld [vmem:[%s3121_s0 + $0x20] ss:$36 sps:$4 sm:$0xff]  }
  0x3a   :  { %2104 = vmatprep.subr.bf16.mxu0 %v2378_v13  ;;  %2167 = vmatpush3.bf16.msra.mxu1 %v2383_v19  ;;  %v2457_v13 = vld [vmem:[%s3121_s0 + $0x1d0] ss:$36 sps:$4 sm:$0xff]  }
  0x3b   :  { %1099 = vmatmul.mubr.bf16.gmra.mrb[12].mxu0 %v2346_v58  ;;  %2168 = vmatprep.subr.bf16.mxu1 %v2391_v25  ;;  %v2428_v58 = vld [vmem:[%s3121_s0 + $0x130] ss:$36 sps:$4 sm:$0xff]  }
  0x3c   :  { %1196 = vmatmul.mubr.bf16.gmra.mrb[12].mxu1 %v2347_v59  ;;  %1106 = vmatprep.mubr.bf16.mxu0 %v2352_v60  ;;  %v2429_v59 = vld [vmem:[%s3121_s0 + $0x138] ss:$36 sps:$4 sm:$0xff]  }
  0x3d   :  { %1203 = vmatprep.mubr.bf16.mxu1 %v2354_v61  ;;  %2105 = vmatpush3.bf16.msra.mxu0 %v2380_v16  ;;  %v2431_v60 = vld [vmem:[%s3121_s0 + $0x17c] ss:$36 sps:$4 sm:$0xff]   ;;  %v2433_v61 = vld [vmem:[%s3121_s0 + $0x184] ss:$36 sps:$4 sm:$0xff]  }
  0x3e   :  { %2106 = vmatprep.subr.bf16.mxu0 %v2390_v24  ;;  %2169 = vmatpush3.bf16.msra.mxu1 %v2393_v27 }
  0x3f   :  { %2170 = vmatprep.subr.bf16.mxu1 %v2394_v28 }
  0x41   :  { %2107 = vmatpush3.bf16.msra.mxu0 %v2392_v26 }
  0x42   :  { %2236 = vmatprep.subr.bf16.mxu0 %v2402_v32  ;;  %2171 = vmatpush3.bf16.msra.mxu1 %v2395_v31 }
  0x43   :  { %1107 = vmatmul.mubr.bf16.gmra.mrb[16].mxu0 %v2356_v2  ;;  %2268 = vmatprep.subr.bf16.mxu1 %v2402_v32  ;;  %v2442_v2 = vld [vmem:[%s3121_s0 + $0x1c0] ss:$36 sps:$4 sm:$0xff]  }
  0x44   :  { %1204 = vmatmul.mubr.bf16.gmra.mrb[16].mxu1 %v2357_v3  ;;  %1114 = vmatprep.mubr.bf16.mxu0 %v2362_v4  ;;  %v2443_v3 = vld [vmem:[%s3121_s0 + $0x1c8] ss:$36 sps:$4 sm:$0xff]  }
  0x45   :  { %1211 = vmatprep.mubr.bf16.mxu1 %v2364_v5  ;;  %v2445_v4 = vld [vmem:[%s3121_s0 + $0x20c] ss:$36 sps:$4 sm:$0xff]   ;;  %v2447_v5 = vld [vmem:[%s3121_s0 + $0x214] ss:$36 sps:$4 sm:$0xff]  }
  0x4b   :  { %1115 = vmatmul.mubr.bf16.gmra.mrb[20].mxu0 %v2366_v10  ;;  %v2454_v10 = vld [vmem:[%s3121_s0 + $0x68] ss:$36 sps:$4 sm:$0xff]  }
  0x4c   :  { %1212 = vmatmul.mubr.bf16.gmra.mrb[20].mxu1 %v2367_v11  ;;  %1122 = vmatprep.mubr.bf16.mxu0 %v2372_v12  ;;  %v2455_v11 = vld [vmem:[%s3121_s0 + $0x188] ss:$36 sps:$4 sm:$0xff]   ;;  %v2456_v12 = vld [vmem:[%s3121_s0 + $0xb0] ss:$36 sps:$4 sm:$0xff]  }
  0x4d   :  { %1219 = vmatprep.mubr.bf16.mxu1 %v2374_v14  ;;  %v2458_v14 = vld [vmem:[%s3121_s0 + $0xf8] ss:$36 sps:$4 sm:$0xff]  }
  0x53   :  { %1123 = vmatmul.mubr.bf16.gmra.mrb[24].mxu0 %v2376_v20 }
  0x54   :  { %1220 = vmatmul.mubr.bf16.gmra.mrb[24].mxu1 %v2377_v21  ;;  %1130 = vmatprep.mubr.bf16.mxu0 %v2384_v22 }
  0x55   :  { %1227 = vmatprep.mubr.bf16.mxu1 %v2386_v23 }
  0x5b   :  { %1131 = vmatmul.mubr.bf16.gmra.mrb[28].mxu0 %v2388_v29 }
  0x5c   :  { %1228 = vmatmul.mubr.bf16.gmra.mrb[28].mxu1 %v2389_v30  ;;  %1268 = vmatprep.mubr.bf16.mxu0 %v2398_v33 }
  0x5d   :  { %1365 = vmatprep.mubr.bf16.mxu1 %v2401_v34 }
  0x63   :  { %1269 = vmatmul.mubr.bf16.vlgmr.msra.gmra.mrb[32].mxu0 %v2396_v35 }
  0x64   :  { %1366 = vmatmul.mubr.bf16.vlgmr.msra.gmra.mrb[32].mxu1 %v2399_v36  ;;  %2237 = vmatpush3.bf16.msra.mxu0 %v2402_v32 }
  0x65   :  { %1276 = vmatprep.mubr.bf16.mxu0 %v2403_v37  ;;  %1373 = vmatprep.mubr.bf16.mxu1 %v2405_v38 }
  0x66   :  { %2238 = vmatprep.subr.bf16.mxu0 %v2409_v39  ;;  %2276 = vmatpush3.bf16.msra.mxu1 %v2402_v32 }
  0x67   :  { %2269 = vmatprep.subr.bf16.mxu1 %v2409_v39 }
  0x68   :  { %2239 = vmatpush3.bf16.msra.mxu0 %v2409_v39 }
  0x69   :  { %2240 = vmatprep.subr.bf16.mxu0 %v2416_v40 }
  0x6a   :  { %2277 = vmatpush3.bf16.msra.mxu1 %v2409_v39 }
  0x6b   :  { %1277 = vmatmul.mubr.bf16.gmra.mrb[36].mxu0 %v2407_v41  ;;  %2270 = vmatprep.subr.bf16.mxu1 %v2416_v40 }
  0x6c   :  { %1374 = vmatmul.mubr.bf16.gmra.mrb[36].mxu1 %v2408_v42  ;;  %1284 = vmatprep.mubr.bf16.mxu0 %v2410_v43 }
  0x6d   :  { %1381 = vmatprep.mubr.bf16.mxu1 %v2412_v44  ;;  %2241 = vmatpush3.bf16.msra.mxu0 %v2416_v40 }
  0x6e   :  { %2242 = vmatprep.subr.bf16.mxu0 %v2423_v45  ;;  %2278 = vmatpush3.bf16.msra.mxu1 %v2416_v40 }
  0x6f   :  { %2271 = vmatprep.subr.bf16.mxu1 %v2423_v45 }
  0x71   :  { %2243 = vmatpush3.bf16.msra.mxu0 %v2423_v45 }
  0x72   :  { %2244 = vmatprep.subr.bf16.mxu0 %v2430_v46  ;;  %2279 = vmatpush3.bf16.msra.mxu1 %v2423_v45 }
  0x73   :  { %1285 = vmatmul.mubr.bf16.gmra.mrb[40].mxu0 %v2414_v47  ;;  %2272 = vmatprep.subr.bf16.mxu1 %v2430_v46 }
  0x74   :  { %1382 = vmatmul.mubr.bf16.gmra.mrb[40].mxu1 %v2415_v48  ;;  %1292 = vmatprep.mubr.bf16.mxu0 %v2417_v49 }
  0x75   :  { %1389 = vmatprep.mubr.bf16.mxu1 %v2419_v50  ;;  %2245 = vmatpush3.bf16.msra.mxu0 %v2430_v46 }
  0x76   :  { %2246 = vmatprep.subr.bf16.mxu0 %v2437_v51  ;;  %2280 = vmatpush3.bf16.msra.mxu1 %v2430_v46 }
  0x77   :  { %2273 = vmatprep.subr.bf16.mxu1 %v2437_v51 }
  0x79   :  { %2247 = vmatpush3.bf16.msra.mxu0 %v2437_v51 }
  0x7a   :  { %2248 = vmatprep.subr.bf16.mxu0 %v2444_v53  ;;  %2281 = vmatpush3.bf16.msra.mxu1 %v2437_v51 }
  0x7b   :  { %1293 = vmatmul.mubr.bf16.gmra.mrb[44].mxu0 %v2421_v52  ;;  %2274 = vmatprep.subr.bf16.mxu1 %v2444_v53 }
  0x7c   :  { %1390 = vmatmul.mubr.bf16.gmra.mrb[44].mxu1 %v2422_v54  ;;  %1300 = vmatprep.mubr.bf16.mxu0 %v2424_v55 }
  0x7d   :  { %1397 = vmatprep.mubr.bf16.mxu1 %v2426_v56  ;;  %2249 = vmatpush3.bf16.msra.mxu0 %v2444_v53 }
  0x7e   :  { %2250 = vmatprep.subr.bf16.mxu0 %v2451_v57  ;;  %2282 = vmatpush3.bf16.msra.mxu1 %v2444_v53 }
  0x7f   :  { %2275 = vmatprep.subr.bf16.mxu1 %v2451_v57 }
  0x81   :  { %2251 = vmatpush3.bf16.msra.mxu0 %v2451_v57 }
  0x82   :  { %2283 = vmatpush3.bf16.msra.mxu1 %v2451_v57 }
  0x83   :  { %1301 = vmatmul.mubr.bf16.gmra.mrb[48].mxu0 %v2428_v58 }
  0x84   :  { %1398 = vmatmul.mubr.bf16.gmra.mrb[48].mxu1 %v2429_v59  ;;  %1308 = vmatprep.mubr.bf16.mxu0 %v2431_v60 }
  0x85   :  { %1405 = vmatprep.mubr.bf16.mxu1 %v2433_v61 }
  0x8b   :  { %1309 = vmatmul.mubr.bf16.gmra.mrb[52].mxu0 %v2435_v62 }
  0x8c   :  { %1406 = vmatmul.mubr.bf16.gmra.mrb[52].mxu1 %v2436_v63  ;;  %1316 = vmatprep.mubr.bf16.mxu0 %v2438_v0 }
  0x8d   :  { %1413 = vmatprep.mubr.bf16.mxu1 %v2440_v1 }
  0x93   :  { %1317 = vmatmul.mubr.bf16.gmra.mrb[56].mxu0 %v2442_v2 }
  0x94   :  { %1414 = vmatmul.mubr.bf16.gmra.mrb[56].mxu1 %v2443_v3  ;;  %1324 = vmatprep.mubr.bf16.mxu0 %v2445_v4 }
  0x95   :  { %1421 = vmatprep.mubr.bf16.mxu1 %v2447_v5 }
  0x9b   :  { %1325 = vmatmul.mubr.bf16.gmra.mrb[60].mxu0 %v2449_v6 }
  0x9c   :  { %1422 = vmatmul.mubr.bf16.gmra.mrb[60].mxu1 %v2450_v7  ;;  %2252 = vmatprep.mubr.bf16.mxu0 %v2452_v8 }
  0x9d   :  { %2260 = vmatprep.mubr.bf16.mxu1 %v2453_v9 }
  0xa3   :  { %2253 = vmatmul.mubr.bf16.vlgmr.msra.gmra.mrb[64].mxu0 %v2454_v10 }
  0xa4   :  { %2261 = vmatmul.mubr.bf16.vlgmr.msra.gmra.mrb[64].mxu1 %v2455_v11  ;;  %2256 = vmatprep.mubr.bf16.mxu0 %v2456_v12 }
  0xa5   :  { %2264 = vmatprep.mubr.bf16.mxu1 %v2457_v13 }
  0xab   :  { %2257 = vmatmul.mubr.bf16.gmra.mrb[68].mxu0 %v2458_v14 }
  0xac   :  { %2265 = vmatmul.mubr.bf16.gmra.mrb[68].mxu1 %v2459_v15 }
  0xf6   :  { %v1980_v16 = vpop.f32.mrb[0].mxu0 }
  0xf7   :  { %v2044_v17 = vpop.f32.mrb[0].mxu1  ;;  %v1981_v18 = vpop.f32.mrb[1].mxu0 }
  0xf8   :  { %v1982_v19 = vadd.f32 %v1981_v18, %v1980_v16  ;;  %v2045_v20 = vpop.f32.mrb[1].mxu1  ;;  %v1983_v21 = vpop.f32.mrb[2].mxu0 }
  0xf9   :  { %v2046_v22 = vadd.f32 %v2045_v20, %v2044_v17  ;;  %v2047_v23 = vpop.f32.mrb[2].mxu1  ;;  %v1984_v24 = vpop.f32.mrb[3].mxu0 }
  0xfa   :  { %v1985_v25 = vadd.f32 %v1984_v24, %v1983_v21  ;;  %v2048_v26 = vpop.f32.mrb[3].mxu1 }
  0xfb   :  { %v2919_v27 = vadd.f32 %v2046_v22, %v1982_v19  ;;  %v2049_v28 = vadd.f32 %v2048_v26, %v2047_v23 }
  0xfd   :  { %v2921_v29 = vadd.f32 %v2049_v28, %v1985_v25 }
  0xfe   :  { %v1986_v30 = vpop.f32.mrb[4].mxu0 }
  0xff   :  { %v2050_v31 = vpop.f32.mrb[4].mxu1  ;;  %v1987_v32 = vpop.f32.mrb[5].mxu0 }
 0x100   :  { %v1988_v33 = vadd.f32 %v1987_v32, %v1986_v30  ;;  %v2051_v34 = vpop.f32.mrb[5].mxu1  ;;  %v1989_v35 = vpop.f32.mrb[6].mxu0 }
 0x101   :  { %v2052_v36 = vadd.f32 %v2051_v34, %v2050_v31  ;;  %v2053_v37 = vpop.f32.mrb[6].mxu1  ;;  %v1990_v38 = vpop.f32.mrb[7].mxu0 }
 0x102   :  { %v1991_v39 = vadd.f32 %v1990_v38, %v1989_v35  ;;  %v2054_v40 = vpop.f32.mrb[7].mxu1 }
 0x103   :  { %v2923_v41 = vadd.f32 %v2052_v36, %v1988_v33  ;;  %v2055_v42 = vadd.f32 %v2054_v40, %v2053_v37 }
 0x105   :  { %v2925_v43 = vadd.f32 %v2055_v42, %v1991_v39 }
 0x106   :  { %v1992_v44 = vpop.f32.mrb[8].mxu0 }
 0x107   :  { %v2056_v45 = vpop.f32.mrb[8].mxu1  ;;  %v1993_v46 = vpop.f32.mrb[9].mxu0 }
 0x108   :  { %v1994_v47 = vadd.f32 %v1993_v46, %v1992_v44  ;;  %v2057_v48 = vpop.f32.mrb[9].mxu1  ;;  %v1995_v49 = vpop.f32.mrb[10].mxu0 }
 0x109   :  { %v2058_v50 = vadd.f32 %v2057_v48, %v2056_v45  ;;  %v2059_v51 = vpop.f32.mrb[10].mxu1  ;;  %v1996_v52 = vpop.f32.mrb[11].mxu0 }
 0x10a   :  { %v1997_v53 = vadd.f32 %v1996_v52, %v1995_v49  ;;  %v2060_v54 = vpop.f32.mrb[11].mxu1 }
 0x10b   :  { %v2927_v55 = vadd.f32 %v2058_v50, %v1994_v47  ;;  %v2061_v56 = vadd.f32 %v2060_v54, %v2059_v51 }
 0x10d   :  { %v2929_v57 = vadd.f32 %v2061_v56, %v1997_v53 }
 0x10e   :  { %v1998_v58 = vpop.f32.mrb[12].mxu0 }
 0x10f   :  { %v2062_v59 = vpop.f32.mrb[12].mxu1  ;;  %v1999_v60 = vpop.f32.mrb[13].mxu0 }
 0x110   :  { %v2000_v61 = vadd.f32 %v1999_v60, %v1998_v58  ;;  %v2063_v62 = vpop.f32.mrb[13].mxu1  ;;  %v2001_v63 = vpop.f32.mrb[14].mxu0 }
 0x111   :  { %v2064_v0 = vadd.f32 %v2063_v62, %v2062_v59  ;;  %v2065_v1 = vpop.f32.mrb[14].mxu1  ;;  %v2002_v2 = vpop.f32.mrb[15].mxu0 }
 0x112   :  { %v2003_v3 = vadd.f32 %v2002_v2, %v2001_v63  ;;  %v2066_v4 = vpop.f32.mrb[15].mxu1 }
 0x113   :  { %v2931_v5 = vadd.f32 %v2064_v0, %v2000_v61  ;;  %v2067_v6 = vadd.f32 %v2066_v4, %v2065_v1 }
 0x115   :  { %v2933_v7 = vadd.f32 %v2067_v6, %v2003_v3 }
 0x116   :  { %v2004_v8 = vpop.f32.mrb[16].mxu0 }
 0x117   :  { %v2068_v9 = vpop.f32.mrb[16].mxu1  ;;  %v2005_v10 = vpop.f32.mrb[17].mxu0 }
 0x118   :  { %v2006_v11 = vadd.f32 %v2005_v10, %v2004_v8  ;;  %v2069_v12 = vpop.f32.mrb[17].mxu1  ;;  %v2007_v13 = vpop.f32.mrb[18].mxu0 }
 0x119   :  { %v2070_v14 = vadd.f32 %v2069_v12, %v2068_v9  ;;  %v2071_v15 = vpop.f32.mrb[18].mxu1  ;;  %v2008_v16 = vpop.f32.mrb[19].mxu0 }
 0x11a   :  { %v2009_v17 = vadd.f32 %v2008_v16, %v2007_v13  ;;  %v2072_v18 = vpop.f32.mrb[19].mxu1 }
 0x11b   :  { %v2935_v19 = vadd.f32 %v2070_v14, %v2006_v11  ;;  %v2073_v20 = vadd.f32 %v2072_v18, %v2071_v15 }
 0x11d   :  { %v2937_v21 = vadd.f32 %v2073_v20, %v2009_v17 }
 0x11e   :  { %v2010_v22 = vpop.f32.mrb[20].mxu0 }
 0x11f   :  { %v2074_v23 = vpop.f32.mrb[20].mxu1  ;;  %v2011_v24 = vpop.f32.mrb[21].mxu0 }
 0x120   :  { %v2012_v25 = vadd.f32 %v2011_v24, %v2010_v22  ;;  %v2075_v26 = vpop.f32.mrb[21].mxu1  ;;  %v2013_v28 = vpop.f32.mrb[22].mxu0 }
 0x121   :  { %v2076_v30 = vadd.f32 %v2075_v26, %v2074_v23  ;;  %v2077_v31 = vpop.f32.mrb[22].mxu1  ;;  %v2014_v32 = vpop.f32.mrb[23].mxu0 }
 0x122   :  { %v2015_v33 = vadd.f32 %v2014_v32, %v2013_v28  ;;  %v2078_v34 = vpop.f32.mrb[23].mxu1 }
 0x123   :  { %v2939_v35 = vadd.f32 %v2076_v30, %v2012_v25  ;;  %v2079_v36 = vadd.f32 %v2078_v34, %v2077_v31 }
 0x125   :  { %v2941_v37 = vadd.f32 %v2079_v36, %v2015_v33 }
 0x126   :  { %v2016_v38 = vpop.f32.mrb[24].mxu0 }
 0x127   :  { %v2080_v39 = vpop.f32.mrb[24].mxu1  ;;  %v2017_v40 = vpop.f32.mrb[25].mxu0 }
 0x128   :  { %v2018_v42 = vadd.f32 %v2017_v40, %v2016_v38  ;;  %v2081_v44 = vpop.f32.mrb[25].mxu1  ;;  %v2019_v45 = vpop.f32.mrb[26].mxu0 }
 0x129   :  { %v2082_v46 = vadd.f32 %v2081_v44, %v2080_v39  ;;  %v2083_v47 = vpop.f32.mrb[26].mxu1  ;;  %v2020_v48 = vpop.f32.mrb[27].mxu0 }
 0x12a   :  { %v2021_v49 = vadd.f32 %v2020_v48, %v2019_v45  ;;  %v2084_v50 = vpop.f32.mrb[27].mxu1 }
 0x12b   :  { %v2943_v51 = vadd.f32 %v2082_v46, %v2018_v42  ;;  %v2085_v52 = vadd.f32 %v2084_v50, %v2083_v47 }
 0x12d   :  { %v2945_v53 = vadd.f32 %v2085_v52, %v2021_v49 }
 0x12e   :  { %v2022_v54 = vpop.f32.mrb[28].mxu0 }
 0x12f   :  { %v2086_v56 = vpop.f32.mrb[28].mxu1  ;;  %v2023_v58 = vpop.f32.mrb[29].mxu0 }
 0x130   :  { %v2024_v59 = vadd.f32 %v2023_v58, %v2022_v54  ;;  %v2087_v60 = vpop.f32.mrb[29].mxu1  ;;  %v2025_v61 = vpop.f32.mrb[30].mxu0 }
 0x131   :  { %v2088_v62 = vadd.f32 %v2087_v60, %v2086_v56  ;;  %v2089_v63 = vpop.f32.mrb[30].mxu1  ;;  %v2026_v0 = vpop.f32.mrb[31].mxu0 }
 0x132   :  { %v2027_v1 = vadd.f32 %v2026_v0, %v2025_v61  ;;  %v2090_v2 = vpop.f32.mrb[31].mxu1 }
 0x133   :  { %v2947_v3 = vadd.f32 %v2088_v62, %v2024_v59  ;;  %v2091_v4 = vadd.f32 %v2090_v2, %v2089_v63 }
 0x135   :  { %v2949_v6 = vadd.f32 %v2091_v4, %v2027_v1 }
 0x136   :  { %v2108_v8 = vpop.f32.mrb[32].mxu0 }
 0x137   :  { %v2109_v9 = vpop.f32.mrb[33].mxu0  ;;  %v2172_v10 = vpop.f32.mrb[32].mxu1 }
 0x138   :  { %v2110_v11 = vadd.f32 %v2109_v9, %v2108_v8  ;;  %v2111_v12 = vpop.f32.mrb[34].mxu0  ;;  %v2173_v13 = vpop.f32.mrb[33].mxu1 }
 0x139   :  { %v2112_v14 = vpop.f32.mrb[35].mxu0  ;;  %v2174_v15 = vadd.f32 %v2173_v13, %v2172_v10  ;;  %v2175_v16 = vpop.f32.mrb[34].mxu1 }
 0x13a   :  { %v1271_v17 = vadd.f32 %v2110_v11, %v2919_v27  ;;  %v2113_v18 = vadd.f32 %v2112_v14, %v2111_v12  ;;  %v2176_v20 = vpop.f32.mrb[35].mxu1 }
 0x13b   :  { %v2177_v22 = vadd.f32 %v2176_v20, %v2175_v16 }
 0x13c   :  { %v1274_v23 = vadd.f32 %v2113_v18, %v2921_v29  ;;  %v2953_v24 = vadd.f32 %v2174_v15, %v1271_v17 }
 0x13e   :  { %v2114_v25 = vpop.f32.mrb[36].mxu0  ;;  %v2955_v26 = vadd.f32 %v2177_v22, %v1274_v23 }
 0x13f   :  { %v2115_v28 = vpop.f32.mrb[37].mxu0  ;;  %v2178_v30 = vpop.f32.mrb[36].mxu1 }
 0x140   :  { %v2116_v31 = vadd.f32 %v2115_v28, %v2114_v25  ;;  %v2117_v32 = vpop.f32.mrb[38].mxu0  ;;  %v2179_v33 = vpop.f32.mrb[37].mxu1 }
 0x141   :  { %v2118_v34 = vpop.f32.mrb[39].mxu0  ;;  %v2180_v36 = vadd.f32 %v2179_v33, %v2178_v30  ;;  %v2181_v38 = vpop.f32.mrb[38].mxu1 }
 0x142   :  { %v1279_v27 = vadd.f32 %v2116_v31, %v2923_v41  ;;  %v2119_v39 = vadd.f32 %v2118_v34, %v2117_v32  ;;  %v2182_v40 = vpop.f32.mrb[39].mxu1 }
 0x143   :  { %v2183_v42 = vadd.f32 %v2182_v40, %v2181_v38 }
 0x144   :  { %v1282_v29 = vadd.f32 %v2119_v39, %v2925_v43  ;;  %v2959_v44 = vadd.f32 %v2180_v36, %v1279_v27 }
 0x146   :  { %v2120_v45 = vpop.f32.mrb[40].mxu0  ;;  %v2961_v46 = vadd.f32 %v2183_v42, %v1282_v29 }
 0x147   :  { %v2121_v47 = vpop.f32.mrb[41].mxu0  ;;  %v2184_v48 = vpop.f32.mrb[40].mxu1 }
 0x148   :  { %v2122_v49 = vadd.f32 %v2121_v47, %v2120_v45  ;;  %v2123_v50 = vpop.f32.mrb[42].mxu0  ;;  %v2185_v52 = vpop.f32.mrb[41].mxu1 }
 0x149   :  { %v2124_v54 = vpop.f32.mrb[43].mxu0  ;;  %v2186_v56 = vadd.f32 %v2185_v52, %v2184_v48  ;;  %v2187_v58 = vpop.f32.mrb[42].mxu1 }
 0x14a   :  { %v1287_v41 = vadd.f32 %v2122_v49, %v2927_v55  ;;  %v2125_v59 = vadd.f32 %v2124_v54, %v2123_v50  ;;  %v2188_v60 = vpop.f32.mrb[43].mxu1 }
 0x14b   :  { %v2189_v61 = vadd.f32 %v2188_v60, %v2187_v58 }
 0x14c   :  { %v1290_v43 = vadd.f32 %v2125_v59, %v2929_v57  ;;  %v2965_v62 = vadd.f32 %v2186_v56, %v1287_v41 }
 0x14e   :  { %v2126_v63 = vpop.f32.mrb[44].mxu0  ;;  %v2967_v0 = vadd.f32 %v2189_v61, %v1290_v43 }
 0x14f   :  { %v2127_v1 = vpop.f32.mrb[45].mxu0  ;;  %v2190_v2 = vpop.f32.mrb[44].mxu1 }
 0x150   :  { %v2128_v4 = vadd.f32 %v2127_v1, %v2126_v63  ;;  %v2129_v8 = vpop.f32.mrb[46].mxu0  ;;  %v2191_v9 = vpop.f32.mrb[45].mxu1 }
 0x151   :  { %v2130_v10 = vpop.f32.mrb[47].mxu0  ;;  %v2192_v11 = vadd.f32 %v2191_v9, %v2190_v2  ;;  %v2193_v12 = vpop.f32.mrb[46].mxu1 }
 0x152   :  { %v1295_v55 = vadd.f32 %v2128_v4, %v2931_v5  ;;  %v2131_v13 = vadd.f32 %v2130_v10, %v2129_v8  ;;  %v2194_v14 = vpop.f32.mrb[47].mxu1 }
 0x153   :  { %v2195_v15 = vadd.f32 %v2194_v14, %v2193_v12 }
 0x154   :  { %v1298_v57 = vadd.f32 %v2131_v13, %v2933_v7  ;;  %v2971_v16 = vadd.f32 %v2192_v11, %v1295_v55 }
 0x156   :  { %v2132_v17 = vpop.f32.mrb[48].mxu0  ;;  %v2973_v18 = vadd.f32 %v2195_v15, %v1298_v57 }
 0x157   :  { %v2133_v20 = vpop.f32.mrb[49].mxu0  ;;  %v2196_v22 = vpop.f32.mrb[48].mxu1 }
 0x158   :  { %v2134_v23 = vadd.f32 %v2133_v20, %v2132_v17  ;;  %v2135_v25 = vpop.f32.mrb[50].mxu0  ;;  %v2197_v28 = vpop.f32.mrb[49].mxu1 }
 0x159   :  { %v2136_v30 = vpop.f32.mrb[51].mxu0  ;;  %v2198_v31 = vadd.f32 %v2197_v28, %v2196_v22  ;;  %v2199_v32 = vpop.f32.mrb[50].mxu1 }
 0x15a   :  { %v1303_v5 = vadd.f32 %v2134_v23, %v2935_v19  ;;  %v2137_v33 = vadd.f32 %v2136_v30, %v2135_v25  ;;  %v2200_v34 = vpop.f32.mrb[51].mxu1 }
 0x15b   :  { %v2201_v36 = vadd.f32 %v2200_v34, %v2199_v32 }
 0x15c   :  { %v1306_v7 = vadd.f32 %v2137_v33, %v2937_v21  ;;  %v1400_v38 = vadd.f32 %v2198_v31, %v1303_v5 }
 0x15e   :  { %v2138_v27 = vpop.f32.mrb[52].mxu0  ;;  %v2977_v39 = vadd.f32 %v2201_v36, %v1306_v7 }
 0x15f   :  { %v2139_v40 = vpop.f32.mrb[53].mxu0  ;;  %v2202_v42 = vpop.f32.mrb[52].mxu1 }
 0x160   :  { %v2140_v29 = vadd.f32 %v2139_v40, %v2138_v27  ;;  %v2141_v45 = vpop.f32.mrb[54].mxu0  ;;  %v2203_v47 = vpop.f32.mrb[53].mxu1 }
 0x161   :  { %v2142_v48 = vpop.f32.mrb[55].mxu0  ;;  %v2204_v49 = vadd.f32 %v2203_v47, %v2202_v42  ;;  %v2205_v50 = vpop.f32.mrb[54].mxu1 }
 0x162   :  { %v1311_v52 = vadd.f32 %v2140_v29, %v2939_v35  ;;  %v2143_v19 = vadd.f32 %v2142_v48, %v2141_v45  ;;  %v2206_v54 = vpop.f32.mrb[55].mxu1 }
 0x163   :  { %v2207_v56 = vadd.f32 %v2206_v54, %v2205_v50 }
 0x164   :  { %v1314_v58 = vadd.f32 %v2143_v19, %v2941_v37  ;;  %v1408_v21 = vadd.f32 %v2204_v49, %v1311_v52 }
 0x166   :  { %v2144_v41 = vpop.f32.mrb[56].mxu0  ;;  %v1411_v59 = vadd.f32 %v2207_v56, %v1314_v58 }
 0x167   :  { %v2145_v60 = vpop.f32.mrb[57].mxu0  ;;  %v2208_v61 = vpop.f32.mrb[56].mxu1 }
 0x168   :  { %v2146_v43 = vadd.f32 %v2145_v60, %v2144_v41  ;;  %v2147_v63 = vpop.f32.mrb[58].mxu0  ;;  %v2209_v1 = vpop.f32.mrb[57].mxu1 }
 0x169   :  { %v2148_v2 = vpop.f32.mrb[59].mxu0  ;;  %v2210_v4 = vadd.f32 %v2209_v1, %v2208_v61  ;;  %v2211_v8 = vpop.f32.mrb[58].mxu1 }
 0x16a   :  { %v1319_v9 = vadd.f32 %v2146_v43, %v2943_v51  ;;  %v2149_v10 = vadd.f32 %v2148_v2, %v2147_v63  ;;  %v2212_v35 = vpop.f32.mrb[59].mxu1 }
 0x16b   :  { %v2213_v11 = vadd.f32 %v2212_v35, %v2211_v8 }
 0x16c   :  { %v1322_v12 = vadd.f32 %v2149_v10, %v2945_v53  ;;  %v1416_v55 = vadd.f32 %v2210_v4, %v1319_v9 }
 0x16e   :  { %v2150_v37 = vpop.f32.mrb[60].mxu0  ;;  %v1419_v13 = vadd.f32 %v2213_v11, %v1322_v12 }
 0x16f   :  { %v2151_v14 = vpop.f32.mrb[61].mxu0  ;;  %v2214_v15 = vpop.f32.mrb[60].mxu1 }
 0x170   :  { %v2152_v57 = vadd.f32 %v2151_v14, %v2150_v37  ;;  %v2153_v17 = vpop.f32.mrb[62].mxu0  ;;  %v2215_v20 = vpop.f32.mrb[61].mxu1 }
 0x171   :  { %v2154_v22 = vpop.f32.mrb[63].mxu0  ;;  %v2216_v23 = vadd.f32 %v2215_v20, %v2214_v15  ;;  %v2217_v25 = vpop.f32.mrb[62].mxu1 }
 0x172   :  { %v1327_v28 = vadd.f32 %v2152_v57, %v2947_v3  ;;  %v2155_v30 = vadd.f32 %v2154_v22, %v2153_v17  ;;  %v2218_v51 = vpop.f32.mrb[63].mxu1 }
 0x173   :  { %v2219_v31 = vadd.f32 %v2218_v51, %v2217_v25 }
 0x174   :  { %v1330_v32 = vadd.f32 %v2155_v30, %v2949_v6  ;;  %v1424_v5 = vadd.f32 %v2216_v23, %v1327_v28 }
 0x176   :  { %v2254_v53 = vpop.f32.mrb[64].mxu0  ;;  %v1427_v33 = vadd.f32 %v2219_v31, %v1330_v32 }
 0x177   :  { %v2986_v34 = vadd.f32 %v2254_v53, %v2959_v44  ;;  %v2262_v36 = vpop.f32.mrb[64].mxu1  ;;  %v1464_v7 = vpop.f32.mrb[65].mxu0 }
 0x178   :  { %v2988_v27 = vadd.f32 %v2262_v36, %v1408_v21  ;;  %v2991_v40 = vadd.f32 %v1464_v7, %v2953_v24  ;;  %v1496_v42 = vpop.f32.mrb[65].mxu1  ;;  %v2255_v3 = vpop.f32.mrb[66].mxu0 }
 0x179   :  { %v2993_v29 = vadd.f32 %v1496_v42, %v1400_v38  ;;  %v2996_v45 = vadd.f32 %v2255_v3, %v2961_v46  ;;  %v2263_v6 = vpop.f32.mrb[66].mxu1  ;;  %v1467_v47 = vpop.f32.mrb[67].mxu0  ;;  %v1550_v52 = vmul.f32 %v2986_v34, %v2986_v34 }
 0x17a   :  { %v2998_v48 = vadd.f32 %v2263_v6, %v1411_v59  ;;  %v3001_v44 = vadd.f32 %v1467_v47, %v2955_v26  ;;  %v1499_v49 = vpop.f32.mrb[67].mxu1  ;;  %v1548_v24 = vmul.f32 %v2991_v40, %v2991_v40  ;;  %v1558_v51 = vmul.f32 %v2988_v27, %v2988_v27 }
 0x17b   :  { %v3004_v50 = vadd.f32 %v1499_v49, %v2977_v39  ;;  %v1551_v39 = vmul.f32 %v2996_v45, %v2996_v45 }
 0x17c   :  { %v1527_v38 = vadd.f32 %v3001_v44, %v2991_v40  ;;  %v1549_v46 = vmul.f32 %v3001_v44, %v3001_v44 }
 0x17d   :  { %v1557_v25 = vmul.f32 %v3004_v50, %v3004_v50 }
 0x17e   :  { %v1528_v19 = vadd.f32 %v1527_v38, %v2986_v34  ;;  %v1564_v26 = vadd.f32 %v1549_v46, %v1548_v24  ;;  %v2258_v54 = vpop.f32.mrb[68].mxu0 }
 0x17f   :  { %v3018_v56 = vadd.f32 %v2258_v54, %v2971_v16  ;;  %v2266_v58 = vpop.f32.mrb[68].mxu1  ;;  %v1480_v21 = vpop.f32.mrb[69].mxu0 }
 0x180   :  { %v1565_v41 = vadd.f32 %v1564_v26, %v1550_v52  ;;  %v3020_v59 = vadd.f32 %v2266_v58, %v1424_v5  ;;  %v3023_v60 = vadd.f32 %v1480_v21, %v2965_v62  ;;  %v1529_v61 = vadd.f32 %v1528_v19, %v2996_v45  ;;  %v1512_v43 = vpop.f32.mrb[69].mxu1  ;;  %v2259_v63 = vpop.f32.mrb[70].mxu0 }
 0x181   :  { %v3026_v1 = vadd.f32 %v1512_v43, %v1416_v55  ;;  %v3029_v2 = vadd.f32 %v2259_v63, %v2973_v18  ;;  %v2267_v4 = vpop.f32.mrb[70].mxu1  ;;  %v1483_v16 = vpop.f32.mrb[71].mxu0  ;;  %v1554_v14 = vmul.f32 %v3018_v56, %v3018_v56  ;;  %v1559_v5 = vmul.f32 %v2998_v48, %v2998_v48 }
 0x182   :  { %v1530_v8 = vadd.f32 %v1529_v61, %v3023_v60  ;;  %v1552_v9 = vmul.f32 %v3023_v60, %v3023_v60  ;;  %v1566_v10 = vadd.f32 %v1565_v41, %v1551_v39  ;;  %v1515_v35 = vpop.f32.mrb[71].mxu1  ;;  %v3034_v62 = vadd.f32 %v2267_v4, %v1427_v33 }
 0x183   :  { %v3037_v11 = vadd.f32 %v1483_v16, %v2967_v0  ;;  %v3039_v55 = vadd.f32 %v1515_v35, %v1419_v13  ;;  %v1555_v17 = vmul.f32 %v3029_v2, %v3029_v2  ;;  %v1556_v13 = vmul.f32 %v2993_v29, %v2993_v29 }
 0x184   :  { %v1567_v12 = vadd.f32 %v1566_v10, %v1552_v9  ;;  %v1560_v36 = vmul.f32 %v3026_v1, %v3026_v1  ;;  %v1562_v49 = vmul.f32 %v3020_v59, %v3020_v59  ;;  %v1563_v46 = vmul.f32 %v3034_v62, %v3034_v62 }
 0x185   :  { %v1531_v18 = vadd.f32 %v1530_v8, %v3037_v11  ;;  %v1553_v37 = vmul.f32 %v3037_v11, %v3037_v11  ;;  %v1561_v6 = vmul.f32 %v3039_v55, %v3039_v55 }
 0x187   :  { %v1532_v15 = vadd.f32 %v1531_v18, %v3018_v56  ;;  %v1568_v57 = vadd.f32 %v1567_v12, %v1553_v37 }
 0x189   :  { %v1533_v0 = vadd.f32 %v1532_v15, %v3029_v2  ;;  %v1569_v20 = vadd.f32 %v1568_v57, %v1554_v14  ;;  %v1598_v15 = vlaneseq }
 0x18b   :  { %v1534_v22 = vadd.f32 %v1533_v0, %v2993_v29  ;;  %v1570_v23 = vadd.f32 %v1569_v20, %v1555_v17  ;;  %v1599_v57 = vshrl.u32 %v1598_v15, 7  ;;  %v1590_v17 = vld [vmem:[%s3122_s2] sm:$0x1] }
 0x18d   :  { %v1571_v28 = vadd.f32 %v1570_v23, %v1556_v13  ;;  %v1535_v30 = vadd.f32 %v1534_v22, %v3004_v50  ;;  %v1600_v0 = vsub.s32 0, %v1599_v57  ;;  %v1594_v22 = vld [vmem:[%s3123_s3] sm:$0x1] }
 0x18f   :  { %v1536_v31 = vadd.f32 %v1535_v30, %v2988_v27  ;;  %v1572_v32 = vadd.f32 %v1571_v28, %v1557_v25 }
 0x191   :  { %v1537_v53 = vadd.f32 %v1536_v31, %v2998_v48  ;;  %v1573_v33 = vadd.f32 %v1572_v32, %v1558_v51 }
 0x193   :  { %v1538_v7 = vadd.f32 %v1537_v53, %v3026_v1  ;;  %v1574_v42 = vadd.f32 %v1573_v33, %v1559_v5 }
 0x195   :  { %v1539_v3 = vadd.f32 %v1538_v7, %v3039_v55  ;;  %v1575_v47 = vadd.f32 %v1574_v42, %v1560_v36 }
 0x197   :  { %v1540_v24 = vadd.f32 %v1539_v3, %v3020_v59  ;;  %v1576_v38 = vadd.f32 %v1575_v47, %v1561_v6 }
 0x199   :  { %v1541_v52 = vadd.f32 %v1540_v24, %v3034_v62  ;;  %v1577_v19 = vadd.f32 %v1576_v38, %v1562_v49 }
 0x19b   :  { %v1542_v26 = vrot.slane %v1541_v52, 4  ;;  %v1578_v54 = vadd.f32 %v1577_v19, %v1563_v46 }
 0x19d   :  { %v1543_v39 = vadd.f32 %v1542_v26, %v1541_v52  ;;  %v1579_v58 = vrot.slane %v1578_v54, 4 }
 0x19f   :  { %v1544_v21 = vrot.slane %v1543_v39, 2  ;;  %v1580_v41 = vadd.f32 %v1579_v58, %v1578_v54 }
 0x1a1   :  { %v1545_v61 = vadd.f32 %v1544_v21, %v1543_v39  ;;  %v1581_v43 = vrot.slane %v1580_v41, 2 }
 0x1a3   :  { %v1546_v63 = vrot.slane %v1545_v61, 1  ;;  %v1582_v4 = vadd.f32 %v1581_v43, %v1580_v41 }
 0x1a5   :  { %v1547_v16 = vadd.f32 %v1546_v63, %v1545_v61  ;;  %v1583_v8 = vrot.slane %v1582_v4, 1 }
 0x1a7   :  { %v1584_v9 = vadd.f32 %v1583_v8, %v1582_v4  ;;  %v1585_v10 = vmul.f32 0.0078125, %v1547_v16 }
 0x1a9   :  { %v1586_v35 = vmul.f32 0.0078125, %v1584_v9  ;;  %v1587_v12 = vmul.f32 %v1585_v10, %v1585_v10 }
 0x1ab   :  { %v1588_v18 = vsub.f32 %v1586_v35, %v1587_v12 }
 0x1ad   :  { %v1589_v37 = vmax.f32 %v1588_v18, 0.0 }
 0x1af   :  { %v1591_v14 = vadd.f32 1e-05, %v1589_v37 }
 0x1b1   :  { %2460 = vrsqrt.f32 %v1591_v14 }
 0x1bb   :  { %v2461_v20 = vpop.eup %2460 }
 0x1bc   :  { %v1593_v13 = vmul.f32 %v2461_v20, %v1590_v17 }
 0x1be   :  { %v1595_v23 = vmul.f32 %v1593_v13, %v1585_v10  ;;  %v1601_v25 = vrot.slane %v1593_v13, %v1600_v0 }
 0x1c0   :  { %v1596_v28 = vsub.f32 %v1594_v22, %v1595_v23  ;;  %v1603_v30 = vmul.f32 %v1601_v25, %v2991_v40  ;;  %v1604_v51 = vmul.f32 %v1601_v25, %v3001_v44  ;;  %v1607_v31 = vmul.f32 %v1601_v25, %v3023_v60 }
 0x1c1   :  { %v1608_v32 = vmul.f32 %v1601_v25, %v3037_v11  ;;  %v1609_v5 = vmul.f32 %v1601_v25, %v3018_v56  ;;  %v1610_v53 = vmul.f32 %v1601_v25, %v3029_v2  ;;  %v1611_v33 = vmul.f32 %v1601_v25, %v2993_v29 }
 0x1c2   :  { %v1612_v36 = vmul.f32 %v1601_v25, %v3004_v50  ;;  %v1613_v7 = vmul.f32 %v1601_v25, %v2988_v27  ;;  %v1614_v42 = vmul.f32 %v1601_v25, %v2998_v48  ;;  %v1615_v40 = vmul.f32 %v1601_v25, %v3026_v1 }
 0x1c3   :  { %v1616_v44 = vmul.f32 %v1601_v25, %v3039_v55  ;;  %v1617_v60 = vmul.f32 %v1601_v25, %v3020_v59  ;;  %v1605_v11 = vmul.f32 %v1601_v25, %v2986_v34  ;;  %v1606_v56 = vmul.f32 %v1601_v25, %v2996_v45 }
 0x1c4   :  { %v1618_v2 = vmul.f32 %v1601_v25, %v3034_v62  ;;  %v1623_v3 = vrot.slane %v1596_v28, %v1600_v0 }
 0x1c6   :  { %v1625_v29 = vadd.f32 %v1623_v3, %v1603_v30  ;;  %v1626_v6 = vadd.f32 %v1623_v3, %v1604_v51  ;;  %v1627_v50 = vadd.f32 %v1623_v3, %v1605_v11  ;;  %v1628_v47 = vadd.f32 %v1623_v3, %v1606_v56 }
 0x1c7   :  { %v1629_v27 = vadd.f32 %v1623_v3, %v1607_v31  ;;  %v1630_v49 = vadd.f32 %v1623_v3, %v1608_v32  ;;  %v1631_v48 = vadd.f32 %v1623_v3, %v1609_v5  ;;  %v1632_v24 = vadd.f32 %v1623_v3, %v1610_v53 }
 0x1c8   :  { %v1633_v1 = vadd.f32 %v1623_v3, %v1611_v33  ;;  %v1634_v38 = vadd.f32 %v1623_v3, %v1612_v36  ;;  %v1635_v55 = vadd.f32 %v1623_v3, %v1613_v7  ;;  %v1636_v46 = vadd.f32 %v1623_v3, %v1614_v42 }
 0x1c9   :  { %v1637_v59 = vadd.f32 %v1623_v3, %v1615_v40  ;;  %v1638_v52 = vadd.f32 %v1623_v3, %v1616_v44  ;;  %v1639_v34 = vadd.f32 %v1623_v3, %v1617_v60  ;;  %v1640_v19 = vadd.f32 %v1623_v3, %v1618_v2 }
 0x1ca   :  { %v1641_v45 = vmax.f32 %v1625_v29, 0.0  ;;  %v1642_v26 = vmax.f32 %v1626_v6, 0.0  ;;  %v1643_v62 = vmax.f32 %v1627_v50, 0.0  ;;  %v1644_v54 = vmax.f32 %v1628_v47, 0.0 }
 0x1cb   :  { %v1645_v39 = vmax.f32 %v1629_v27, 0.0  ;;  %v1646_v58 = vmax.f32 %v1630_v49, 0.0  ;;  %v1647_v21 = vmax.f32 %v1631_v48, 0.0  ;;  %v1648_v41 = vmax.f32 %v1632_v24, 0.0 }
 0x1cc   :  { %v1649_v61 = vmax.f32 %v1633_v1, 0.0  ;;  %v1650_v43 = vmax.f32 %v1634_v38, 0.0  ;;  %v1651_v63 = vmax.f32 %v1635_v55, 0.0  ;;  %v1652_v4 = vmax.f32 %v1636_v46, 0.0 }
 0x1cd   :  { %v1653_v16 = vmax.f32 %v1637_v59, 0.0  ;;  %v1654_v8 = vmax.f32 %v1638_v52, 0.0  ;;  %v1655_v9 = vmax.f32 %v1639_v34, 0.0  ;;  %v1656_v10 = vmax.f32 %v1640_v19, 0.0 }
 0x1ce   :  { %v1920_v35 = vpack.c.bf16 %v1642_v26, %v1641_v45  ;;  %v1925_v12 = vpack.c.bf16 %v1644_v54, %v1643_v62  ;;  %v1930_v18 = vpack.c.bf16 %v1646_v58, %v1645_v39  ;;  %v1935_v37 = vpack.c.bf16 %v1648_v41, %v1647_v21 }
 0x1cf   :  { %v1940_v14 = vpack.c.bf16 %v1650_v43, %v1649_v61  ;;  %v1945_v15 = vpack.c.bf16 %v1652_v4, %v1651_v63  ;;  %v1950_v57 = vpack.c.bf16 %v1654_v8, %v1653_v16  ;;  %v1955_v17 = vpack.c.bf16 %v1656_v10, %v1655_v9 }
 0x1d0   :  { %1921 = vst [vmem:[%s3124_s4] sm:$0xff] %v1920_v35   ;;  %1957 = vst [vmem:[%s3124_s4 + $0x8] sm:$0xff] %v1925_v12  }
 0x1d1   :  { %1958 = vst [vmem:[%s3124_s4 + $0x10] sm:$0xff] %v1930_v18   ;;  %1959 = vst [vmem:[%s3124_s4 + $0x18] sm:$0xff] %v1935_v37  }
 0x1d2   :  { %1960 = vst [vmem:[%s3124_s4 + $0x20] sm:$0xff] %v1940_v14   ;;  %1961 = vst [vmem:[%s3124_s4 + $0x28] sm:$0xff] %v1945_v15  }
 0x1d3   :  { %1962 = vst [vmem:[%s3124_s4 + $0x30] sm:$0xff] %v1950_v57   ;;  %1963 = vst [vmem:[%s3124_s4 + $0x38] sm:$0xff] %v1955_v17  }

// kernel: forward.9
= control target key start
LH: loop header
LB: loop body
LE: loop exit
PB: predicated region body
PF: predicated region fallthrough
CT: control target
= control target key end

     0   :  { %12 = vsyncpa [#allocation3], 0  ;;  %v282_v36 = vlaneseq  ;;  %v2781_v37 = vmov 1966171168   ;;  %s3687_s0 = inlined_call_operand.vmem [shape: bf16[2,2048], index: 0, kind: input, shape index: {}]   ;;  %s3688_s1 = inlined_call_operand.vmem [shape: bf16[2048,256], index: 1, kind: input, shape index: {}]   ;;  %s3689_s2 = inlined_call_operand.vmem [shape: f32[1,256], index: 2, kind: input, shape index: {}]   ;;  %s3690_s3 = inlined_call_operand.vmem [shape: f32[2,128], index: 3, kind: input, shape index: {}]   ;;  %s3691_s4 = inlined_call_operand.hbm [shape: f32[2,128], index: 4, kind: output, shape index: {0}]   ;;  %s3692_s5 = inlined_call_operand.hbm [shape: f32[2,128], index: 5, kind: output, shape index: {1}]   ;;  %s3693_s6 = inlined_call_operand.vmem [shape: bf16[2,128], index: 6, kind: output, shape index: {2}]  }
   0x1   :  { %v2345_v0 = vld [vmem:[%s3688_s1 + $0x4] ss:$8 sps:$4 sm:$0xff]   ;;  %v2349_v2 = vld [vmem:[%s3688_s1] ss:$8 sps:$4 sm:$0xff]   ;;  %v2351_v4 = vld [vmem:[%s3688_s1 + $0x14] ss:$8 sps:$4 sm:$0xff]   ;;  %v296_v38 = vunpack.c.l.s4 %v2781_v37 }
   0x2   :  { %v2347_v1 = vld [vmem:[%s3688_s1 + $0x404] ss:$8 sps:$4 sm:$0xff]   ;;  %1688 = vmatprep.subr.bf16.mxu1 %v2345_v0  ;;  %v2350_v3 = vld [vmem:[%s3688_s1 + $0x400] ss:$8 sps:$4 sm:$0xff]   ;;  %v2353_v5 = vld [vmem:[%s3688_s1 + $0x414] ss:$8 sps:$4 sm:$0xff]  }
   0x3   :  { %1852 = vmatprep.subr.bf16.mxu0 %v2347_v1  ;;  %1689 = vmatpush1.bf16.msra.mxu1 %v2349_v2  ;;  %v2355_v6 = vld [vmem:[%s3688_s1 + $0x10] ss:$8 sps:$4 sm:$0xff]   ;;  %v2357_v8 = vld [vmem:[%s3688_s1 + $0x24] ss:$8 sps:$4 sm:$0xff]   ;;  %v2361_v10 = vld [vmem:[%s3688_s1 + $0x20] ss:$8 sps:$4 sm:$0xff]   ;;  %v297_v43 = vunpack.c.0.s8 %v296_v38 }
   0x4   :  { %1853 = vmatpush1.bf16.msra.mxu0 %v2350_v3  ;;  %1690 = vmatprep.subr.bf16.mxu1 %v2351_v4  ;;  %v2356_v7 = vld [vmem:[%s3688_s1 + $0x410] ss:$8 sps:$4 sm:$0xff]   ;;  %v2359_v9 = vld [vmem:[%s3688_s1 + $0x424] ss:$8 sps:$4 sm:$0xff]   ;;  %v2362_v11 = vld [vmem:[%s3688_s1 + $0x420] ss:$8 sps:$4 sm:$0xff]  }
   0x5   :  { %1854 = vmatprep.subr.bf16.mxu0 %v2353_v5  ;;  %v2363_v12 = vld [vmem:[%s3688_s1 + $0x34] ss:$8 sps:$4 sm:$0xff]   ;;  %v2367_v14 = vld [vmem:[%s3688_s1 + $0x30] ss:$8 sps:$4 sm:$0xff]   ;;  %v2369_v16 = vld [vmem:[%s3688_s1 + $0x44] ss:$8 sps:$4 sm:$0xff]  }
   0x6   :  { %v2365_v13 = vld [vmem:[%s3688_s1 + $0x434] ss:$8 sps:$4 sm:$0xff]   ;;  %v2368_v15 = vld [vmem:[%s3688_s1 + $0x430] ss:$8 sps:$4 sm:$0xff]   ;;  %v2371_v17 = vld [vmem:[%s3688_s1 + $0x444] ss:$8 sps:$4 sm:$0xff]  }
   0x7   :  { %1691 = vmatpush1.bf16.msra.mxu1 %v2355_v6  ;;  %v2373_v18 = vld [vmem:[%s3688_s1 + $0x40] ss:$8 sps:$4 sm:$0xff]   ;;  %v2375_v20 = vld [vmem:[%s3688_s1 + $0x54] ss:$8 sps:$4 sm:$0xff]   ;;  %v2379_v22 = vld [vmem:[%s3688_s1 + $0x50] ss:$8 sps:$4 sm:$0xff]  }
   0x8   :  { %1855 = vmatpush1.bf16.msra.mxu0 %v2356_v7  ;;  %1692 = vmatprep.subr.bf16.mxu1 %v2357_v8  ;;  %v2374_v19 = vld [vmem:[%s3688_s1 + $0x440] ss:$8 sps:$4 sm:$0xff]   ;;  %v2377_v21 = vld [vmem:[%s3688_s1 + $0x454] ss:$8 sps:$4 sm:$0xff]   ;;  %v2380_v23 = vld [vmem:[%s3688_s1 + $0x450] ss:$8 sps:$4 sm:$0xff]  }
   0x9   :  { %1856 = vmatprep.subr.bf16.mxu0 %v2359_v9  ;;  %v2381_v24 = vld [vmem:[%s3688_s1 + $0x64] ss:$8 sps:$4 sm:$0xff]   ;;  %v2385_v26 = vld [vmem:[%s3688_s1 + $0x60] ss:$8 sps:$4 sm:$0xff]   ;;  %v2387_v28 = vld [vmem:[%s3688_s1 + $0x74] ss:$8 sps:$4 sm:$0xff]  }
   0xa   :  { %v2383_v25 = vld [vmem:[%s3688_s1 + $0x464] ss:$8 sps:$4 sm:$0xff]   ;;  %v2386_v27 = vld [vmem:[%s3688_s1 + $0x460] ss:$8 sps:$4 sm:$0xff]   ;;  %v2389_v29 = vld [vmem:[%s3688_s1 + $0x474] ss:$8 sps:$4 sm:$0xff]  }
   0xb   :  { %1693 = vmatpush1.bf16.msra.mxu1 %v2361_v10  ;;  %v2391_v30 = vld [vmem:[%s3688_s1 + $0x70] ss:$8 sps:$4 sm:$0xff]   ;;  %v2393_v32 = vld [vmem:[%s3688_s1 + $0x84] ss:$8 sps:$4 sm:$0xff]   ;;  %v2397_v34 = vld [vmem:[%s3688_s1 + $0x80] ss:$8 sps:$4 sm:$0xff]  }
   0xc   :  { %1857 = vmatpush1.bf16.msra.mxu0 %v2362_v11  ;;  %1694 = vmatprep.subr.bf16.mxu1 %v2363_v12  ;;  %v2392_v31 = vld [vmem:[%s3688_s1 + $0x470] ss:$8 sps:$4 sm:$0xff]   ;;  %v2395_v33 = vld [vmem:[%s3688_s1 + $0x484] ss:$8 sps:$4 sm:$0xff]   ;;  %v2398_v35 = vld [vmem:[%s3688_s1 + $0x480] ss:$8 sps:$4 sm:$0xff]  }
   0xd   :  { %1858 = vmatprep.subr.bf16.mxu0 %v2365_v13  ;;  %v2399_v39 = vld [vmem:[%s3688_s1 + $0x94] ss:$8 sps:$4 sm:$0xff]   ;;  %v2403_v41 = vld [vmem:[%s3688_s1 + $0x90] ss:$8 sps:$4 sm:$0xff]   ;;  %v2936_v42 = vshrl.u32 %v282_v36, 7  ;;  %v22_v52 = vld [vmem:[%s3687_s0] sm:$0xff] }
   0xe   :  { %v2401_v40 = vld [vmem:[%s3688_s1 + $0x494] ss:$8 sps:$4 sm:$0xff]   ;;  %v2404_v44 = vld [vmem:[%s3688_s1 + $0x490] ss:$8 sps:$4 sm:$0xff]   ;;  %v2405_v45 = vld [vmem:[%s3688_s1 + $0xa4] ss:$8 sps:$4 sm:$0xff]   ;;  %v294_v12 = vcombine.high %v22_v52, %v22_v52 }
   0xf   :  { %1695 = vmatpush1.bf16.msra.mxu1 %v2367_v14  ;;  %v2407_v46 = vld [vmem:[%s3688_s1 + $0x4a4] ss:$8 sps:$4 sm:$0xff]   ;;  %v2409_v47 = vld [vmem:[%s3688_s1 + $0xa0] ss:$8 sps:$4 sm:$0xff]   ;;  %v2954_v49 = vsub.s32 %v297_v43, %v2936_v42  ;;  %v2411_v50 = vld [vmem:[%s3688_s1 + $0xb4] ss:$8 sps:$4 sm:$0xff]  }
  0x10   :  { %1859 = vmatpush1.bf16.msra.mxu0 %v2368_v15  ;;  %1696 = vmatprep.subr.bf16.mxu1 %v2369_v16  ;;  %v2410_v48 = vld [vmem:[%s3688_s1 + $0x4a0] ss:$8 sps:$4 sm:$0xff]   ;;  %v2413_v51 = vld [vmem:[%s3688_s1 + $0x4b4] ss:$8 sps:$4 sm:$0xff]   ;;  %v2415_v53 = vld [vmem:[%s3688_s1 + $0xb0] ss:$8 sps:$4 sm:$0xff]  }
  0x11   :  { %1860 = vmatprep.subr.bf16.mxu0 %v2371_v17  ;;  %v301_v54 = vrot.slane %v22_v52, %v2954_v49  ;;  %v2416_v55 = vld [vmem:[%s3688_s1 + $0x4b0] ss:$8 sps:$4 sm:$0xff]   ;;  %v23_v56 = vld [vmem:[%s3687_s0 + $0x8] sm:$0xff]  ;;  %v2423_v1 = vld [vmem:[%s3688_s1 + $0xd4] ss:$8 sps:$4 sm:$0xff]  }
  0x12   :  { %v2417_v57 = vld [vmem:[%s3688_s1 + $0xc4] ss:$8 sps:$4 sm:$0xff]   ;;  %v350_v60 = vrot.slane %v23_v56, %v2954_v49  ;;  %v2421_v63 = vld [vmem:[%s3688_s1 + $0xc0] ss:$8 sps:$4 sm:$0xff]   ;;  %v2425_v2 = vld [vmem:[%s3688_s1 + $0x4d4] ss:$8 sps:$4 sm:$0xff]   ;;  %v343_v13 = vcombine.high %v23_v56, %v23_v56 }
  0x13   :  { %1697 = vmatpush1.bf16.msra.mxu1 %v2373_v18  ;;  %v2419_v58 = vld [vmem:[%s3688_s1 + $0x4c4] ss:$8 sps:$4 sm:$0xff]   ;;  %v309_v59 = vcombine.high %v301_v54, %v301_v54  ;;  %v2422_v0 = vld [vmem:[%s3688_s1 + $0x4c0] ss:$8 sps:$4 sm:$0xff]   ;;  %v2427_v4 = vld [vmem:[%s3688_s1 + $0xd0] ss:$8 sps:$4 sm:$0xff]   ;;  %v308_v18 = vrot.slane %v294_v12, %v2954_v49 }
  0x14   :  { %1861 = vmatpush1.bf16.msra.mxu0 %v2374_v19  ;;  %1698 = vmatprep.subr.bf16.mxu1 %v2375_v20  ;;  %v358_v62 = vcombine.high %v350_v60, %v350_v60  ;;  %v2428_v5 = vld [vmem:[%s3688_s1 + $0x4d0] ss:$8 sps:$4 sm:$0xff]   ;;  %v2429_v6 = vld [vmem:[%s3688_s1 + $0xe4] ss:$8 sps:$4 sm:$0xff]   ;;  %v2433_v8 = vld [vmem:[%s3688_s1 + $0xe0] ss:$8 sps:$4 sm:$0xff]   ;;  %v357_v19 = vrot.slane %v343_v13, %v2954_v49  ;;  %v3038_v20 = vrot.slane %v301_v54, %v2954_v49 }
  0x15   :  { %1862 = vmatprep.subr.bf16.mxu0 %v2377_v21  ;;  %v2983_v61 = vrot.slane %v309_v59, %v2954_v49  ;;  %v2431_v7 = vld [vmem:[%s3688_s1 + $0x4e4] ss:$8 sps:$4 sm:$0xff]   ;;  %v2434_v9 = vld [vmem:[%s3688_s1 + $0x4e0] ss:$8 sps:$4 sm:$0xff]   ;;  %v2435_v10 = vld [vmem:[%s3688_s1 + $0xf4] ss:$8 sps:$4 sm:$0xff]   ;;  %v3041_v21 = vrot.slane %v350_v60, %v2954_v49 }
  0x16   :  { %v380_v3 = vrot.slane %v358_v62, %v2954_v49  ;;  %v2437_v11 = vld [vmem:[%s3688_s1 + $0x4f4] ss:$8 sps:$4 sm:$0xff]   ;;  %v2439_v14 = vld [vmem:[%s3688_s1 + $0xf0] ss:$8 sps:$4 sm:$0xff]   ;;  %v2444_v16 = vld [vmem:[%s3688_s1 + $0x104] ss:$8 sps:$4 sm:$0xff]  }
  0x17   :  { %1699 = vmatpush1.bf16.msra.mxu1 %v2379_v22  ;;  %1720 = vmatprep.mubr.bf16.mxu1 %v2983_v61  ;;  %v2440_v15 = vld [vmem:[%s3688_s1 + $0x4f0] ss:$8 sps:$4 sm:$0xff]   ;;  %v2448_v17 = vld [vmem:[%s3688_s1 + $0x504] ss:$8 sps:$4 sm:$0xff]   ;;  %v310_v22 = vcombine.high %v308_v18, %v308_v18  ;;  %v2455_v38 = vld [vmem:[%s3688_s1 + $0x120] ss:$8 sps:$4 sm:$0xff]  }
  0x18   :  { %1863 = vmatpush1.bf16.msra.mxu0 %v2380_v23  ;;  %1700 = vmatprep.subr.bf16.mxu1 %v2381_v24  ;;  %v359_v23 = vcombine.high %v357_v19, %v357_v19  ;;  %v2442_v24 = vld [vmem:[%s3688_s1 + $0x100] ss:$8 sps:$4 sm:$0xff]   ;;  %v2457_v36 = vld [vmem:[%s3688_s1 + $0x124] ss:$8 sps:$4 sm:$0xff]   ;;  %v2461_v43 = vld [vmem:[%s3688_s1 + $0x130] ss:$8 sps:$4 sm:$0xff]  }
  0x19   :  { %1864 = vmatprep.subr.bf16.mxu0 %v2383_v25  ;;  %1884 = vmatprep.mubr.bf16.mxu0 %v380_v3  ;;  %v2446_v25 = vld [vmem:[%s3688_s1 + $0x500] ss:$8 sps:$4 sm:$0xff]   ;;  %v2460_v37 = vld [vmem:[%s3688_s1 + $0x524] ss:$8 sps:$4 sm:$0xff]   ;;  %v2476_v52 = vld [vmem:[%s3688_s1 + $0x550] ss:$8 sps:$4 sm:$0xff]  }
  0x1a   :  { %v2484_v54 = vld [vmem:[%s3688_s1 + $0x564] ss:$8 sps:$4 sm:$0xff]   ;;  %v2482_v56 = vld [vmem:[%s3688_s1 + $0x560] ss:$8 sps:$4 sm:$0xff]   ;;  %v2485_v59 = vld [vmem:[%s3688_s1 + $0x170] ss:$8 sps:$4 sm:$0xff]  }
  0x1b   :  { %1701 = vmatpush1.bf16.msra.mxu1 %v2385_v26  ;;  %v2451_v26 = vld [vmem:[%s3688_s1 + $0x114] ss:$8 sps:$4 sm:$0xff]   ;;  %v2488_v60 = vld [vmem:[%s3688_s1 + $0x570] ss:$8 sps:$4 sm:$0xff]   ;;  %v2496_v62 = vld [vmem:[%s3688_s1 + $0x584] ss:$8 sps:$4 sm:$0xff]  }
  0x1c   :  { %1865 = vmatpush1.bf16.msra.mxu0 %v2386_v27  ;;  %1702 = vmatprep.subr.bf16.mxu1 %v2387_v28  ;;  %v2454_v27 = vld [vmem:[%s3688_s1 + $0x514] ss:$8 sps:$4 sm:$0xff]   ;;  %v3056_v28 = vrot.slane %v310_v22, %v2954_v49  ;;  %v2512_v12 = vld [vmem:[%s3688_s1 + $0x5b0] ss:$8 sps:$4 sm:$0xff]   ;;  %v2517_v13 = vld [vmem:[%s3688_s1 + $0x1c4] ss:$8 sps:$4 sm:$0xff]  }
  0x1d   :  { %1866 = vmatprep.subr.bf16.mxu0 %v2389_v29  ;;  %v3059_v29 = vrot.slane %v359_v23, %v2954_v49  ;;  %v2524_v22 = vld [vmem:[%s3688_s1 + $0x5d0] ss:$8 sps:$4 sm:$0xff]   ;;  %v2529_v23 = vld [vmem:[%s3688_s1 + $0x1e4] ss:$8 sps:$4 sm:$0xff]  }
  0x1f   :  { %1703 = vmatpush1.bf16.msra.mxu1 %v2391_v30  ;;  %v3062_v30 = vrot.slane %v308_v18, %v2954_v49  ;;  %v2526_v18 = vld [vmem:[%s3688_s1 + $0x5d4] ss:$8 sps:$4 sm:$0xff]  }
  0x20   :  { %1867 = vmatpush1.bf16.msra.mxu0 %v2392_v31  ;;  %1704 = vmatprep.subr.bf16.mxu1 %v2393_v32  ;;  %v341_v31 = vcombine.high %v2983_v61, %v2983_v61  ;;  %v390_v32 = vcombine.high %v380_v3, %v380_v3  ;;  %v2493_v61 = vld [vmem:[%s3688_s1 + $0x184] ss:$8 sps:$4 sm:$0xff]   ;;  %v2497_v3 = vld [vmem:[%s3688_s1 + $0x190] ss:$8 sps:$4 sm:$0xff]  }
  0x21   :  { %1868 = vmatprep.subr.bf16.mxu0 %v2395_v33  ;;  %v3067_v33 = vrot.slane %v357_v19, %v2954_v49  ;;  %v2475_v49 = vld [vmem:[%s3688_s1 + $0x154] ss:$8 sps:$4 sm:$0xff]   ;;  %v2521_v19 = vld [vmem:[%s3688_s1 + $0x1d0] ss:$8 sps:$4 sm:$0xff]  }
  0x23   :  { %1705 = vmatpush1.bf16.msra.mxu1 %v2397_v34  ;;  %v2449_v34 = vld [vmem:[%s3688_s1 + $0x110] ss:$8 sps:$4 sm:$0xff]  }
  0x24   :  { %1869 = vmatpush1.bf16.msra.mxu0 %v2398_v35  ;;  %1706 = vmatprep.subr.bf16.mxu1 %v2399_v39  ;;  %v2452_v35 = vld [vmem:[%s3688_s1 + $0x510] ss:$8 sps:$4 sm:$0xff]   ;;  %v2458_v39 = vld [vmem:[%s3688_s1 + $0x520] ss:$8 sps:$4 sm:$0xff]  }
  0x25   :  { %1870 = vmatprep.subr.bf16.mxu0 %v2401_v40  ;;  %v2463_v40 = vld [vmem:[%s3688_s1 + $0x134] ss:$8 sps:$4 sm:$0xff]  }
  0x27   :  { %1707 = vmatpush1.bf16.msra.mxu1 %v2403_v41  ;;  %v2466_v41 = vld [vmem:[%s3688_s1 + $0x534] ss:$8 sps:$4 sm:$0xff]  }
  0x28   :  { %1871 = vmatpush1.bf16.msra.mxu0 %v2404_v44  ;;  %1708 = vmatprep.subr.bf16.mxu1 %v2405_v45  ;;  %v2464_v44 = vld [vmem:[%s3688_s1 + $0x530] ss:$8 sps:$4 sm:$0xff]   ;;  %v2469_v45 = vld [vmem:[%s3688_s1 + $0x144] ss:$8 sps:$4 sm:$0xff]  }
  0x29   :  { %1872 = vmatprep.subr.bf16.mxu0 %v2407_v46  ;;  %v2472_v46 = vld [vmem:[%s3688_s1 + $0x544] ss:$8 sps:$4 sm:$0xff]  }
  0x2b   :  { %1709 = vmatpush1.bf16.msra.mxu1 %v2409_v47  ;;  %v2467_v47 = vld [vmem:[%s3688_s1 + $0x140] ss:$8 sps:$4 sm:$0xff]  }
  0x2c   :  { %1873 = vmatpush1.bf16.msra.mxu0 %v2410_v48  ;;  %1710 = vmatprep.subr.bf16.mxu1 %v2411_v50  ;;  %v2470_v48 = vld [vmem:[%s3688_s1 + $0x540] ss:$8 sps:$4 sm:$0xff]   ;;  %v2478_v50 = vld [vmem:[%s3688_s1 + $0x554] ss:$8 sps:$4 sm:$0xff]  }
  0x2d   :  { %1874 = vmatprep.subr.bf16.mxu0 %v2413_v51  ;;  %v2473_v51 = vld [vmem:[%s3688_s1 + $0x150] ss:$8 sps:$4 sm:$0xff]  }
  0x2f   :  { %1711 = vmatpush1.bf16.msra.mxu1 %v2415_v53  ;;  %v2481_v53 = vld [vmem:[%s3688_s1 + $0x164] ss:$8 sps:$4 sm:$0xff]  }
  0x30   :  { %1875 = vmatpush1.bf16.msra.mxu0 %v2416_v55  ;;  %1712 = vmatprep.subr.bf16.mxu1 %v2417_v57  ;;  %v2479_v55 = vld [vmem:[%s3688_s1 + $0x160] ss:$8 sps:$4 sm:$0xff]   ;;  %v2487_v57 = vld [vmem:[%s3688_s1 + $0x174] ss:$8 sps:$4 sm:$0xff]  }
  0x31   :  { %1876 = vmatprep.subr.bf16.mxu0 %v2419_v58  ;;  %v2490_v58 = vld [vmem:[%s3688_s1 + $0x574] ss:$8 sps:$4 sm:$0xff]  }
  0x33   :  { %1713 = vmatpush1.bf16.msra.mxu1 %v2421_v63  ;;  %v2491_v63 = vld [vmem:[%s3688_s1 + $0x180] ss:$8 sps:$4 sm:$0xff]  }
  0x34   :  { %1877 = vmatpush1.bf16.msra.mxu0 %v2422_v0  ;;  %1714 = vmatprep.subr.bf16.mxu1 %v2423_v1  ;;  %v2494_v0 = vld [vmem:[%s3688_s1 + $0x580] ss:$8 sps:$4 sm:$0xff]   ;;  %v2499_v1 = vld [vmem:[%s3688_s1 + $0x194] ss:$8 sps:$4 sm:$0xff]  }
  0x35   :  { %1878 = vmatprep.subr.bf16.mxu0 %v2425_v2  ;;  %v2502_v2 = vld [vmem:[%s3688_s1 + $0x594] ss:$8 sps:$4 sm:$0xff]  }
  0x37   :  { %1715 = vmatpush1.bf16.msra.mxu1 %v2427_v4  ;;  %v2500_v4 = vld [vmem:[%s3688_s1 + $0x590] ss:$8 sps:$4 sm:$0xff]  }
  0x38   :  { %1879 = vmatpush1.bf16.msra.mxu0 %v2428_v5  ;;  %1716 = vmatprep.subr.bf16.mxu1 %v2429_v6  ;;  %v2505_v5 = vld [vmem:[%s3688_s1 + $0x1a4] ss:$8 sps:$4 sm:$0xff]  }
  0x39   :  { %1880 = vmatprep.subr.bf16.mxu0 %v2431_v7  ;;  %v2508_v6 = vld [vmem:[%s3688_s1 + $0x5a4] ss:$8 sps:$4 sm:$0xff]   ;;  %v2503_v7 = vld [vmem:[%s3688_s1 + $0x1a0] ss:$8 sps:$4 sm:$0xff]  }
  0x3b   :  { %1717 = vmatpush1.bf16.msra.mxu1 %v2433_v8  ;;  %v2506_v8 = vld [vmem:[%s3688_s1 + $0x5a0] ss:$8 sps:$4 sm:$0xff]  }
  0x3c   :  { %1881 = vmatpush1.bf16.msra.mxu0 %v2434_v9  ;;  %1718 = vmatprep.subr.bf16.mxu1 %v2435_v10  ;;  %v2511_v9 = vld [vmem:[%s3688_s1 + $0x1b4] ss:$8 sps:$4 sm:$0xff]  }
  0x3d   :  { %1882 = vmatprep.subr.bf16.mxu0 %v2437_v11  ;;  %v2514_v10 = vld [vmem:[%s3688_s1 + $0x5b4] ss:$8 sps:$4 sm:$0xff]   ;;  %v2509_v11 = vld [vmem:[%s3688_s1 + $0x1b0] ss:$8 sps:$4 sm:$0xff]  }
  0x3f   :  { %1719 = vmatpush1.bf16.msra.mxu1 %v2439_v14  ;;  %v2520_v14 = vld [vmem:[%s3688_s1 + $0x5c4] ss:$8 sps:$4 sm:$0xff]  }
  0x40   :  { %1883 = vmatpush1.bf16.msra.mxu0 %v2440_v15  ;;  %1729 = vmatprep.subr.bf16.mxu1 %v2444_v16  ;;  %v2515_v15 = vld [vmem:[%s3688_s1 + $0x1c0] ss:$8 sps:$4 sm:$0xff]  }
  0x41   :  { %1893 = vmatprep.subr.bf16.mxu0 %v2448_v17  ;;  %v2518_v16 = vld [vmem:[%s3688_s1 + $0x5c0] ss:$8 sps:$4 sm:$0xff]   ;;  %v2523_v17 = vld [vmem:[%s3688_s1 + $0x1d4] ss:$8 sps:$4 sm:$0xff]  }
  0x42   :  { %1721 = vmatmul.mubr.bf16.vlgmr.msra.gmra.mrb[0].mxu1 %v3038_v20 }
  0x43   :  { %1885 = vmatmul.mubr.bf16.vlgmr.msra.gmra.mrb[0].mxu0 %v3041_v21  ;;  %1730 = vmatpush1.bf16.msra.mxu1 %v2442_v24  ;;  %v2532_v24 = vld [vmem:[%s3688_s1 + $0x5e4] ss:$8 sps:$4 sm:$0xff]  }
  0x44   :  { %1894 = vmatpush1.bf16.msra.mxu0 %v2446_v25  ;;  %1731 = vmatprep.subr.bf16.mxu1 %v2451_v26  ;;  %v2527_v25 = vld [vmem:[%s3688_s1 + $0x1e0] ss:$8 sps:$4 sm:$0xff]  }
  0x45   :  { %1895 = vmatprep.subr.bf16.mxu0 %v2454_v27  ;;  %1761 = vmatprep.mubr.bf16.mxu1 %v341_v31  ;;  %v2530_v26 = vld [vmem:[%s3688_s1 + $0x5e0] ss:$8 sps:$4 sm:$0xff]   ;;  %v2535_v27 = vld [vmem:[%s3688_s1 + $0x1f4] ss:$8 sps:$4 sm:$0xff]  }
  0x46   :  { %1925 = vmatprep.mubr.bf16.mxu0 %v390_v32  ;;  %v2538_v31 = vld [vmem:[%s3688_s1 + $0x5f4] ss:$8 sps:$4 sm:$0xff]   ;;  %v2533_v32 = vld [vmem:[%s3688_s1 + $0x1f0] ss:$8 sps:$4 sm:$0xff]  }
  0x47   :  { %1732 = vmatpush1.bf16.msra.mxu1 %v2449_v34  ;;  %v2536_v34 = vld [vmem:[%s3688_s1 + $0x5f0] ss:$8 sps:$4 sm:$0xff]  }
  0x48   :  { %1896 = vmatpush1.bf16.msra.mxu0 %v2452_v35  ;;  %1733 = vmatprep.subr.bf16.mxu1 %v2457_v36  ;;  %v2541_v35 = vld [vmem:[%s3688_s1 + $0x204] ss:$8 sps:$4 sm:$0xff]  }
  0x49   :  { %1897 = vmatprep.subr.bf16.mxu0 %v2460_v37  ;;  %v2544_v36 = vld [vmem:[%s3688_s1 + $0x604] ss:$8 sps:$4 sm:$0xff]   ;;  %v339_v37 = vcombine.high %v3038_v20, %v3038_v20  ;;  %v2550_v20 = vld [vmem:[%s3688_s1 + $0x614] ss:$8 sps:$4 sm:$0xff]  }
  0x4b   :  { %1734 = vmatpush1.bf16.msra.mxu1 %v2455_v38  ;;  %v388_v38 = vcombine.high %v3041_v21, %v3041_v21  ;;  %v2545_v21 = vld [vmem:[%s3688_s1 + $0x210] ss:$8 sps:$4 sm:$0xff]  }
  0x4c   :  { %1898 = vmatpush1.bf16.msra.mxu0 %v2458_v39  ;;  %1735 = vmatprep.subr.bf16.mxu1 %v2463_v40  ;;  %v2539_v39 = vld [vmem:[%s3688_s1 + $0x200] ss:$8 sps:$4 sm:$0xff]  }
  0x4d   :  { %1899 = vmatprep.subr.bf16.mxu0 %v2466_v41  ;;  %v2542_v40 = vld [vmem:[%s3688_s1 + $0x600] ss:$8 sps:$4 sm:$0xff]   ;;  %v2547_v41 = vld [vmem:[%s3688_s1 + $0x214] ss:$8 sps:$4 sm:$0xff]  }
  0x4f   :  { %1736 = vmatpush1.bf16.msra.mxu1 %v2461_v43  ;;  %v2548_v43 = vld [vmem:[%s3688_s1 + $0x610] ss:$8 sps:$4 sm:$0xff]  }
  0x50   :  { %1900 = vmatpush1.bf16.msra.mxu0 %v2464_v44  ;;  %1737 = vmatprep.subr.bf16.mxu1 %v2469_v45  ;;  %v2553_v44 = vld [vmem:[%s3688_s1 + $0x224] ss:$8 sps:$4 sm:$0xff]  }
  0x51   :  { %1901 = vmatprep.subr.bf16.mxu0 %v2472_v46  ;;  %v2556_v45 = vld [vmem:[%s3688_s1 + $0x624] ss:$8 sps:$4 sm:$0xff]   ;;  %v2551_v46 = vld [vmem:[%s3688_s1 + $0x220] ss:$8 sps:$4 sm:$0xff]  }
  0x53   :  { %1738 = vmatpush1.bf16.msra.mxu1 %v2467_v47  ;;  %v2554_v47 = vld [vmem:[%s3688_s1 + $0x620] ss:$8 sps:$4 sm:$0xff]  }
  0x54   :  { %1902 = vmatpush1.bf16.msra.mxu0 %v2470_v48  ;;  %1739 = vmatprep.subr.bf16.mxu1 %v2475_v49  ;;  %v2559_v48 = vld [vmem:[%s3688_s1 + $0x234] ss:$8 sps:$4 sm:$0xff]  }
  0x55   :  { %1903 = vmatprep.subr.bf16.mxu0 %v2478_v50  ;;  %v2562_v49 = vld [vmem:[%s3688_s1 + $0x634] ss:$8 sps:$4 sm:$0xff]   ;;  %v2557_v50 = vld [vmem:[%s3688_s1 + $0x230] ss:$8 sps:$4 sm:$0xff]  }
  0x57   :  { %1740 = vmatpush1.bf16.msra.mxu1 %v2473_v51  ;;  %v2560_v51 = vld [vmem:[%s3688_s1 + $0x630] ss:$8 sps:$4 sm:$0xff]  }
  0x58   :  { %1904 = vmatpush1.bf16.msra.mxu0 %v2476_v52  ;;  %1741 = vmatprep.subr.bf16.mxu1 %v2481_v53  ;;  %v2565_v52 = vld [vmem:[%s3688_s1 + $0x244] ss:$8 sps:$4 sm:$0xff]  }
  0x59   :  { %1905 = vmatprep.subr.bf16.mxu0 %v2484_v54  ;;  %v2568_v53 = vld [vmem:[%s3688_s1 + $0x644] ss:$8 sps:$4 sm:$0xff]   ;;  %v2563_v54 = vld [vmem:[%s3688_s1 + $0x240] ss:$8 sps:$4 sm:$0xff]  }
  0x5b   :  { %1742 = vmatpush1.bf16.msra.mxu1 %v2479_v55  ;;  %v2566_v55 = vld [vmem:[%s3688_s1 + $0x640] ss:$8 sps:$4 sm:$0xff]  }
  0x5c   :  { %1906 = vmatpush1.bf16.msra.mxu0 %v2482_v56  ;;  %1743 = vmatprep.subr.bf16.mxu1 %v2487_v57  ;;  %v2571_v56 = vld [vmem:[%s3688_s1 + $0x254] ss:$8 sps:$4 sm:$0xff]  }
  0x5d   :  { %1907 = vmatprep.subr.bf16.mxu0 %v2490_v58  ;;  %v2574_v57 = vld [vmem:[%s3688_s1 + $0x654] ss:$8 sps:$4 sm:$0xff]   ;;  %v2569_v58 = vld [vmem:[%s3688_s1 + $0x250] ss:$8 sps:$4 sm:$0xff]  }
  0x5f   :  { %1744 = vmatpush1.bf16.msra.mxu1 %v2485_v59  ;;  %v2572_v59 = vld [vmem:[%s3688_s1 + $0x650] ss:$8 sps:$4 sm:$0xff]  }
  0x60   :  { %1908 = vmatpush1.bf16.msra.mxu0 %v2488_v60  ;;  %1745 = vmatprep.subr.bf16.mxu1 %v2493_v61  ;;  %v2577_v60 = vld [vmem:[%s3688_s1 + $0x264] ss:$8 sps:$4 sm:$0xff]  }
  0x61   :  { %1909 = vmatprep.subr.bf16.mxu0 %v2496_v62  ;;  %v2580_v61 = vld [vmem:[%s3688_s1 + $0x664] ss:$8 sps:$4 sm:$0xff]   ;;  %v2575_v62 = vld [vmem:[%s3688_s1 + $0x260] ss:$8 sps:$4 sm:$0xff]  }
  0x63   :  { %1746 = vmatpush1.bf16.msra.mxu1 %v2491_v63  ;;  %v2578_v63 = vld [vmem:[%s3688_s1 + $0x660] ss:$8 sps:$4 sm:$0xff]  }
  0x64   :  { %1910 = vmatpush1.bf16.msra.mxu0 %v2494_v0  ;;  %1747 = vmatprep.subr.bf16.mxu1 %v2499_v1  ;;  %v2583_v0 = vld [vmem:[%s3688_s1 + $0x274] ss:$8 sps:$4 sm:$0xff]  }
  0x65   :  { %1911 = vmatprep.subr.bf16.mxu0 %v2502_v2  ;;  %v2586_v1 = vld [vmem:[%s3688_s1 + $0x674] ss:$8 sps:$4 sm:$0xff]   ;;  %v2581_v2 = vld [vmem:[%s3688_s1 + $0x270] ss:$8 sps:$4 sm:$0xff]  }
  0x67   :  { %1748 = vmatpush1.bf16.msra.mxu1 %v2497_v3  ;;  %v2584_v3 = vld [vmem:[%s3688_s1 + $0x670] ss:$8 sps:$4 sm:$0xff]  }
  0x68   :  { %1912 = vmatpush1.bf16.msra.mxu0 %v2500_v4  ;;  %1749 = vmatprep.subr.bf16.mxu1 %v2505_v5  ;;  %v2589_v4 = vld [vmem:[%s3688_s1 + $0x284] ss:$8 sps:$4 sm:$0xff]  }
  0x69   :  { %1913 = vmatprep.subr.bf16.mxu0 %v2508_v6  ;;  %v2592_v5 = vld [vmem:[%s3688_s1 + $0x684] ss:$8 sps:$4 sm:$0xff]   ;;  %v2587_v6 = vld [vmem:[%s3688_s1 + $0x280] ss:$8 sps:$4 sm:$0xff]  }
  0x6b   :  { %1750 = vmatpush1.bf16.msra.mxu1 %v2503_v7  ;;  %v2590_v7 = vld [vmem:[%s3688_s1 + $0x680] ss:$8 sps:$4 sm:$0xff]  }
  0x6c   :  { %1914 = vmatpush1.bf16.msra.mxu0 %v2506_v8  ;;  %1751 = vmatprep.subr.bf16.mxu1 %v2511_v9  ;;  %v2595_v8 = vld [vmem:[%s3688_s1 + $0x294] ss:$8 sps:$4 sm:$0xff]  }
  0x6d   :  { %1915 = vmatprep.subr.bf16.mxu0 %v2514_v10  ;;  %v2598_v9 = vld [vmem:[%s3688_s1 + $0x694] ss:$8 sps:$4 sm:$0xff]   ;;  %v2593_v10 = vld [vmem:[%s3688_s1 + $0x290] ss:$8 sps:$4 sm:$0xff]  }
  0x6f   :  { %1752 = vmatpush1.bf16.msra.mxu1 %v2509_v11  ;;  %v2596_v11 = vld [vmem:[%s3688_s1 + $0x690] ss:$8 sps:$4 sm:$0xff]  }
  0x70   :  { %1916 = vmatpush1.bf16.msra.mxu0 %v2512_v12  ;;  %1753 = vmatprep.subr.bf16.mxu1 %v2517_v13  ;;  %v2601_v12 = vld [vmem:[%s3688_s1 + $0x2a4] ss:$8 sps:$4 sm:$0xff]  }
  0x71   :  { %1917 = vmatprep.subr.bf16.mxu0 %v2520_v14  ;;  %v2604_v13 = vld [vmem:[%s3688_s1 + $0x6a4] ss:$8 sps:$4 sm:$0xff]   ;;  %v2599_v14 = vld [vmem:[%s3688_s1 + $0x2a0] ss:$8 sps:$4 sm:$0xff]  }
  0x73   :  { %1754 = vmatpush1.bf16.msra.mxu1 %v2515_v15  ;;  %v2602_v15 = vld [vmem:[%s3688_s1 + $0x6a0] ss:$8 sps:$4 sm:$0xff]  }
  0x74   :  { %1918 = vmatpush1.bf16.msra.mxu0 %v2518_v16  ;;  %1755 = vmatprep.subr.bf16.mxu1 %v2523_v17  ;;  %v2607_v16 = vld [vmem:[%s3688_s1 + $0x2b4] ss:$8 sps:$4 sm:$0xff]  }
  0x75   :  { %1919 = vmatprep.subr.bf16.mxu0 %v2526_v18  ;;  %v2610_v17 = vld [vmem:[%s3688_s1 + $0x6b4] ss:$8 sps:$4 sm:$0xff]  }
  0x77   :  { %1756 = vmatpush1.bf16.msra.mxu1 %v2521_v19 }
  0x78   :  { %1920 = vmatpush1.bf16.msra.mxu0 %v2524_v22  ;;  %1757 = vmatprep.subr.bf16.mxu1 %v2529_v23 }
  0x79   :  { %1921 = vmatprep.subr.bf16.mxu0 %v2532_v24 }
  0x7b   :  { %1758 = vmatpush1.bf16.msra.mxu1 %v2527_v25 }
  0x7c   :  { %1922 = vmatpush1.bf16.msra.mxu0 %v2530_v26  ;;  %1759 = vmatprep.subr.bf16.mxu1 %v2535_v27 }
  0x7d   :  { %1923 = vmatprep.subr.bf16.mxu0 %v2538_v31 }
  0x7f   :  { %1760 = vmatpush1.bf16.msra.mxu1 %v2533_v32 }
  0x80   :  { %1924 = vmatpush1.bf16.msra.mxu0 %v2536_v34  ;;  %1770 = vmatprep.subr.bf16.mxu1 %v2541_v35 }
  0x81   :  { %1934 = vmatprep.subr.bf16.mxu0 %v2544_v36 }
  0x82   :  { %1762 = vmatmul.mubr.bf16.vlgmr.msra.gmra.mrb[0].mxu1 %v339_v37 }
  0x83   :  { %1926 = vmatmul.mubr.bf16.vlgmr.msra.gmra.mrb[0].mxu0 %v388_v38  ;;  %1771 = vmatpush1.bf16.msra.mxu1 %v2539_v39 }
  0x84   :  { %1935 = vmatpush1.bf16.msra.mxu0 %v2542_v40  ;;  %1772 = vmatprep.subr.bf16.mxu1 %v2547_v41 }
  0x85   :  { %1936 = vmatprep.subr.bf16.mxu0 %v2550_v20  ;;  %1802 = vmatprep.mubr.bf16.mxu1 %v3056_v28 }
  0x86   :  { %1966 = vmatprep.mubr.bf16.mxu0 %v3059_v29 }
  0x87   :  { %1773 = vmatpush1.bf16.msra.mxu1 %v2545_v21 }
  0x88   :  { %1937 = vmatpush1.bf16.msra.mxu0 %v2548_v43  ;;  %1774 = vmatprep.subr.bf16.mxu1 %v2553_v44 }
  0x89   :  { %1938 = vmatprep.subr.bf16.mxu0 %v2556_v45 }
  0x8b   :  { %1775 = vmatpush1.bf16.msra.mxu1 %v2551_v46 }
  0x8c   :  { %1939 = vmatpush1.bf16.msra.mxu0 %v2554_v47  ;;  %1776 = vmatprep.subr.bf16.mxu1 %v2559_v48 }
  0x8d   :  { %1940 = vmatprep.subr.bf16.mxu0 %v2562_v49 }
  0x8f   :  { %1777 = vmatpush1.bf16.msra.mxu1 %v2557_v50 }
  0x90   :  { %1941 = vmatpush1.bf16.msra.mxu0 %v2560_v51  ;;  %1778 = vmatprep.subr.bf16.mxu1 %v2565_v52 }
  0x91   :  { %1942 = vmatprep.subr.bf16.mxu0 %v2568_v53 }
  0x93   :  { %1779 = vmatpush1.bf16.msra.mxu1 %v2563_v54 }
  0x94   :  { %1943 = vmatpush1.bf16.msra.mxu0 %v2566_v55  ;;  %1780 = vmatprep.subr.bf16.mxu1 %v2571_v56 }
  0x95   :  { %1944 = vmatprep.subr.bf16.mxu0 %v2574_v57 }
  0x97   :  { %1781 = vmatpush1.bf16.msra.mxu1 %v2569_v58 }
  0x98   :  { %1945 = vmatpush1.bf16.msra.mxu0 %v2572_v59  ;;  %1782 = vmatprep.subr.bf16.mxu1 %v2577_v60 }
  0x99   :  { %1946 = vmatprep.subr.bf16.mxu0 %v2580_v61 }
  0x9b   :  { %1783 = vmatpush1.bf16.msra.mxu1 %v2575_v62 }
  0x9c   :  { %1947 = vmatpush1.bf16.msra.mxu0 %v2578_v63  ;;  %1784 = vmatprep.subr.bf16.mxu1 %v2583_v0 }
  0x9d   :  { %1948 = vmatprep.subr.bf16.mxu0 %v2586_v1 }
  0x9f   :  { %1785 = vmatpush1.bf16.msra.mxu1 %v2581_v2 }
  0xa0   :  { %1949 = vmatpush1.bf16.msra.mxu0 %v2584_v3  ;;  %1786 = vmatprep.subr.bf16.mxu1 %v2589_v4 }
  0xa1   :  { %1950 = vmatprep.subr.bf16.mxu0 %v2592_v5 }
  0xa3   :  { %1787 = vmatpush1.bf16.msra.mxu1 %v2587_v6 }
  0xa4   :  { %1951 = vmatpush1.bf16.msra.mxu0 %v2590_v7  ;;  %1788 = vmatprep.subr.bf16.mxu1 %v2595_v8 }
  0xa5   :  { %1952 = vmatprep.subr.bf16.mxu0 %v2598_v9 }
  0xa7   :  { %1789 = vmatpush1.bf16.msra.mxu1 %v2593_v10 }
  0xa8   :  { %1953 = vmatpush1.bf16.msra.mxu0 %v2596_v11  ;;  %1790 = vmatprep.subr.bf16.mxu1 %v2601_v12 }
  0xa9   :  { %1954 = vmatprep.subr.bf16.mxu0 %v2604_v13 }
  0xaa   :  { %13 = vsyncpa [#allocation5], 0  ;;  %v2605_v18 = vld [vmem:[%s3688_s1 + $0x2b0] ss:$8 sps:$4 sm:$0xff]   ;;  %v2613_v22 = vld [vmem:[%s3688_s1 + $0x2c4] ss:$8 sps:$4 sm:$0xff]   ;;  %v342_v47 = vcombine.high %v3056_v28, %v3056_v28  ;;  %v391_v48 = vcombine.high %v3059_v29, %v3059_v29 }
  0xab   :  { %1791 = vmatpush1.bf16.msra.mxu1 %v2599_v14  ;;  %v2608_v19 = vld [vmem:[%s3688_s1 + $0x6b0] ss:$8 sps:$4 sm:$0xff]   ;;  %v2616_v23 = vld [vmem:[%s3688_s1 + $0x6c4] ss:$8 sps:$4 sm:$0xff]   ;;  %v2611_v24 = vld [vmem:[%s3688_s1 + $0x2c0] ss:$8 sps:$4 sm:$0xff]  }
  0xac   :  { %1955 = vmatpush1.bf16.msra.mxu0 %v2602_v15  ;;  %1792 = vmatprep.subr.bf16.mxu1 %v2607_v16  ;;  %v2614_v25 = vld [vmem:[%s3688_s1 + $0x6c0] ss:$8 sps:$4 sm:$0xff]   ;;  %v2619_v26 = vld [vmem:[%s3688_s1 + $0x2d4] ss:$8 sps:$4 sm:$0xff]   ;;  %v2617_v31 = vld [vmem:[%s3688_s1 + $0x2d0] ss:$8 sps:$4 sm:$0xff]  }
  0xad   :  { %1956 = vmatprep.subr.bf16.mxu0 %v2610_v17  ;;  %v2622_v27 = vld [vmem:[%s3688_s1 + $0x6d4] ss:$8 sps:$4 sm:$0xff]   ;;  %v2620_v32 = vld [vmem:[%s3688_s1 + $0x6d0] ss:$8 sps:$4 sm:$0xff]   ;;  %v2625_v34 = vld [vmem:[%s3688_s1 + $0x2e4] ss:$8 sps:$4 sm:$0xff]  }
  0xae   :  { %v2628_v35 = vld [vmem:[%s3688_s1 + $0x6e4] ss:$8 sps:$4 sm:$0xff]   ;;  %v2623_v36 = vld [vmem:[%s3688_s1 + $0x2e0] ss:$8 sps:$4 sm:$0xff]   ;;  %v2631_v38 = vld [vmem:[%s3688_s1 + $0x2f4] ss:$8 sps:$4 sm:$0xff]  }
  0xaf   :  { %1793 = vmatpush1.bf16.msra.mxu1 %v2605_v18  ;;  %v2626_v37 = vld [vmem:[%s3688_s1 + $0x6e0] ss:$8 sps:$4 sm:$0xff]   ;;  %v2634_v39 = vld [vmem:[%s3688_s1 + $0x6f4] ss:$8 sps:$4 sm:$0xff]   ;;  %v2629_v40 = vld [vmem:[%s3688_s1 + $0x2f0] ss:$8 sps:$4 sm:$0xff]  }
  0xb0   :  { %1957 = vmatpush1.bf16.msra.mxu0 %v2608_v19  ;;  %1794 = vmatprep.subr.bf16.mxu1 %v2613_v22  ;;  %v2632_v41 = vld [vmem:[%s3688_s1 + $0x6f0] ss:$8 sps:$4 sm:$0xff]   ;;  %v2637_v20 = vld [vmem:[%s3688_s1 + $0x304] ss:$8 sps:$4 sm:$0xff]   ;;  %v2635_v43 = vld [vmem:[%s3688_s1 + $0x300] ss:$8 sps:$4 sm:$0xff]  }
  0xb1   :  { %1958 = vmatprep.subr.bf16.mxu0 %v2616_v23  ;;  %v2640_v21 = vld [vmem:[%s3688_s1 + $0x704] ss:$8 sps:$4 sm:$0xff]   ;;  %v2638_v44 = vld [vmem:[%s3688_s1 + $0x700] ss:$8 sps:$4 sm:$0xff]   ;;  %v2643_v45 = vld [vmem:[%s3688_s1 + $0x314] ss:$8 sps:$4 sm:$0xff]  }
  0xb2   :  { %v2646_v46 = vld [vmem:[%s3688_s1 + $0x714] ss:$8 sps:$4 sm:$0xff]   ;;  %v2641_v49 = vld [vmem:[%s3688_s1 + $0x310] ss:$8 sps:$4 sm:$0xff]   ;;  %v2649_v28 = vld [vmem:[%s3688_s1 + $0x324] ss:$8 sps:$4 sm:$0xff]  }
  0xb3   :  { %1795 = vmatpush1.bf16.msra.mxu1 %v2611_v24  ;;  %v2644_v50 = vld [vmem:[%s3688_s1 + $0x710] ss:$8 sps:$4 sm:$0xff]   ;;  %v2652_v29 = vld [vmem:[%s3688_s1 + $0x724] ss:$8 sps:$4 sm:$0xff]   ;;  %v2647_v51 = vld [vmem:[%s3688_s1 + $0x320] ss:$8 sps:$4 sm:$0xff]  }
  0xb4   :  { %1959 = vmatpush1.bf16.msra.mxu0 %v2614_v25  ;;  %1796 = vmatprep.subr.bf16.mxu1 %v2619_v26  ;;  %v2650_v52 = vld [vmem:[%s3688_s1 + $0x720] ss:$8 sps:$4 sm:$0xff]   ;;  %v2655_v53 = vld [vmem:[%s3688_s1 + $0x334] ss:$8 sps:$4 sm:$0xff]   ;;  %v2653_v55 = vld [vmem:[%s3688_s1 + $0x330] ss:$8 sps:$4 sm:$0xff]  }
  0xb5   :  { %1960 = vmatprep.subr.bf16.mxu0 %v2622_v27  ;;  %v2658_v54 = vld [vmem:[%s3688_s1 + $0x734] ss:$8 sps:$4 sm:$0xff]   ;;  %v2656_v56 = vld [vmem:[%s3688_s1 + $0x730] ss:$8 sps:$4 sm:$0xff]   ;;  %v2661_v57 = vld [vmem:[%s3688_s1 + $0x344] ss:$8 sps:$4 sm:$0xff]  }
  0xb6   :  { %v2664_v58 = vld [vmem:[%s3688_s1 + $0x744] ss:$8 sps:$4 sm:$0xff]   ;;  %v2659_v59 = vld [vmem:[%s3688_s1 + $0x340] ss:$8 sps:$4 sm:$0xff]   ;;  %v2667_v61 = vld [vmem:[%s3688_s1 + $0x354] ss:$8 sps:$4 sm:$0xff]  }
  0xb7   :  { %1797 = vmatpush1.bf16.msra.mxu1 %v2617_v31  ;;  %v2662_v60 = vld [vmem:[%s3688_s1 + $0x740] ss:$8 sps:$4 sm:$0xff]   ;;  %v2670_v62 = vld [vmem:[%s3688_s1 + $0x754] ss:$8 sps:$4 sm:$0xff]   ;;  %v2665_v63 = vld [vmem:[%s3688_s1 + $0x350] ss:$8 sps:$4 sm:$0xff]  }
  0xb8   :  { %1961 = vmatpush1.bf16.msra.mxu0 %v2620_v32  ;;  %1798 = vmatprep.subr.bf16.mxu1 %v2625_v34  ;;  %v2668_v0 = vld [vmem:[%s3688_s1 + $0x750] ss:$8 sps:$4 sm:$0xff]   ;;  %v2673_v1 = vld [vmem:[%s3688_s1 + $0x364] ss:$8 sps:$4 sm:$0xff]   ;;  %v2671_v3 = vld [vmem:[%s3688_s1 + $0x360] ss:$8 sps:$4 sm:$0xff]  }
  0xb9   :  { %1962 = vmatprep.subr.bf16.mxu0 %v2628_v35  ;;  %v2676_v2 = vld [vmem:[%s3688_s1 + $0x764] ss:$8 sps:$4 sm:$0xff]   ;;  %v2674_v4 = vld [vmem:[%s3688_s1 + $0x760] ss:$8 sps:$4 sm:$0xff]   ;;  %v2679_v5 = vld [vmem:[%s3688_s1 + $0x374] ss:$8 sps:$4 sm:$0xff]  }
  0xba   :  { %v2682_v6 = vld [vmem:[%s3688_s1 + $0x774] ss:$8 sps:$4 sm:$0xff]   ;;  %v2677_v7 = vld [vmem:[%s3688_s1 + $0x370] ss:$8 sps:$4 sm:$0xff]   ;;  %v2685_v9 = vld [vmem:[%s3688_s1 + $0x384] ss:$8 sps:$4 sm:$0xff]  }
  0xbb   :  { %1799 = vmatpush1.bf16.msra.mxu1 %v2623_v36  ;;  %v2680_v8 = vld [vmem:[%s3688_s1 + $0x770] ss:$8 sps:$4 sm:$0xff]   ;;  %v2688_v10 = vld [vmem:[%s3688_s1 + $0x784] ss:$8 sps:$4 sm:$0xff]   ;;  %v2683_v11 = vld [vmem:[%s3688_s1 + $0x380] ss:$8 sps:$4 sm:$0xff]  }
  0xbc   :  { %1963 = vmatpush1.bf16.msra.mxu0 %v2626_v37  ;;  %1800 = vmatprep.subr.bf16.mxu1 %v2631_v38  ;;  %v2686_v12 = vld [vmem:[%s3688_s1 + $0x780] ss:$8 sps:$4 sm:$0xff]   ;;  %v2691_v13 = vld [vmem:[%s3688_s1 + $0x394] ss:$8 sps:$4 sm:$0xff]   ;;  %v2689_v15 = vld [vmem:[%s3688_s1 + $0x390] ss:$8 sps:$4 sm:$0xff]  }
  0xbd   :  { %1964 = vmatprep.subr.bf16.mxu0 %v2634_v39  ;;  %v2694_v14 = vld [vmem:[%s3688_s1 + $0x794] ss:$8 sps:$4 sm:$0xff]   ;;  %v2692_v16 = vld [vmem:[%s3688_s1 + $0x790] ss:$8 sps:$4 sm:$0xff]   ;;  %v2697_v17 = vld [vmem:[%s3688_s1 + $0x3a4] ss:$8 sps:$4 sm:$0xff]  }
  0xbe   :  { %v2700_v18 = vld [vmem:[%s3688_s1 + $0x7a4] ss:$8 sps:$4 sm:$0xff]   ;;  %v2695_v19 = vld [vmem:[%s3688_s1 + $0x3a0] ss:$8 sps:$4 sm:$0xff]   ;;  %v2703_v23 = vld [vmem:[%s3688_s1 + $0x3b4] ss:$8 sps:$4 sm:$0xff]  }
  0xbf   :  { %1801 = vmatpush1.bf16.msra.mxu1 %v2629_v40  ;;  %v2698_v22 = vld [vmem:[%s3688_s1 + $0x7a0] ss:$8 sps:$4 sm:$0xff]   ;;  %v2706_v24 = vld [vmem:[%s3688_s1 + $0x7b4] ss:$8 sps:$4 sm:$0xff]   ;;  %v2701_v25 = vld [vmem:[%s3688_s1 + $0x3b0] ss:$8 sps:$4 sm:$0xff]  }
  0xc0   :  { %1965 = vmatpush1.bf16.msra.mxu0 %v2632_v41  ;;  %1811 = vmatprep.subr.bf16.mxu1 %v2637_v20  ;;  %v2704_v26 = vld [vmem:[%s3688_s1 + $0x7b0] ss:$8 sps:$4 sm:$0xff]   ;;  %v2709_v27 = vld [vmem:[%s3688_s1 + $0x3c4] ss:$8 sps:$4 sm:$0xff]   ;;  %v2707_v32 = vld [vmem:[%s3688_s1 + $0x3c0] ss:$8 sps:$4 sm:$0xff]  }
  0xc1   :  { %1975 = vmatprep.subr.bf16.mxu0 %v2640_v21  ;;  %v2712_v31 = vld [vmem:[%s3688_s1 + $0x7c4] ss:$8 sps:$4 sm:$0xff]   ;;  %v2710_v34 = vld [vmem:[%s3688_s1 + $0x7c0] ss:$8 sps:$4 sm:$0xff]   ;;  %v2715_v35 = vld [vmem:[%s3688_s1 + $0x3d4] ss:$8 sps:$4 sm:$0xff]  }
  0xc2   :  { %1803 = vmatmul.mubr.bf16.vlgmr.msra.gmra.mrb[0].mxu1 %v3062_v30  ;;  %v2718_v36 = vld [vmem:[%s3688_s1 + $0x7d4] ss:$8 sps:$4 sm:$0xff]   ;;  %v2713_v37 = vld [vmem:[%s3688_s1 + $0x3d0] ss:$8 sps:$4 sm:$0xff]   ;;  %v2721_v39 = vld [vmem:[%s3688_s1 + $0x3e4] ss:$8 sps:$4 sm:$0xff]  }
  0xc3   :  { %1967 = vmatmul.mubr.bf16.vlgmr.msra.gmra.mrb[0].mxu0 %v3067_v33  ;;  %1812 = vmatpush1.bf16.msra.mxu1 %v2635_v43  ;;  %v2716_v38 = vld [vmem:[%s3688_s1 + $0x7d0] ss:$8 sps:$4 sm:$0xff]   ;;  %v2724_v40 = vld [vmem:[%s3688_s1 + $0x7e4] ss:$8 sps:$4 sm:$0xff]   ;;  %v2719_v41 = vld [vmem:[%s3688_s1 + $0x3e0] ss:$8 sps:$4 sm:$0xff]  }
  0xc4   :  { %1976 = vmatpush1.bf16.msra.mxu0 %v2638_v44  ;;  %1813 = vmatprep.subr.bf16.mxu1 %v2643_v45  ;;  %v2722_v20 = vld [vmem:[%s3688_s1 + $0x7e0] ss:$8 sps:$4 sm:$0xff]   ;;  %v2727_v21 = vld [vmem:[%s3688_s1 + $0x3f4] ss:$8 sps:$4 sm:$0xff]   ;;  %v2725_v44 = vld [vmem:[%s3688_s1 + $0x3f0] ss:$8 sps:$4 sm:$0xff]  }
  0xc5   :  { %1977 = vmatprep.subr.bf16.mxu0 %v2646_v46  ;;  %1843 = vmatprep.mubr.bf16.mxu1 %v342_v47  ;;  %v2730_v43 = vld [vmem:[%s3688_s1 + $0x7f4] ss:$8 sps:$4 sm:$0xff]   ;;  %v2728_v45 = vld [vmem:[%s3688_s1 + $0x7f0] ss:$8 sps:$4 sm:$0xff]   ;;  %v340_v46 = vcombine.high %v3062_v30, %v3062_v30  ;;  %v389_v47 = vcombine.high %v3067_v33, %v3067_v33  ;;  %s2782_s1 = smov [#allocation2]   ;;  %s2783_s19 = smov [#allocation4]  }
  0xc6   :  { %2007 = vmatprep.mubr.bf16.mxu0 %v391_v48  ;;  %v284_v48 = vsub.s32 0, %v2936_v42  ;;  %s2032_s18 = sshll.u32 %s2782_s1, 4  ;;  %s2042_s20 = sshll.u32 %s2783_s19, 4  ;;  %s2033_s18 = int_to_ptr.vmem [resolvable:$true] %s2032_s18  ;;  %s3650_s20 = int_to_ptr.vmem [resolvable:$true] %s2042_s20 }
  0xc7   :  { %1814 = vmatpush1.bf16.msra.mxu1 %v2641_v49  ;;  %v280_v49 = vld [vmem:[%s3689_s2] sm:$0x3]  ;;  %s2733_s2 = scalar_lea.vmem %s2033_s18, 32  ;;  %p2738_p1 = scmp.lt.s32.totalorder %s2033_s18, %s2033_s18 }
  0xc8   :  { %1978 = vmatpush1.bf16.msra.mxu0 %v2644_v50  ;;  %1815 = vmatprep.subr.bf16.mxu1 %v2649_v28  ;;  %v288_v50 = vsub.s32 1, %v2936_v42  ;;  %v285_v28 = vrot.slane %v280_v49, %v284_v48  ;;  %p2734_p0 = scmp.ne.s32.totalorder %s2033_s18, %s2733_s2  ;;  %p2739_p2 = scmp.lt.s32.totalorder %s2733_s2, %s2733_s2 }
  0xc9   :  { %1979 = vmatprep.subr.bf16.mxu0 %v2652_v29 }
  0xca   :  { %v289_v29 = vrot.slane %v280_v49, %v288_v50  ;;  %p2740_p3 = por %p2739_p2, %p2738_p1 }
  0xcb   :  { %1816 = vmatpush1.bf16.msra.mxu1 %v2647_v51 }
  0xcc   :  { %1980 = vmatpush1.bf16.msra.mxu0 %v2650_v52  ;;  %1817 = vmatprep.subr.bf16.mxu1 %v2655_v53  ;;  %p2741_p4 = pnand %p2740_p3, %p2734_p0 }
  0xcd   :  { %1981 = vmatprep.subr.bf16.mxu0 %v2658_v54 }
  0xcf   :  { %1818 = vmatpush1.bf16.msra.mxu1 %v2653_v55 }
  0xd0   :  { %1982 = vmatpush1.bf16.msra.mxu0 %v2656_v56  ;;  %1819 = vmatprep.subr.bf16.mxu1 %v2661_v57 }
  0xd1   :  { %1983 = vmatprep.subr.bf16.mxu0 %v2664_v58 }
  0xd3   :  { %1820 = vmatpush1.bf16.msra.mxu1 %v2659_v59 }
  0xd4   :  { %1984 = vmatpush1.bf16.msra.mxu0 %v2662_v60  ;;  %1821 = vmatprep.subr.bf16.mxu1 %v2667_v61 }
  0xd5   :  { %1985 = vmatprep.subr.bf16.mxu0 %v2670_v62 }
  0xd7   :  { %1822 = vmatpush1.bf16.msra.mxu1 %v2665_v63 }
  0xd8   :  { %1986 = vmatpush1.bf16.msra.mxu0 %v2668_v0  ;;  %1823 = vmatprep.subr.bf16.mxu1 %v2673_v1 }
  0xd9   :  { %1987 = vmatprep.subr.bf16.mxu0 %v2676_v2 }
  0xdb   :  { %1824 = vmatpush1.bf16.msra.mxu1 %v2671_v3 }
  0xdc   :  { %1988 = vmatpush1.bf16.msra.mxu0 %v2674_v4  ;;  %1825 = vmatprep.subr.bf16.mxu1 %v2679_v5 }
  0xdd   :  { %1989 = vmatprep.subr.bf16.mxu0 %v2682_v6 }
  0xdf   :  { %1826 = vmatpush1.bf16.msra.mxu1 %v2677_v7 }
  0xe0   :  { %1990 = vmatpush1.bf16.msra.mxu0 %v2680_v8  ;;  %1827 = vmatprep.subr.bf16.mxu1 %v2685_v9 }
  0xe1   :  { %1991 = vmatprep.subr.bf16.mxu0 %v2688_v10 }
  0xe3   :  { %1828 = vmatpush1.bf16.msra.mxu1 %v2683_v11 }
  0xe4   :  { %1992 = vmatpush1.bf16.msra.mxu0 %v2686_v12  ;;  %1829 = vmatprep.subr.bf16.mxu1 %v2691_v13 }
  0xe5   :  { %1993 = vmatprep.subr.bf16.mxu0 %v2694_v14 }
  0xe7   :  { %1830 = vmatpush1.bf16.msra.mxu1 %v2689_v15 }
  0xe8   :  { %1994 = vmatpush1.bf16.msra.mxu0 %v2692_v16  ;;  %1831 = vmatprep.subr.bf16.mxu1 %v2697_v17 }
  0xe9   :  { %1995 = vmatprep.subr.bf16.mxu0 %v2700_v18 }
  0xeb   :  { %1832 = vmatpush1.bf16.msra.mxu1 %v2695_v19 }
  0xec   :  { %1996 = vmatpush1.bf16.msra.mxu0 %v2698_v22  ;;  %1833 = vmatprep.subr.bf16.mxu1 %v2703_v23 }
  0xed   :  { %1997 = vmatprep.subr.bf16.mxu0 %v2706_v24 }
  0xef   :  { %1834 = vmatpush1.bf16.msra.mxu1 %v2701_v25 }
  0xf0   :  { %1998 = vmatpush1.bf16.msra.mxu0 %v2704_v26  ;;  %1835 = vmatprep.subr.bf16.mxu1 %v2709_v27 }
  0xf1   :  { %1999 = vmatprep.subr.bf16.mxu0 %v2712_v31 }
  0xf3   :  { %1836 = vmatpush1.bf16.msra.mxu1 %v2707_v32 }
  0xf4   :  { %2000 = vmatpush1.bf16.msra.mxu0 %v2710_v34  ;;  %1837 = vmatprep.subr.bf16.mxu1 %v2715_v35 }
  0xf5   :  { %2001 = vmatprep.subr.bf16.mxu0 %v2718_v36 }
  0xf7   :  { %1838 = vmatpush1.bf16.msra.mxu1 %v2713_v37 }
  0xf8   :  { %2002 = vmatpush1.bf16.msra.mxu0 %v2716_v38  ;;  %1839 = vmatprep.subr.bf16.mxu1 %v2721_v39 }
  0xf9   :  { %2003 = vmatprep.subr.bf16.mxu0 %v2724_v40 }
  0xfb   :  { %1840 = vmatpush1.bf16.msra.mxu1 %v2719_v41 }
  0xfc   :  { %2004 = vmatpush1.bf16.msra.mxu0 %v2722_v20  ;;  %1841 = vmatprep.subr.bf16.mxu1 %v2727_v21 }
  0xfd   :  { %2005 = vmatprep.subr.bf16.mxu0 %v2730_v43 }
  0xff   :  { %1842 = vmatpush1.bf16.msra.mxu1 %v2725_v44 }
 0x100   :  { %2006 = vmatpush1.bf16.msra.mxu0 %v2728_v45 }
 0x102   :  { %1844 = vmatmul.mubr.bf16.vlgmr.msra.gmra.mrb[0].mxu1 %v340_v46 }
 0x103   :  { %2008 = vmatmul.mubr.bf16.vlgmr.msra.gmra.mrb[0].mxu0 %v389_v47 }
 0x1d5   :  { %v1845_v51 = vpop.f32.mrb[0].mxu1 }
 0x1d6   :  { %v2009_v52 = vpop.f32.mrb[0].mxu0  ;;  %v2314_v30 = vadd.f32 %v1845_v51, %v285_v28  ;;  %v1847_v33 = vpop.f32.mrb[1].mxu1 }
 0x1d7   :  { %v2011_v53 = vpop.f32.mrb[1].mxu0  ;;  %v2316_v54 = vadd.f32 %v1847_v33, %v289_v29  ;;  %v1849_v55 = vpop.f32.mrb[2].mxu1 }
 0x1d8   :  { %v2013_v56 = vpop.f32.mrb[2].mxu0  ;;  %v2315_v57 = vadd.f32 %v2314_v30, %v2009_v52  ;;  %v1850_v58 = vpop.f32.mrb[3].mxu1 }
 0x1d9   :  { %v2014_v59 = vpop.f32.mrb[3].mxu0  ;;  %v2317_v60 = vadd.f32 %v2316_v54, %v2011_v53 }
 0x1da   :  { %2016 = vst [vmem:[#allocation2] sm:$0x3] %v2315_v57 }
 0x1db   :  { %v2019_v42 = vmul.f32 0.5, %v2317_v60  ;;  %2017 = vst [vmem:[#allocation4] sm:$0x3] %v2317_v60 }
 0x1dc   :  { %2744 = shalt.err (!%p2741_p4)
}
 0x1dd   :  { %s2745_s23 = scalar_lea.hbm %s3691_s4, 32 }
 0x1de   :  { %p2746_p5 = scmp.ne.s32.totalorder %s3691_s4, %s2745_s23  ;;  %p2749_p6 = scmp.lt.u32.totalorder %s2745_s23, %s3691_s4 }
 0x1e0   :  { %p2751_p7 = pnand %p2749_p6, %p2746_p5 }
 0x1e2   :  { %2754 = shalt.err (!%p2751_p7)
}
 0x1e3   :  { %2035 = dma.vmem_to_hbm [thread:$0]  %s2033_s18, 32, %s3691_s4, [#allocation3]  }
 0x1e4   :  { %s2755_s29 = scalar_lea.vmem %s3650_s20, 32  ;;  %p2760_p9 = scmp.lt.s32.totalorder %s3650_s20, %s3650_s20 }
 0x1e5   :  { %p2756_p8 = scmp.ne.s32.totalorder %s3650_s20, %s2755_s29  ;;  %p2761_p10 = scmp.lt.s32.totalorder %s2755_s29, %s2755_s29 }
 0x1e7   :  { %p2762_p11 = por %p2761_p10, %p2760_p9 }
 0x1e9   :  { %p2763_p12 = pnand %p2762_p11, %p2756_p8 }
 0x1eb   :  { %2766 = shalt.err (!%p2763_p12)
}
 0x1ec   :  { %s2767_s8 = scalar_lea.hbm %s3692_s5, 32 }
 0x1ed   :  { %p2768_p13 = scmp.ne.s32.totalorder %s3692_s5, %s2767_s8  ;;  %p2771_p0 = scmp.lt.u32.totalorder %s2767_s8, %s3692_s5 }
 0x1ef   :  { %p2773_p1 = pnand %p2771_p0, %p2768_p13 }
 0x1f1   :  { %2776 = shalt.err (!%p2773_p1)
}
 0x1f2   :  { %2045 = dma.vmem_to_hbm [thread:$0]  %s3650_s20, 32, %s3692_s5, [#allocation5]   ;;  %v2020_v61 = vmul.f32 1.442695, %v2019_v42  ;;  %v2018_v62 = vld [vmem:[%s3690_s3] sm:$0x3] }
 0x1f4   :  { %2731 = vpow2.f32 %v2020_v61 }
 0x1fe   :  { %v2732_v63 = vpop.eup %2731 }
 0x1ff   :  { %v2022_v0 = vmul.f32 %v2732_v63, %v2018_v62 }
 0x201   :  { %v2023_v1 = vadd.f32 %v2315_v57, %v2022_v0 }
 0x203   :  { %v2024_v2 = vpack.c.bf16 %v2023_v1, %v2023_v1 }
 0x205   :  { %2025 = vst [vmem:[%s3693_s6] sm:$0x1] %v2024_v2 }
 0x206   :  { %2777 = dma.done.wait [#allocation3], 32  }
 0x207   :  { %2778 = vsyncadd [#allocation3], 4294967264 }
 0x208   :  { %2779 = dma.done.wait [#allocation5], 32  }
 0x209   :  { %2780 = vsyncadd [#allocation5], 4294967264 }
 0x20a   :  { %2056 = vsyncpa [#allocation3], 1 }
 0x20b   :  { %2057 = vsyncpa [#allocation5], 1 }

// kernel: forward.10
= control target key start
LH: loop header
LB: loop body
LE: loop exit
PB: predicated region body
PF: predicated region fallthrough
CT: control target
= control target key end

     0   :  { %v1472_v3 = vmov 0   ;;  %s1949_s1 = inlined_call_operand.vmem [shape: bf16[128,2048], index: 1, kind: input, shape index: {}]   ;;  %s1950_s0 = inlined_call_operand.vmem [shape: bf16[2,128], index: 0, kind: input, shape index: {}]   ;;  %s1951_s2 = inlined_call_operand.vmem [shape: f32[1,2048], index: 2, kind: input, shape index: {}]   ;;  %s1952_s3 = inlined_call_operand.vmem [shape: bf16[2,2048], index: 3, kind: output, shape index: {}]  }
   0x1   :  { %v16_v0 = vld [vmem:[%s1949_s1] sm:$0xff]  ;;  %v17_v2 = vld [vmem:[%s1949_s1 + $0x8] sm:$0xff]  ;;  %900 = vmatprep.mubr.bf16.mxu0 %v1472_v3  ;;  %941 = vmatprep.mubr.bf16.mxu1 %v1472_v3  ;;  %v18_v63 = vld [vmem:[%s1949_s1 + $0x10] sm:$0xff] }
   0x2   :  { %v24_v1 = vld [vmem:[%s1949_s1 + $0x40] sm:$0xff]  ;;  %v25_v5 = vld [vmem:[%s1949_s1 + $0x48] sm:$0xff] }
   0x3   :  { %v1335_v4 = vcombine.high %v16_v0, %v24_v1  ;;  %v1334_v6 = vcombine.low %v16_v0, %v24_v1  ;;  %v32_v7 = vld [vmem:[%s1949_s1 + $0x80] sm:$0xff]  ;;  %v1337_v9 = vcombine.high %v17_v2, %v25_v5  ;;  %v1336_v10 = vcombine.low %v17_v2, %v25_v5  ;;  %v33_v12 = vld [vmem:[%s1949_s1 + $0x88] sm:$0xff]  ;;  %v26_v0 = vld [vmem:[%s1949_s1 + $0x50] sm:$0xff] }
   0x4   :  { %v40_v8 = vld [vmem:[%s1949_s1 + $0xc0] sm:$0xff]  ;;  %v41_v13 = vld [vmem:[%s1949_s1 + $0xc8] sm:$0xff]  ;;  %v19_v1 = vld [vmem:[%s1949_s1 + $0x18] sm:$0xff] }
   0x5   :  { %v1351_v11 = vcombine.high %v32_v7, %v40_v8  ;;  %v48_v14 = vld [vmem:[%s1949_s1 + $0x100] sm:$0xff]  ;;  %868 = vmatprep.subr.bf16.mxu0 %v1335_v4  ;;  %v1353_v15 = vcombine.high %v33_v12, %v41_v13  ;;  %v49_v17 = vld [vmem:[%s1949_s1 + $0x108] sm:$0xff]  ;;  %909 = vmatprep.subr.bf16.mxu1 %v1337_v9  ;;  %v1350_v19 = vcombine.low %v32_v7, %v40_v8  ;;  %v27_v2 = vld [vmem:[%s1949_s1 + $0x58] sm:$0xff] }
   0x6   :  { %v56_v16 = vld [vmem:[%s1949_s1 + $0x140] sm:$0xff]  ;;  %v57_v18 = vld [vmem:[%s1949_s1 + $0x148] sm:$0xff]  ;;  %869 = vmatpush1.bf16.msra.mxu0 %v1334_v6  ;;  %910 = vmatpush1.bf16.msra.mxu1 %v1336_v10  ;;  %v1352_v20 = vcombine.low %v33_v12, %v41_v13  ;;  %v1339_v6 = vcombine.high %v18_v63, %v26_v0  ;;  %v1341_v7 = vcombine.high %v19_v1, %v27_v2  ;;  %v34_v8 = vld [vmem:[%s1949_s1 + $0x90] sm:$0xff] }
   0x7   :  { %870 = vmatprep.subr.bf16.mxu0 %v1351_v11  ;;  %v1367_v21 = vcombine.high %v48_v14, %v56_v16  ;;  %911 = vmatprep.subr.bf16.mxu1 %v1353_v15  ;;  %v1369_v22 = vcombine.high %v49_v17, %v57_v18  ;;  %v64_v23 = vld [vmem:[%s1949_s1 + $0x180] sm:$0xff]  ;;  %v65_v25 = vld [vmem:[%s1949_s1 + $0x188] sm:$0xff]  ;;  %v1366_v27 = vcombine.low %v48_v14, %v56_v16  ;;  %v42_v9 = vld [vmem:[%s1949_s1 + $0xd0] sm:$0xff] }
   0x8   :  { %v72_v24 = vld [vmem:[%s1949_s1 + $0x1c0] sm:$0xff]  ;;  %v73_v26 = vld [vmem:[%s1949_s1 + $0x1c8] sm:$0xff]  ;;  %v1368_v28 = vcombine.low %v49_v17, %v57_v18  ;;  %v35_v10 = vld [vmem:[%s1949_s1 + $0x98] sm:$0xff]  ;;  %v1338_v13 = vcombine.low %v18_v63, %v26_v0  ;;  %v1340_v14 = vcombine.low %v19_v1, %v27_v2  ;;  %v1355_v15 = vcombine.high %v34_v8, %v42_v9 }
   0x9   :  { %v1383_v29 = vcombine.high %v64_v23, %v72_v24  ;;  %v1385_v30 = vcombine.high %v65_v25, %v73_v26  ;;  %v80_v31 = vld [vmem:[%s1949_s1 + $0x200] sm:$0xff]  ;;  %v81_v33 = vld [vmem:[%s1949_s1 + $0x208] sm:$0xff]  ;;  %v1382_v35 = vcombine.low %v64_v23, %v72_v24  ;;  %v1384_v36 = vcombine.low %v65_v25, %v73_v26  ;;  %v43_v11 = vld [vmem:[%s1949_s1 + $0xd8] sm:$0xff] }
   0xa   :  { %871 = vmatpush1.bf16.msra.mxu0 %v1350_v19  ;;  %912 = vmatpush1.bf16.msra.mxu1 %v1352_v20  ;;  %v88_v32 = vld [vmem:[%s1949_s1 + $0x240] sm:$0xff]  ;;  %v89_v34 = vld [vmem:[%s1949_s1 + $0x248] sm:$0xff]  ;;  %v1357_v16 = vcombine.high %v35_v10, %v43_v11  ;;  %v50_v17 = vld [vmem:[%s1949_s1 + $0x110] sm:$0xff] }
   0xb   :  { %872 = vmatprep.subr.bf16.mxu0 %v1367_v21  ;;  %913 = vmatprep.subr.bf16.mxu1 %v1369_v22  ;;  %v1399_v37 = vcombine.high %v80_v31, %v88_v32  ;;  %v1401_v38 = vcombine.high %v81_v33, %v89_v34  ;;  %v96_v39 = vld [vmem:[%s1949_s1 + $0x280] sm:$0xff]  ;;  %v97_v41 = vld [vmem:[%s1949_s1 + $0x288] sm:$0xff]  ;;  %v1398_v43 = vcombine.low %v80_v31, %v88_v32  ;;  %v58_v18 = vld [vmem:[%s1949_s1 + $0x150] sm:$0xff] }
   0xc   :  { %v104_v40 = vld [vmem:[%s1949_s1 + $0x2c0] sm:$0xff]  ;;  %v105_v42 = vld [vmem:[%s1949_s1 + $0x2c8] sm:$0xff]  ;;  %v1400_v44 = vcombine.low %v81_v33, %v89_v34  ;;  %v51_v19 = vld [vmem:[%s1949_s1 + $0x118] sm:$0xff]  ;;  %v1354_v21 = vcombine.low %v34_v8, %v42_v9  ;;  %v1356_v22 = vcombine.low %v35_v10, %v43_v11  ;;  %v1371_v23 = vcombine.high %v50_v17, %v58_v18 }
   0xd   :  { %v1415_v45 = vcombine.high %v96_v39, %v104_v40  ;;  %v1417_v46 = vcombine.high %v97_v41, %v105_v42  ;;  %v112_v47 = vld [vmem:[%s1949_s1 + $0x300] sm:$0xff]  ;;  %v113_v49 = vld [vmem:[%s1949_s1 + $0x308] sm:$0xff]  ;;  %v1414_v51 = vcombine.low %v96_v39, %v104_v40  ;;  %v1416_v52 = vcombine.low %v97_v41, %v105_v42  ;;  %v59_v20 = vld [vmem:[%s1949_s1 + $0x158] sm:$0xff] }
   0xe   :  { %873 = vmatpush1.bf16.msra.mxu0 %v1366_v27  ;;  %914 = vmatpush1.bf16.msra.mxu1 %v1368_v28  ;;  %v120_v48 = vld [vmem:[%s1949_s1 + $0x340] sm:$0xff]  ;;  %v121_v50 = vld [vmem:[%s1949_s1 + $0x348] sm:$0xff]  ;;  %v1373_v24 = vcombine.high %v51_v19, %v59_v20  ;;  %v66_v25 = vld [vmem:[%s1949_s1 + $0x190] sm:$0xff] }
   0xf   :  { %874 = vmatprep.subr.bf16.mxu0 %v1383_v29  ;;  %915 = vmatprep.subr.bf16.mxu1 %v1385_v30  ;;  %v1431_v53 = vcombine.high %v112_v47, %v120_v48  ;;  %v1433_v54 = vcombine.high %v113_v49, %v121_v50  ;;  %v128_v55 = vld [vmem:[%s1949_s1 + $0x380] sm:$0xff]  ;;  %v129_v57 = vld [vmem:[%s1949_s1 + $0x388] sm:$0xff]  ;;  %v1430_v59 = vcombine.low %v112_v47, %v120_v48  ;;  %v74_v26 = vld [vmem:[%s1949_s1 + $0x1d0] sm:$0xff] }
  0x10   :  { %v136_v56 = vld [vmem:[%s1949_s1 + $0x3c0] sm:$0xff]  ;;  %v137_v58 = vld [vmem:[%s1949_s1 + $0x3c8] sm:$0xff]  ;;  %v1432_v60 = vcombine.low %v113_v49, %v121_v50  ;;  %v67_v27 = vld [vmem:[%s1949_s1 + $0x198] sm:$0xff]  ;;  %v1370_v29 = vcombine.low %v50_v17, %v58_v18  ;;  %v1372_v30 = vcombine.low %v51_v19, %v59_v20  ;;  %v1387_v31 = vcombine.high %v66_v25, %v74_v26 }
  0x11   :  { %v1447_v61 = vcombine.high %v128_v55, %v136_v56  ;;  %v1449_v62 = vcombine.high %v129_v57, %v137_v58  ;;  %v1446_v4 = vcombine.low %v128_v55, %v136_v56  ;;  %v1448_v5 = vcombine.low %v129_v57, %v137_v58  ;;  %v1619_v12 = vld [vmem:[%s1950_s0] sm:$0x1]  ;;  %v75_v28 = vld [vmem:[%s1949_s1 + $0x1d8] sm:$0xff]  ;;  %v82_v33 = vld [vmem:[%s1949_s1 + $0x210] sm:$0xff] }
  0x12   :  { %875 = vmatpush1.bf16.msra.mxu0 %v1382_v35  ;;  %916 = vmatpush1.bf16.msra.mxu1 %v1384_v36  ;;  %v1389_v32 = vcombine.high %v67_v27, %v75_v28  ;;  %v90_v34 = vld [vmem:[%s1949_s1 + $0x250] sm:$0xff]  ;;  %v83_v35 = vld [vmem:[%s1949_s1 + $0x218] sm:$0xff]  ;;  %v20_v1 = vld [vmem:[%s1949_s1 + $0x20] sm:$0xff] }
  0x13   :  { %876 = vmatprep.subr.bf16.mxu0 %v1399_v37  ;;  %917 = vmatprep.subr.bf16.mxu1 %v1401_v38  ;;  %v91_v36 = vld [vmem:[%s1949_s1 + $0x258] sm:$0xff]  ;;  %v1386_v37 = vcombine.low %v66_v25, %v74_v26  ;;  %v1388_v38 = vcombine.low %v67_v27, %v75_v28  ;;  %v1403_v39 = vcombine.high %v82_v33, %v90_v34  ;;  %v98_v41 = vld [vmem:[%s1949_s1 + $0x290] sm:$0xff]  ;;  %v28_v2 = vld [vmem:[%s1949_s1 + $0x60] sm:$0xff] }
  0x14   :  { %v1405_v40 = vcombine.high %v83_v35, %v91_v36  ;;  %v106_v42 = vld [vmem:[%s1949_s1 + $0x2d0] sm:$0xff]  ;;  %v1343_v8 = vcombine.high %v20_v1, %v28_v2  ;;  %v36_v10 = vld [vmem:[%s1949_s1 + $0xa0] sm:$0xff] }
  0x15   :  { %v1419_v47 = vcombine.high %v98_v41, %v106_v42  ;;  %v114_v49 = vld [vmem:[%s1949_s1 + $0x310] sm:$0xff]  ;;  %v44_v11 = vld [vmem:[%s1949_s1 + $0xe0] sm:$0xff] }
  0x16   :  { %877 = vmatpush1.bf16.msra.mxu0 %v1398_v43  ;;  %918 = vmatpush1.bf16.msra.mxu1 %v1400_v44  ;;  %v99_v43 = vld [vmem:[%s1949_s1 + $0x298] sm:$0xff]  ;;  %v122_v50 = vld [vmem:[%s1949_s1 + $0x350] sm:$0xff]  ;;  %v1359_v17 = vcombine.high %v36_v10, %v44_v11  ;;  %v52_v19 = vld [vmem:[%s1949_s1 + $0x120] sm:$0xff] }
  0x17   :  { %878 = vmatprep.subr.bf16.mxu0 %v1415_v45  ;;  %919 = vmatprep.subr.bf16.mxu1 %v1417_v46  ;;  %v107_v44 = vld [vmem:[%s1949_s1 + $0x2d8] sm:$0xff]  ;;  %v1402_v45 = vcombine.low %v82_v33, %v90_v34  ;;  %v1404_v46 = vcombine.low %v83_v35, %v91_v36  ;;  %v1435_v55 = vcombine.high %v114_v49, %v122_v50  ;;  %v130_v57 = vld [vmem:[%s1949_s1 + $0x390] sm:$0xff]  ;;  %v60_v20 = vld [vmem:[%s1949_s1 + $0x160] sm:$0xff] }
  0x18   :  { %v1421_v48 = vcombine.high %v99_v43, %v107_v44  ;;  %v138_v58 = vld [vmem:[%s1949_s1 + $0x3d0] sm:$0xff]  ;;  %v1375_v25 = vcombine.high %v52_v19, %v60_v20  ;;  %v68_v27 = vld [vmem:[%s1949_s1 + $0x1a0] sm:$0xff] }
  0x19   :  { %v1451_v63 = vcombine.high %v130_v57, %v138_v58  ;;  %v76_v28 = vld [vmem:[%s1949_s1 + $0x1e0] sm:$0xff] }
  0x1a   :  { %879 = vmatpush1.bf16.msra.mxu0 %v1414_v51  ;;  %920 = vmatpush1.bf16.msra.mxu1 %v1416_v52  ;;  %v115_v51 = vld [vmem:[%s1949_s1 + $0x318] sm:$0xff]  ;;  %v1391_v33 = vcombine.high %v68_v27, %v76_v28  ;;  %v84_v35 = vld [vmem:[%s1949_s1 + $0x220] sm:$0xff] }
  0x1b   :  { %880 = vmatprep.subr.bf16.mxu0 %v1431_v53  ;;  %921 = vmatprep.subr.bf16.mxu1 %v1433_v54  ;;  %v123_v52 = vld [vmem:[%s1949_s1 + $0x358] sm:$0xff]  ;;  %v1418_v53 = vcombine.low %v98_v41, %v106_v42  ;;  %v1420_v54 = vcombine.low %v99_v43, %v107_v44  ;;  %v92_v36 = vld [vmem:[%s1949_s1 + $0x260] sm:$0xff] }
  0x1c   :  { %v1437_v56 = vcombine.high %v115_v51, %v123_v52  ;;  %v1407_v41 = vcombine.high %v84_v35, %v92_v36  ;;  %v100_v43 = vld [vmem:[%s1949_s1 + $0x2a0] sm:$0xff] }
  0x1d   :  { %v108_v44 = vld [vmem:[%s1949_s1 + $0x2e0] sm:$0xff] }
  0x1e   :  { %881 = vmatpush1.bf16.msra.mxu0 %v1430_v59  ;;  %922 = vmatpush1.bf16.msra.mxu1 %v1432_v60  ;;  %v131_v59 = vld [vmem:[%s1949_s1 + $0x398] sm:$0xff] }
  0x1f   :  { %882 = vmatprep.subr.bf16.mxu0 %v1447_v61  ;;  %923 = vmatprep.subr.bf16.mxu1 %v1449_v62  ;;  %v139_v60 = vld [vmem:[%s1949_s1 + $0x3d8] sm:$0xff]  ;;  %v1434_v61 = vcombine.low %v114_v49, %v122_v50  ;;  %v1436_v62 = vcombine.low %v115_v51, %v123_v52  ;;  %v1423_v49 = vcombine.high %v100_v43, %v108_v44  ;;  %v116_v51 = vld [vmem:[%s1949_s1 + $0x320] sm:$0xff] }
  0x20   :  { %v1453_v0 = vcombine.high %v131_v59, %v139_v60  ;;  %v124_v52 = vld [vmem:[%s1949_s1 + $0x360] sm:$0xff] }
  0x22   :  { %883 = vmatpush1.bf16.msra.mxu0 %v1446_v4  ;;  %924 = vmatpush1.bf16.msra.mxu1 %v1448_v5  ;;  %v21_v4 = vld [vmem:[%s1949_s1 + $0x28] sm:$0xff] }
  0x23   :  { %950 = vmatprep.subr.bf16.mxu0 %v1339_v6  ;;  %991 = vmatprep.subr.bf16.mxu1 %v1341_v7  ;;  %v29_v5 = vld [vmem:[%s1949_s1 + $0x68] sm:$0xff]  ;;  %v1450_v6 = vcombine.low %v130_v57, %v138_v58  ;;  %v1452_v7 = vcombine.low %v131_v59, %v139_v60  ;;  %v1439_v57 = vcombine.high %v116_v51, %v124_v52  ;;  %v132_v59 = vld [vmem:[%s1949_s1 + $0x3a0] sm:$0xff] }
  0x24   :  { %v1345_v9 = vcombine.high %v21_v4, %v29_v5  ;;  %v140_v60 = vld [vmem:[%s1949_s1 + $0x3e0] sm:$0xff] }
  0x25   :  { %901 = vmatmul.mubr.bf16.vlgmr.msra.gmra.mrb[0].mxu0 %v1619_v12  ;;  %942 = vmatmul.mubr.bf16.vlgmr.msra.gmra.mrb[0].mxu1 %v1619_v12 }
  0x26   :  { %951 = vmatpush1.bf16.msra.mxu0 %v1338_v13  ;;  %992 = vmatpush1.bf16.msra.mxu1 %v1340_v14  ;;  %v37_v13 = vld [vmem:[%s1949_s1 + $0xa8] sm:$0xff] }
  0x27   :  { %952 = vmatprep.subr.bf16.mxu0 %v1355_v15  ;;  %993 = vmatprep.subr.bf16.mxu1 %v1357_v16  ;;  %v45_v14 = vld [vmem:[%s1949_s1 + $0xe8] sm:$0xff]  ;;  %v1342_v15 = vcombine.low %v20_v1, %v28_v2  ;;  %v1344_v16 = vcombine.low %v21_v4, %v29_v5  ;;  %v1455_v1 = vcombine.high %v132_v59, %v140_v60  ;;  %v22_v4 = vld [vmem:[%s1949_s1 + $0x30] sm:$0xff] }
  0x28   :  { %982 = vmatprep.mubr.bf16.mxu0 %v1472_v3  ;;  %1023 = vmatprep.mubr.bf16.mxu1 %v1472_v3  ;;  %v1361_v18 = vcombine.high %v37_v13, %v45_v14  ;;  %v30_v5 = vld [vmem:[%s1949_s1 + $0x70] sm:$0xff] }
  0x2a   :  { %953 = vmatpush1.bf16.msra.mxu0 %v1354_v21  ;;  %994 = vmatpush1.bf16.msra.mxu1 %v1356_v22  ;;  %v53_v21 = vld [vmem:[%s1949_s1 + $0x128] sm:$0xff] }
  0x2b   :  { %954 = vmatprep.subr.bf16.mxu0 %v1371_v23  ;;  %995 = vmatprep.subr.bf16.mxu1 %v1373_v24  ;;  %v61_v22 = vld [vmem:[%s1949_s1 + $0x168] sm:$0xff]  ;;  %v1358_v23 = vcombine.low %v36_v10, %v44_v11  ;;  %v1360_v24 = vcombine.low %v37_v13, %v45_v14  ;;  %v1347_v10 = vcombine.high %v22_v4, %v30_v5  ;;  %v38_v13 = vld [vmem:[%s1949_s1 + $0xb0] sm:$0xff] }
  0x2c   :  { %v1377_v26 = vcombine.high %v53_v21, %v61_v22  ;;  %v46_v14 = vld [vmem:[%s1949_s1 + $0xf0] sm:$0xff] }
  0x2e   :  { %955 = vmatpush1.bf16.msra.mxu0 %v1370_v29  ;;  %996 = vmatpush1.bf16.msra.mxu1 %v1372_v30  ;;  %v69_v29 = vld [vmem:[%s1949_s1 + $0x1a8] sm:$0xff] }
  0x2f   :  { %956 = vmatprep.subr.bf16.mxu0 %v1387_v31  ;;  %997 = vmatprep.subr.bf16.mxu1 %v1389_v32  ;;  %v77_v30 = vld [vmem:[%s1949_s1 + $0x1e8] sm:$0xff]  ;;  %v1374_v31 = vcombine.low %v52_v19, %v60_v20  ;;  %v1376_v32 = vcombine.low %v53_v21, %v61_v22  ;;  %v1363_v19 = vcombine.high %v38_v13, %v46_v14  ;;  %v54_v21 = vld [vmem:[%s1949_s1 + $0x130] sm:$0xff] }
  0x30   :  { %v1393_v34 = vcombine.high %v69_v29, %v77_v30  ;;  %v62_v22 = vld [vmem:[%s1949_s1 + $0x170] sm:$0xff] }
  0x32   :  { %957 = vmatpush1.bf16.msra.mxu0 %v1386_v37  ;;  %998 = vmatpush1.bf16.msra.mxu1 %v1388_v38  ;;  %v85_v37 = vld [vmem:[%s1949_s1 + $0x228] sm:$0xff] }
  0x33   :  { %958 = vmatprep.subr.bf16.mxu0 %v1403_v39  ;;  %999 = vmatprep.subr.bf16.mxu1 %v1405_v40  ;;  %v93_v38 = vld [vmem:[%s1949_s1 + $0x268] sm:$0xff]  ;;  %v1390_v39 = vcombine.low %v68_v27, %v76_v28  ;;  %v1392_v40 = vcombine.low %v69_v29, %v77_v30  ;;  %v1379_v27 = vcombine.high %v54_v21, %v62_v22  ;;  %v70_v29 = vld [vmem:[%s1949_s1 + $0x1b0] sm:$0xff] }
  0x34   :  { %v1409_v42 = vcombine.high %v85_v37, %v93_v38  ;;  %v78_v30 = vld [vmem:[%s1949_s1 + $0x1f0] sm:$0xff] }
  0x36   :  { %959 = vmatpush1.bf16.msra.mxu0 %v1402_v45  ;;  %1000 = vmatpush1.bf16.msra.mxu1 %v1404_v46  ;;  %v101_v45 = vld [vmem:[%s1949_s1 + $0x2a8] sm:$0xff] }
  0x37   :  { %960 = vmatprep.subr.bf16.mxu0 %v1419_v47  ;;  %1001 = vmatprep.subr.bf16.mxu1 %v1421_v48  ;;  %v109_v46 = vld [vmem:[%s1949_s1 + $0x2e8] sm:$0xff]  ;;  %v1406_v47 = vcombine.low %v84_v35, %v92_v36  ;;  %v1408_v48 = vcombine.low %v85_v37, %v93_v38  ;;  %v1395_v35 = vcombine.high %v70_v29, %v78_v30  ;;  %v86_v37 = vld [vmem:[%s1949_s1 + $0x230] sm:$0xff] }
  0x38   :  { %v1425_v50 = vcombine.high %v101_v45, %v109_v46  ;;  %v94_v38 = vld [vmem:[%s1949_s1 + $0x270] sm:$0xff] }
  0x3a   :  { %961 = vmatpush1.bf16.msra.mxu0 %v1418_v53  ;;  %1002 = vmatpush1.bf16.msra.mxu1 %v1420_v54  ;;  %v117_v53 = vld [vmem:[%s1949_s1 + $0x328] sm:$0xff] }
  0x3b   :  { %962 = vmatprep.subr.bf16.mxu0 %v1435_v55  ;;  %1003 = vmatprep.subr.bf16.mxu1 %v1437_v56  ;;  %v125_v54 = vld [vmem:[%s1949_s1 + $0x368] sm:$0xff]  ;;  %v1422_v55 = vcombine.low %v100_v43, %v108_v44  ;;  %v1424_v56 = vcombine.low %v101_v45, %v109_v46  ;;  %v102_v44 = vld [vmem:[%s1949_s1 + $0x2b0] sm:$0xff]  ;;  %v103_v46 = vld [vmem:[%s1949_s1 + $0x2b8] sm:$0xff] }
  0x3c   :  { %v1441_v58 = vcombine.high %v117_v53, %v125_v54  ;;  %v110_v45 = vld [vmem:[%s1949_s1 + $0x2f0] sm:$0xff] }
  0x3e   :  { %963 = vmatpush1.bf16.msra.mxu0 %v1434_v61  ;;  %1004 = vmatpush1.bf16.msra.mxu1 %v1436_v62  ;;  %v133_v61 = vld [vmem:[%s1949_s1 + $0x3a8] sm:$0xff] }
  0x3f   :  { %964 = vmatprep.subr.bf16.mxu0 %v1451_v63  ;;  %1005 = vmatprep.subr.bf16.mxu1 %v1453_v0  ;;  %v141_v62 = vld [vmem:[%s1949_s1 + $0x3e8] sm:$0xff]  ;;  %v1438_v63 = vcombine.low %v116_v51, %v124_v52  ;;  %v1440_v0 = vcombine.low %v117_v53, %v125_v54  ;;  %v118_v52 = vld [vmem:[%s1949_s1 + $0x330] sm:$0xff]  ;;  %v119_v54 = vld [vmem:[%s1949_s1 + $0x338] sm:$0xff] }
  0x40   :  { %v1457_v2 = vcombine.high %v133_v61, %v141_v62  ;;  %v126_v53 = vld [vmem:[%s1949_s1 + $0x370] sm:$0xff] }
  0x42   :  { %965 = vmatpush1.bf16.msra.mxu0 %v1450_v6  ;;  %1006 = vmatpush1.bf16.msra.mxu1 %v1452_v7  ;;  %v23_v6 = vld [vmem:[%s1949_s1 + $0x38] sm:$0xff] }
  0x43   :  { %1032 = vmatprep.subr.bf16.mxu0 %v1343_v8  ;;  %1073 = vmatprep.subr.bf16.mxu1 %v1345_v9  ;;  %v31_v7 = vld [vmem:[%s1949_s1 + $0x78] sm:$0xff]  ;;  %v1454_v8 = vcombine.low %v132_v59, %v140_v60  ;;  %v1456_v9 = vcombine.low %v133_v61, %v141_v62  ;;  %v134_v60 = vld [vmem:[%s1949_s1 + $0x3b0] sm:$0xff] }
  0x44   :  { %v1349_v11 = vcombine.high %v23_v6, %v31_v7  ;;  %v142_v61 = vld [vmem:[%s1949_s1 + $0x3f0] sm:$0xff]  ;;  %v135_v62 = vld [vmem:[%s1949_s1 + $0x3b8] sm:$0xff] }
  0x45   :  { %983 = vmatmul.mubr.bf16.vlgmr.msra.gmra.mrb[4].mxu0 %v1619_v12  ;;  %1024 = vmatmul.mubr.bf16.vlgmr.msra.gmra.mrb[4].mxu1 %v1619_v12 }
  0x46   :  { %1033 = vmatpush1.bf16.msra.mxu0 %v1342_v15  ;;  %1074 = vmatpush1.bf16.msra.mxu1 %v1344_v16  ;;  %v39_v15 = vld [vmem:[%s1949_s1 + $0xb8] sm:$0xff] }
  0x47   :  { %1034 = vmatprep.subr.bf16.mxu0 %v1359_v17  ;;  %1075 = vmatprep.subr.bf16.mxu1 %v1361_v18  ;;  %v47_v16 = vld [vmem:[%s1949_s1 + $0xf8] sm:$0xff]  ;;  %v1346_v17 = vcombine.low %v22_v4, %v30_v5  ;;  %v1348_v18 = vcombine.low %v23_v6, %v31_v7  ;;  %v1458_v5 = vcombine.low %v134_v60, %v142_v61  ;;  %v148_v7 = vlaneseq }
  0x48   :  { %1064 = vmatprep.mubr.bf16.mxu0 %v1472_v3  ;;  %1105 = vmatprep.mubr.bf16.mxu1 %v1472_v3  ;;  %v1365_v20 = vcombine.high %v39_v15, %v47_v16 }
  0x4a   :  { %1035 = vmatpush1.bf16.msra.mxu0 %v1358_v23  ;;  %1076 = vmatpush1.bf16.msra.mxu1 %v1360_v24  ;;  %v55_v23 = vld [vmem:[%s1949_s1 + $0x138] sm:$0xff] }
  0x4b   :  { %1036 = vmatprep.subr.bf16.mxu0 %v1375_v25  ;;  %1077 = vmatprep.subr.bf16.mxu1 %v1377_v26  ;;  %v63_v24 = vld [vmem:[%s1949_s1 + $0x178] sm:$0xff]  ;;  %v1362_v25 = vcombine.low %v38_v13, %v46_v14  ;;  %v1364_v26 = vcombine.low %v39_v15, %v47_v16 }
  0x4c   :  { %v1381_v28 = vcombine.high %v55_v23, %v63_v24 }
  0x4e   :  { %1037 = vmatpush1.bf16.msra.mxu0 %v1374_v31  ;;  %1078 = vmatpush1.bf16.msra.mxu1 %v1376_v32  ;;  %v71_v31 = vld [vmem:[%s1949_s1 + $0x1b8] sm:$0xff] }
  0x4f   :  { %1038 = vmatprep.subr.bf16.mxu0 %v1391_v33  ;;  %1079 = vmatprep.subr.bf16.mxu1 %v1393_v34  ;;  %v79_v32 = vld [vmem:[%s1949_s1 + $0x1f8] sm:$0xff]  ;;  %v1378_v33 = vcombine.low %v54_v21, %v62_v22  ;;  %v1380_v34 = vcombine.low %v55_v23, %v63_v24 }
  0x50   :  { %v1397_v36 = vcombine.high %v71_v31, %v79_v32 }
  0x52   :  { %1039 = vmatpush1.bf16.msra.mxu0 %v1390_v39  ;;  %1080 = vmatpush1.bf16.msra.mxu1 %v1392_v40  ;;  %v95_v39 = vld [vmem:[%s1949_s1 + $0x278] sm:$0xff]  ;;  %v1394_v40 = vcombine.low %v70_v29, %v78_v30 }
  0x53   :  { %1040 = vmatprep.subr.bf16.mxu0 %v1407_v41  ;;  %1081 = vmatprep.subr.bf16.mxu1 %v1409_v42  ;;  %v1396_v41 = vcombine.low %v71_v31, %v79_v32  ;;  %v1411_v42 = vcombine.high %v86_v37, %v94_v38 }
  0x56   :  { %1041 = vmatpush1.bf16.msra.mxu0 %v1406_v47  ;;  %1082 = vmatpush1.bf16.msra.mxu1 %v1408_v48  ;;  %v111_v47 = vld [vmem:[%s1949_s1 + $0x2f8] sm:$0xff]  ;;  %v1410_v48 = vcombine.low %v86_v37, %v94_v38 }
  0x57   :  { %1042 = vmatprep.subr.bf16.mxu0 %v1423_v49  ;;  %1083 = vmatprep.subr.bf16.mxu1 %v1425_v50  ;;  %v1427_v50 = vcombine.high %v102_v44, %v110_v45  ;;  %v1429_v51 = vcombine.high %v103_v46, %v111_v47 }
  0x5a   :  { %1043 = vmatpush1.bf16.msra.mxu0 %v1422_v55  ;;  %1084 = vmatpush1.bf16.msra.mxu1 %v1424_v56  ;;  %v127_v55 = vld [vmem:[%s1949_s1 + $0x378] sm:$0xff]  ;;  %v1426_v56 = vcombine.low %v102_v44, %v110_v45 }
  0x5b   :  { %1044 = vmatprep.subr.bf16.mxu0 %v1439_v57  ;;  %1085 = vmatprep.subr.bf16.mxu1 %v1441_v58  ;;  %v1428_v57 = vcombine.low %v103_v46, %v111_v47  ;;  %v1443_v58 = vcombine.high %v118_v52, %v126_v53  ;;  %v1445_v59 = vcombine.high %v119_v54, %v127_v55 }
  0x5e   :  { %1045 = vmatpush1.bf16.msra.mxu0 %v1438_v63  ;;  %1086 = vmatpush1.bf16.msra.mxu1 %v1440_v0  ;;  %v143_v63 = vld [vmem:[%s1949_s1 + $0x3f8] sm:$0xff]  ;;  %v1442_v0 = vcombine.low %v118_v52, %v126_v53 }
  0x5f   :  { %1046 = vmatprep.subr.bf16.mxu0 %v1455_v1  ;;  %1087 = vmatprep.subr.bf16.mxu1 %v1457_v2  ;;  %v1444_v1 = vcombine.low %v119_v54, %v127_v55  ;;  %v1459_v2 = vcombine.high %v134_v60, %v142_v61  ;;  %v1461_v4 = vcombine.high %v135_v62, %v143_v63 }
  0x60   :  { %v1460_v6 = vcombine.low %v135_v62, %v143_v63 }
  0x62   :  { %1047 = vmatpush1.bf16.msra.mxu0 %v1454_v8  ;;  %1088 = vmatpush1.bf16.msra.mxu1 %v1456_v9  ;;  %v149_v8 = vshrl.u32 %v148_v7, 7 }
  0x63   :  { %1114 = vmatprep.subr.bf16.mxu0 %v1347_v10  ;;  %1155 = vmatprep.subr.bf16.mxu1 %v1349_v11  ;;  %v145_v10 = vld [vmem:[%s1951_s2 + $0x8] sm:$0xff] }
  0x64   :  { %v150_v9 = vsub.s32 0, %v149_v8  ;;  %v158_v13 = vsub.s32 2, %v149_v8  ;;  %v154_v14 = vsub.s32 1, %v149_v8  ;;  %v162_v15 = vsub.s32 3, %v149_v8 }
  0x65   :  { %1065 = vmatmul.mubr.bf16.vlgmr.msra.gmra.mrb[8].mxu0 %v1619_v12  ;;  %1106 = vmatmul.mubr.bf16.vlgmr.msra.gmra.mrb[8].mxu1 %v1619_v12  ;;  %v170_v21 = vsub.s32 5, %v149_v8  ;;  %v178_v22 = vsub.s32 7, %v149_v8 }
  0x66   :  { %1115 = vmatpush1.bf16.msra.mxu0 %v1346_v17  ;;  %1156 = vmatpush1.bf16.msra.mxu1 %v1348_v18  ;;  %v1902_v11 = vrot.slane %v145_v10, %v150_v9  ;;  %v1904_v16 = vrot.slane %v145_v10, %v158_v13  ;;  %v1906_v17 = vrot.slane %v145_v10, %v154_v14 }
  0x67   :  { %1116 = vmatprep.subr.bf16.mxu0 %v1363_v19  ;;  %1157 = vmatprep.subr.bf16.mxu1 %v1365_v20  ;;  %v1908_v18 = vrot.slane %v145_v10, %v162_v15  ;;  %v166_v19 = vsub.s32 4, %v149_v8  ;;  %v174_v20 = vsub.s32 6, %v149_v8  ;;  %v1914_v24 = vrot.slane %v145_v10, %v170_v21 }
  0x68   :  { %1146 = vmatprep.mubr.bf16.mxu0 %v1472_v3  ;;  %1187 = vmatprep.mubr.bf16.mxu1 %v1472_v3  ;;  %v87_v3 = vld [vmem:[%s1949_s1 + $0x238] sm:$0xff] }
  0x69   :  { %v1413_v43 = vcombine.high %v87_v3, %v95_v39  ;;  %v1412_v49 = vcombine.low %v87_v3, %v95_v39  ;;  %v1912_v23 = vrot.slane %v145_v10, %v174_v20 }
  0x6a   :  { %1117 = vmatpush1.bf16.msra.mxu0 %v1362_v25  ;;  %1158 = vmatpush1.bf16.msra.mxu1 %v1364_v26  ;;  %v1916_v25 = vrot.slane %v145_v10, %v178_v22  ;;  %v144_v26 = vld [vmem:[%s1951_s2] sm:$0xff] }
  0x6b   :  { %1118 = vmatprep.subr.bf16.mxu0 %v1379_v27  ;;  %1159 = vmatprep.subr.bf16.mxu1 %v1381_v28  ;;  %v1473_v27 = vmov 1966171168   ;;  %v151_v29 = vrot.slane %v144_v26, %v150_v9  ;;  %v159_v30 = vrot.slane %v144_v26, %v158_v13  ;;  %v155_v31 = vrot.slane %v144_v26, %v154_v14 }
  0x6c   :  { %v1233_v28 = vunpack.c.l.s4 %v1473_v27  ;;  %v175_v52 = vrot.slane %v144_v26, %v174_v20  ;;  %v171_v53 = vrot.slane %v144_v26, %v170_v21  ;;  %v179_v54 = vrot.slane %v144_v26, %v178_v22 }
  0x6e   :  { %1119 = vmatpush1.bf16.msra.mxu0 %v1378_v33  ;;  %1160 = vmatpush1.bf16.msra.mxu1 %v1380_v34  ;;  %v1234_v32 = vunpack.c.0.s8 %v1233_v28  ;;  %v163_v33 = vrot.slane %v144_v26, %v162_v15 }
  0x6f   :  { %1120 = vmatprep.subr.bf16.mxu0 %v1395_v35  ;;  %1161 = vmatprep.subr.bf16.mxu1 %v1397_v36 }
  0x70   :  { %v1921_v39 = vsub.s32 %v1234_v32, %v149_v8 }
  0x72   :  { %1121 = vmatpush1.bf16.msra.mxu0 %v1394_v40  ;;  %1162 = vmatpush1.bf16.msra.mxu1 %v1396_v41 }
  0x73   :  { %1122 = vmatprep.subr.bf16.mxu0 %v1411_v42  ;;  %1163 = vmatprep.subr.bf16.mxu1 %v1413_v43 }
  0x76   :  { %1123 = vmatpush1.bf16.msra.mxu0 %v1410_v48  ;;  %1164 = vmatpush1.bf16.msra.mxu1 %v1412_v49 }
  0x77   :  { %1124 = vmatprep.subr.bf16.mxu0 %v1427_v50  ;;  %1165 = vmatprep.subr.bf16.mxu1 %v1429_v51  ;;  %v167_v51 = vrot.slane %v144_v26, %v166_v19 }
  0x7a   :  { %1125 = vmatpush1.bf16.msra.mxu0 %v1426_v56  ;;  %1166 = vmatpush1.bf16.msra.mxu1 %v1428_v57 }
  0x7b   :  { %1126 = vmatprep.subr.bf16.mxu0 %v1443_v58  ;;  %1167 = vmatprep.subr.bf16.mxu1 %v1445_v59 }
  0x7e   :  { %1127 = vmatpush1.bf16.msra.mxu0 %v1442_v0  ;;  %1168 = vmatpush1.bf16.msra.mxu1 %v1444_v1 }
  0x7f   :  { %1128 = vmatprep.subr.bf16.mxu0 %v1459_v2  ;;  %1169 = vmatprep.subr.bf16.mxu1 %v1461_v4 }
  0x82   :  { %1129 = vmatpush1.bf16.msra.mxu0 %v1458_v5  ;;  %1170 = vmatpush1.bf16.msra.mxu1 %v1460_v6 }
  0x85   :  { %1147 = vmatmul.mubr.bf16.vlgmr.msra.gmra.mrb[12].mxu0 %v1619_v12  ;;  %1188 = vmatmul.mubr.bf16.vlgmr.msra.gmra.mrb[12].mxu1 %v1619_v12  ;;  %v1910_v12 = vrot.slane %v145_v10, %v166_v19 }
  0xf8   :  { %v902_v34 = vpop.f32.mrb[0].mxu0  ;;  %v943_v36 = vpop.f32.mrb[0].mxu1 }
  0xf9   :  { %v903_v35 = vadd.f32 %v902_v34, %v151_v29  ;;  %v904_v37 = vpop.f32.mrb[1].mxu0  ;;  %v944_v38 = vadd.f32 %v943_v36, %v159_v30  ;;  %v945_v40 = vpop.f32.mrb[1].mxu1 }
  0xfa   :  { %v905_v3 = vadd.f32 %v904_v37, %v155_v31  ;;  %v906_v41 = vpop.f32.mrb[2].mxu0  ;;  %v946_v42 = vadd.f32 %v945_v40, %v163_v33  ;;  %v947_v43 = vpop.f32.mrb[2].mxu1 }
  0xfb   :  { %v907_v44 = vpop.f32.mrb[3].mxu0  ;;  %v948_v46 = vpop.f32.mrb[3].mxu1 }
  0xfc   :  { %v1462_v45 = vpack.c.bf16 %v905_v3, %v903_v35  ;;  %v1463_v47 = vpack.c.bf16 %v946_v42, %v944_v38 }
  0xfe   :  { %v1238_v48 = vrot.slane %v1462_v45, %v1921_v39  ;;  %v1245_v49 = vrot.slane %v1463_v47, %v1921_v39 }
 0x100   :  { %v1260_v50 = vcombine.low %v1238_v48, %v1245_v49 }
 0x102   :  { %v1268_v9 = vrot.slane %v1260_v50, %v1921_v39 }
 0x118   :  { %v984_v55 = vpop.f32.mrb[4].mxu0  ;;  %v1025_v57 = vpop.f32.mrb[4].mxu1 }
 0x119   :  { %v985_v56 = vadd.f32 %v984_v55, %v167_v51  ;;  %v986_v58 = vpop.f32.mrb[5].mxu0  ;;  %v1026_v59 = vadd.f32 %v1025_v57, %v175_v52  ;;  %v1027_v61 = vpop.f32.mrb[5].mxu1 }
 0x11a   :  { %v987_v60 = vadd.f32 %v986_v58, %v171_v53  ;;  %v988_v62 = vpop.f32.mrb[6].mxu0  ;;  %v1028_v63 = vadd.f32 %v1027_v61, %v179_v54  ;;  %v1029_v0 = vpop.f32.mrb[6].mxu1 }
 0x11b   :  { %v989_v1 = vpop.f32.mrb[7].mxu0  ;;  %v1030_v4 = vpop.f32.mrb[7].mxu1 }
 0x11c   :  { %v1464_v2 = vpack.c.bf16 %v987_v60, %v985_v56  ;;  %v1465_v5 = vpack.c.bf16 %v1028_v63, %v1026_v59 }
 0x11e   :  { %v1252_v6 = vrot.slane %v1464_v2, %v1921_v39  ;;  %v1259_v7 = vrot.slane %v1465_v5, %v1921_v39 }
 0x120   :  { %v1261_v8 = vcombine.low %v1252_v6, %v1259_v7 }
 0x122   :  { %v1275_v10 = vrot.slane %v1261_v8, %v1921_v39 }
 0x124   :  { %v1276_v13 = vcombine.low %v1268_v9, %v1275_v10 }
 0x126   :  { %1328 = vst [vmem:[%s1952_s3] sm:$0xff] %v1276_v13 }
 0x138   :  { %v1066_v14 = vpop.f32.mrb[8].mxu0  ;;  %v1107_v19 = vpop.f32.mrb[8].mxu1 }
 0x139   :  { %v1067_v15 = vadd.f32 %v1066_v14, %v1902_v11  ;;  %v1068_v20 = vpop.f32.mrb[9].mxu0  ;;  %v1108_v21 = vadd.f32 %v1107_v19, %v1904_v16  ;;  %v1109_v26 = vpop.f32.mrb[9].mxu1 }
 0x13a   :  { %v1069_v22 = vadd.f32 %v1068_v20, %v1906_v17  ;;  %v1070_v27 = vpop.f32.mrb[10].mxu0  ;;  %v1110_v28 = vadd.f32 %v1109_v26, %v1908_v18  ;;  %v1111_v29 = vpop.f32.mrb[10].mxu1 }
 0x13b   :  { %v1071_v30 = vpop.f32.mrb[11].mxu0  ;;  %v1112_v32 = vpop.f32.mrb[11].mxu1 }
 0x13c   :  { %v1466_v31 = vpack.c.bf16 %v1069_v22, %v1067_v15  ;;  %v1467_v33 = vpack.c.bf16 %v1110_v28, %v1108_v21 }
 0x13e   :  { %v1287_v34 = vrot.slane %v1466_v31, %v1921_v39  ;;  %v1294_v35 = vrot.slane %v1467_v33, %v1921_v39 }
 0x140   :  { %v1309_v11 = vcombine.low %v1287_v34, %v1294_v35 }
 0x142   :  { %v1317_v49 = vrot.slane %v1309_v11, %v1921_v39 }
 0x158   :  { %v1148_v36 = vpop.f32.mrb[12].mxu0  ;;  %v1189_v16 = vpop.f32.mrb[12].mxu1 }
 0x159   :  { %v1149_v37 = vadd.f32 %v1148_v36, %v1910_v12  ;;  %v1150_v38 = vpop.f32.mrb[13].mxu0  ;;  %v1190_v17 = vadd.f32 %v1189_v16, %v1912_v23  ;;  %v1191_v18 = vpop.f32.mrb[13].mxu1 }
 0x15a   :  { %v1151_v3 = vadd.f32 %v1150_v38, %v1914_v24  ;;  %v1152_v40 = vpop.f32.mrb[14].mxu0  ;;  %v1192_v41 = vadd.f32 %v1191_v18, %v1916_v25  ;;  %v1193_v42 = vpop.f32.mrb[14].mxu1 }
 0x15b   :  { %v1153_v43 = vpop.f32.mrb[15].mxu0  ;;  %v1194_v45 = vpop.f32.mrb[15].mxu1 }
 0x15c   :  { %v1468_v44 = vpack.c.bf16 %v1151_v3, %v1149_v37  ;;  %v1469_v46 = vpack.c.bf16 %v1192_v41, %v1190_v17 }
 0x15e   :  { %v1301_v47 = vrot.slane %v1468_v44, %v1921_v39  ;;  %v1308_v48 = vrot.slane %v1469_v46, %v1921_v39 }
 0x160   :  { %v1310_v12 = vcombine.low %v1301_v47, %v1308_v48 }
 0x162   :  { %v1324_v23 = vrot.slane %v1310_v12, %v1921_v39 }
 0x164   :  { %v1325_v50 = vcombine.low %v1317_v49, %v1324_v23 }
 0x166   :  { %1329 = vst [vmem:[%s1952_s3 + $0x8] sm:$0xff] %v1325_v50 }

// kernel: forward.11
= control target key start
LH: loop header
LB: loop body
LE: loop exit
PB: predicated region body
PF: predicated region fallthrough
CT: control target
= control target key end

     0   :  { %s2200_s1 = inlined_call_operand.vmem [shape: bf16[512,512], index: 1, kind: input, shape index: {}]   ;;  %s2201_s0 = inlined_call_operand.vmem [shape: bf16[32,512], index: 0, kind: input, shape index: {}]   ;;  %s2202_s2 = inlined_call_operand.vmem [shape: f32[1,128], index: 2, kind: input, shape index: {}]   ;;  %s2203_s3 = inlined_call_operand.vmem [shape: f32[1,128], index: 3, kind: input, shape index: {}]   ;;  %s2204_s4 = inlined_call_operand.vmem [shape: bf16[32,512], index: 4, kind: output, shape index: {}]  }
   0x1   :  { %v1435_v0 = vld [vmem:[%s2200_s1 + $0x4] ss:$16 sps:$4 sm:$0xff]   ;;  %v1437_v1 = vld [vmem:[%s2200_s1 + $0xc] ss:$16 sps:$4 sm:$0xff]   ;;  %v1439_v2 = vld [vmem:[%s2200_s1] ss:$16 sps:$4 sm:$0xff]  }
   0x2   :  { %833 = vmatprep.subr.bf16.mxu0 %v1435_v0  ;;  %v1440_v3 = vld [vmem:[%s2200_s1 + $0x8] ss:$16 sps:$4 sm:$0xff]   ;;  %939 = vmatprep.subr.bf16.mxu1 %v1437_v1  ;;  %v1441_v4 = vld [vmem:[%s2200_s1 + $0x24] ss:$16 sps:$4 sm:$0xff]   ;;  %v1443_v5 = vld [vmem:[%s2200_s1 + $0x2c] ss:$16 sps:$4 sm:$0xff]  }
   0x3   :  { %834 = vmatpush1.bf16.msra.mxu0 %v1439_v2  ;;  %940 = vmatpush1.bf16.msra.mxu1 %v1440_v3  ;;  %v1445_v6 = vld [vmem:[%s2200_s1 + $0x20] ss:$16 sps:$4 sm:$0xff]   ;;  %v1446_v7 = vld [vmem:[%s2200_s1 + $0x28] ss:$16 sps:$4 sm:$0xff]   ;;  %v1447_v8 = vld [vmem:[%s2200_s1 + $0x44] ss:$16 sps:$4 sm:$0xff]  }
   0x4   :  { %835 = vmatprep.subr.bf16.mxu0 %v1441_v4  ;;  %941 = vmatprep.subr.bf16.mxu1 %v1443_v5  ;;  %v1449_v9 = vld [vmem:[%s2200_s1 + $0x4c] ss:$16 sps:$4 sm:$0xff]   ;;  %v1451_v10 = vld [vmem:[%s2200_s1 + $0x40] ss:$16 sps:$4 sm:$0xff]   ;;  %v1452_v11 = vld [vmem:[%s2200_s1 + $0x48] ss:$16 sps:$4 sm:$0xff]  }
   0x5   :  { %v1453_v12 = vld [vmem:[%s2200_s1 + $0x64] ss:$16 sps:$4 sm:$0xff]   ;;  %v1455_v13 = vld [vmem:[%s2200_s1 + $0x6c] ss:$16 sps:$4 sm:$0xff]   ;;  %v1457_v14 = vld [vmem:[%s2200_s1 + $0x60] ss:$16 sps:$4 sm:$0xff]  }
   0x6   :  { %v1458_v15 = vld [vmem:[%s2200_s1 + $0x68] ss:$16 sps:$4 sm:$0xff]   ;;  %v1459_v16 = vld [vmem:[%s2200_s1 + $0x84] ss:$16 sps:$4 sm:$0xff]   ;;  %v1461_v17 = vld [vmem:[%s2200_s1 + $0x8c] ss:$16 sps:$4 sm:$0xff]  }
   0x7   :  { %836 = vmatpush1.bf16.msra.mxu0 %v1445_v6  ;;  %942 = vmatpush1.bf16.msra.mxu1 %v1446_v7  ;;  %v1463_v18 = vld [vmem:[%s2200_s1 + $0x80] ss:$16 sps:$4 sm:$0xff]   ;;  %v1464_v19 = vld [vmem:[%s2200_s1 + $0x88] ss:$16 sps:$4 sm:$0xff]   ;;  %v1465_v20 = vld [vmem:[%s2200_s1 + $0xa4] ss:$16 sps:$4 sm:$0xff]  }
   0x8   :  { %837 = vmatprep.subr.bf16.mxu0 %v1447_v8  ;;  %943 = vmatprep.subr.bf16.mxu1 %v1449_v9  ;;  %v1467_v21 = vld [vmem:[%s2200_s1 + $0xac] ss:$16 sps:$4 sm:$0xff]   ;;  %v1469_v22 = vld [vmem:[%s2200_s1 + $0xa0] ss:$16 sps:$4 sm:$0xff]   ;;  %v1470_v23 = vld [vmem:[%s2200_s1 + $0xa8] ss:$16 sps:$4 sm:$0xff]  }
   0x9   :  { %v1471_v24 = vld [vmem:[%s2200_s1 + $0xc4] ss:$16 sps:$4 sm:$0xff]   ;;  %v1473_v25 = vld [vmem:[%s2200_s1 + $0xcc] ss:$16 sps:$4 sm:$0xff]   ;;  %v1475_v26 = vld [vmem:[%s2200_s1 + $0xc0] ss:$16 sps:$4 sm:$0xff]  }
   0xa   :  { %v1476_v27 = vld [vmem:[%s2200_s1 + $0xc8] ss:$16 sps:$4 sm:$0xff]   ;;  %v1477_v28 = vld [vmem:[%s2200_s1 + $0xe4] ss:$16 sps:$4 sm:$0xff]   ;;  %v1479_v29 = vld [vmem:[%s2200_s1 + $0xec] ss:$16 sps:$4 sm:$0xff]  }
   0xb   :  { %838 = vmatpush1.bf16.msra.mxu0 %v1451_v10  ;;  %944 = vmatpush1.bf16.msra.mxu1 %v1452_v11  ;;  %v1481_v30 = vld [vmem:[%s2200_s1 + $0xe0] ss:$16 sps:$4 sm:$0xff]   ;;  %v1482_v31 = vld [vmem:[%s2200_s1 + $0xe8] ss:$16 sps:$4 sm:$0xff]   ;;  %v1483_v32 = vld [vmem:[%s2200_s1 + $0x104] ss:$16 sps:$4 sm:$0xff]  }
   0xc   :  { %839 = vmatprep.subr.bf16.mxu0 %v1453_v12  ;;  %945 = vmatprep.subr.bf16.mxu1 %v1455_v13  ;;  %v1485_v33 = vld [vmem:[%s2200_s1 + $0x10c] ss:$16 sps:$4 sm:$0xff]   ;;  %v1487_v34 = vld [vmem:[%s2200_s1 + $0x100] ss:$16 sps:$4 sm:$0xff]   ;;  %v1488_v35 = vld [vmem:[%s2200_s1 + $0x108] ss:$16 sps:$4 sm:$0xff]  }
   0xd   :  { %v1489_v36 = vld [vmem:[%s2200_s1 + $0x124] ss:$16 sps:$4 sm:$0xff]   ;;  %v1491_v37 = vld [vmem:[%s2200_s1 + $0x12c] ss:$16 sps:$4 sm:$0xff]   ;;  %v1493_v38 = vld [vmem:[%s2200_s1 + $0x120] ss:$16 sps:$4 sm:$0xff]  }
   0xe   :  { %v1494_v39 = vld [vmem:[%s2200_s1 + $0x128] ss:$16 sps:$4 sm:$0xff]   ;;  %v1495_v40 = vld [vmem:[%s2200_s1 + $0x144] ss:$16 sps:$4 sm:$0xff]   ;;  %v1497_v41 = vld [vmem:[%s2200_s1 + $0x14c] ss:$16 sps:$4 sm:$0xff]  }
   0xf   :  { %840 = vmatpush1.bf16.msra.mxu0 %v1457_v14  ;;  %946 = vmatpush1.bf16.msra.mxu1 %v1458_v15  ;;  %v1499_v42 = vld [vmem:[%s2200_s1 + $0x140] ss:$16 sps:$4 sm:$0xff]   ;;  %v1500_v43 = vld [vmem:[%s2200_s1 + $0x148] ss:$16 sps:$4 sm:$0xff]   ;;  %v1501_v44 = vld [vmem:[%s2200_s1 + $0x164] ss:$16 sps:$4 sm:$0xff]  }
  0x10   :  { %841 = vmatprep.subr.bf16.mxu0 %v1459_v16  ;;  %947 = vmatprep.subr.bf16.mxu1 %v1461_v17  ;;  %v1503_v45 = vld [vmem:[%s2200_s1 + $0x16c] ss:$16 sps:$4 sm:$0xff]   ;;  %v1505_v46 = vld [vmem:[%s2200_s1 + $0x160] ss:$16 sps:$4 sm:$0xff]   ;;  %v1506_v47 = vld [vmem:[%s2200_s1 + $0x168] ss:$16 sps:$4 sm:$0xff]  }
  0x11   :  { %v1533_v48 = vld [vmem:[%s2201_s0 + $0x4] ss:$16 sps:$4 sm:$0xff]   ;;  %v1509_v50 = vld [vmem:[%s2200_s1 + $0x18c] ss:$16 sps:$4 sm:$0xff]   ;;  %v1511_v51 = vld [vmem:[%s2200_s1 + $0x180] ss:$16 sps:$4 sm:$0xff]  }
  0x12   :  { %v1507_v49 = vld [vmem:[%s2200_s1 + $0x184] ss:$16 sps:$4 sm:$0xff]   ;;  %865 = vmatprep.mubr.bf16.mxu0 %v1533_v48  ;;  %971 = vmatprep.mubr.bf16.mxu1 %v1533_v48  ;;  %v1512_v52 = vld [vmem:[%s2200_s1 + $0x188] ss:$16 sps:$4 sm:$0xff]   ;;  %v1515_v54 = vld [vmem:[%s2200_s1 + $0x1ac] ss:$16 sps:$4 sm:$0xff]  }
  0x13   :  { %842 = vmatpush1.bf16.msra.mxu0 %v1463_v18  ;;  %948 = vmatpush1.bf16.msra.mxu1 %v1464_v19  ;;  %v1513_v53 = vld [vmem:[%s2200_s1 + $0x1a4] ss:$16 sps:$4 sm:$0xff]   ;;  %v1517_v55 = vld [vmem:[%s2200_s1 + $0x1a0] ss:$16 sps:$4 sm:$0xff]   ;;  %v1518_v56 = vld [vmem:[%s2200_s1 + $0x1a8] ss:$16 sps:$4 sm:$0xff]  }
  0x14   :  { %843 = vmatprep.subr.bf16.mxu0 %v1465_v20  ;;  %949 = vmatprep.subr.bf16.mxu1 %v1467_v21  ;;  %v1519_v57 = vld [vmem:[%s2200_s1 + $0x1c4] ss:$16 sps:$4 sm:$0xff]   ;;  %v1521_v58 = vld [vmem:[%s2200_s1 + $0x1cc] ss:$16 sps:$4 sm:$0xff]   ;;  %v1523_v59 = vld [vmem:[%s2200_s1 + $0x1c0] ss:$16 sps:$4 sm:$0xff]  }
  0x15   :  { %v1524_v60 = vld [vmem:[%s2200_s1 + $0x1c8] ss:$16 sps:$4 sm:$0xff]   ;;  %v1525_v61 = vld [vmem:[%s2200_s1 + $0x1e4] ss:$16 sps:$4 sm:$0xff]   ;;  %v1527_v62 = vld [vmem:[%s2200_s1 + $0x1ec] ss:$16 sps:$4 sm:$0xff]  }
  0x16   :  { %v1529_v63 = vld [vmem:[%s2200_s1 + $0x1e0] ss:$16 sps:$4 sm:$0xff]   ;;  %v1530_v0 = vld [vmem:[%s2200_s1 + $0x1e8] ss:$16 sps:$4 sm:$0xff]   ;;  %v1536_v1 = vld [vmem:[%s2200_s1 + $0x204] ss:$16 sps:$4 sm:$0xff]  }
  0x17   :  { %844 = vmatpush1.bf16.msra.mxu0 %v1469_v22  ;;  %950 = vmatpush1.bf16.msra.mxu1 %v1470_v23  ;;  %v1539_v2 = vld [vmem:[%s2200_s1 + $0x20c] ss:$16 sps:$4 sm:$0xff]   ;;  %v1531_v3 = vld [vmem:[%s2201_s0] ss:$16 sps:$4 sm:$0xff]   ;;  %v1537_v5 = vld [vmem:[%s2200_s1 + $0x208] ss:$16 sps:$4 sm:$0xff]  }
  0x18   :  { %845 = vmatprep.subr.bf16.mxu0 %v1471_v24  ;;  %951 = vmatprep.subr.bf16.mxu1 %v1473_v25  ;;  %v1534_v4 = vld [vmem:[%s2200_s1 + $0x200] ss:$16 sps:$4 sm:$0xff]   ;;  %v1542_v6 = vld [vmem:[%s2200_s1 + $0x224] ss:$16 sps:$4 sm:$0xff]   ;;  %v1545_v7 = vld [vmem:[%s2200_s1 + $0x22c] ss:$16 sps:$4 sm:$0xff]  }
  0x19   :  { %v1540_v8 = vld [vmem:[%s2200_s1 + $0x220] ss:$16 sps:$4 sm:$0xff]   ;;  %v1543_v9 = vld [vmem:[%s2200_s1 + $0x228] ss:$16 sps:$4 sm:$0xff]   ;;  %v1548_v10 = vld [vmem:[%s2200_s1 + $0x244] ss:$16 sps:$4 sm:$0xff]  }
  0x1a   :  { %v1551_v11 = vld [vmem:[%s2200_s1 + $0x24c] ss:$16 sps:$4 sm:$0xff]   ;;  %v1546_v12 = vld [vmem:[%s2200_s1 + $0x240] ss:$16 sps:$4 sm:$0xff]   ;;  %v1549_v13 = vld [vmem:[%s2200_s1 + $0x248] ss:$16 sps:$4 sm:$0xff]  }
  0x1b   :  { %846 = vmatpush1.bf16.msra.mxu0 %v1475_v26  ;;  %952 = vmatpush1.bf16.msra.mxu1 %v1476_v27  ;;  %v1554_v14 = vld [vmem:[%s2200_s1 + $0x264] ss:$16 sps:$4 sm:$0xff]   ;;  %v1557_v15 = vld [vmem:[%s2200_s1 + $0x26c] ss:$16 sps:$4 sm:$0xff]   ;;  %v1552_v16 = vld [vmem:[%s2200_s1 + $0x260] ss:$16 sps:$4 sm:$0xff]  }
  0x1c   :  { %847 = vmatprep.subr.bf16.mxu0 %v1477_v28  ;;  %953 = vmatprep.subr.bf16.mxu1 %v1479_v29  ;;  %v1555_v17 = vld [vmem:[%s2200_s1 + $0x268] ss:$16 sps:$4 sm:$0xff]   ;;  %v1560_v18 = vld [vmem:[%s2200_s1 + $0x284] ss:$16 sps:$4 sm:$0xff]   ;;  %v1563_v19 = vld [vmem:[%s2200_s1 + $0x28c] ss:$16 sps:$4 sm:$0xff]  }
  0x1d   :  { %v1558_v20 = vld [vmem:[%s2200_s1 + $0x280] ss:$16 sps:$4 sm:$0xff]   ;;  %v1561_v21 = vld [vmem:[%s2200_s1 + $0x288] ss:$16 sps:$4 sm:$0xff]   ;;  %v1566_v22 = vld [vmem:[%s2200_s1 + $0x2a4] ss:$16 sps:$4 sm:$0xff]  }
  0x1e   :  { %v1569_v23 = vld [vmem:[%s2200_s1 + $0x2ac] ss:$16 sps:$4 sm:$0xff]   ;;  %v1564_v24 = vld [vmem:[%s2200_s1 + $0x2a0] ss:$16 sps:$4 sm:$0xff]   ;;  %v1618_v25 = vld [vmem:[%s2201_s0 + $0x24] ss:$16 sps:$4 sm:$0xff]  }
  0x1f   :  { %848 = vmatpush1.bf16.msra.mxu0 %v1481_v30  ;;  %954 = vmatpush1.bf16.msra.mxu1 %v1482_v31  ;;  %v1567_v26 = vld [vmem:[%s2200_s1 + $0x2a8] ss:$16 sps:$4 sm:$0xff]   ;;  %v1620_v27 = vld [vmem:[%s2201_s0 + $0x20] ss:$16 sps:$4 sm:$0xff]   ;;  %v1572_v28 = vld [vmem:[%s2200_s1 + $0x2c4] ss:$16 sps:$4 sm:$0xff]  }
  0x20   :  { %849 = vmatprep.subr.bf16.mxu0 %v1483_v32  ;;  %955 = vmatprep.subr.bf16.mxu1 %v1485_v33  ;;  %v1575_v29 = vld [vmem:[%s2200_s1 + $0x2cc] ss:$16 sps:$4 sm:$0xff]   ;;  %v1570_v30 = vld [vmem:[%s2200_s1 + $0x2c0] ss:$16 sps:$4 sm:$0xff]   ;;  %v1573_v31 = vld [vmem:[%s2200_s1 + $0x2c8] ss:$16 sps:$4 sm:$0xff]  }
  0x21   :  { %v1578_v32 = vld [vmem:[%s2200_s1 + $0x2e4] ss:$16 sps:$4 sm:$0xff]   ;;  %v1581_v33 = vld [vmem:[%s2200_s1 + $0x2ec] ss:$16 sps:$4 sm:$0xff]   ;;  %v1597_v48 = vld [vmem:[%s2200_s1 + $0x348] ss:$16 sps:$4 sm:$0xff]  }
  0x23   :  { %850 = vmatpush1.bf16.msra.mxu0 %v1487_v34  ;;  %956 = vmatpush1.bf16.msra.mxu1 %v1488_v35  ;;  %v1635_v34 = vld [vmem:[%s2201_s0 + $0xc] ss:$16 sps:$4 sm:$0xff]   ;;  %v1576_v35 = vld [vmem:[%s2200_s1 + $0x2e0] ss:$16 sps:$4 sm:$0xff]  }
  0x24   :  { %851 = vmatprep.subr.bf16.mxu0 %v1489_v36  ;;  %957 = vmatprep.subr.bf16.mxu1 %v1491_v37  ;;  %v1579_v36 = vld [vmem:[%s2200_s1 + $0x2e8] ss:$16 sps:$4 sm:$0xff]   ;;  %v1584_v37 = vld [vmem:[%s2200_s1 + $0x304] ss:$16 sps:$4 sm:$0xff]  }
  0x27   :  { %852 = vmatpush1.bf16.msra.mxu0 %v1493_v38  ;;  %958 = vmatpush1.bf16.msra.mxu1 %v1494_v39  ;;  %v1587_v38 = vld [vmem:[%s2200_s1 + $0x30c] ss:$16 sps:$4 sm:$0xff]   ;;  %v1582_v39 = vld [vmem:[%s2200_s1 + $0x300] ss:$16 sps:$4 sm:$0xff]  }
  0x28   :  { %853 = vmatprep.subr.bf16.mxu0 %v1495_v40  ;;  %959 = vmatprep.subr.bf16.mxu1 %v1497_v41  ;;  %v1585_v40 = vld [vmem:[%s2200_s1 + $0x308] ss:$16 sps:$4 sm:$0xff]   ;;  %v1590_v41 = vld [vmem:[%s2200_s1 + $0x324] ss:$16 sps:$4 sm:$0xff]  }
  0x2b   :  { %854 = vmatpush1.bf16.msra.mxu0 %v1499_v42  ;;  %960 = vmatpush1.bf16.msra.mxu1 %v1500_v43  ;;  %v1593_v42 = vld [vmem:[%s2200_s1 + $0x32c] ss:$16 sps:$4 sm:$0xff]   ;;  %v1588_v43 = vld [vmem:[%s2200_s1 + $0x320] ss:$16 sps:$4 sm:$0xff]  }
  0x2c   :  { %855 = vmatprep.subr.bf16.mxu0 %v1501_v44  ;;  %961 = vmatprep.subr.bf16.mxu1 %v1503_v45  ;;  %v1591_v44 = vld [vmem:[%s2200_s1 + $0x328] ss:$16 sps:$4 sm:$0xff]   ;;  %v1596_v45 = vld [vmem:[%s2200_s1 + $0x344] ss:$16 sps:$4 sm:$0xff]  }
  0x2f   :  { %856 = vmatpush1.bf16.msra.mxu0 %v1505_v46  ;;  %962 = vmatpush1.bf16.msra.mxu1 %v1506_v47  ;;  %v1599_v46 = vld [vmem:[%s2200_s1 + $0x34c] ss:$16 sps:$4 sm:$0xff]   ;;  %v1594_v47 = vld [vmem:[%s2200_s1 + $0x340] ss:$16 sps:$4 sm:$0xff]  }
  0x30   :  { %857 = vmatprep.subr.bf16.mxu0 %v1507_v49  ;;  %963 = vmatprep.subr.bf16.mxu1 %v1509_v50  ;;  %v1602_v49 = vld [vmem:[%s2200_s1 + $0x364] ss:$16 sps:$4 sm:$0xff]   ;;  %v1605_v50 = vld [vmem:[%s2200_s1 + $0x36c] ss:$16 sps:$4 sm:$0xff]  }
  0x33   :  { %858 = vmatpush1.bf16.msra.mxu0 %v1511_v51  ;;  %964 = vmatpush1.bf16.msra.mxu1 %v1512_v52  ;;  %v1600_v51 = vld [vmem:[%s2200_s1 + $0x360] ss:$16 sps:$4 sm:$0xff]   ;;  %v1603_v52 = vld [vmem:[%s2200_s1 + $0x368] ss:$16 sps:$4 sm:$0xff]  }
  0x34   :  { %859 = vmatprep.subr.bf16.mxu0 %v1513_v53  ;;  %965 = vmatprep.subr.bf16.mxu1 %v1515_v54  ;;  %v1608_v53 = vld [vmem:[%s2200_s1 + $0x384] ss:$16 sps:$4 sm:$0xff]   ;;  %v1611_v54 = vld [vmem:[%s2200_s1 + $0x38c] ss:$16 sps:$4 sm:$0xff]  }
  0x37   :  { %860 = vmatpush1.bf16.msra.mxu0 %v1517_v55  ;;  %966 = vmatpush1.bf16.msra.mxu1 %v1518_v56  ;;  %v1606_v55 = vld [vmem:[%s2200_s1 + $0x380] ss:$16 sps:$4 sm:$0xff]   ;;  %v1609_v56 = vld [vmem:[%s2200_s1 + $0x388] ss:$16 sps:$4 sm:$0xff]  }
  0x38   :  { %861 = vmatprep.subr.bf16.mxu0 %v1519_v57  ;;  %967 = vmatprep.subr.bf16.mxu1 %v1521_v58  ;;  %v1614_v57 = vld [vmem:[%s2200_s1 + $0x3a4] ss:$16 sps:$4 sm:$0xff]   ;;  %v1617_v58 = vld [vmem:[%s2200_s1 + $0x3ac] ss:$16 sps:$4 sm:$0xff]  }
  0x3b   :  { %862 = vmatpush1.bf16.msra.mxu0 %v1523_v59  ;;  %968 = vmatpush1.bf16.msra.mxu1 %v1524_v60  ;;  %v1612_v59 = vld [vmem:[%s2200_s1 + $0x3a0] ss:$16 sps:$4 sm:$0xff]   ;;  %v1615_v60 = vld [vmem:[%s2200_s1 + $0x3a8] ss:$16 sps:$4 sm:$0xff]  }
  0x3c   :  { %863 = vmatprep.subr.bf16.mxu0 %v1525_v61  ;;  %969 = vmatprep.subr.bf16.mxu1 %v1527_v62  ;;  %v1623_v61 = vld [vmem:[%s2200_s1 + $0x3c4] ss:$16 sps:$4 sm:$0xff]   ;;  %v1626_v62 = vld [vmem:[%s2200_s1 + $0x3cc] ss:$16 sps:$4 sm:$0xff]  }
  0x3f   :  { %864 = vmatpush1.bf16.msra.mxu0 %v1529_v63  ;;  %970 = vmatpush1.bf16.msra.mxu1 %v1530_v0  ;;  %v1621_v63 = vld [vmem:[%s2200_s1 + $0x3c0] ss:$16 sps:$4 sm:$0xff]   ;;  %v1624_v0 = vld [vmem:[%s2200_s1 + $0x3c8] ss:$16 sps:$4 sm:$0xff]  }
  0x40   :  { %886 = vmatprep.subr.bf16.mxu0 %v1536_v1  ;;  %992 = vmatprep.subr.bf16.mxu1 %v1539_v2  ;;  %v1629_v1 = vld [vmem:[%s2200_s1 + $0x3e4] ss:$16 sps:$4 sm:$0xff]   ;;  %v1632_v2 = vld [vmem:[%s2200_s1 + $0x3ec] ss:$16 sps:$4 sm:$0xff]  }
  0x42   :  { %866 = vmatmul.mubr.bf16.vlgmr.msra.gmra.mrb[0].mxu0 %v1531_v3  ;;  %972 = vmatmul.mubr.bf16.vlgmr.msra.gmra.mrb[0].mxu1 %v1531_v3  ;;  %v1627_v3 = vld [vmem:[%s2200_s1 + $0x3e0] ss:$16 sps:$4 sm:$0xff]  }
  0x43   :  { %887 = vmatpush1.bf16.msra.mxu0 %v1534_v4  ;;  %993 = vmatpush1.bf16.msra.mxu1 %v1537_v5  ;;  %v1630_v4 = vld [vmem:[%s2200_s1 + $0x3e8] ss:$16 sps:$4 sm:$0xff]  }
  0x44   :  { %888 = vmatprep.subr.bf16.mxu0 %v1542_v6  ;;  %994 = vmatprep.subr.bf16.mxu1 %v1545_v7  ;;  %v1633_v5 = vld [vmem:[%s2201_s0 + $0x8] ss:$16 sps:$4 sm:$0xff]   ;;  %v1636_v6 = vld [vmem:[%s2201_s0 + $0x2c] ss:$16 sps:$4 sm:$0xff]  }
  0x45   :  { %875 = vmatprep.mubr.bf16.mxu0 %v1618_v25  ;;  %981 = vmatprep.mubr.bf16.mxu1 %v1618_v25  ;;  %v1638_v7 = vld [vmem:[%s2201_s0 + $0x28] ss:$16 sps:$4 sm:$0xff]  }
  0x47   :  { %889 = vmatpush1.bf16.msra.mxu0 %v1540_v8  ;;  %995 = vmatpush1.bf16.msra.mxu1 %v1543_v9 }
  0x48   :  { %890 = vmatprep.subr.bf16.mxu0 %v1548_v10  ;;  %996 = vmatprep.subr.bf16.mxu1 %v1551_v11 }
  0x4a   :  { %876 = vmatmul.mubr.bf16.gmra.mrb[4].mxu0 %v1620_v27  ;;  %982 = vmatmul.mubr.bf16.gmra.mrb[4].mxu1 %v1620_v27 }
  0x4b   :  { %891 = vmatpush1.bf16.msra.mxu0 %v1546_v12  ;;  %997 = vmatpush1.bf16.msra.mxu1 %v1549_v13 }
  0x4c   :  { %892 = vmatprep.subr.bf16.mxu0 %v1554_v14  ;;  %998 = vmatprep.subr.bf16.mxu1 %v1557_v15 }
  0x4d   :  { %918 = vmatprep.mubr.bf16.mxu0 %v1635_v34  ;;  %1024 = vmatprep.mubr.bf16.mxu1 %v1635_v34 }
  0x4f   :  { %893 = vmatpush1.bf16.msra.mxu0 %v1552_v16  ;;  %999 = vmatpush1.bf16.msra.mxu1 %v1555_v17 }
  0x50   :  { %894 = vmatprep.subr.bf16.mxu0 %v1560_v18  ;;  %1000 = vmatprep.subr.bf16.mxu1 %v1563_v19 }
  0x53   :  { %895 = vmatpush1.bf16.msra.mxu0 %v1558_v20  ;;  %1001 = vmatpush1.bf16.msra.mxu1 %v1561_v21 }
  0x54   :  { %896 = vmatprep.subr.bf16.mxu0 %v1566_v22  ;;  %1002 = vmatprep.subr.bf16.mxu1 %v1569_v23 }
  0x57   :  { %897 = vmatpush1.bf16.msra.mxu0 %v1564_v24  ;;  %1003 = vmatpush1.bf16.msra.mxu1 %v1567_v26 }
  0x58   :  { %898 = vmatprep.subr.bf16.mxu0 %v1572_v28  ;;  %1004 = vmatprep.subr.bf16.mxu1 %v1575_v29 }
  0x5b   :  { %899 = vmatpush1.bf16.msra.mxu0 %v1570_v30  ;;  %1005 = vmatpush1.bf16.msra.mxu1 %v1573_v31 }
  0x5c   :  { %900 = vmatprep.subr.bf16.mxu0 %v1578_v32  ;;  %1006 = vmatprep.subr.bf16.mxu1 %v1581_v33 }
  0x5f   :  { %901 = vmatpush1.bf16.msra.mxu0 %v1576_v35  ;;  %1007 = vmatpush1.bf16.msra.mxu1 %v1579_v36 }
  0x60   :  { %902 = vmatprep.subr.bf16.mxu0 %v1584_v37  ;;  %1008 = vmatprep.subr.bf16.mxu1 %v1587_v38 }
  0x63   :  { %903 = vmatpush1.bf16.msra.mxu0 %v1582_v39  ;;  %1009 = vmatpush1.bf16.msra.mxu1 %v1585_v40 }
  0x64   :  { %904 = vmatprep.subr.bf16.mxu0 %v1590_v41  ;;  %1010 = vmatprep.subr.bf16.mxu1 %v1593_v42 }
  0x67   :  { %905 = vmatpush1.bf16.msra.mxu0 %v1588_v43  ;;  %1011 = vmatpush1.bf16.msra.mxu1 %v1591_v44 }
  0x68   :  { %906 = vmatprep.subr.bf16.mxu0 %v1596_v45  ;;  %1012 = vmatprep.subr.bf16.mxu1 %v1599_v46 }
  0x6b   :  { %907 = vmatpush1.bf16.msra.mxu0 %v1594_v47  ;;  %1013 = vmatpush1.bf16.msra.mxu1 %v1597_v48 }
  0x6c   :  { %908 = vmatprep.subr.bf16.mxu0 %v1602_v49  ;;  %1014 = vmatprep.subr.bf16.mxu1 %v1605_v50 }
  0x6f   :  { %909 = vmatpush1.bf16.msra.mxu0 %v1600_v51  ;;  %1015 = vmatpush1.bf16.msra.mxu1 %v1603_v52 }
  0x70   :  { %910 = vmatprep.subr.bf16.mxu0 %v1608_v53  ;;  %1016 = vmatprep.subr.bf16.mxu1 %v1611_v54 }
  0x73   :  { %911 = vmatpush1.bf16.msra.mxu0 %v1606_v55  ;;  %1017 = vmatpush1.bf16.msra.mxu1 %v1609_v56 }
  0x74   :  { %912 = vmatprep.subr.bf16.mxu0 %v1614_v57  ;;  %1018 = vmatprep.subr.bf16.mxu1 %v1617_v58 }
  0x77   :  { %913 = vmatpush1.bf16.msra.mxu0 %v1612_v59  ;;  %1019 = vmatpush1.bf16.msra.mxu1 %v1615_v60 }
  0x78   :  { %914 = vmatprep.subr.bf16.mxu0 %v1623_v61  ;;  %1020 = vmatprep.subr.bf16.mxu1 %v1626_v62 }
  0x7b   :  { %915 = vmatpush1.bf16.msra.mxu0 %v1621_v63  ;;  %1021 = vmatpush1.bf16.msra.mxu1 %v1624_v0 }
  0x7c   :  { %916 = vmatprep.subr.bf16.mxu0 %v1629_v1  ;;  %1022 = vmatprep.subr.bf16.mxu1 %v1632_v2 }
  0x7f   :  { %917 = vmatpush1.bf16.msra.mxu0 %v1627_v3  ;;  %1023 = vmatpush1.bf16.msra.mxu1 %v1630_v4 }
  0x82   :  { %919 = vmatmul.mubr.bf16.vlgmr.msra.gmra.mrb[0].mxu0 %v1633_v5  ;;  %1025 = vmatmul.mubr.bf16.vlgmr.msra.gmra.mrb[0].mxu1 %v1633_v5 }
  0x83   :  { %928 = vmatprep.mubr.bf16.mxu0 %v1636_v6  ;;  %1034 = vmatprep.mubr.bf16.mxu1 %v1636_v6 }
  0x8a   :  { %929 = vmatmul.mubr.bf16.gmra.mrb[4].mxu0 %v1638_v7  ;;  %1035 = vmatmul.mubr.bf16.gmra.mrb[4].mxu1 %v1638_v7 }
 0x155   :  { %v2074_v8 = vpop.f32.mrb[0].mxu0  ;;  %v2076_v9 = vpop.f32.mrb[0].mxu1 }
 0x156   :  { %v2078_v10 = vpop.f32.mrb[1].mxu0  ;;  %v2080_v11 = vpop.f32.mrb[1].mxu1  ;;  %v1081_v12 = vmul.f32 %v2074_v8, %v2074_v8  ;;  %v1083_v13 = vmul.f32 %v2076_v9, %v2076_v9 }
 0x157   :  { %v1082_v14 = vmul.f32 %v2078_v10, %v2078_v10  ;;  %v1084_v15 = vmul.f32 %v2080_v11, %v2080_v11  ;;  %v2090_v16 = vpop.f32.mrb[2].mxu0  ;;  %v2092_v17 = vpop.f32.mrb[2].mxu1 }
 0x158   :  { %v1045_v18 = vadd.f32 %v2090_v16, %v2074_v8  ;;  %v1085_v19 = vmul.f32 %v2090_v16, %v2090_v16  ;;  %v1063_v20 = vadd.f32 %v2092_v17, %v2076_v9  ;;  %v1087_v21 = vmul.f32 %v2092_v17, %v2092_v17  ;;  %v2102_v22 = vpop.f32.mrb[3].mxu0  ;;  %v2104_v23 = vpop.f32.mrb[3].mxu1 }
 0x159   :  { %v1054_v24 = vadd.f32 %v2102_v22, %v2078_v10  ;;  %v1086_v25 = vmul.f32 %v2102_v22, %v2102_v22  ;;  %v1072_v26 = vadd.f32 %v2104_v23, %v2080_v11  ;;  %v1088_v27 = vmul.f32 %v2104_v23, %v2104_v23 }
 0x15a   :  { %v1097_v28 = vadd.f32 %v1085_v19, %v1081_v12  ;;  %v1115_v29 = vadd.f32 %v1087_v21, %v1083_v13 }
 0x15b   :  { %v1106_v30 = vadd.f32 %v1086_v25, %v1082_v14  ;;  %v1124_v31 = vadd.f32 %v1088_v27, %v1084_v15 }
 0x15d   :  { %v2114_v32 = vpop.f32.mrb[4].mxu0  ;;  %v2116_v33 = vpop.f32.mrb[4].mxu1 }
 0x15e   :  { %v1046_v34 = vadd.f32 %v1045_v18, %v2114_v32  ;;  %v1089_v35 = vmul.f32 %v2114_v32, %v2114_v32  ;;  %v1064_v36 = vadd.f32 %v1063_v20, %v2116_v33  ;;  %v1091_v37 = vmul.f32 %v2116_v33, %v2116_v33  ;;  %v2124_v38 = vpop.f32.mrb[5].mxu0  ;;  %v2126_v39 = vpop.f32.mrb[5].mxu1 }
 0x15f   :  { %v1055_v40 = vadd.f32 %v1054_v24, %v2124_v38  ;;  %v1090_v41 = vmul.f32 %v2124_v38, %v2124_v38  ;;  %v1073_v42 = vadd.f32 %v1072_v26, %v2126_v39  ;;  %v1092_v43 = vmul.f32 %v2126_v39, %v2126_v39  ;;  %v2134_v44 = vpop.f32.mrb[6].mxu0  ;;  %v2136_v45 = vpop.f32.mrb[6].mxu1 }
 0x160   :  { %v1098_v46 = vadd.f32 %v1097_v28, %v1089_v35  ;;  %v1116_v47 = vadd.f32 %v1115_v29, %v1091_v37  ;;  %v1047_v48 = vadd.f32 %v1046_v34, %v2134_v44  ;;  %v1093_v49 = vmul.f32 %v2134_v44, %v2134_v44  ;;  %v2141_v50 = vpop.f32.mrb[7].mxu0  ;;  %v2143_v51 = vpop.f32.mrb[7].mxu1 }
 0x161   :  { %v1107_v52 = vadd.f32 %v1106_v30, %v1090_v41  ;;  %v1125_v53 = vadd.f32 %v1124_v31, %v1092_v43  ;;  %v1065_v54 = vadd.f32 %v1064_v36, %v2136_v45  ;;  %v1095_v55 = vmul.f32 %v2136_v45, %v2136_v45 }
 0x162   :  { %v1048_v56 = vrot.slane %v1047_v48, 4  ;;  %v1099_v57 = vadd.f32 %v1098_v46, %v1093_v49  ;;  %v1056_v58 = vadd.f32 %v1055_v40, %v2141_v50  ;;  %v1094_v59 = vmul.f32 %v2141_v50, %v2141_v50 }
 0x163   :  { %v1066_v60 = vrot.slane %v1065_v54, 4  ;;  %v1117_v61 = vadd.f32 %v1116_v47, %v1095_v55  ;;  %v1074_v62 = vadd.f32 %v1073_v42, %v2143_v51  ;;  %v1096_v63 = vmul.f32 %v2143_v51, %v2143_v51 }
 0x164   :  { %v1049_v0 = vadd.f32 %v1048_v56, %v1047_v48  ;;  %v1100_v1 = vrot.slane %v1099_v57, 4  ;;  %v1057_v2 = vrot.slane %v1056_v58, 4  ;;  %v1108_v3 = vadd.f32 %v1107_v52, %v1094_v59 }
 0x165   :  { %v1067_v4 = vadd.f32 %v1066_v60, %v1065_v54  ;;  %v1118_v5 = vrot.slane %v1117_v61, 4  ;;  %v1075_v6 = vrot.slane %v1074_v62, 4  ;;  %v1126_v7 = vadd.f32 %v1125_v53, %v1096_v63 }
 0x166   :  { %v1050_v12 = vrot.slane %v1049_v0, 2  ;;  %v1101_v13 = vadd.f32 %v1100_v1, %v1099_v57  ;;  %v1058_v14 = vadd.f32 %v1057_v2, %v1056_v58  ;;  %v1109_v15 = vrot.slane %v1108_v3, 4 }
 0x167   :  { %v1068_v18 = vrot.slane %v1067_v4, 2  ;;  %v1119_v19 = vadd.f32 %v1118_v5, %v1117_v61  ;;  %v1076_v20 = vadd.f32 %v1075_v6, %v1074_v62  ;;  %v1127_v21 = vrot.slane %v1126_v7, 4 }
 0x168   :  { %v1051_v24 = vadd.f32 %v1050_v12, %v1049_v0  ;;  %v1102_v25 = vrot.slane %v1101_v13, 2  ;;  %v1059_v26 = vrot.slane %v1058_v14, 2  ;;  %v1110_v27 = vadd.f32 %v1109_v15, %v1108_v3 }
 0x169   :  { %v1069_v28 = vadd.f32 %v1068_v18, %v1067_v4  ;;  %v1120_v29 = vrot.slane %v1119_v19, 2  ;;  %v1077_v30 = vrot.slane %v1076_v20, 2  ;;  %v1128_v31 = vadd.f32 %v1127_v21, %v1126_v7 }
 0x16a   :  { %v1052_v34 = vrot.slane %v1051_v24, 1  ;;  %v1103_v35 = vadd.f32 %v1102_v25, %v1101_v13  ;;  %v1060_v36 = vadd.f32 %v1059_v26, %v1058_v14  ;;  %v1111_v37 = vrot.slane %v1110_v27, 2  ;;  %v1148_v26 = vld [vmem:[%s2203_s3] sm:$0x1] }
 0x16b   :  { %v1070_v40 = vrot.slane %v1069_v28, 1  ;;  %v1121_v41 = vadd.f32 %v1120_v29, %v1119_v19  ;;  %v1078_v42 = vadd.f32 %v1077_v30, %v1076_v20  ;;  %v1129_v43 = vrot.slane %v1128_v31, 2  ;;  %v1144_v20 = vld [vmem:[%s2202_s2] sm:$0x1] }
 0x16c   :  { %v1053_v46 = vadd.f32 %v1052_v34, %v1051_v24  ;;  %v1104_v47 = vrot.slane %v1103_v35, 1  ;;  %v1061_v48 = vrot.slane %v1060_v36, 1  ;;  %v1112_v49 = vadd.f32 %v1111_v37, %v1110_v27 }
 0x16d   :  { %v1122_v52 = vrot.slane %v1121_v41, 1  ;;  %v1130_v53 = vadd.f32 %v1129_v43, %v1128_v31  ;;  %v1079_v57 = vrot.slane %v1078_v42, 1  ;;  %v1071_v58 = vadd.f32 %v1070_v40, %v1069_v28 }
 0x16e   :  { %v1105_v54 = vadd.f32 %v1104_v47, %v1103_v35  ;;  %v1062_v55 = vadd.f32 %v1061_v48, %v1060_v36  ;;  %v1113_v56 = vrot.slane %v1112_v49, 1  ;;  %v1151_v18 = vlaneseq }
 0x16f   :  { %v1131_v61 = vrot.slane %v1130_v53, 1  ;;  %v1123_v62 = vadd.f32 %v1122_v52, %v1121_v41  ;;  %v1080_v0 = vadd.f32 %v1079_v57, %v1078_v42 }
 0x170   :  { %v1114_v59 = vadd.f32 %v1113_v56, %v1112_v49  ;;  %v1133_v60 = vadd.f32 %v1062_v55, %v1053_v46  ;;  %v1152_v19 = vshrl.u32 %v1151_v18, 7 }
 0x171   :  { %v1132_v2 = vadd.f32 %v1131_v61, %v1130_v53 }
 0x172   :  { %v1134_v63 = vadd.f32 %v1114_v59, %v1105_v54  ;;  %v1135_v1 = vadd.f32 %v1133_v60, %v1071_v58  ;;  %v1153_v21 = vsub.s32 0, %v1152_v19 }
 0x174   :  { %v1136_v3 = vadd.f32 %v1134_v63, %v1123_v62  ;;  %v1137_v4 = vadd.f32 %v1135_v1, %v1080_v0 }
 0x176   :  { %v1138_v5 = vadd.f32 %v1136_v3, %v1132_v2  ;;  %v1139_v6 = vmul.f32 0.0078125, %v1137_v4 }
 0x178   :  { %v1140_v7 = vmul.f32 0.0078125, %v1138_v5  ;;  %v1141_v12 = vmul.f32 %v1139_v6, %v1139_v6 }
 0x17a   :  { %v1142_v13 = vsub.f32 %v1140_v7, %v1141_v12 }
 0x17c   :  { %v1143_v14 = vmax.f32 %v1142_v13, 0.0 }
 0x17e   :  { %v1145_v15 = vadd.f32 1e-05, %v1143_v14 }
 0x180   :  { %1639 = vrsqrt.f32 %v1145_v15 }
 0x18a   :  { %v1640_v24 = vpop.eup %1639 }
 0x18b   :  { %v1147_v25 = vmul.f32 %v1640_v24, %v1144_v20 }
 0x18d   :  { %v1149_v27 = vmul.f32 %v1147_v25, %v1139_v6  ;;  %v1154_v28 = vrot.slane %v1147_v25, %v1153_v21 }
 0x18f   :  { %v1150_v29 = vsub.f32 %v1148_v26, %v1149_v27  ;;  %v1155_v30 = vmul.f32 %v1154_v28, %v2074_v8  ;;  %v1156_v31 = vmul.f32 %v1154_v28, %v2078_v10  ;;  %v1157_v34 = vmul.f32 %v1154_v28, %v2076_v9 }
 0x190   :  { %v1158_v35 = vmul.f32 %v1154_v28, %v2080_v11  ;;  %v1159_v36 = vmul.f32 %v1154_v28, %v2090_v16  ;;  %v1160_v37 = vmul.f32 %v1154_v28, %v2102_v22  ;;  %v1161_v40 = vmul.f32 %v1154_v28, %v2092_v17 }
 0x191   :  { %v1162_v41 = vmul.f32 %v1154_v28, %v2104_v23  ;;  %v1163_v42 = vmul.f32 %v1154_v28, %v2114_v32  ;;  %v1164_v43 = vmul.f32 %v1154_v28, %v2124_v38  ;;  %v1165_v8 = vmul.f32 %v1154_v28, %v2116_v33 }
 0x192   :  { %v1166_v10 = vmul.f32 %v1154_v28, %v2126_v39  ;;  %v1167_v9 = vmul.f32 %v1154_v28, %v2134_v44  ;;  %v1168_v11 = vmul.f32 %v1154_v28, %v2141_v50  ;;  %v1169_v16 = vmul.f32 %v1154_v28, %v2136_v45 }
 0x193   :  { %v1170_v22 = vmul.f32 %v1154_v28, %v2143_v51  ;;  %v1174_v46 = vrot.slane %v1150_v29, %v1153_v21 }
 0x195   :  { %v1175_v17 = vadd.f32 %v1174_v46, %v1155_v30  ;;  %v1176_v47 = vadd.f32 %v1174_v46, %v1156_v31  ;;  %v1177_v23 = vadd.f32 %v1174_v46, %v1157_v34  ;;  %v1178_v48 = vadd.f32 %v1174_v46, %v1158_v35 }
 0x196   :  { %v1179_v32 = vadd.f32 %v1174_v46, %v1159_v36  ;;  %v1180_v49 = vadd.f32 %v1174_v46, %v1160_v37  ;;  %v1181_v38 = vadd.f32 %v1174_v46, %v1161_v40  ;;  %v1182_v52 = vadd.f32 %v1174_v46, %v1162_v41 }
 0x197   :  { %v1183_v33 = vadd.f32 %v1174_v46, %v1163_v42  ;;  %v1184_v53 = vadd.f32 %v1174_v46, %v1164_v43  ;;  %v1185_v39 = vadd.f32 %v1174_v46, %v1165_v8  ;;  %v1186_v54 = vadd.f32 %v1174_v46, %v1166_v10 }
 0x198   :  { %v1187_v44 = vadd.f32 %v1174_v46, %v1167_v9  ;;  %v1188_v55 = vadd.f32 %v1174_v46, %v1168_v11  ;;  %v1189_v50 = vadd.f32 %v1174_v46, %v1169_v16  ;;  %v1190_v56 = vadd.f32 %v1174_v46, %v1170_v22 }
 0x199   :  { %v1191_v45 = vmax.f32 %v1175_v17, 0.0  ;;  %v1192_v57 = vmax.f32 %v1176_v47, 0.0  ;;  %v1193_v51 = vmax.f32 %v1177_v23, 0.0  ;;  %v1194_v58 = vmax.f32 %v1178_v48, 0.0 }
 0x19a   :  { %v1195_v59 = vmax.f32 %v1179_v32, 0.0  ;;  %v1196_v60 = vmax.f32 %v1180_v49, 0.0  ;;  %v1197_v61 = vmax.f32 %v1181_v38, 0.0  ;;  %v1198_v62 = vmax.f32 %v1182_v52, 0.0 }
 0x19b   :  { %v1199_v63 = vmax.f32 %v1183_v33, 0.0  ;;  %v1200_v0 = vmax.f32 %v1184_v53, 0.0  ;;  %v1201_v1 = vmax.f32 %v1185_v39, 0.0  ;;  %v1202_v2 = vmax.f32 %v1186_v54, 0.0 }
 0x19c   :  { %v1203_v3 = vmax.f32 %v1187_v44, 0.0  ;;  %v1204_v4 = vmax.f32 %v1188_v55, 0.0  ;;  %v1205_v5 = vmax.f32 %v1189_v50, 0.0  ;;  %v1206_v6 = vmax.f32 %v1190_v56, 0.0 }
 0x19d   :  { %v1411_v7 = vpack.c.bf16 %v1192_v57, %v1191_v45  ;;  %v1412_v12 = vpack.c.bf16 %v1194_v58, %v1193_v51  ;;  %v1413_v13 = vpack.c.bf16 %v1196_v60, %v1195_v59  ;;  %v1414_v14 = vpack.c.bf16 %v1198_v62, %v1197_v61 }
 0x19e   :  { %v1415_v15 = vpack.c.bf16 %v1200_v0, %v1199_v63  ;;  %v1416_v18 = vpack.c.bf16 %v1202_v2, %v1201_v1  ;;  %v1417_v19 = vpack.c.bf16 %v1204_v4, %v1203_v3  ;;  %v1418_v20 = vpack.c.bf16 %v1206_v6, %v1205_v5 }
 0x19f   :  { %1255 = vst [vmem:[%s2204_s4] sm:$0xff] %v1411_v7  ;;  %1256 = vst [vmem:[%s2204_s4 + $0x8] sm:$0xff] %v1412_v12 }
 0x1a0   :  { %1257 = vst [vmem:[%s2204_s4 + $0x10] sm:$0xff] %v1413_v13  ;;  %1258 = vst [vmem:[%s2204_s4 + $0x18] sm:$0xff] %v1414_v14 }
 0x1a1   :  { %1259 = vst [vmem:[%s2204_s4 + $0x20] sm:$0xff] %v1415_v15  ;;  %1260 = vst [vmem:[%s2204_s4 + $0x28] sm:$0xff] %v1416_v18 }
 0x1a2   :  { %1261 = vst [vmem:[%s2204_s4 + $0x30] sm:$0xff] %v1417_v19  ;;  %1262 = vst [vmem:[%s2204_s4 + $0x38] sm:$0xff] %v1418_v20 }

// kernel: forward.12
= control target key start
LH: loop header
LB: loop body
LE: loop exit
PB: predicated region body
PF: predicated region fallthrough
CT: control target
= control target key end

     0   :  { %s4170_s1 = inlined_call_operand.vmem [shape: bf16[512,512], index: 1, kind: input, shape index: {}]   ;;  %s4171_s0 = inlined_call_operand.vmem [shape: bf16[128,512], index: 0, kind: input, shape index: {}]   ;;  %s4172_s2 = inlined_call_operand.vmem [shape: f32[1,128], index: 2, kind: input, shape index: {}]   ;;  %s4173_s3 = inlined_call_operand.vmem [shape: f32[1,128], index: 3, kind: input, shape index: {}]   ;;  %s4174_s4 = inlined_call_operand.vmem [shape: bf16[128,512], index: 4, kind: output, shape index: {}]  }
   0x1   :  { %v2395_v0 = vld [vmem:[%s4170_s1 + $0x4] ss:$16 sps:$4 sm:$0xff]   ;;  %v2397_v1 = vld [vmem:[%s4170_s1 + $0xc] ss:$16 sps:$4 sm:$0xff]   ;;  %v2399_v2 = vld [vmem:[%s4170_s1] ss:$16 sps:$4 sm:$0xff]  }
   0x2   :  { %977 = vmatprep.subr.bf16.mxu0 %v2395_v0  ;;  %v2400_v3 = vld [vmem:[%s4170_s1 + $0x8] ss:$16 sps:$4 sm:$0xff]   ;;  %1203 = vmatprep.subr.bf16.mxu1 %v2397_v1  ;;  %v2401_v4 = vld [vmem:[%s4170_s1 + $0x24] ss:$16 sps:$4 sm:$0xff]   ;;  %v2403_v5 = vld [vmem:[%s4170_s1 + $0x2c] ss:$16 sps:$4 sm:$0xff]  }
   0x3   :  { %978 = vmatpush1.bf16.msra.mxu0 %v2399_v2  ;;  %1204 = vmatpush1.bf16.msra.mxu1 %v2400_v3  ;;  %v2405_v6 = vld [vmem:[%s4170_s1 + $0x20] ss:$16 sps:$4 sm:$0xff]   ;;  %v2406_v7 = vld [vmem:[%s4170_s1 + $0x28] ss:$16 sps:$4 sm:$0xff]   ;;  %v2407_v8 = vld [vmem:[%s4170_s1 + $0x44] ss:$16 sps:$4 sm:$0xff]  }
   0x4   :  { %979 = vmatprep.subr.bf16.mxu0 %v2401_v4  ;;  %1205 = vmatprep.subr.bf16.mxu1 %v2403_v5  ;;  %v2409_v9 = vld [vmem:[%s4170_s1 + $0x4c] ss:$16 sps:$4 sm:$0xff]   ;;  %v2411_v10 = vld [vmem:[%s4170_s1 + $0x40] ss:$16 sps:$4 sm:$0xff]   ;;  %v2412_v11 = vld [vmem:[%s4170_s1 + $0x48] ss:$16 sps:$4 sm:$0xff]  }
   0x5   :  { %v2413_v12 = vld [vmem:[%s4170_s1 + $0x64] ss:$16 sps:$4 sm:$0xff]   ;;  %v2415_v13 = vld [vmem:[%s4170_s1 + $0x6c] ss:$16 sps:$4 sm:$0xff]   ;;  %v2417_v14 = vld [vmem:[%s4170_s1 + $0x60] ss:$16 sps:$4 sm:$0xff]  }
   0x6   :  { %v2418_v15 = vld [vmem:[%s4170_s1 + $0x68] ss:$16 sps:$4 sm:$0xff]   ;;  %v2419_v16 = vld [vmem:[%s4170_s1 + $0x84] ss:$16 sps:$4 sm:$0xff]   ;;  %v2421_v17 = vld [vmem:[%s4170_s1 + $0x8c] ss:$16 sps:$4 sm:$0xff]  }
   0x7   :  { %980 = vmatpush1.bf16.msra.mxu0 %v2405_v6  ;;  %1206 = vmatpush1.bf16.msra.mxu1 %v2406_v7  ;;  %v2423_v18 = vld [vmem:[%s4170_s1 + $0x80] ss:$16 sps:$4 sm:$0xff]   ;;  %v2424_v19 = vld [vmem:[%s4170_s1 + $0x88] ss:$16 sps:$4 sm:$0xff]   ;;  %v2425_v20 = vld [vmem:[%s4170_s1 + $0xa4] ss:$16 sps:$4 sm:$0xff]  }
   0x8   :  { %981 = vmatprep.subr.bf16.mxu0 %v2407_v8  ;;  %1207 = vmatprep.subr.bf16.mxu1 %v2409_v9  ;;  %v2427_v21 = vld [vmem:[%s4170_s1 + $0xac] ss:$16 sps:$4 sm:$0xff]   ;;  %v2429_v22 = vld [vmem:[%s4170_s1 + $0xa0] ss:$16 sps:$4 sm:$0xff]   ;;  %v2430_v23 = vld [vmem:[%s4170_s1 + $0xa8] ss:$16 sps:$4 sm:$0xff]  }
   0x9   :  { %v2431_v24 = vld [vmem:[%s4170_s1 + $0xc4] ss:$16 sps:$4 sm:$0xff]   ;;  %v2433_v25 = vld [vmem:[%s4170_s1 + $0xcc] ss:$16 sps:$4 sm:$0xff]   ;;  %v2435_v26 = vld [vmem:[%s4170_s1 + $0xc0] ss:$16 sps:$4 sm:$0xff]  }
   0xa   :  { %v2436_v27 = vld [vmem:[%s4170_s1 + $0xc8] ss:$16 sps:$4 sm:$0xff]   ;;  %v2437_v28 = vld [vmem:[%s4170_s1 + $0xe4] ss:$16 sps:$4 sm:$0xff]   ;;  %v2439_v29 = vld [vmem:[%s4170_s1 + $0xec] ss:$16 sps:$4 sm:$0xff]  }
   0xb   :  { %982 = vmatpush1.bf16.msra.mxu0 %v2411_v10  ;;  %1208 = vmatpush1.bf16.msra.mxu1 %v2412_v11  ;;  %v2441_v30 = vld [vmem:[%s4170_s1 + $0xe0] ss:$16 sps:$4 sm:$0xff]   ;;  %v2442_v31 = vld [vmem:[%s4170_s1 + $0xe8] ss:$16 sps:$4 sm:$0xff]   ;;  %v2443_v32 = vld [vmem:[%s4170_s1 + $0x104] ss:$16 sps:$4 sm:$0xff]  }
   0xc   :  { %983 = vmatprep.subr.bf16.mxu0 %v2413_v12  ;;  %1209 = vmatprep.subr.bf16.mxu1 %v2415_v13  ;;  %v2445_v33 = vld [vmem:[%s4170_s1 + $0x10c] ss:$16 sps:$4 sm:$0xff]   ;;  %v2447_v34 = vld [vmem:[%s4170_s1 + $0x100] ss:$16 sps:$4 sm:$0xff]   ;;  %v2448_v35 = vld [vmem:[%s4170_s1 + $0x108] ss:$16 sps:$4 sm:$0xff]  }
   0xd   :  { %v2449_v36 = vld [vmem:[%s4170_s1 + $0x124] ss:$16 sps:$4 sm:$0xff]   ;;  %v2451_v37 = vld [vmem:[%s4170_s1 + $0x12c] ss:$16 sps:$4 sm:$0xff]   ;;  %v2453_v38 = vld [vmem:[%s4170_s1 + $0x120] ss:$16 sps:$4 sm:$0xff]  }
   0xe   :  { %v2454_v39 = vld [vmem:[%s4170_s1 + $0x128] ss:$16 sps:$4 sm:$0xff]   ;;  %v2455_v40 = vld [vmem:[%s4170_s1 + $0x144] ss:$16 sps:$4 sm:$0xff]   ;;  %v2457_v41 = vld [vmem:[%s4170_s1 + $0x14c] ss:$16 sps:$4 sm:$0xff]  }
   0xf   :  { %984 = vmatpush1.bf16.msra.mxu0 %v2417_v14  ;;  %1210 = vmatpush1.bf16.msra.mxu1 %v2418_v15  ;;  %v2459_v42 = vld [vmem:[%s4170_s1 + $0x140] ss:$16 sps:$4 sm:$0xff]   ;;  %v2460_v43 = vld [vmem:[%s4170_s1 + $0x148] ss:$16 sps:$4 sm:$0xff]   ;;  %v2461_v44 = vld [vmem:[%s4170_s1 + $0x164] ss:$16 sps:$4 sm:$0xff]  }
  0x10   :  { %985 = vmatprep.subr.bf16.mxu0 %v2419_v16  ;;  %1211 = vmatprep.subr.bf16.mxu1 %v2421_v17  ;;  %v2463_v45 = vld [vmem:[%s4170_s1 + $0x16c] ss:$16 sps:$4 sm:$0xff]   ;;  %v2465_v46 = vld [vmem:[%s4170_s1 + $0x160] ss:$16 sps:$4 sm:$0xff]   ;;  %v2466_v47 = vld [vmem:[%s4170_s1 + $0x168] ss:$16 sps:$4 sm:$0xff]  }
  0x11   :  { %v2493_v48 = vld [vmem:[%s4171_s0 + $0x4] ss:$16 sps:$4 sm:$0xff]   ;;  %v2469_v50 = vld [vmem:[%s4170_s1 + $0x18c] ss:$16 sps:$4 sm:$0xff]   ;;  %v2471_v51 = vld [vmem:[%s4170_s1 + $0x180] ss:$16 sps:$4 sm:$0xff]  }
  0x12   :  { %v2467_v49 = vld [vmem:[%s4170_s1 + $0x184] ss:$16 sps:$4 sm:$0xff]   ;;  %1009 = vmatprep.mubr.bf16.mxu0 %v2493_v48  ;;  %1235 = vmatprep.mubr.bf16.mxu1 %v2493_v48  ;;  %v2472_v52 = vld [vmem:[%s4170_s1 + $0x188] ss:$16 sps:$4 sm:$0xff]   ;;  %v2475_v54 = vld [vmem:[%s4170_s1 + $0x1ac] ss:$16 sps:$4 sm:$0xff]  }
  0x13   :  { %986 = vmatpush1.bf16.msra.mxu0 %v2423_v18  ;;  %1212 = vmatpush1.bf16.msra.mxu1 %v2424_v19  ;;  %v2473_v53 = vld [vmem:[%s4170_s1 + $0x1a4] ss:$16 sps:$4 sm:$0xff]   ;;  %v2477_v55 = vld [vmem:[%s4170_s1 + $0x1a0] ss:$16 sps:$4 sm:$0xff]   ;;  %v2478_v56 = vld [vmem:[%s4170_s1 + $0x1a8] ss:$16 sps:$4 sm:$0xff]  }
  0x14   :  { %987 = vmatprep.subr.bf16.mxu0 %v2425_v20  ;;  %1213 = vmatprep.subr.bf16.mxu1 %v2427_v21  ;;  %v2479_v57 = vld [vmem:[%s4170_s1 + $0x1c4] ss:$16 sps:$4 sm:$0xff]   ;;  %v2481_v58 = vld [vmem:[%s4170_s1 + $0x1cc] ss:$16 sps:$4 sm:$0xff]   ;;  %v2483_v59 = vld [vmem:[%s4170_s1 + $0x1c0] ss:$16 sps:$4 sm:$0xff]  }
  0x15   :  { %v2484_v60 = vld [vmem:[%s4170_s1 + $0x1c8] ss:$16 sps:$4 sm:$0xff]   ;;  %v2485_v61 = vld [vmem:[%s4170_s1 + $0x1e4] ss:$16 sps:$4 sm:$0xff]   ;;  %v2487_v62 = vld [vmem:[%s4170_s1 + $0x1ec] ss:$16 sps:$4 sm:$0xff]  }
  0x16   :  { %v2489_v63 = vld [vmem:[%s4170_s1 + $0x1e0] ss:$16 sps:$4 sm:$0xff]   ;;  %v2490_v0 = vld [vmem:[%s4170_s1 + $0x1e8] ss:$16 sps:$4 sm:$0xff]   ;;  %v2496_v1 = vld [vmem:[%s4170_s1 + $0x204] ss:$16 sps:$4 sm:$0xff]  }
  0x17   :  { %988 = vmatpush1.bf16.msra.mxu0 %v2429_v22  ;;  %1214 = vmatpush1.bf16.msra.mxu1 %v2430_v23  ;;  %v2499_v2 = vld [vmem:[%s4170_s1 + $0x20c] ss:$16 sps:$4 sm:$0xff]   ;;  %v2491_v3 = vld [vmem:[%s4171_s0] ss:$16 sps:$4 sm:$0xff]   ;;  %v2497_v5 = vld [vmem:[%s4170_s1 + $0x208] ss:$16 sps:$4 sm:$0xff]  }
  0x18   :  { %989 = vmatprep.subr.bf16.mxu0 %v2431_v24  ;;  %1215 = vmatprep.subr.bf16.mxu1 %v2433_v25  ;;  %v2494_v4 = vld [vmem:[%s4170_s1 + $0x200] ss:$16 sps:$4 sm:$0xff]   ;;  %v2502_v6 = vld [vmem:[%s4170_s1 + $0x224] ss:$16 sps:$4 sm:$0xff]   ;;  %v2505_v7 = vld [vmem:[%s4170_s1 + $0x22c] ss:$16 sps:$4 sm:$0xff]  }
  0x19   :  { %v2506_v8 = vld [vmem:[%s4171_s0 + $0x24] ss:$16 sps:$4 sm:$0xff]   ;;  %v2500_v9 = vld [vmem:[%s4170_s1 + $0x220] ss:$16 sps:$4 sm:$0xff]   ;;  %v2503_v10 = vld [vmem:[%s4170_s1 + $0x228] ss:$16 sps:$4 sm:$0xff]  }
  0x1a   :  { %v2511_v11 = vld [vmem:[%s4170_s1 + $0x244] ss:$16 sps:$4 sm:$0xff]   ;;  %v2514_v12 = vld [vmem:[%s4170_s1 + $0x24c] ss:$16 sps:$4 sm:$0xff]   ;;  %v2508_v13 = vld [vmem:[%s4171_s0 + $0x20] ss:$16 sps:$4 sm:$0xff]  }
  0x1b   :  { %990 = vmatpush1.bf16.msra.mxu0 %v2435_v26  ;;  %1216 = vmatpush1.bf16.msra.mxu1 %v2436_v27  ;;  %v2509_v14 = vld [vmem:[%s4170_s1 + $0x240] ss:$16 sps:$4 sm:$0xff]   ;;  %v2512_v15 = vld [vmem:[%s4170_s1 + $0x248] ss:$16 sps:$4 sm:$0xff]   ;;  %v2517_v16 = vld [vmem:[%s4170_s1 + $0x264] ss:$16 sps:$4 sm:$0xff]  }
  0x1c   :  { %991 = vmatprep.subr.bf16.mxu0 %v2437_v28  ;;  %1217 = vmatprep.subr.bf16.mxu1 %v2439_v29  ;;  %v2520_v17 = vld [vmem:[%s4170_s1 + $0x26c] ss:$16 sps:$4 sm:$0xff]   ;;  %v2521_v18 = vld [vmem:[%s4171_s0 + $0x44] ss:$16 sps:$4 sm:$0xff]   ;;  %v2515_v19 = vld [vmem:[%s4170_s1 + $0x260] ss:$16 sps:$4 sm:$0xff]  }
  0x1d   :  { %v2518_v20 = vld [vmem:[%s4170_s1 + $0x268] ss:$16 sps:$4 sm:$0xff]   ;;  %v2526_v21 = vld [vmem:[%s4170_s1 + $0x284] ss:$16 sps:$4 sm:$0xff]   ;;  %v2529_v22 = vld [vmem:[%s4170_s1 + $0x28c] ss:$16 sps:$4 sm:$0xff]  }
  0x1e   :  { %v2523_v23 = vld [vmem:[%s4171_s0 + $0x40] ss:$16 sps:$4 sm:$0xff]   ;;  %v2527_v25 = vld [vmem:[%s4170_s1 + $0x288] ss:$16 sps:$4 sm:$0xff]   ;;  %v2532_v26 = vld [vmem:[%s4170_s1 + $0x2a4] ss:$16 sps:$4 sm:$0xff]  }
  0x1f   :  { %992 = vmatpush1.bf16.msra.mxu0 %v2441_v30  ;;  %1218 = vmatpush1.bf16.msra.mxu1 %v2442_v31  ;;  %v2524_v24 = vld [vmem:[%s4170_s1 + $0x280] ss:$16 sps:$4 sm:$0xff]   ;;  %v2535_v27 = vld [vmem:[%s4170_s1 + $0x2ac] ss:$16 sps:$4 sm:$0xff]   ;;  %v2536_v28 = vld [vmem:[%s4171_s0 + $0x64] ss:$16 sps:$4 sm:$0xff]  }
  0x20   :  { %993 = vmatprep.subr.bf16.mxu0 %v2443_v32  ;;  %1219 = vmatprep.subr.bf16.mxu1 %v2445_v33  ;;  %v2530_v29 = vld [vmem:[%s4170_s1 + $0x2a0] ss:$16 sps:$4 sm:$0xff]   ;;  %v2533_v30 = vld [vmem:[%s4170_s1 + $0x2a8] ss:$16 sps:$4 sm:$0xff]   ;;  %v2541_v31 = vld [vmem:[%s4170_s1 + $0x2c4] ss:$16 sps:$4 sm:$0xff]  }
  0x21   :  { %v2544_v32 = vld [vmem:[%s4170_s1 + $0x2cc] ss:$16 sps:$4 sm:$0xff]   ;;  %v2538_v33 = vld [vmem:[%s4171_s0 + $0x60] ss:$16 sps:$4 sm:$0xff]   ;;  %v2566_v48 = vld [vmem:[%s4171_s0 + $0xa4] ss:$16 sps:$4 sm:$0xff]  }
  0x23   :  { %994 = vmatpush1.bf16.msra.mxu0 %v2447_v34  ;;  %1220 = vmatpush1.bf16.msra.mxu1 %v2448_v35  ;;  %v2539_v34 = vld [vmem:[%s4170_s1 + $0x2c0] ss:$16 sps:$4 sm:$0xff]   ;;  %v2542_v35 = vld [vmem:[%s4170_s1 + $0x2c8] ss:$16 sps:$4 sm:$0xff]  }
  0x24   :  { %995 = vmatprep.subr.bf16.mxu0 %v2449_v36  ;;  %1221 = vmatprep.subr.bf16.mxu1 %v2451_v37  ;;  %v2547_v36 = vld [vmem:[%s4170_s1 + $0x2e4] ss:$16 sps:$4 sm:$0xff]   ;;  %v2550_v37 = vld [vmem:[%s4170_s1 + $0x2ec] ss:$16 sps:$4 sm:$0xff]  }
  0x27   :  { %996 = vmatpush1.bf16.msra.mxu0 %v2453_v38  ;;  %1222 = vmatpush1.bf16.msra.mxu1 %v2454_v39  ;;  %v2551_v38 = vld [vmem:[%s4171_s0 + $0x84] ss:$16 sps:$4 sm:$0xff]   ;;  %v2545_v39 = vld [vmem:[%s4170_s1 + $0x2e0] ss:$16 sps:$4 sm:$0xff]  }
  0x28   :  { %997 = vmatprep.subr.bf16.mxu0 %v2455_v40  ;;  %1223 = vmatprep.subr.bf16.mxu1 %v2457_v41  ;;  %v2548_v40 = vld [vmem:[%s4170_s1 + $0x2e8] ss:$16 sps:$4 sm:$0xff]   ;;  %v2556_v41 = vld [vmem:[%s4170_s1 + $0x304] ss:$16 sps:$4 sm:$0xff]  }
  0x2b   :  { %998 = vmatpush1.bf16.msra.mxu0 %v2459_v42  ;;  %1224 = vmatpush1.bf16.msra.mxu1 %v2460_v43  ;;  %v2559_v42 = vld [vmem:[%s4170_s1 + $0x30c] ss:$16 sps:$4 sm:$0xff]   ;;  %v2553_v43 = vld [vmem:[%s4171_s0 + $0x80] ss:$16 sps:$4 sm:$0xff]  }
  0x2c   :  { %999 = vmatprep.subr.bf16.mxu0 %v2461_v44  ;;  %1225 = vmatprep.subr.bf16.mxu1 %v2463_v45  ;;  %v2554_v44 = vld [vmem:[%s4170_s1 + $0x300] ss:$16 sps:$4 sm:$0xff]   ;;  %v2557_v45 = vld [vmem:[%s4170_s1 + $0x308] ss:$16 sps:$4 sm:$0xff]  }
  0x2f   :  { %1000 = vmatpush1.bf16.msra.mxu0 %v2465_v46  ;;  %1226 = vmatpush1.bf16.msra.mxu1 %v2466_v47  ;;  %v2562_v46 = vld [vmem:[%s4170_s1 + $0x324] ss:$16 sps:$4 sm:$0xff]   ;;  %v2565_v47 = vld [vmem:[%s4170_s1 + $0x32c] ss:$16 sps:$4 sm:$0xff]  }
  0x30   :  { %1001 = vmatprep.subr.bf16.mxu0 %v2467_v49  ;;  %1227 = vmatprep.subr.bf16.mxu1 %v2469_v50  ;;  %v2560_v49 = vld [vmem:[%s4170_s1 + $0x320] ss:$16 sps:$4 sm:$0xff]   ;;  %v2563_v50 = vld [vmem:[%s4170_s1 + $0x328] ss:$16 sps:$4 sm:$0xff]  }
  0x33   :  { %1002 = vmatpush1.bf16.msra.mxu0 %v2471_v51  ;;  %1228 = vmatpush1.bf16.msra.mxu1 %v2472_v52  ;;  %v2571_v51 = vld [vmem:[%s4170_s1 + $0x344] ss:$16 sps:$4 sm:$0xff]   ;;  %v2574_v52 = vld [vmem:[%s4170_s1 + $0x34c] ss:$16 sps:$4 sm:$0xff]  }
  0x34   :  { %1003 = vmatprep.subr.bf16.mxu0 %v2473_v53  ;;  %1229 = vmatprep.subr.bf16.mxu1 %v2475_v54  ;;  %v2568_v53 = vld [vmem:[%s4171_s0 + $0xa0] ss:$16 sps:$4 sm:$0xff]  }
  0x35   :  { %v2569_v54 = vld [vmem:[%s4170_s1 + $0x340] ss:$16 sps:$4 sm:$0xff]  }
  0x37   :  { %1004 = vmatpush1.bf16.msra.mxu0 %v2477_v55  ;;  %1230 = vmatpush1.bf16.msra.mxu1 %v2478_v56  ;;  %v2572_v55 = vld [vmem:[%s4170_s1 + $0x348] ss:$16 sps:$4 sm:$0xff]   ;;  %v2577_v56 = vld [vmem:[%s4170_s1 + $0x364] ss:$16 sps:$4 sm:$0xff]  }
  0x38   :  { %1005 = vmatprep.subr.bf16.mxu0 %v2479_v57  ;;  %1231 = vmatprep.subr.bf16.mxu1 %v2481_v58  ;;  %v2580_v57 = vld [vmem:[%s4170_s1 + $0x36c] ss:$16 sps:$4 sm:$0xff]   ;;  %v2581_v58 = vld [vmem:[%s4171_s0 + $0xc4] ss:$16 sps:$4 sm:$0xff]  }
  0x3b   :  { %1006 = vmatpush1.bf16.msra.mxu0 %v2483_v59  ;;  %1232 = vmatpush1.bf16.msra.mxu1 %v2484_v60  ;;  %v2575_v59 = vld [vmem:[%s4170_s1 + $0x360] ss:$16 sps:$4 sm:$0xff]   ;;  %v2578_v60 = vld [vmem:[%s4170_s1 + $0x368] ss:$16 sps:$4 sm:$0xff]  }
  0x3c   :  { %1007 = vmatprep.subr.bf16.mxu0 %v2485_v61  ;;  %1233 = vmatprep.subr.bf16.mxu1 %v2487_v62  ;;  %v2586_v61 = vld [vmem:[%s4170_s1 + $0x384] ss:$16 sps:$4 sm:$0xff]   ;;  %v2589_v62 = vld [vmem:[%s4170_s1 + $0x38c] ss:$16 sps:$4 sm:$0xff]  }
  0x3f   :  { %1008 = vmatpush1.bf16.msra.mxu0 %v2489_v63  ;;  %1234 = vmatpush1.bf16.msra.mxu1 %v2490_v0  ;;  %v2583_v63 = vld [vmem:[%s4171_s0 + $0xc0] ss:$16 sps:$4 sm:$0xff]  }
  0x40   :  { %1090 = vmatprep.subr.bf16.mxu0 %v2496_v1  ;;  %1316 = vmatprep.subr.bf16.mxu1 %v2499_v2  ;;  %v2584_v0 = vld [vmem:[%s4170_s1 + $0x380] ss:$16 sps:$4 sm:$0xff]   ;;  %v2587_v1 = vld [vmem:[%s4170_s1 + $0x388] ss:$16 sps:$4 sm:$0xff]   ;;  %v2592_v2 = vld [vmem:[%s4170_s1 + $0x3a4] ss:$16 sps:$4 sm:$0xff]  }
  0x42   :  { %1010 = vmatmul.mubr.bf16.vlgmr.msra.gmra.mrb[0].mxu0 %v2491_v3  ;;  %1236 = vmatmul.mubr.bf16.vlgmr.msra.gmra.mrb[0].mxu1 %v2491_v3  ;;  %v2595_v3 = vld [vmem:[%s4170_s1 + $0x3ac] ss:$16 sps:$4 sm:$0xff]  }
  0x43   :  { %1091 = vmatpush1.bf16.msra.mxu0 %v2494_v4  ;;  %1317 = vmatpush1.bf16.msra.mxu1 %v2497_v5  ;;  %v2596_v4 = vld [vmem:[%s4171_s0 + $0xe4] ss:$16 sps:$4 sm:$0xff]   ;;  %v2590_v5 = vld [vmem:[%s4170_s1 + $0x3a0] ss:$16 sps:$4 sm:$0xff]  }
  0x44   :  { %1092 = vmatprep.subr.bf16.mxu0 %v2502_v6  ;;  %1318 = vmatprep.subr.bf16.mxu1 %v2505_v7  ;;  %v2593_v6 = vld [vmem:[%s4170_s1 + $0x3a8] ss:$16 sps:$4 sm:$0xff]   ;;  %v2601_v7 = vld [vmem:[%s4170_s1 + $0x3c4] ss:$16 sps:$4 sm:$0xff]  }
  0x45   :  { %1019 = vmatprep.mubr.bf16.mxu0 %v2506_v8  ;;  %1245 = vmatprep.mubr.bf16.mxu1 %v2506_v8  ;;  %v2604_v8 = vld [vmem:[%s4170_s1 + $0x3cc] ss:$16 sps:$4 sm:$0xff]  }
  0x47   :  { %1093 = vmatpush1.bf16.msra.mxu0 %v2500_v9  ;;  %1319 = vmatpush1.bf16.msra.mxu1 %v2503_v10  ;;  %v2598_v9 = vld [vmem:[%s4171_s0 + $0xe0] ss:$16 sps:$4 sm:$0xff]  }
  0x48   :  { %1094 = vmatprep.subr.bf16.mxu0 %v2511_v11  ;;  %1320 = vmatprep.subr.bf16.mxu1 %v2514_v12  ;;  %v2599_v10 = vld [vmem:[%s4170_s1 + $0x3c0] ss:$16 sps:$4 sm:$0xff]   ;;  %v2602_v11 = vld [vmem:[%s4170_s1 + $0x3c8] ss:$16 sps:$4 sm:$0xff]   ;;  %v2607_v12 = vld [vmem:[%s4170_s1 + $0x3e4] ss:$16 sps:$4 sm:$0xff]  }
  0x4a   :  { %1020 = vmatmul.mubr.bf16.gmra.mrb[4].mxu0 %v2508_v13  ;;  %1246 = vmatmul.mubr.bf16.gmra.mrb[4].mxu1 %v2508_v13  ;;  %v2610_v13 = vld [vmem:[%s4170_s1 + $0x3ec] ss:$16 sps:$4 sm:$0xff]  }
  0x4b   :  { %1095 = vmatpush1.bf16.msra.mxu0 %v2509_v14  ;;  %1321 = vmatpush1.bf16.msra.mxu1 %v2512_v15  ;;  %v2613_v14 = vld [vmem:[%s4171_s0 + $0xc] ss:$16 sps:$4 sm:$0xff]   ;;  %v2605_v15 = vld [vmem:[%s4170_s1 + $0x3e0] ss:$16 sps:$4 sm:$0xff]  }
  0x4c   :  { %1096 = vmatprep.subr.bf16.mxu0 %v2517_v16  ;;  %1322 = vmatprep.subr.bf16.mxu1 %v2520_v17  ;;  %v2608_v16 = vld [vmem:[%s4170_s1 + $0x3e8] ss:$16 sps:$4 sm:$0xff]  }
  0x4d   :  { %1029 = vmatprep.mubr.bf16.mxu0 %v2521_v18  ;;  %1255 = vmatprep.mubr.bf16.mxu1 %v2521_v18  ;;  %v2611_v17 = vld [vmem:[%s4171_s0 + $0x8] ss:$16 sps:$4 sm:$0xff]   ;;  %v2614_v18 = vld [vmem:[%s4171_s0 + $0x2c] ss:$16 sps:$4 sm:$0xff]  }
  0x4f   :  { %1097 = vmatpush1.bf16.msra.mxu0 %v2515_v19  ;;  %1323 = vmatpush1.bf16.msra.mxu1 %v2518_v20  ;;  %v2616_v19 = vld [vmem:[%s4171_s0 + $0x28] ss:$16 sps:$4 sm:$0xff]   ;;  %v2617_v20 = vld [vmem:[%s4171_s0 + $0x4c] ss:$16 sps:$4 sm:$0xff]  }
  0x50   :  { %1098 = vmatprep.subr.bf16.mxu0 %v2526_v21  ;;  %1324 = vmatprep.subr.bf16.mxu1 %v2529_v22  ;;  %v2619_v21 = vld [vmem:[%s4171_s0 + $0x48] ss:$16 sps:$4 sm:$0xff]   ;;  %v2620_v22 = vld [vmem:[%s4171_s0 + $0x6c] ss:$16 sps:$4 sm:$0xff]  }
  0x52   :  { %1030 = vmatmul.mubr.bf16.gmra.mrb[8].mxu0 %v2523_v23  ;;  %1256 = vmatmul.mubr.bf16.gmra.mrb[8].mxu1 %v2523_v23  ;;  %v2622_v23 = vld [vmem:[%s4171_s0 + $0x68] ss:$16 sps:$4 sm:$0xff]  }
  0x53   :  { %1099 = vmatpush1.bf16.msra.mxu0 %v2524_v24  ;;  %1325 = vmatpush1.bf16.msra.mxu1 %v2527_v25  ;;  %v2623_v24 = vld [vmem:[%s4171_s0 + $0x8c] ss:$16 sps:$4 sm:$0xff]   ;;  %v2625_v25 = vld [vmem:[%s4171_s0 + $0x88] ss:$16 sps:$4 sm:$0xff]  }
  0x54   :  { %1100 = vmatprep.subr.bf16.mxu0 %v2532_v26  ;;  %1326 = vmatprep.subr.bf16.mxu1 %v2535_v27  ;;  %v2626_v26 = vld [vmem:[%s4171_s0 + $0xac] ss:$16 sps:$4 sm:$0xff]   ;;  %v2628_v27 = vld [vmem:[%s4171_s0 + $0xa8] ss:$16 sps:$4 sm:$0xff]  }
  0x55   :  { %1039 = vmatprep.mubr.bf16.mxu0 %v2536_v28  ;;  %1265 = vmatprep.mubr.bf16.mxu1 %v2536_v28  ;;  %v2629_v28 = vld [vmem:[%s4171_s0 + $0xcc] ss:$16 sps:$4 sm:$0xff]  }
  0x57   :  { %1101 = vmatpush1.bf16.msra.mxu0 %v2530_v29  ;;  %1327 = vmatpush1.bf16.msra.mxu1 %v2533_v30  ;;  %v2631_v29 = vld [vmem:[%s4171_s0 + $0xc8] ss:$16 sps:$4 sm:$0xff]   ;;  %v2632_v30 = vld [vmem:[%s4171_s0 + $0xec] ss:$16 sps:$4 sm:$0xff]  }
  0x58   :  { %1102 = vmatprep.subr.bf16.mxu0 %v2541_v31  ;;  %1328 = vmatprep.subr.bf16.mxu1 %v2544_v32  ;;  %v2634_v31 = vld [vmem:[%s4171_s0 + $0xe8] ss:$16 sps:$4 sm:$0xff]  }
  0x5a   :  { %1040 = vmatmul.mubr.bf16.gmra.mrb[12].mxu0 %v2538_v33  ;;  %1266 = vmatmul.mubr.bf16.gmra.mrb[12].mxu1 %v2538_v33 }
  0x5b   :  { %1103 = vmatpush1.bf16.msra.mxu0 %v2539_v34  ;;  %1329 = vmatpush1.bf16.msra.mxu1 %v2542_v35 }
  0x5c   :  { %1104 = vmatprep.subr.bf16.mxu0 %v2547_v36  ;;  %1330 = vmatprep.subr.bf16.mxu1 %v2550_v37 }
  0x5d   :  { %1049 = vmatprep.mubr.bf16.mxu0 %v2551_v38  ;;  %1275 = vmatprep.mubr.bf16.mxu1 %v2551_v38 }
  0x5f   :  { %1105 = vmatpush1.bf16.msra.mxu0 %v2545_v39  ;;  %1331 = vmatpush1.bf16.msra.mxu1 %v2548_v40 }
  0x60   :  { %1106 = vmatprep.subr.bf16.mxu0 %v2556_v41  ;;  %1332 = vmatprep.subr.bf16.mxu1 %v2559_v42 }
  0x62   :  { %1050 = vmatmul.mubr.bf16.gmra.mrb[16].mxu0 %v2553_v43  ;;  %1276 = vmatmul.mubr.bf16.gmra.mrb[16].mxu1 %v2553_v43 }
  0x63   :  { %1107 = vmatpush1.bf16.msra.mxu0 %v2554_v44  ;;  %1333 = vmatpush1.bf16.msra.mxu1 %v2557_v45 }
  0x64   :  { %1108 = vmatprep.subr.bf16.mxu0 %v2562_v46  ;;  %1334 = vmatprep.subr.bf16.mxu1 %v2565_v47 }
  0x65   :  { %1059 = vmatprep.mubr.bf16.mxu0 %v2566_v48  ;;  %1285 = vmatprep.mubr.bf16.mxu1 %v2566_v48 }
  0x67   :  { %1109 = vmatpush1.bf16.msra.mxu0 %v2560_v49  ;;  %1335 = vmatpush1.bf16.msra.mxu1 %v2563_v50 }
  0x68   :  { %1110 = vmatprep.subr.bf16.mxu0 %v2571_v51  ;;  %1336 = vmatprep.subr.bf16.mxu1 %v2574_v52 }
  0x6a   :  { %1060 = vmatmul.mubr.bf16.gmra.mrb[20].mxu0 %v2568_v53  ;;  %1286 = vmatmul.mubr.bf16.gmra.mrb[20].mxu1 %v2568_v53 }
  0x6b   :  { %1111 = vmatpush1.bf16.msra.mxu0 %v2569_v54  ;;  %1337 = vmatpush1.bf16.msra.mxu1 %v2572_v55 }
  0x6c   :  { %1112 = vmatprep.subr.bf16.mxu0 %v2577_v56  ;;  %1338 = vmatprep.subr.bf16.mxu1 %v2580_v57 }
  0x6d   :  { %1069 = vmatprep.mubr.bf16.mxu0 %v2581_v58  ;;  %1295 = vmatprep.mubr.bf16.mxu1 %v2581_v58 }
  0x6f   :  { %1113 = vmatpush1.bf16.msra.mxu0 %v2575_v59  ;;  %1339 = vmatpush1.bf16.msra.mxu1 %v2578_v60 }
  0x70   :  { %1114 = vmatprep.subr.bf16.mxu0 %v2586_v61  ;;  %1340 = vmatprep.subr.bf16.mxu1 %v2589_v62 }
  0x72   :  { %1070 = vmatmul.mubr.bf16.gmra.mrb[24].mxu0 %v2583_v63  ;;  %1296 = vmatmul.mubr.bf16.gmra.mrb[24].mxu1 %v2583_v63 }
  0x73   :  { %1115 = vmatpush1.bf16.msra.mxu0 %v2584_v0  ;;  %1341 = vmatpush1.bf16.msra.mxu1 %v2587_v1 }
  0x74   :  { %1116 = vmatprep.subr.bf16.mxu0 %v2592_v2  ;;  %1342 = vmatprep.subr.bf16.mxu1 %v2595_v3 }
  0x75   :  { %1079 = vmatprep.mubr.bf16.mxu0 %v2596_v4  ;;  %1305 = vmatprep.mubr.bf16.mxu1 %v2596_v4 }
  0x77   :  { %1117 = vmatpush1.bf16.msra.mxu0 %v2590_v5  ;;  %1343 = vmatpush1.bf16.msra.mxu1 %v2593_v6 }
  0x78   :  { %1118 = vmatprep.subr.bf16.mxu0 %v2601_v7  ;;  %1344 = vmatprep.subr.bf16.mxu1 %v2604_v8 }
  0x7a   :  { %1080 = vmatmul.mubr.bf16.gmra.mrb[28].mxu0 %v2598_v9  ;;  %1306 = vmatmul.mubr.bf16.gmra.mrb[28].mxu1 %v2598_v9 }
  0x7b   :  { %1119 = vmatpush1.bf16.msra.mxu0 %v2599_v10  ;;  %1345 = vmatpush1.bf16.msra.mxu1 %v2602_v11 }
  0x7c   :  { %1120 = vmatprep.subr.bf16.mxu0 %v2607_v12  ;;  %1346 = vmatprep.subr.bf16.mxu1 %v2610_v13 }
  0x7d   :  { %1122 = vmatprep.mubr.bf16.mxu0 %v2613_v14  ;;  %1348 = vmatprep.mubr.bf16.mxu1 %v2613_v14 }
  0x7f   :  { %1121 = vmatpush1.bf16.msra.mxu0 %v2605_v15  ;;  %1347 = vmatpush1.bf16.msra.mxu1 %v2608_v16 }
  0x82   :  { %1123 = vmatmul.mubr.bf16.vlgmr.msra.gmra.mrb[0].mxu0 %v2611_v17  ;;  %1349 = vmatmul.mubr.bf16.vlgmr.msra.gmra.mrb[0].mxu1 %v2611_v17 }
  0x83   :  { %1132 = vmatprep.mubr.bf16.mxu0 %v2614_v18  ;;  %1358 = vmatprep.mubr.bf16.mxu1 %v2614_v18 }
  0x8a   :  { %1133 = vmatmul.mubr.bf16.gmra.mrb[4].mxu0 %v2616_v19  ;;  %1359 = vmatmul.mubr.bf16.gmra.mrb[4].mxu1 %v2616_v19 }
  0x8b   :  { %1142 = vmatprep.mubr.bf16.mxu0 %v2617_v20  ;;  %1368 = vmatprep.mubr.bf16.mxu1 %v2617_v20 }
  0x92   :  { %1143 = vmatmul.mubr.bf16.gmra.mrb[8].mxu0 %v2619_v21  ;;  %1369 = vmatmul.mubr.bf16.gmra.mrb[8].mxu1 %v2619_v21 }
  0x93   :  { %1152 = vmatprep.mubr.bf16.mxu0 %v2620_v22  ;;  %1378 = vmatprep.mubr.bf16.mxu1 %v2620_v22 }
  0x9a   :  { %1153 = vmatmul.mubr.bf16.gmra.mrb[12].mxu0 %v2622_v23  ;;  %1379 = vmatmul.mubr.bf16.gmra.mrb[12].mxu1 %v2622_v23 }
  0x9b   :  { %1162 = vmatprep.mubr.bf16.mxu0 %v2623_v24  ;;  %1388 = vmatprep.mubr.bf16.mxu1 %v2623_v24 }
  0xa2   :  { %1163 = vmatmul.mubr.bf16.gmra.mrb[16].mxu0 %v2625_v25  ;;  %1389 = vmatmul.mubr.bf16.gmra.mrb[16].mxu1 %v2625_v25 }
  0xa3   :  { %1172 = vmatprep.mubr.bf16.mxu0 %v2626_v26  ;;  %1398 = vmatprep.mubr.bf16.mxu1 %v2626_v26 }
  0xaa   :  { %1173 = vmatmul.mubr.bf16.gmra.mrb[20].mxu0 %v2628_v27  ;;  %1399 = vmatmul.mubr.bf16.gmra.mrb[20].mxu1 %v2628_v27 }
  0xab   :  { %1182 = vmatprep.mubr.bf16.mxu0 %v2629_v28  ;;  %1408 = vmatprep.mubr.bf16.mxu1 %v2629_v28 }
  0xb2   :  { %1183 = vmatmul.mubr.bf16.gmra.mrb[24].mxu0 %v2631_v29  ;;  %1409 = vmatmul.mubr.bf16.gmra.mrb[24].mxu1 %v2631_v29 }
  0xb3   :  { %1192 = vmatprep.mubr.bf16.mxu0 %v2632_v30  ;;  %1418 = vmatprep.mubr.bf16.mxu1 %v2632_v30 }
  0xba   :  { %1193 = vmatmul.mubr.bf16.gmra.mrb[28].mxu0 %v2634_v31  ;;  %1419 = vmatmul.mubr.bf16.gmra.mrb[28].mxu1 %v2634_v31 }
 0x155   :  { %v3142_v32 = vpop.f32.mrb[0].mxu0  ;;  %v3144_v33 = vpop.f32.mrb[0].mxu1 }
 0x156   :  { %v3146_v34 = vpop.f32.mrb[1].mxu0  ;;  %v3148_v35 = vpop.f32.mrb[1].mxu1  ;;  %v1513_v36 = vmul.f32 %v3142_v32, %v3142_v32  ;;  %v1515_v37 = vmul.f32 %v3144_v33, %v3144_v33 }
 0x157   :  { %v1514_v38 = vmul.f32 %v3146_v34, %v3146_v34  ;;  %v1516_v39 = vmul.f32 %v3148_v35, %v3148_v35  ;;  %v3158_v40 = vpop.f32.mrb[2].mxu0  ;;  %v3160_v41 = vpop.f32.mrb[2].mxu1 }
 0x158   :  { %v1429_v42 = vadd.f32 %v3158_v40, %v3142_v32  ;;  %v1517_v43 = vmul.f32 %v3158_v40, %v3158_v40  ;;  %v1471_v44 = vadd.f32 %v3160_v41, %v3144_v33  ;;  %v1519_v45 = vmul.f32 %v3160_v41, %v3160_v41  ;;  %v3170_v46 = vpop.f32.mrb[3].mxu0  ;;  %v3172_v47 = vpop.f32.mrb[3].mxu1 }
 0x159   :  { %v1450_v48 = vadd.f32 %v3170_v46, %v3146_v34  ;;  %v1518_v49 = vmul.f32 %v3170_v46, %v3170_v46  ;;  %v1492_v50 = vadd.f32 %v3172_v47, %v3148_v35  ;;  %v1520_v51 = vmul.f32 %v3172_v47, %v3172_v47 }
 0x15a   :  { %v1577_v52 = vadd.f32 %v1517_v43, %v1513_v36  ;;  %v1619_v53 = vadd.f32 %v1519_v45, %v1515_v37 }
 0x15b   :  { %v1598_v54 = vadd.f32 %v1518_v49, %v1514_v38  ;;  %v1640_v55 = vadd.f32 %v1520_v51, %v1516_v39 }
 0x15d   :  { %v3182_v56 = vpop.f32.mrb[4].mxu0  ;;  %v3184_v57 = vpop.f32.mrb[4].mxu1 }
 0x15e   :  { %v1430_v58 = vadd.f32 %v1429_v42, %v3182_v56  ;;  %v1521_v59 = vmul.f32 %v3182_v56, %v3182_v56  ;;  %v1472_v60 = vadd.f32 %v1471_v44, %v3184_v57  ;;  %v1523_v61 = vmul.f32 %v3184_v57, %v3184_v57  ;;  %v3192_v62 = vpop.f32.mrb[5].mxu0  ;;  %v3194_v63 = vpop.f32.mrb[5].mxu1 }
 0x15f   :  { %v1451_v0 = vadd.f32 %v1450_v48, %v3192_v62  ;;  %v1522_v1 = vmul.f32 %v3192_v62, %v3192_v62  ;;  %v1493_v2 = vadd.f32 %v1492_v50, %v3194_v63  ;;  %v1524_v3 = vmul.f32 %v3194_v63, %v3194_v63  ;;  %v3202_v4 = vpop.f32.mrb[6].mxu0  ;;  %v3204_v5 = vpop.f32.mrb[6].mxu1 }
 0x160   :  { %v1578_v6 = vadd.f32 %v1577_v52, %v1521_v59  ;;  %v1620_v7 = vadd.f32 %v1619_v53, %v1523_v61  ;;  %v1431_v8 = vadd.f32 %v1430_v58, %v3202_v4  ;;  %v1525_v9 = vmul.f32 %v3202_v4, %v3202_v4  ;;  %v3209_v10 = vpop.f32.mrb[7].mxu0  ;;  %v3211_v11 = vpop.f32.mrb[7].mxu1 }
 0x161   :  { %v1599_v12 = vadd.f32 %v1598_v54, %v1522_v1  ;;  %v1641_v13 = vadd.f32 %v1640_v55, %v1524_v3  ;;  %v1473_v14 = vadd.f32 %v1472_v60, %v3204_v5  ;;  %v1527_v15 = vmul.f32 %v3204_v5, %v3204_v5 }
 0x162   :  { %v1579_v16 = vadd.f32 %v1578_v6, %v1525_v9  ;;  %v1452_v17 = vadd.f32 %v1451_v0, %v3209_v10  ;;  %v1526_v18 = vmul.f32 %v3209_v10, %v3209_v10  ;;  %v1494_v19 = vadd.f32 %v1493_v2, %v3211_v11 }
 0x163   :  { %v1621_v20 = vadd.f32 %v1620_v7, %v1527_v15  ;;  %v1528_v21 = vmul.f32 %v3211_v11, %v3211_v11 }
 0x164   :  { %v1600_v22 = vadd.f32 %v1599_v12, %v1526_v18 }
 0x165   :  { %v1642_v23 = vadd.f32 %v1641_v13, %v1528_v21  ;;  %v3222_v24 = vpop.f32.mrb[8].mxu0  ;;  %v3224_v25 = vpop.f32.mrb[8].mxu1 }
 0x166   :  { %v1432_v26 = vadd.f32 %v1431_v8, %v3222_v24  ;;  %v1529_v27 = vmul.f32 %v3222_v24, %v3222_v24  ;;  %v1474_v28 = vadd.f32 %v1473_v14, %v3224_v25  ;;  %v1531_v29 = vmul.f32 %v3224_v25, %v3224_v25  ;;  %v3232_v30 = vpop.f32.mrb[9].mxu0  ;;  %v3234_v31 = vpop.f32.mrb[9].mxu1 }
 0x167   :  { %v1453_v36 = vadd.f32 %v1452_v17, %v3232_v30  ;;  %v1530_v37 = vmul.f32 %v3232_v30, %v3232_v30  ;;  %v1495_v38 = vadd.f32 %v1494_v19, %v3234_v31  ;;  %v1532_v39 = vmul.f32 %v3234_v31, %v3234_v31  ;;  %v3242_v42 = vpop.f32.mrb[10].mxu0  ;;  %v3244_v43 = vpop.f32.mrb[10].mxu1 }
 0x168   :  { %v1580_v44 = vadd.f32 %v1579_v16, %v1529_v27  ;;  %v1622_v45 = vadd.f32 %v1621_v20, %v1531_v29  ;;  %v1433_v48 = vadd.f32 %v1432_v26, %v3242_v42  ;;  %v1533_v49 = vmul.f32 %v3242_v42, %v3242_v42  ;;  %v3249_v50 = vpop.f32.mrb[11].mxu0  ;;  %v3251_v51 = vpop.f32.mrb[11].mxu1 }
 0x169   :  { %v1601_v52 = vadd.f32 %v1600_v22, %v1530_v37  ;;  %v1643_v53 = vadd.f32 %v1642_v23, %v1532_v39  ;;  %v1475_v54 = vadd.f32 %v1474_v28, %v3244_v43  ;;  %v1535_v55 = vmul.f32 %v3244_v43, %v3244_v43 }
 0x16a   :  { %v1581_v58 = vadd.f32 %v1580_v44, %v1533_v49  ;;  %v1454_v59 = vadd.f32 %v1453_v36, %v3249_v50  ;;  %v1534_v60 = vmul.f32 %v3249_v50, %v3249_v50  ;;  %v1496_v61 = vadd.f32 %v1495_v38, %v3251_v51 }
 0x16b   :  { %v1623_v0 = vadd.f32 %v1622_v45, %v1535_v55  ;;  %v1536_v1 = vmul.f32 %v3251_v51, %v3251_v51 }
 0x16c   :  { %v1602_v2 = vadd.f32 %v1601_v52, %v1534_v60 }
 0x16d   :  { %v1644_v3 = vadd.f32 %v1643_v53, %v1536_v1  ;;  %v3262_v6 = vpop.f32.mrb[12].mxu0  ;;  %v3264_v7 = vpop.f32.mrb[12].mxu1 }
 0x16e   :  { %v1434_v8 = vadd.f32 %v1433_v48, %v3262_v6  ;;  %v1537_v9 = vmul.f32 %v3262_v6, %v3262_v6  ;;  %v1476_v12 = vadd.f32 %v1475_v54, %v3264_v7  ;;  %v1539_v13 = vmul.f32 %v3264_v7, %v3264_v7  ;;  %v3272_v14 = vpop.f32.mrb[13].mxu0  ;;  %v3274_v15 = vpop.f32.mrb[13].mxu1 }
 0x16f   :  { %v1455_v16 = vadd.f32 %v1454_v59, %v3272_v14  ;;  %v1538_v17 = vmul.f32 %v3272_v14, %v3272_v14  ;;  %v1497_v18 = vadd.f32 %v1496_v61, %v3274_v15  ;;  %v1540_v19 = vmul.f32 %v3274_v15, %v3274_v15  ;;  %v3282_v20 = vpop.f32.mrb[14].mxu0  ;;  %v3284_v21 = vpop.f32.mrb[14].mxu1 }
 0x170   :  { %v1582_v22 = vadd.f32 %v1581_v58, %v1537_v9  ;;  %v1624_v23 = vadd.f32 %v1623_v0, %v1539_v13  ;;  %v1435_v26 = vadd.f32 %v1434_v8, %v3282_v20  ;;  %v1541_v27 = vmul.f32 %v3282_v20, %v3282_v20  ;;  %v3289_v28 = vpop.f32.mrb[15].mxu0  ;;  %v3291_v29 = vpop.f32.mrb[15].mxu1 }
 0x171   :  { %4214 = vst [vmem:[#allocation2_spill] sm:$0xff] %v3291_v29  ;;  %v1603_v36 = vadd.f32 %v1602_v2, %v1538_v17  ;;  %v1645_v37 = vadd.f32 %v1644_v3, %v1540_v19  ;;  %v1477_v38 = vadd.f32 %v1476_v12, %v3284_v21  ;;  %v1543_v39 = vmul.f32 %v3284_v21, %v3284_v21 }
 0x172   :  { %v1583_v44 = vadd.f32 %v1582_v22, %v1541_v27  ;;  %v1456_v45 = vadd.f32 %v1455_v16, %v3289_v28  ;;  %v1542_v48 = vmul.f32 %v3289_v28, %v3289_v28  ;;  %v1498_v49 = vadd.f32 %v1497_v18, %v3291_v29 }
 0x173   :  { %v1625_v52 = vadd.f32 %v1624_v23, %v1543_v39  ;;  %v1544_v53 = vmul.f32 %v3291_v29, %v3291_v29 }
 0x174   :  { %v1604_v54 = vadd.f32 %v1603_v36, %v1542_v48 }
 0x175   :  { %v1646_v55 = vadd.f32 %v1645_v37, %v1544_v53  ;;  %v3302_v58 = vpop.f32.mrb[16].mxu0  ;;  %v3304_v59 = vpop.f32.mrb[16].mxu1 }
 0x176   :  { %4215 = vst [vmem:[#allocation3_spill] sm:$0xff] %v3302_v58  ;;  %4216 = vst [vmem:[#allocation4_spill] sm:$0xff] %v3304_v59  ;;  %v1436_v60 = vadd.f32 %v1435_v26, %v3302_v58  ;;  %v1545_v61 = vmul.f32 %v3302_v58, %v3302_v58  ;;  %v1478_v0 = vadd.f32 %v1477_v38, %v3304_v59  ;;  %v3312_v2 = vpop.f32.mrb[17].mxu0  ;;  %v3314_v3 = vpop.f32.mrb[17].mxu1 }
 0x177   :  { %v1547_v1 = vmul.f32 %v3304_v59, %v3304_v59  ;;  %4217 = vst [vmem:[#allocation5_spill] sm:$0xff] %v3312_v2  ;;  %4218 = vst [vmem:[#allocation6_spill] sm:$0xff] %v3314_v3  ;;  %v1457_v8 = vadd.f32 %v1456_v45, %v3312_v2  ;;  %v1546_v9 = vmul.f32 %v3312_v2, %v3312_v2  ;;  %v3322_v16 = vpop.f32.mrb[18].mxu0  ;;  %v3324_v17 = vpop.f32.mrb[18].mxu1 }
 0x178   :  { %v1499_v12 = vadd.f32 %v1498_v49, %v3314_v3  ;;  %v1548_v13 = vmul.f32 %v3314_v3, %v3314_v3  ;;  %4219 = vst [vmem:[#allocation7_spill] sm:$0xff] %v3322_v16  ;;  %4220 = vst [vmem:[#allocation8_spill] sm:$0xff] %v3324_v17  ;;  %v1584_v18 = vadd.f32 %v1583_v44, %v1545_v61  ;;  %v3329_v26 = vpop.f32.mrb[19].mxu0  ;;  %v3331_v27 = vpop.f32.mrb[19].mxu1 }
 0x179   :  { %v1626_v19 = vadd.f32 %v1625_v52, %v1547_v1  ;;  %v1437_v22 = vadd.f32 %v1436_v60, %v3322_v16  ;;  %v1549_v23 = vmul.f32 %v3322_v16, %v3322_v16  ;;  %4221 = vst [vmem:[#allocation9_spill] sm:$0xff] %v3329_v26  ;;  %4222 = vst [vmem:[#allocation10_spill] sm:$0xff] %v3331_v27 }
 0x17a   :  { %v1605_v36 = vadd.f32 %v1604_v54, %v1546_v9  ;;  %v1647_v37 = vadd.f32 %v1646_v55, %v1548_v13  ;;  %v1479_v38 = vadd.f32 %v1478_v0, %v3324_v17  ;;  %v1551_v39 = vmul.f32 %v3324_v17, %v3324_v17 }
 0x17b   :  { %v1585_v45 = vadd.f32 %v1584_v18, %v1549_v23  ;;  %v1458_v44 = vadd.f32 %v1457_v8, %v3329_v26  ;;  %v1550_v48 = vmul.f32 %v3329_v26, %v3329_v26  ;;  %v1500_v49 = vadd.f32 %v1499_v12, %v3331_v27 }
 0x17c   :  { %v1627_v52 = vadd.f32 %v1626_v19, %v1551_v39  ;;  %v1552_v53 = vmul.f32 %v3331_v27, %v3331_v27 }
 0x17d   :  { %v1606_v60 = vadd.f32 %v1605_v36, %v1550_v48  ;;  %v3342_v55 = vpop.f32.mrb[20].mxu0  ;;  %v3344_v61 = vpop.f32.mrb[20].mxu1 }
 0x17e   :  { %v1648_v54 = vadd.f32 %v1647_v37, %v1552_v53  ;;  %4223 = vst [vmem:[#allocation11_spill] sm:$0xff] %v3342_v55  ;;  %4224 = vst [vmem:[#allocation12_spill] sm:$0xff] %v3344_v61  ;;  %v1438_v0 = vadd.f32 %v1437_v22, %v3342_v55  ;;  %v1553_v1 = vmul.f32 %v3342_v55, %v3342_v55  ;;  %v3352_v12 = vpop.f32.mrb[21].mxu0  ;;  %v3354_v13 = vpop.f32.mrb[21].mxu1 }
 0x17f   :  { %v1480_v8 = vadd.f32 %v1479_v38, %v3344_v61  ;;  %v1555_v9 = vmul.f32 %v3344_v61, %v3344_v61  ;;  %4225 = vst [vmem:[#allocation13_spill] sm:$0xff] %v3352_v12  ;;  %4226 = vst [vmem:[#allocation14_spill] sm:$0xff] %v3354_v13  ;;  %v1459_v18 = vadd.f32 %v1458_v44, %v3352_v12  ;;  %v3362_v36 = vpop.f32.mrb[22].mxu0  ;;  %v3364_v37 = vpop.f32.mrb[22].mxu1 }
 0x180   :  { %v1554_v19 = vmul.f32 %v3352_v12, %v3352_v12  ;;  %v1501_v23 = vadd.f32 %v1500_v49, %v3354_v13  ;;  %v1556_v22 = vmul.f32 %v3354_v13, %v3354_v13  ;;  %4227 = vst [vmem:[#allocation15_spill] sm:$0xff] %v3362_v36  ;;  %4228 = vst [vmem:[#allocation16_spill] sm:$0xff] %v3364_v37  ;;  %v3369_v44 = vpop.f32.mrb[23].mxu0  ;;  %v3371_v61 = vpop.f32.mrb[23].mxu1 }
 0x181   :  { %v1586_v38 = vadd.f32 %v1585_v45, %v1553_v1  ;;  %v1628_v39 = vadd.f32 %v1627_v52, %v1555_v9  ;;  %v1439_v48 = vadd.f32 %v1438_v0, %v3362_v36  ;;  %v1557_v53 = vmul.f32 %v3362_v36, %v3362_v36  ;;  %4229 = vst [vmem:[#allocation17_spill] sm:$0xff] %v3369_v44 }
 0x182   :  { %4230 = vst [vmem:[#allocation18_spill] sm:$0xff] %v3371_v61  ;;  %v1607_v12 = vadd.f32 %v1606_v60, %v1554_v19  ;;  %v1649_v49 = vadd.f32 %v1648_v54, %v1556_v22  ;;  %v1481_v55 = vadd.f32 %v1480_v8, %v3364_v37  ;;  %v1559_v13 = vmul.f32 %v3364_v37, %v3364_v37 }
 0x183   :  { %v1587_v27 = vadd.f32 %v1586_v38, %v1557_v53  ;;  %v1460_v45 = vadd.f32 %v1459_v18, %v3369_v44  ;;  %v1558_v52 = vmul.f32 %v3369_v44, %v3369_v44  ;;  %v1502_v0 = vadd.f32 %v1501_v23, %v3371_v61 }
 0x184   :  { %v1629_v1 = vadd.f32 %v1628_v39, %v1559_v13  ;;  %v1560_v9 = vmul.f32 %v3371_v61, %v3371_v61 }
 0x185   :  { %v1608_v36 = vadd.f32 %v1607_v12, %v1558_v52  ;;  %v3382_v54 = vpop.f32.mrb[24].mxu0  ;;  %v3384_v8 = vpop.f32.mrb[24].mxu1 }
 0x186   :  { %v1650_v60 = vadd.f32 %v1649_v49, %v1560_v9  ;;  %4231 = vst [vmem:[#allocation19_spill] sm:$0xff] %v3382_v54  ;;  %4232 = vst [vmem:[#allocation20_spill] sm:$0xff] %v3384_v8  ;;  %v1440_v19 = vadd.f32 %v1439_v48, %v3382_v54  ;;  %v1561_v18 = vmul.f32 %v3382_v54, %v3382_v54  ;;  %v3392_v13 = vpop.f32.mrb[25].mxu0  ;;  %v3394_v38 = vpop.f32.mrb[25].mxu1 }
 0x187   :  { %v1482_v22 = vadd.f32 %v1481_v55, %v3384_v8  ;;  %v1563_v23 = vmul.f32 %v3384_v8, %v3384_v8  ;;  %4233 = vst [vmem:[#allocation21_spill] sm:$0xff] %v3392_v13  ;;  %4234 = vst [vmem:[#allocation22_spill] sm:$0xff] %v3394_v38  ;;  %v1461_v12 = vadd.f32 %v1460_v45, %v3392_v13  ;;  %v3402_v49 = vpop.f32.mrb[26].mxu0  ;;  %v3404_v55 = vpop.f32.mrb[26].mxu1 }
 0x188   :  { %v1562_v39 = vmul.f32 %v3392_v13, %v3392_v13  ;;  %v1503_v53 = vadd.f32 %v1502_v0, %v3394_v38  ;;  %v1564_v48 = vmul.f32 %v3394_v38, %v3394_v38  ;;  %4235 = vst [vmem:[#allocation23_spill] sm:$0xff] %v3402_v49  ;;  %4236 = vst [vmem:[#allocation24_spill] sm:$0xff] %v3404_v55  ;;  %v3409_v45 = vpop.f32.mrb[27].mxu0  ;;  %v3411_v61 = vpop.f32.mrb[27].mxu1 }
 0x189   :  { %v1588_v52 = vadd.f32 %v1587_v27, %v1561_v18  ;;  %v1630_v9 = vadd.f32 %v1629_v1, %v1563_v23  ;;  %v1441_v8 = vadd.f32 %v1440_v19, %v3402_v49  ;;  %v1565_v54 = vmul.f32 %v3402_v49, %v3402_v49  ;;  %4237 = vst [vmem:[#allocation25_spill] sm:$0xff] %v3409_v45 }
 0x18a   :  { %4238 = vst [vmem:[#allocation26_spill] sm:$0xff] %v3411_v61  ;;  %v1609_v13 = vadd.f32 %v1608_v36, %v1562_v39  ;;  %v1651_v0 = vadd.f32 %v1650_v60, %v1564_v48  ;;  %v1483_v37 = vadd.f32 %v1482_v22, %v3404_v55  ;;  %v1567_v38 = vmul.f32 %v3404_v55, %v3404_v55 }
 0x18b   :  { %v1589_v44 = vadd.f32 %v1588_v52, %v1565_v54  ;;  %v1462_v27 = vadd.f32 %v1461_v12, %v3409_v45  ;;  %v1566_v1 = vmul.f32 %v3409_v45, %v3409_v45  ;;  %v1504_v19 = vadd.f32 %v1503_v53, %v3411_v61 }
 0x18c   :  { %v1631_v18 = vadd.f32 %v1630_v9, %v1567_v38  ;;  %v1568_v23 = vmul.f32 %v3411_v61, %v3411_v61 }
 0x18d   :  { %v1610_v49 = vadd.f32 %v1609_v13, %v1566_v1  ;;  %v3422_v60 = vpop.f32.mrb[28].mxu0  ;;  %v3424_v22 = vpop.f32.mrb[28].mxu1 }
 0x18e   :  { %v1652_v36 = vadd.f32 %v1651_v0, %v1568_v23  ;;  %4239 = vst [vmem:[#allocation27_spill] sm:$0xff] %v3422_v60  ;;  %4240 = vst [vmem:[#allocation28_spill] sm:$0xff] %v3424_v22  ;;  %v1442_v39 = vadd.f32 %v1441_v8, %v3422_v60  ;;  %v1569_v54 = vmul.f32 %v3422_v60, %v3422_v60  ;;  %v3432_v38 = vpop.f32.mrb[29].mxu0  ;;  %v3434_v48 = vpop.f32.mrb[29].mxu1 }
 0x18f   :  { %v1484_v12 = vadd.f32 %v1483_v37, %v3424_v22  ;;  %v1571_v53 = vmul.f32 %v3424_v22, %v3424_v22  ;;  %4241 = vst [vmem:[#allocation29_spill] sm:$0xff] %v3432_v38  ;;  %4242 = vst [vmem:[#allocation30_spill] sm:$0xff] %v3434_v48  ;;  %v1463_v13 = vadd.f32 %v1462_v27, %v3432_v38  ;;  %v3442_v0 = vpop.f32.mrb[30].mxu0  ;;  %v3444_v37 = vpop.f32.mrb[30].mxu1 }
 0x190   :  { %v1570_v52 = vmul.f32 %v3432_v38, %v3432_v38  ;;  %v1505_v9 = vadd.f32 %v1504_v19, %v3434_v48  ;;  %v1572_v8 = vmul.f32 %v3434_v48, %v3434_v48  ;;  %4243 = vst [vmem:[#allocation31_spill] sm:$0xff] %v3442_v0  ;;  %4244 = vst [vmem:[#allocation32_spill] sm:$0xff] %v3444_v37  ;;  %v3449_v27 = vpop.f32.mrb[31].mxu0  ;;  %v3451_v61 = vpop.f32.mrb[31].mxu1 }
 0x191   :  { %v1590_v1 = vadd.f32 %v1589_v44, %v1569_v54  ;;  %v1632_v23 = vadd.f32 %v1631_v18, %v1571_v53  ;;  %v1443_v22 = vadd.f32 %v1442_v39, %v3442_v0  ;;  %v1573_v60 = vmul.f32 %v3442_v0, %v3442_v0  ;;  %4245 = vst [vmem:[#allocation33_spill] sm:$0xff] %v3449_v27 }
 0x192   :  { %4246 = vst [vmem:[#allocation34_spill] sm:$0xff] %v3451_v61  ;;  %v1611_v38 = vadd.f32 %v1610_v49, %v1570_v52  ;;  %v1653_v19 = vadd.f32 %v1652_v36, %v1572_v8  ;;  %v1485_v55 = vadd.f32 %v1484_v12, %v3444_v37  ;;  %v1575_v48 = vmul.f32 %v3444_v37, %v3444_v37 }
 0x193   :  { %v1444_v45 = vrot.slane %v1443_v22, 4  ;;  %v1591_v17 = vadd.f32 %v1590_v1, %v1573_v60  ;;  %v1464_v44 = vadd.f32 %v1463_v13, %v3449_v27  ;;  %v1574_v18 = vmul.f32 %v3449_v27, %v3449_v27 }
 0x194   :  { %v1486_v39 = vrot.slane %v1485_v55, 4  ;;  %v1633_v54 = vadd.f32 %v1632_v23, %v1575_v48  ;;  %v1506_v53 = vadd.f32 %v1505_v9, %v3451_v61  ;;  %v1576_v49 = vmul.f32 %v3451_v61, %v3451_v61 }
 0x195   :  { %v1445_v36 = vadd.f32 %v1444_v45, %v1443_v22  ;;  %v1592_v52 = vrot.slane %v1591_v17, 4  ;;  %v1465_v12 = vrot.slane %v1464_v44, 4  ;;  %v1612_v8 = vadd.f32 %v1611_v38, %v1574_v18 }
 0x196   :  { %v1487_v0 = vadd.f32 %v1486_v39, %v1485_v55  ;;  %v1634_v37 = vrot.slane %v1633_v54, 4  ;;  %v1507_v26 = vrot.slane %v1506_v53, 4  ;;  %v1654_v60 = vadd.f32 %v1653_v19, %v1576_v49 }
 0x197   :  { %v1446_v1 = vrot.slane %v1445_v36, 2  ;;  %v1593_v13 = vadd.f32 %v1592_v52, %v1591_v17  ;;  %v1466_v16 = vadd.f32 %v1465_v12, %v1464_v44  ;;  %v1613_v3 = vrot.slane %v1612_v8, 4 }
 0x198   :  { %v1488_v27 = vrot.slane %v1487_v0, 2  ;;  %v1635_v59 = vadd.f32 %v1634_v37, %v1633_v54  ;;  %v1508_v48 = vadd.f32 %v1507_v26, %v1506_v53  ;;  %v1655_v23 = vrot.slane %v1654_v60, 4 }
 0x199   :  { %v1447_v9 = vadd.f32 %v1446_v1, %v1445_v36  ;;  %v1594_v2 = vrot.slane %v1593_v13, 2  ;;  %v1467_v58 = vrot.slane %v1466_v16, 2  ;;  %v1614_v61 = vadd.f32 %v1613_v3, %v1612_v8 }
 0x19a   :  { %v1489_v45 = vadd.f32 %v1488_v27, %v1487_v0  ;;  %v1636_v22 = vrot.slane %v1635_v59, 2  ;;  %v1509_v29 = vrot.slane %v1508_v48, 2  ;;  %v1656_v38 = vadd.f32 %v1655_v23, %v1654_v60 }
 0x19b   :  { %v1448_v55 = vrot.slane %v1447_v9, 1  ;;  %v1595_v18 = vadd.f32 %v1594_v2, %v1593_v13  ;;  %v1468_v39 = vadd.f32 %v1467_v58, %v1466_v16  ;;  %v1615_v19 = vrot.slane %v1614_v61, 2 }
 0x19c   :  { %v1490_v49 = vrot.slane %v1489_v45, 1  ;;  %v1637_v17 = vadd.f32 %v1636_v22, %v1635_v59  ;;  %v1510_v44 = vadd.f32 %v1509_v29, %v1508_v48  ;;  %v1657_v52 = vrot.slane %v1656_v38, 2 }
 0x19d   :  { %v1449_v12 = vadd.f32 %v1448_v55, %v1447_v9  ;;  %v1596_v37 = vrot.slane %v1595_v18, 1  ;;  %v1469_v26 = vrot.slane %v1468_v39, 1  ;;  %v1616_v54 = vadd.f32 %v1615_v19, %v1614_v61 }
 0x19e   :  { %v1638_v53 = vrot.slane %v1637_v17, 1  ;;  %v1658_v36 = vadd.f32 %v1657_v52, %v1656_v38  ;;  %v1511_v27 = vrot.slane %v1510_v44, 1  ;;  %v1491_v8 = vadd.f32 %v1490_v49, %v1489_v45  ;;  %v1672_v49 = vld [vmem:[%s4172_s2] sm:$0x1] }
 0x19f   :  { %v1597_v1 = vadd.f32 %v1596_v37, %v1595_v18  ;;  %v1470_v3 = vadd.f32 %v1469_v26, %v1468_v39  ;;  %v1617_v0 = vrot.slane %v1616_v54, 1  ;;  %v1679_v52 = vlaneseq  ;;  %v3471_v37 = vld [vmem:[%s4173_s3] sm:$0x1] }
 0x1a0   :  { %v1659_v2 = vrot.slane %v1658_v36, 1  ;;  %v1639_v58 = vadd.f32 %v1638_v53, %v1637_v17  ;;  %v1512_v13 = vadd.f32 %v1511_v27, %v1510_v44  ;;  %v4273_v53 = vld [vmem:[#allocation25_spill] sm:$0xff] }
 0x1a1   :  { %v1618_v60 = vadd.f32 %v1617_v0, %v1616_v54  ;;  %v1661_v23 = vadd.f32 %v1470_v3, %v1449_v12  ;;  %v3462_v45 = vshrl.u32 %v1679_v52, 7 }
 0x1a2   :  { %v1660_v29 = vadd.f32 %v1659_v2, %v1658_v36  ;;  %v4250_v2 = vld [vmem:[#allocation4_spill] sm:$0xff] }
 0x1a3   :  { %v1662_v16 = vadd.f32 %v1618_v60, %v1597_v1  ;;  %v1663_v59 = vadd.f32 %v1661_v23, %v1491_v8  ;;  %v4208_v17 = vsub.s32 0, %v3462_v45  ;;  %v4247_v8 = vld [vmem:[#allocation2_spill] sm:$0xff]  ;;  %v4248_v60 = vld [vmem:[#allocation3_spill] sm:$0xff]  ;;  %v4249_v23 = vld [vmem:[#allocation5_spill] sm:$0xff] }
 0x1a5   :  { %v1664_v48 = vadd.f32 %v1662_v16, %v1639_v58  ;;  %v1665_v9 = vadd.f32 %v1663_v59, %v1512_v13  ;;  %v4251_v58 = vld [vmem:[#allocation6_spill] sm:$0xff]  ;;  %v4252_v16 = vld [vmem:[#allocation7_spill] sm:$0xff]  ;;  %v4253_v59 = vld [vmem:[#allocation9_spill] sm:$0xff] }
 0x1a7   :  { %v1666_v22 = vadd.f32 %v1664_v48, %v1660_v29  ;;  %v1667_v55 = vmul.f32 0.001953125, %v1665_v9  ;;  %v4254_v48 = vld [vmem:[#allocation8_spill] sm:$0xff] }
 0x1a9   :  { %v1668_v61 = vmul.f32 0.001953125, %v1666_v22  ;;  %v1669_v19 = vmul.f32 %v1667_v55, %v1667_v55  ;;  %v4255_v22 = vld [vmem:[#allocation10_spill] sm:$0xff] }
 0x1ab   :  { %v1670_v38 = vsub.f32 %v1668_v61, %v1669_v19  ;;  %v4256_v61 = vld [vmem:[#allocation11_spill] sm:$0xff] }
 0x1ad   :  { %v1671_v18 = vmax.f32 %v1670_v38, 0.0  ;;  %v4257_v38 = vld [vmem:[#allocation13_spill] sm:$0xff] }
 0x1af   :  { %v1673_v39 = vadd.f32 1e-05, %v1671_v18 }
 0x1b1   :  { %2635 = vrsqrt.f32 %v1673_v39  ;;  %v4258_v39 = vld [vmem:[#allocation12_spill] sm:$0xff] }
 0x1bb   :  { %v2636_v44 = vpop.eup %2635 }
 0x1bc   :  { %v1675_v12 = vmul.f32 %v2636_v44, %v1672_v49  ;;  %v4259_v49 = vld [vmem:[#allocation14_spill] sm:$0xff] }
 0x1be   :  { %v3473_v26 = vmul.f32 %v1675_v12, %v1667_v55  ;;  %v3477_v54 = vrot.slane %v1675_v12, %v4208_v17  ;;  %v4260_v12 = vld [vmem:[#allocation15_spill] sm:$0xff]  ;;  %v4275_v17 = vld [vmem:[#allocation24_spill] sm:$0xff] }
 0x1c0   :  { %v3483_v36 = vmul.f32 %v3477_v54, %v3142_v32  ;;  %v3487_v1 = vmul.f32 %v3477_v54, %v3146_v34  ;;  %v3491_v3 = vmul.f32 %v3477_v54, %v3144_v33  ;;  %v3495_v0 = vmul.f32 %v3477_v54, %v3148_v35 }
 0x1c1   :  { %v3499_v27 = vmul.f32 %v3477_v54, %v3158_v40  ;;  %v3503_v32 = vmul.f32 %v3477_v54, %v3170_v46  ;;  %v3507_v34 = vmul.f32 %v3477_v54, %v3160_v41  ;;  %v3511_v33 = vmul.f32 %v3477_v54, %v3172_v47 }
 0x1c2   :  { %v3515_v35 = vmul.f32 %v3477_v54, %v3182_v56  ;;  %v3519_v40 = vmul.f32 %v3477_v54, %v3192_v62  ;;  %v3523_v46 = vmul.f32 %v3477_v54, %v3184_v57  ;;  %v3527_v41 = vmul.f32 %v3477_v54, %v3194_v63 }
 0x1c3   :  { %v3531_v47 = vmul.f32 %v3477_v54, %v3202_v4  ;;  %v3535_v56 = vmul.f32 %v3477_v54, %v3209_v10  ;;  %v3539_v62 = vmul.f32 %v3477_v54, %v3204_v5  ;;  %v3543_v57 = vmul.f32 %v3477_v54, %v3211_v11 }
 0x1c4   :  { %v3547_v63 = vmul.f32 %v3477_v54, %v3222_v24  ;;  %v3551_v4 = vmul.f32 %v3477_v54, %v3232_v30  ;;  %v3555_v10 = vmul.f32 %v3477_v54, %v3224_v25  ;;  %v3559_v5 = vmul.f32 %v3477_v54, %v3234_v31 }
 0x1c5   :  { %v3563_v11 = vmul.f32 %v3477_v54, %v3242_v42  ;;  %v3567_v24 = vmul.f32 %v3477_v54, %v3249_v50  ;;  %v3571_v30 = vmul.f32 %v3477_v54, %v3244_v43  ;;  %v3575_v25 = vmul.f32 %v3477_v54, %v3251_v51 }
 0x1c6   :  { %v3579_v31 = vmul.f32 %v3477_v54, %v3262_v6  ;;  %v3583_v42 = vmul.f32 %v3477_v54, %v3272_v14  ;;  %v3587_v50 = vmul.f32 %v3477_v54, %v3264_v7  ;;  %v3591_v43 = vmul.f32 %v3477_v54, %v3274_v15 }
 0x1c7   :  { %v3595_v51 = vmul.f32 %v3477_v54, %v3282_v20  ;;  %v3599_v6 = vmul.f32 %v3477_v54, %v3289_v28  ;;  %v3603_v14 = vmul.f32 %v3477_v54, %v3284_v21  ;;  %v3607_v7 = vmul.f32 %v3477_v54, %v4247_v8 }
 0x1c8   :  { %v3611_v15 = vmul.f32 %v3477_v54, %v4248_v60  ;;  %v3615_v20 = vmul.f32 %v3477_v54, %v4249_v23  ;;  %v3619_v28 = vmul.f32 %v3477_v54, %v4250_v2  ;;  %v3623_v21 = vmul.f32 %v3477_v54, %v4251_v58  ;;  %v4261_v60 = vld [vmem:[#allocation17_spill] sm:$0xff]  ;;  %v4262_v2 = vld [vmem:[#allocation16_spill] sm:$0xff] }
 0x1c9   :  { %v3627_v13 = vmul.f32 %v3477_v54, %v4252_v16  ;;  %v3631_v29 = vmul.f32 %v3477_v54, %v4253_v59  ;;  %v3635_v9 = vmul.f32 %v3477_v54, %v4254_v48  ;;  %v3639_v55 = vmul.f32 %v3477_v54, %v4255_v22  ;;  %v4263_v16 = vld [vmem:[#allocation18_spill] sm:$0xff]  ;;  %v4264_v48 = vld [vmem:[#allocation19_spill] sm:$0xff] }
 0x1ca   :  { %v3643_v19 = vmul.f32 %v3477_v54, %v4256_v61  ;;  %v3647_v18 = vmul.f32 %v3477_v54, %v4257_v38  ;;  %v3651_v52 = vmul.f32 %v3477_v54, %v4258_v39  ;;  %v3655_v44 = vmul.f32 %v3477_v54, %v4259_v49  ;;  %v4265_v61 = vld [vmem:[#allocation21_spill] sm:$0xff]  ;;  %v4267_v39 = vld [vmem:[#allocation20_spill] sm:$0xff] }
 0x1cb   :  { %v3659_v8 = vmul.f32 %v3477_v54, %v4260_v12  ;;  %v3663_v23 = vmul.f32 %v3477_v54, %v4261_v60  ;;  %v3667_v58 = vmul.f32 %v3477_v54, %v4262_v2  ;;  %v3671_v59 = vmul.f32 %v3477_v54, %v4263_v16  ;;  %v4269_v12 = vld [vmem:[#allocation22_spill] sm:$0xff]  ;;  %v4271_v2 = vld [vmem:[#allocation23_spill] sm:$0xff] }
 0x1cc   :  { %v3675_v22 = vmul.f32 %v3477_v54, %v4264_v48  ;;  %v3679_v38 = vmul.f32 %v3477_v54, %v4265_v61  ;;  %v3683_v49 = vmul.f32 %v3477_v54, %v4267_v39  ;;  %v3687_v60 = vmul.f32 %v3477_v54, %v4269_v12 }
 0x1cd   :  { %v3691_v16 = vmul.f32 %v3477_v54, %v4271_v2  ;;  %v3695_v48 = vmul.f32 %v3477_v54, %v4273_v53  ;;  %v3699_v61 = vmul.f32 %v3477_v54, %v4275_v17 }
 0x1ce   :  { %4266 = vst [vmem:[#allocation2_spill] sm:$0xff] %v3679_v38  ;;  %4268 = vst [vmem:[#allocation3_spill] sm:$0xff] %v3683_v49  ;;  %v4277_v38 = vld [vmem:[#allocation26_spill] sm:$0xff]  ;;  %v4279_v49 = vld [vmem:[#allocation27_spill] sm:$0xff] }
 0x1cf   :  { %4270 = vst [vmem:[#allocation5_spill] sm:$0xff] %v3687_v60  ;;  %4272 = vst [vmem:[#allocation4_spill] sm:$0xff] %v3691_v16  ;;  %v3703_v39 = vmul.f32 %v3477_v54, %v4277_v38  ;;  %v3707_v12 = vmul.f32 %v3477_v54, %v4279_v49  ;;  %v4281_v60 = vld [vmem:[#allocation29_spill] sm:$0xff]  ;;  %v4283_v16 = vld [vmem:[#allocation28_spill] sm:$0xff] }
 0x1d0   :  { %4274 = vst [vmem:[#allocation6_spill] sm:$0xff] %v3695_v48  ;;  %4276 = vst [vmem:[#allocation7_spill] sm:$0xff] %v3699_v61  ;;  %v3711_v2 = vmul.f32 %v3477_v54, %v4281_v60  ;;  %v3715_v53 = vmul.f32 %v3477_v54, %v4283_v16  ;;  %v4285_v48 = vld [vmem:[#allocation30_spill] sm:$0xff]  ;;  %v4287_v61 = vld [vmem:[#allocation31_spill] sm:$0xff] }
 0x1d1   :  { %4278 = vst [vmem:[#allocation9_spill] sm:$0xff] %v3703_v39  ;;  %4280 = vst [vmem:[#allocation8_spill] sm:$0xff] %v3707_v12  ;;  %v3719_v17 = vmul.f32 %v3477_v54, %v4285_v48  ;;  %v3723_v38 = vmul.f32 %v3477_v54, %v4287_v61  ;;  %v4288_v39 = vld [vmem:[#allocation33_spill] sm:$0xff]  ;;  %v4289_v12 = vld [vmem:[#allocation32_spill] sm:$0xff]  ;;  %v4292_v48 = vsub.f32 %v3471_v37, %v3473_v26 }
 0x1d2   :  { %4282 = vst [vmem:[#allocation10_spill] sm:$0xff] %v3711_v2  ;;  %4284 = vst [vmem:[#allocation11_spill] sm:$0xff] %v3715_v53  ;;  %v3727_v49 = vmul.f32 %v3477_v54, %v4288_v39  ;;  %v3731_v60 = vmul.f32 %v3477_v54, %v4289_v12  ;;  %v4290_v2 = vld [vmem:[#allocation34_spill] sm:$0xff]  ;;  %v4291_v53 = vsub.s32 0, %v3462_v45 }
 0x1d3   :  { %4286 = vst [vmem:[#allocation13_spill] sm:$0xff] %v3719_v17  ;;  %v3735_v16 = vmul.f32 %v3477_v54, %v4290_v2 }
 0x1d4   :  { %v3742_v17 = vrot.slane %v4292_v48, %v4291_v53 }
 0x1d6   :  { %v3746_v61 = vadd.f32 %v3742_v17, %v3483_v36  ;;  %v3750_v39 = vadd.f32 %v3742_v17, %v3487_v1  ;;  %v3754_v12 = vadd.f32 %v3742_v17, %v3491_v3  ;;  %v3758_v45 = vadd.f32 %v3742_v17, %v3495_v0  ;;  %v4303_v2 = vld [vmem:[#allocation5_spill] sm:$0xff]  ;;  %v4305_v53 = vld [vmem:[#allocation4_spill] sm:$0xff] }
 0x1d7   :  { %v3762_v37 = vadd.f32 %v3742_v17, %v3499_v27  ;;  %v3766_v26 = vadd.f32 %v3742_v17, %v3503_v32  ;;  %v3770_v54 = vadd.f32 %v3742_v17, %v3507_v34  ;;  %v3774_v36 = vadd.f32 %v3742_v17, %v3511_v33  ;;  %v4307_v48 = vld [vmem:[#allocation6_spill] sm:$0xff] }
 0x1d8   :  { %4293 = vst [vmem:[#allocation12_spill] sm:$0xff] %v3746_v61  ;;  %4294 = vst [vmem:[#allocation14_spill] sm:$0xff] %v3750_v39  ;;  %v3778_v1 = vadd.f32 %v3742_v17, %v3515_v35  ;;  %v3782_v3 = vadd.f32 %v3742_v17, %v3519_v40  ;;  %v3786_v0 = vadd.f32 %v3742_v17, %v3523_v46 }
 0x1d9   :  { %4295 = vst [vmem:[#allocation15_spill] sm:$0xff] %v3754_v12  ;;  %4296 = vst [vmem:[#allocation17_spill] sm:$0xff] %v3758_v45  ;;  %v3790_v27 = vadd.f32 %v3742_v17, %v3527_v41  ;;  %v3794_v32 = vadd.f32 %v3742_v17, %v3531_v47  ;;  %v3798_v34 = vadd.f32 %v3742_v17, %v3535_v56 }
 0x1da   :  { %4297 = vst [vmem:[#allocation16_spill] sm:$0xff] %v3762_v37  ;;  %v3802_v33 = vadd.f32 %v3742_v17, %v3539_v62  ;;  %v3806_v35 = vadd.f32 %v3742_v17, %v3543_v57  ;;  %v3810_v40 = vadd.f32 %v3742_v17, %v3547_v63  ;;  %v3814_v46 = vadd.f32 %v3742_v17, %v3551_v4 }
 0x1db   :  { %v3818_v41 = vadd.f32 %v3742_v17, %v3555_v10  ;;  %v3822_v47 = vadd.f32 %v3742_v17, %v3559_v5  ;;  %v3826_v56 = vadd.f32 %v3742_v17, %v3563_v11  ;;  %v3830_v62 = vadd.f32 %v3742_v17, %v3567_v24 }
 0x1dc   :  { %v3834_v57 = vadd.f32 %v3742_v17, %v3571_v30  ;;  %v3838_v63 = vadd.f32 %v3742_v17, %v3575_v25  ;;  %v3842_v4 = vadd.f32 %v3742_v17, %v3579_v31  ;;  %v3846_v10 = vadd.f32 %v3742_v17, %v3583_v42 }
 0x1dd   :  { %v3850_v5 = vadd.f32 %v3742_v17, %v3587_v50  ;;  %v3854_v11 = vadd.f32 %v3742_v17, %v3591_v43  ;;  %v3858_v24 = vadd.f32 %v3742_v17, %v3595_v51  ;;  %v3862_v30 = vadd.f32 %v3742_v17, %v3599_v6 }
 0x1de   :  { %v3866_v25 = vadd.f32 %v3742_v17, %v3603_v14  ;;  %v3870_v31 = vadd.f32 %v3742_v17, %v3607_v7  ;;  %v3874_v42 = vadd.f32 %v3742_v17, %v3611_v15  ;;  %v3878_v50 = vadd.f32 %v3742_v17, %v3615_v20 }
 0x1df   :  { %v3882_v43 = vadd.f32 %v3742_v17, %v3619_v28  ;;  %v3886_v51 = vadd.f32 %v3742_v17, %v3623_v21  ;;  %v3890_v6 = vadd.f32 %v3742_v17, %v3627_v13  ;;  %v3894_v14 = vadd.f32 %v3742_v17, %v3631_v29 }
 0x1e0   :  { %v3898_v7 = vadd.f32 %v3742_v17, %v3635_v9  ;;  %v3902_v15 = vadd.f32 %v3742_v17, %v3639_v55  ;;  %v3906_v20 = vadd.f32 %v3742_v17, %v3643_v19  ;;  %v3910_v28 = vadd.f32 %v3742_v17, %v3647_v18 }
 0x1e1   :  { %v3914_v21 = vadd.f32 %v3742_v17, %v3651_v52  ;;  %v3918_v13 = vadd.f32 %v3742_v17, %v3655_v44  ;;  %v3922_v29 = vadd.f32 %v3742_v17, %v3659_v8  ;;  %v3926_v9 = vadd.f32 %v3742_v17, %v3663_v23  ;;  %v4299_v52 = vld [vmem:[#allocation2_spill] sm:$0xff]  ;;  %v4301_v8 = vld [vmem:[#allocation3_spill] sm:$0xff] }
 0x1e2   :  { %v3930_v55 = vadd.f32 %v3742_v17, %v3667_v58  ;;  %v3934_v19 = vadd.f32 %v3742_v17, %v3671_v59  ;;  %v3938_v18 = vadd.f32 %v3742_v17, %v3675_v22  ;;  %v3942_v44 = vadd.f32 %v3742_v17, %v4299_v52 }
 0x1e3   :  { %v3946_v23 = vadd.f32 %v3742_v17, %v4301_v8  ;;  %v3950_v58 = vadd.f32 %v3742_v17, %v4303_v2  ;;  %v3954_v59 = vadd.f32 %v3742_v17, %v4305_v53  ;;  %v3958_v22 = vadd.f32 %v3742_v17, %v4307_v48 }
 0x1e4   :  { %4298 = vst [vmem:[#allocation18_spill] sm:$0xff] %v3938_v18  ;;  %4300 = vst [vmem:[#allocation19_spill] sm:$0xff] %v3942_v44  ;;  %v4309_v18 = vld [vmem:[#allocation7_spill] sm:$0xff]  ;;  %v4310_v44 = vld [vmem:[#allocation9_spill] sm:$0xff] }
 0x1e5   :  { %4302 = vst [vmem:[#allocation21_spill] sm:$0xff] %v3946_v23  ;;  %4304 = vst [vmem:[#allocation20_spill] sm:$0xff] %v3950_v58  ;;  %v3962_v52 = vadd.f32 %v3742_v17, %v4309_v18  ;;  %v3966_v8 = vadd.f32 %v3742_v17, %v4310_v44  ;;  %v4311_v23 = vld [vmem:[#allocation8_spill] sm:$0xff]  ;;  %v4312_v58 = vld [vmem:[#allocation10_spill] sm:$0xff]  ;;  %v3986_v44 = vadd.f32 %v3742_v17, %v3723_v38  ;;  %v1828_v38 = vmax.f32 %v3798_v34, 0.0 }
 0x1e6   :  { %4306 = vst [vmem:[#allocation22_spill] sm:$0xff] %v3954_v59  ;;  %4308 = vst [vmem:[#allocation23_spill] sm:$0xff] %v3958_v22  ;;  %v3970_v2 = vadd.f32 %v3742_v17, %v4311_v23  ;;  %v3974_v53 = vadd.f32 %v3742_v17, %v4312_v58  ;;  %v4313_v59 = vld [vmem:[#allocation11_spill] sm:$0xff]  ;;  %v4315_v22 = vld [vmem:[#allocation13_spill] sm:$0xff]  ;;  %v3990_v23 = vadd.f32 %v3742_v17, %v3727_v49  ;;  %v1820_v49 = vmax.f32 %v3766_v26, 0.0 }
 0x1e7   :  { %v3978_v48 = vadd.f32 %v3742_v17, %v4313_v59  ;;  %v3982_v18 = vadd.f32 %v3742_v17, %v4315_v22  ;;  %4317 = vst [vmem:[#allocation26_spill] sm:$0xff] %v3986_v44  ;;  %v3994_v58 = vadd.f32 %v3742_v17, %v3731_v60  ;;  %v3998_v59 = vadd.f32 %v3742_v17, %v3735_v16 }
 0x1e8   :  { %4318 = vst [vmem:[#allocation27_spill] sm:$0xff] %v3990_v23  ;;  %v1821_v23 = vmax.f32 %v3770_v54, 0.0  ;;  %v1822_v60 = vmax.f32 %v3774_v36, 0.0  ;;  %v1824_v17 = vmax.f32 %v3782_v3, 0.0  ;;  %v1825_v16 = vmax.f32 %v3786_v0, 0.0 }
 0x1e9   :  { %4314 = vst [vmem:[#allocation25_spill] sm:$0xff] %v3978_v48  ;;  %4316 = vst [vmem:[#allocation24_spill] sm:$0xff] %v3982_v18  ;;  %v1826_v22 = vmax.f32 %v3790_v27, 0.0  ;;  %v1827_v18 = vmax.f32 %v3794_v32, 0.0  ;;  %v1829_v44 = vmax.f32 %v3802_v33, 0.0  ;;  %v1830_v26 = vmax.f32 %v3806_v35, 0.0 }
 0x1ea   :  { %4319 = vst [vmem:[#allocation29_spill] sm:$0xff] %v3994_v58  ;;  %4320 = vst [vmem:[#allocation28_spill] sm:$0xff] %v3998_v59  ;;  %v1823_v58 = vmax.f32 %v3778_v1, 0.0  ;;  %v1831_v54 = vmax.f32 %v3810_v40, 0.0  ;;  %v1832_v36 = vmax.f32 %v3814_v46, 0.0  ;;  %v1833_v1 = vmax.f32 %v3818_v41, 0.0 }
 0x1eb   :  { %v1834_v3 = vmax.f32 %v3822_v47, 0.0  ;;  %v1835_v0 = vmax.f32 %v3826_v56, 0.0  ;;  %v1836_v27 = vmax.f32 %v3830_v62, 0.0  ;;  %v1837_v32 = vmax.f32 %v3834_v57, 0.0  ;;  %v4321_v48 = vld [vmem:[#allocation18_spill] sm:$0xff]  ;;  %v4322_v37 = vld [vmem:[#allocation19_spill] sm:$0xff] }
 0x1ec   :  { %v1838_v34 = vmax.f32 %v3838_v63, 0.0  ;;  %v1839_v33 = vmax.f32 %v3842_v4, 0.0  ;;  %v1840_v35 = vmax.f32 %v3846_v10, 0.0  ;;  %v1841_v40 = vmax.f32 %v3850_v5, 0.0  ;;  %v4323_v45 = vld [vmem:[#allocation21_spill] sm:$0xff]  ;;  %v4324_v12 = vld [vmem:[#allocation20_spill] sm:$0xff] }
 0x1ed   :  { %v1842_v46 = vmax.f32 %v3854_v11, 0.0  ;;  %v1843_v41 = vmax.f32 %v3858_v24, 0.0  ;;  %v1844_v47 = vmax.f32 %v3862_v30, 0.0  ;;  %v1845_v56 = vmax.f32 %v3866_v25, 0.0  ;;  %v4325_v39 = vld [vmem:[#allocation22_spill] sm:$0xff]  ;;  %v4326_v61 = vld [vmem:[#allocation23_spill] sm:$0xff] }
 0x1ee   :  { %v1846_v62 = vmax.f32 %v3870_v31, 0.0  ;;  %v1847_v57 = vmax.f32 %v3874_v42, 0.0  ;;  %v1848_v63 = vmax.f32 %v3878_v50, 0.0  ;;  %v1849_v4 = vmax.f32 %v3882_v43, 0.0 }
 0x1ef   :  { %v1850_v10 = vmax.f32 %v3886_v51, 0.0  ;;  %v1851_v5 = vmax.f32 %v3890_v6, 0.0  ;;  %v1852_v11 = vmax.f32 %v3894_v14, 0.0  ;;  %v1853_v24 = vmax.f32 %v3898_v7, 0.0 }
 0x1f0   :  { %v1854_v30 = vmax.f32 %v3902_v15, 0.0  ;;  %v1855_v25 = vmax.f32 %v3906_v20, 0.0  ;;  %v1856_v31 = vmax.f32 %v3910_v28, 0.0  ;;  %v1857_v42 = vmax.f32 %v3914_v21, 0.0  ;;  %v4327_v59 = vld [vmem:[#allocation25_spill] sm:$0xff] }
 0x1f1   :  { %v1858_v50 = vmax.f32 %v3918_v13, 0.0  ;;  %v1859_v43 = vmax.f32 %v3922_v29, 0.0  ;;  %v1860_v51 = vmax.f32 %v3926_v9, 0.0  ;;  %v1861_v6 = vmax.f32 %v3930_v55, 0.0 }
 0x1f2   :  { %v1862_v14 = vmax.f32 %v3934_v19, 0.0  ;;  %v1863_v7 = vmax.f32 %v4321_v48, 0.0  ;;  %v1864_v15 = vmax.f32 %v4322_v37, 0.0  ;;  %v1865_v20 = vmax.f32 %v4323_v45, 0.0  ;;  %v4328_v37 = vld [vmem:[#allocation24_spill] sm:$0xff] }
 0x1f3   :  { %v1866_v28 = vmax.f32 %v4324_v12, 0.0  ;;  %v1867_v21 = vmax.f32 %v4325_v39, 0.0  ;;  %v1868_v13 = vmax.f32 %v4326_v61, 0.0  ;;  %v1869_v29 = vmax.f32 %v3962_v52, 0.0  ;;  %v4329_v12 = vld [vmem:[#allocation26_spill] sm:$0xff]  ;;  %v4330_v61 = vld [vmem:[#allocation27_spill] sm:$0xff] }
 0x1f4   :  { %v1870_v9 = vmax.f32 %v3966_v8, 0.0  ;;  %v1871_v55 = vmax.f32 %v3970_v2, 0.0  ;;  %v1872_v19 = vmax.f32 %v3974_v53, 0.0  ;;  %v1873_v48 = vmax.f32 %v4327_v59, 0.0  ;;  %v4331_v8 = vld [vmem:[#allocation29_spill] sm:$0xff]  ;;  %v4332_v53 = vld [vmem:[#allocation28_spill] sm:$0xff] }
 0x1f5   :  { %v1874_v45 = vmax.f32 %v4328_v37, 0.0  ;;  %v1875_v39 = vmax.f32 %v4329_v12, 0.0  ;;  %v1876_v52 = vmax.f32 %v4330_v61, 0.0  ;;  %v1877_v2 = vmax.f32 %v4331_v8, 0.0  ;;  %v4333_v37 = vld [vmem:[#allocation12_spill] sm:$0xff]  ;;  %v4335_v61 = vld [vmem:[#allocation14_spill] sm:$0xff] }
 0x1f6   :  { %v1878_v59 = vmax.f32 %v4332_v53, 0.0  ;;  %v4334_v12 = vmax.f32 %v4333_v37, 0.0  ;;  %v4336_v8 = vmax.f32 %v4335_v61, 0.0  ;;  %v4337_v37 = vld [vmem:[#allocation15_spill] sm:$0xff] }
 0x1f7   :  { %v4338_v61 = vmax.f32 %v4337_v37, 0.0 }
 0x1f8   :  { %v2299_v53 = vpack.c.bf16 %v4336_v8, %v4334_v12  ;;  %v4339_v8 = vld [vmem:[#allocation17_spill] sm:$0xff] }
 0x1f9   :  { %v4340_v12 = vmax.f32 %v4339_v8, 0.0  ;;  %v4341_v8 = vld [vmem:[#allocation16_spill] sm:$0xff] }
 0x1fa   :  { %2071 = vst [vmem:[%s4174_s4] sm:$0xff] %v2299_v53 }
 0x1fb   :  { %v2300_v37 = vpack.c.bf16 %v4340_v12, %v4338_v61  ;;  %v4342_v12 = vmax.f32 %v4341_v8, 0.0  ;;  %v2302_v8 = vpack.c.bf16 %v1822_v60, %v1821_v23  ;;  %v2305_v23 = vpack.c.bf16 %v1828_v38, %v1827_v18 }
 0x1fc   :  { %v2306_v60 = vpack.c.bf16 %v1830_v26, %v1829_v44  ;;  %v2311_v18 = vpack.c.bf16 %v1840_v35, %v1839_v33  ;;  %v2312_v44 = vpack.c.bf16 %v1842_v46, %v1841_v40  ;;  %v2313_v38 = vpack.c.bf16 %v1844_v47, %v1843_v41 }
 0x1fd   :  { %v2301_v61 = vpack.c.bf16 %v1820_v49, %v4342_v12  ;;  %v2303_v12 = vpack.c.bf16 %v1824_v17, %v1823_v58  ;;  %v2304_v49 = vpack.c.bf16 %v1826_v22, %v1825_v16  ;;  %v2307_v17 = vpack.c.bf16 %v1832_v36, %v1831_v54  ;;  %2072 = vst [vmem:[%s4174_s4 + $0x8] sm:$0xff] %v2300_v37 }
 0x1fe   :  { %v2308_v58 = vpack.c.bf16 %v1834_v3, %v1833_v1  ;;  %v2309_v16 = vpack.c.bf16 %v1836_v27, %v1835_v0  ;;  %v2310_v22 = vpack.c.bf16 %v1838_v34, %v1837_v32  ;;  %2074 = vst [vmem:[%s4174_s4 + $0x18] sm:$0xff] %v2302_v8  ;;  %v2314_v26 = vpack.c.bf16 %v1846_v62, %v1845_v56 }
 0x1ff   :  { %2073 = vst [vmem:[%s4174_s4 + $0x10] sm:$0xff] %v2301_v61  ;;  %2075 = vst [vmem:[%s4174_s4 + $0x20] sm:$0xff] %v2303_v12  ;;  %v2315_v54 = vpack.c.bf16 %v1848_v63, %v1847_v57  ;;  %v2316_v36 = vpack.c.bf16 %v1850_v10, %v1849_v4  ;;  %v2317_v1 = vpack.c.bf16 %v1852_v11, %v1851_v5 }
 0x200   :  { %2076 = vst [vmem:[%s4174_s4 + $0x28] sm:$0xff] %v2304_v49  ;;  %2077 = vst [vmem:[%s4174_s4 + $0x30] sm:$0xff] %v2305_v23  ;;  %v2318_v3 = vpack.c.bf16 %v1854_v30, %v1853_v24  ;;  %v2319_v0 = vpack.c.bf16 %v1856_v31, %v1855_v25  ;;  %v2320_v27 = vpack.c.bf16 %v1858_v50, %v1857_v42 }
 0x201   :  { %2078 = vst [vmem:[%s4174_s4 + $0x38] sm:$0xff] %v2306_v60  ;;  %2079 = vst [vmem:[%s4174_s4 + $0x40] sm:$0xff] %v2307_v17  ;;  %v2321_v32 = vpack.c.bf16 %v1860_v51, %v1859_v43  ;;  %v2322_v34 = vpack.c.bf16 %v1862_v14, %v1861_v6  ;;  %v2323_v33 = vpack.c.bf16 %v1864_v15, %v1863_v7 }
 0x202   :  { %2080 = vst [vmem:[%s4174_s4 + $0x48] sm:$0xff] %v2308_v58  ;;  %2081 = vst [vmem:[%s4174_s4 + $0x50] sm:$0xff] %v2309_v16  ;;  %v2324_v35 = vpack.c.bf16 %v1866_v28, %v1865_v20  ;;  %v2325_v40 = vpack.c.bf16 %v1868_v13, %v1867_v21  ;;  %v2326_v46 = vpack.c.bf16 %v1870_v9, %v1869_v29 }
 0x203   :  { %2082 = vst [vmem:[%s4174_s4 + $0x58] sm:$0xff] %v2310_v22  ;;  %2083 = vst [vmem:[%s4174_s4 + $0x60] sm:$0xff] %v2311_v18  ;;  %v2327_v41 = vpack.c.bf16 %v1872_v19, %v1871_v55  ;;  %v2328_v47 = vpack.c.bf16 %v1874_v45, %v1873_v48  ;;  %v2329_v56 = vpack.c.bf16 %v1876_v52, %v1875_v39 }
 0x204   :  { %2084 = vst [vmem:[%s4174_s4 + $0x68] sm:$0xff] %v2312_v44  ;;  %2085 = vst [vmem:[%s4174_s4 + $0x70] sm:$0xff] %v2313_v38  ;;  %v2330_v62 = vpack.c.bf16 %v1878_v59, %v1877_v2 }
 0x205   :  { %2086 = vst [vmem:[%s4174_s4 + $0x78] sm:$0xff] %v2314_v26  ;;  %2087 = vst [vmem:[%s4174_s4 + $0x80] sm:$0xff] %v2315_v54 }
 0x206   :  { %2088 = vst [vmem:[%s4174_s4 + $0x88] sm:$0xff] %v2316_v36  ;;  %2089 = vst [vmem:[%s4174_s4 + $0x90] sm:$0xff] %v2317_v1 }
 0x207   :  { %2090 = vst [vmem:[%s4174_s4 + $0x98] sm:$0xff] %v2318_v3  ;;  %2091 = vst [vmem:[%s4174_s4 + $0xa0] sm:$0xff] %v2319_v0 }
 0x208   :  { %2092 = vst [vmem:[%s4174_s4 + $0xa8] sm:$0xff] %v2320_v27  ;;  %2093 = vst [vmem:[%s4174_s4 + $0xb0] sm:$0xff] %v2321_v32 }
 0x209   :  { %2094 = vst [vmem:[%s4174_s4 + $0xb8] sm:$0xff] %v2322_v34  ;;  %2095 = vst [vmem:[%s4174_s4 + $0xc0] sm:$0xff] %v2323_v33 }
 0x20a   :  { %2096 = vst [vmem:[%s4174_s4 + $0xc8] sm:$0xff] %v2324_v35  ;;  %2097 = vst [vmem:[%s4174_s4 + $0xd0] sm:$0xff] %v2325_v40 }
 0x20b   :  { %2098 = vst [vmem:[%s4174_s4 + $0xd8] sm:$0xff] %v2326_v46  ;;  %2099 = vst [vmem:[%s4174_s4 + $0xe0] sm:$0xff] %v2327_v41 }
 0x20c   :  { %2100 = vst [vmem:[%s4174_s4 + $0xe8] sm:$0xff] %v2328_v47  ;;  %2101 = vst [vmem:[%s4174_s4 + $0xf0] sm:$0xff] %v2329_v56 }
 0x20d   :  { %2102 = vst [vmem:[%s4174_s4 + $0xf8] sm:$0xff] %v2330_v62 }

// kernel: forward.13
= control target key start
LH: loop header
LB: loop body
LE: loop exit
PB: predicated region body
PF: predicated region fallthrough
CT: control target
= control target key end

     0   :  { %s3727_s12 = smov 0   ;;  %s4529_s0 = inlined_call_operand.vmem [shape: bf16[512,1152], index: 0, kind: input, shape index: {}]   ;;  %s4530_s1 = inlined_call_operand.vmem [shape: bf16[1152,128], index: 1, kind: input, shape index: {}]   ;;  %s4531_s2 = inlined_call_operand.vmem [shape: f32[1,128], index: 2, kind: input, shape index: {}]   ;;  %s4532_s3 = inlined_call_operand.vmem [shape: f32[512,128], index: 3, kind: output, shape index: {}]  }
   0x1 LB: > { %s2582_s13 = sadd.s32 4294967295, %s3705_s12   ;;  %p2586_p0 = scmp.ge.s32.totalorder %s3705_s12, 1  ;;  %s3705_s12 = sphi %s3727_s12, %s13_s12  }
   0x2   : > { %p139_p1 = scmp.lt.s32.totalorder %s3705_s12, 3 }
   0x4   : > { %p140_p2 = pnand %p2586_p0, %p139_p1 }
   0x5   : > { %v3355_v0 = vld [vmem:[%s4530_s1 + $0x40] sm:$0xff] (!%p140_p2)   ;;  %s2587_s16 = sshll.u32 (!%p140_p2), %s2582_s13, 5  ;;  %v3357_v2 = vld [vmem:[%s4530_s1 + $0x48] sm:$0xff] (!%p140_p2)   ;;  %v3359_v4 = vld [vmem:[%s4530_s1 + $0x50] sm:$0xff] (!%p140_p2)  }
   0x6   : > { %143 = sbr.rel (%p140_p2) target bundleno = 552 (0x228), region = 32  ;;  %v3356_v1 = vld [vmem:[%s4530_s1] sm:$0xff] (!%p140_p2)   ;;  %2810 = vmatprep.subr.bf16.mxu0 (!%p140_p2), %v3355_v0  ;;  %3330 = vmatprep.subr.bf16.mxu1 (!%p140_p2), %v3355_v0  ;;  %p165_p3 = scmp.lt.s32.totalorder (!%p140_p2), %s2587_s16, 63  ;;  %v3358_v3 = vld [vmem:[%s4530_s1 + $0x8] sm:$0xff] (!%p140_p2)   ;;  %v3360_v5 = vld [vmem:[%s4530_s1 + $0x10] sm:$0xff] (!%p140_p2)  }
   0x7   : > { %2811 = vmatpush3.bf16.msra.mxu0 (!%p140_p2), %v3356_v1  ;;  %3338 = vmatpush3.bf16.msra.mxu1 (!%p140_p2), %v3356_v1  ;;  %v3361_v6 = vld [vmem:[%s4530_s1 + $0x58] sm:$0xff] (!%p140_p2)   ;;  %v3363_v8 = vld [vmem:[%s4530_s1 + $0x60] sm:$0xff] (!%p140_p2)   ;;  %v3365_v10 = vld [vmem:[%s4530_s1 + $0x68] sm:$0xff] (!%p140_p2)  }
   0x8   : > { %2812 = vmatprep.subr.bf16.mxu0 (!%p140_p2), %v3357_v2  ;;  %3331 = vmatprep.subr.bf16.mxu1 (!%p140_p2), %v3357_v2  ;;  %v3362_v7 = vld [vmem:[%s4530_s1 + $0x18] sm:$0xff] (!%p140_p2)   ;;  %v3364_v9 = vld [vmem:[%s4530_s1 + $0x20] sm:$0xff] (!%p140_p2)   ;;  %v3366_v13 = vld [vmem:[%s4530_s1 + $0x28] sm:$0xff] (!%p140_p2)  }
   0x9   : > { %v3367_v14 = vld [vmem:[%s4530_s1 + $0x70] sm:$0xff] (!%p140_p2)   ;;  %v3369_v16 = vld [vmem:[%s4530_s1 + $0x78] sm:$0xff] (!%p140_p2)   ;;  %v3377_v18 = vld [vmem:[%s4530_s1 + $0xc0] sm:$0xff] (!%p140_p2)  }
   0xa   : > { %v3368_v15 = vld [vmem:[%s4530_s1 + $0x30] sm:$0xff] (!%p140_p2)   ;;  %v3370_v17 = vld [vmem:[%s4530_s1 + $0x38] sm:$0xff] (!%p140_p2)   ;;  %v3380_v21 = vld [vmem:[%s4530_s1 + $0x140] sm:$0xff] (!%p140_p2)  }
   0xb   : > { %2813 = vmatpush3.bf16.msra.mxu0 (!%p140_p2), %v3358_v3  ;;  %3339 = vmatpush3.bf16.msra.mxu1 (!%p140_p2), %v3358_v3  ;;  %v3378_v22 = vld [vmem:[%s4530_s1 + $0x80] sm:$0xff] (!%p140_p2)   ;;  %v3379_v23 = vld [vmem:[%s4530_s1 + $0xc8] sm:$0xff] (!%p140_p2)   ;;  %v3389_v31 = vld [vmem:[%s4530_s1 + $0xd0] sm:$0xff] (!%p140_p2)  }
   0xc   : > { %2814 = vmatprep.subr.bf16.mxu0 (!%p140_p2), %v3359_v4  ;;  %3332 = vmatprep.subr.bf16.mxu1 (!%p140_p2), %v3359_v4  ;;  %v3382_v24 = vld [vmem:[%s4530_s1 + $0x100] sm:$0xff] (!%p140_p2)   ;;  %v3381_v27 = vld [vmem:[%s4530_s1 + $0x88] sm:$0xff] (!%p140_p2)   ;;  %v3390_v32 = vld [vmem:[%s4530_s1 + $0x90] sm:$0xff] (!%p140_p2)  }
   0xd   : > { %s4534_s16 = smov (!%p165_p3, %s2587_s16), 63  ;;  %v3400_v28 = vld [vmem:[%s4530_s1 + $0x148] sm:$0xff]   ;;  %v3391_v34 = vld [vmem:[%s4530_s1 + $0xd8] sm:$0xff]   ;;  %v3399_v40 = vld [vmem:[%s4530_s1 + $0xe0] sm:$0xff]  }
   0xe   : > { %s3346_s29 = smul.u32 36, %s4534_s16  ;;  %v3402_v33 = vld [vmem:[%s4530_s1 + $0x108] sm:$0xff]   ;;  %v3392_v37 = vld [vmem:[%s4530_s1 + $0x98] sm:$0xff]   ;;  %v3401_v41 = vld [vmem:[%s4530_s1 + $0xa0] sm:$0xff]  }
   0xf   : > { %2815 = vmatpush3.bf16.msra.mxu0 %v3360_v5  ;;  %3340 = vmatpush3.bf16.msra.mxu1 %v3360_v5  ;;  %v3403_v42 = vld [vmem:[%s4530_s1 + $0xe8] sm:$0xff]   ;;  %v3414_v43 = vld [vmem:[%s4530_s1 + $0x150] sm:$0xff]   ;;  %v3413_v52 = vld [vmem:[%s4530_s1 + $0xf8] sm:$0xff]  }
  0x10   : > { %2816 = vmatprep.subr.bf16.mxu0 %v3361_v6  ;;  %3333 = vmatprep.subr.bf16.mxu1 %v3361_v6  ;;  %s3768_s9 = scalar_lea.vmem %s4529_s0, %s3346_s29  ;;  %v3416_v46 = vld [vmem:[%s4530_s1 + $0x110] sm:$0xff]   ;;  %v3404_v47 = vld [vmem:[%s4530_s1 + $0xa8] sm:$0xff]   ;;  %v3431_v55 = vld [vmem:[%s4530_s1 + $0x158] sm:$0xff]  }
  0x11   : > { %v3373_v11 = vld [vmem:[%s3768_s9 + $0x4] ss:$36 sps:$4 sm:$0xff]   ;;  %v3383_v25 = vld [vmem:[%s3768_s9 + $0x4c] ss:$36 sps:$4 sm:$0xff]   ;;  %v3393_v35 = vld [vmem:[%s3768_s9 + $0x94] ss:$36 sps:$4 sm:$0xff]  }
  0x12   : > { %v3376_v12 = vld [vmem:[%s3768_s9 + $0x364] ss:$36 sps:$4 sm:$0xff]   ;;  %1689 = vmatprep.mubr.bf16.mxu0 %v3373_v11  ;;  %v3385_v26 = vld [vmem:[%s3768_s9 + $0x3ac] ss:$36 sps:$4 sm:$0xff]   ;;  %v3395_v36 = vld [vmem:[%s3768_s9 + $0x3f4] ss:$36 sps:$4 sm:$0xff]  }
  0x13   : > { %2817 = vmatpush3.bf16.msra.mxu0 %v3362_v7  ;;  %3341 = vmatpush3.bf16.msra.mxu1 %v3362_v7  ;;  %v3371_v19 = vld [vmem:[%s3768_s9] ss:$36 sps:$4 sm:$0xff]   ;;  %v3387_v29 = vld [vmem:[%s3768_s9 + $0x48] ss:$36 sps:$4 sm:$0xff]   ;;  %v3397_v38 = vld [vmem:[%s3768_s9 + $0x90] ss:$36 sps:$4 sm:$0xff]  }
  0x14   : > { %2818 = vmatprep.subr.bf16.mxu0 %v3363_v8  ;;  %3334 = vmatprep.subr.bf16.mxu1 %v3363_v8  ;;  %v3374_v20 = vld [vmem:[%s3768_s9 + $0x360] ss:$36 sps:$4 sm:$0xff]   ;;  %v3388_v30 = vld [vmem:[%s3768_s9 + $0x3a8] ss:$36 sps:$4 sm:$0xff]   ;;  %v3398_v39 = vld [vmem:[%s3768_s9 + $0x3f0] ss:$36 sps:$4 sm:$0xff]  }
  0x15   : > { %1785 = vmatprep.mubr.bf16.mxu1 %v3376_v12  ;;  %v3405_v44 = vld [vmem:[%s3768_s9 + $0xdc] ss:$36 sps:$4 sm:$0xff]   ;;  %v3411_v48 = vld [vmem:[%s4530_s1 + $0xf0] sm:$0xff]   ;;  %v3417_v53 = vld [vmem:[%s3768_s9 + $0x124] ss:$36 sps:$4 sm:$0xff]  }
  0x16   : > { %v3407_v45 = vld [vmem:[%s3768_s9 + $0x43c] ss:$36 sps:$4 sm:$0xff]   ;;  %v3412_v51 = vld [vmem:[%s4530_s1 + $0xb0] sm:$0xff]   ;;  %v3419_v58 = vld [vmem:[%s3768_s9 + $0x8] ss:$36 sps:$4 sm:$0xff]  }
  0x17   : > { %2819 = vmatpush3.bf16.msra.mxu0 %v3364_v9  ;;  %3342 = vmatpush3.bf16.msra.mxu1 %v3364_v9  ;;  %v3409_v49 = vld [vmem:[%s3768_s9 + $0xd8] ss:$36 sps:$4 sm:$0xff]   ;;  %v3421_v54 = vld [vmem:[%s3768_s9 + $0xc] ss:$36 sps:$4 sm:$0xff]   ;;  %v3422_v59 = vld [vmem:[%s3768_s9 + $0x120] ss:$36 sps:$4 sm:$0xff]  }
  0x18   : > { %2820 = vmatprep.subr.bf16.mxu0 %v3365_v10  ;;  %3335 = vmatprep.subr.bf16.mxu1 %v3365_v10  ;;  %v3410_v50 = vld [vmem:[%s3768_s9 + $0x438] ss:$36 sps:$4 sm:$0xff]   ;;  %v3423_v60 = vld [vmem:[%s4530_s1 + $0x1c0] sm:$0xff]   ;;  %v3425_v62 = vld [vmem:[%s3768_s9 + $0x16c] ss:$36 sps:$4 sm:$0xff]  }
  0x19   : > { %v3432_v56 = vld [vmem:[%s4530_s1 + $0x118] sm:$0xff]   ;;  %v3424_v61 = vld [vmem:[%s4530_s1 + $0x180] sm:$0xff]   ;;  %v3439_v1 = vld [vmem:[%s4530_s1 + $0x1c8] sm:$0xff]  }
  0x1a   : > { %v3415_v57 = vld [vmem:[%s4530_s1 + $0xb8] sm:$0xff]   ;;  %v3441_v0 = vld [vmem:[%s4530_s1 + $0x160] sm:$0xff]   ;;  %v3440_v3 = vld [vmem:[%s4530_s1 + $0x188] sm:$0xff]  }
  0x1b   : > { %2821 = vmatpush3.bf16.msra.mxu0 %v3366_v13  ;;  %3343 = vmatpush3.bf16.msra.mxu1 %v3366_v13  ;;  %v3427_v63 = vld [vmem:[%s3768_s9 + $0x54] ss:$36 sps:$4 sm:$0xff]   ;;  %v3442_v2 = vld [vmem:[%s4530_s1 + $0x120] sm:$0xff]   ;;  %v3429_v4 = vld [vmem:[%s3768_s9 + $0x168] ss:$36 sps:$4 sm:$0xff]  }
  0x1c   : > { %2822 = vmatprep.subr.bf16.mxu0 %v3367_v14  ;;  %3336 = vmatprep.subr.bf16.mxu1 %v3367_v14  ;;  %v3430_v5 = vld [vmem:[%s3768_s9 + $0x50] ss:$36 sps:$4 sm:$0xff]   ;;  %v3435_v7 = vld [vmem:[%s3768_s9 + $0x9c] ss:$36 sps:$4 sm:$0xff]   ;;  %v3455_v8 = vld [vmem:[%s4530_s1 + $0x168] sm:$0xff]  }
  0x1d   : > { %v3433_v6 = vld [vmem:[%s3768_s9 + $0x1b4] ss:$36 sps:$4 sm:$0xff]   ;;  %v3457_v10 = vld [vmem:[%s4530_s1 + $0x128] sm:$0xff]   ;;  %v3443_v14 = vld [vmem:[%s3768_s9 + $0x1fc] ss:$36 sps:$4 sm:$0xff]  }
  0x1e   : > { %v3456_v9 = vld [vmem:[%s4530_s1 + $0x1d0] sm:$0xff]   ;;  %v3438_v13 = vld [vmem:[%s3768_s9 + $0x98] ss:$36 sps:$4 sm:$0xff]  }
  0x1f   : > { %2823 = vmatpush3.bf16.msra.mxu0 %v3368_v15  ;;  %3344 = vmatpush3.bf16.msra.mxu1 %v3368_v15  ;;  %v3458_v11 = vld [vmem:[%s4530_s1 + $0x190] sm:$0xff]  }
  0x20   : > { %2824 = vmatprep.subr.bf16.mxu0 %v3369_v16  ;;  %3337 = vmatprep.subr.bf16.mxu1 %v3369_v16  ;;  %v3437_v12 = vld [vmem:[%s3768_s9 + $0x1b0] ss:$36 sps:$4 sm:$0xff]  }
  0x21   : > { %v3465_v15 = vld [vmem:[%s4530_s1 + $0x170] sm:$0xff]  }
  0x22   : > { %v3466_v16 = vld [vmem:[%s4530_s1 + $0x130] sm:$0xff]  }
  0x23   : > { %2825 = vmatpush3.bf16.msra.mxu0 %v3370_v17  ;;  %3345 = vmatpush3.bf16.msra.mxu1 %v3370_v17  ;;  %v3445_v17 = vld [vmem:[%s3768_s9 + $0xe4] ss:$36 sps:$4 sm:$0xff]  }
  0x24   : > { %2922 = vmatprep.subr.bf16.mxu1 %v3377_v18  ;;  %3034 = vmatprep.subr.bf16.mxu0 %v3380_v21  ;;  %v3473_v18 = vld [vmem:[%s4530_s1 + $0x1d8] sm:$0xff]   ;;  %v3448_v21 = vld [vmem:[%s3768_s9 + $0xe0] ss:$36 sps:$4 sm:$0xff]  }
  0x26   : > { %1690 = vmatmul.mubr.bf16.vlgmr.msra.gmra.mrb[0].mxu0 %v3371_v19  ;;  %1786 = vmatmul.mubr.bf16.vlgmr.msra.gmra.mrb[0].mxu1 %v3374_v20  ;;  %v3474_v19 = vld [vmem:[%s4530_s1 + $0x198] sm:$0xff]  }
  0x27   : > { %2923 = vmatpush3.bf16.msra.mxu1 %v3378_v22  ;;  %3035 = vmatpush3.bf16.msra.mxu0 %v3382_v24  ;;  %v3447_v20 = vld [vmem:[%s3768_s9 + $0x1f8] ss:$36 sps:$4 sm:$0xff]   ;;  %v3449_v22 = vld [vmem:[%s3768_s9 + $0x244] ss:$36 sps:$4 sm:$0xff]  }
  0x28   : > { %2924 = vmatprep.subr.bf16.mxu1 %v3379_v23  ;;  %1697 = vmatprep.mubr.bf16.mxu0 %v3383_v25  ;;  %v3451_v23 = vld [vmem:[%s3768_s9 + $0x12c] ss:$36 sps:$4 sm:$0xff]   ;;  %v3481_v24 = vld [vmem:[%s4530_s1 + $0x178] sm:$0xff]  }
  0x29   : > { %1793 = vmatprep.mubr.bf16.mxu1 %v3385_v26  ;;  %3036 = vmatprep.subr.bf16.mxu0 %v3400_v28  ;;  %v3482_v25 = vld [vmem:[%s4530_s1 + $0x138] sm:$0xff]   ;;  %v3489_v26 = vld [vmem:[%s4530_s1 + $0x1e0] sm:$0xff]  }
  0x2a   : > { %v3490_v28 = vld [vmem:[%s4530_s1 + $0x1a0] sm:$0xff]  }
  0x2b   : > { %2925 = vmatpush3.bf16.msra.mxu1 %v3381_v27  ;;  %3037 = vmatpush3.bf16.msra.mxu0 %v3402_v33  ;;  %v3453_v27 = vld [vmem:[%s3768_s9 + $0x240] ss:$36 sps:$4 sm:$0xff]   ;;  %v3504_v33 = vld [vmem:[%s4530_s1 + $0x1e8] sm:$0xff]  }
  0x2c   : > { %2926 = vmatprep.subr.bf16.mxu1 %v3389_v31  ;;  %3038 = vmatprep.subr.bf16.mxu0 %v3414_v43  ;;  %v3459_v31 = vld [vmem:[%s3768_s9 + $0x28c] ss:$36 sps:$4 sm:$0xff]   ;;  %v3475_v43 = vld [vmem:[%s3768_s9 + $0x31c] ss:$36 sps:$4 sm:$0xff]  }
  0x2e   : > { %1698 = vmatmul.mubr.bf16.gmra.mrb[4].mxu0 %v3387_v29  ;;  %1794 = vmatmul.mubr.bf16.gmra.mrb[4].mxu1 %v3388_v30  ;;  %v3491_v29 = vld [vmem:[%s4530_s1 + $0x200] sm:$0xff]   ;;  %v3454_v30 = vld [vmem:[%s3768_s9 + $0x128] ss:$36 sps:$4 sm:$0xff]  }
  0x2f   : > { %2927 = vmatpush3.bf16.msra.mxu1 %v3390_v32  ;;  %1705 = vmatprep.mubr.bf16.mxu0 %v3393_v35  ;;  %v3461_v32 = vld [vmem:[%s3768_s9 + $0x174] ss:$36 sps:$4 sm:$0xff]   ;;  %v3505_v35 = vld [vmem:[%s4530_s1 + $0x1a8] sm:$0xff]  }
  0x30   : > { %2928 = vmatprep.subr.bf16.mxu1 %v3391_v34  ;;  %1801 = vmatprep.mubr.bf16.mxu1 %v3395_v36  ;;  %v3463_v34 = vld [vmem:[%s3768_s9 + $0x288] ss:$36 sps:$4 sm:$0xff]   ;;  %v3464_v36 = vld [vmem:[%s3768_s9 + $0x170] ss:$36 sps:$4 sm:$0xff]  }
  0x31   : > { %3039 = vmatpush3.bf16.msra.mxu0 %v3416_v46  ;;  %v3480_v46 = vld [vmem:[%s3768_s9 + $0x200] ss:$36 sps:$4 sm:$0xff]  }
  0x32   : > { %3040 = vmatprep.subr.bf16.mxu0 %v3431_v55  ;;  %v3506_v55 = vld [vmem:[%s4530_s1 + $0x208] sm:$0xff]  }
  0x33   : > { %2929 = vmatpush3.bf16.msra.mxu1 %v3392_v37  ;;  %v3467_v37 = vld [vmem:[%s3768_s9 + $0x2d4] ss:$36 sps:$4 sm:$0xff]  }
  0x34   : > { %2930 = vmatprep.subr.bf16.mxu1 %v3399_v40  ;;  %v3472_v40 = vld [vmem:[%s3768_s9 + $0x1b8] ss:$36 sps:$4 sm:$0xff]  }
  0x35   : > { %3041 = vmatpush3.bf16.msra.mxu0 %v3432_v56  ;;  %v3521_v56 = vld [vmem:[%s4530_s1 + $0x210] sm:$0xff]  }
  0x36   : > { %1706 = vmatmul.mubr.bf16.gmra.mrb[8].mxu0 %v3397_v38  ;;  %1802 = vmatmul.mubr.bf16.gmra.mrb[8].mxu1 %v3398_v39  ;;  %v3469_v38 = vld [vmem:[%s3768_s9 + $0x1bc] ss:$36 sps:$4 sm:$0xff]   ;;  %v3471_v39 = vld [vmem:[%s3768_s9 + $0x2d0] ss:$36 sps:$4 sm:$0xff]  }
  0x37   : > { %2931 = vmatpush3.bf16.msra.mxu1 %v3401_v41  ;;  %1713 = vmatprep.mubr.bf16.mxu0 %v3405_v44  ;;  %v3519_v41 = vld [vmem:[%s4530_s1 + $0x1f0] sm:$0xff]   ;;  %v3477_v44 = vld [vmem:[%s3768_s9 + $0x204] ss:$36 sps:$4 sm:$0xff]  }
  0x38   : > { %2932 = vmatprep.subr.bf16.mxu1 %v3403_v42  ;;  %1809 = vmatprep.mubr.bf16.mxu1 %v3407_v45  ;;  %v3520_v42 = vld [vmem:[%s4530_s1 + $0x1b0] sm:$0xff]   ;;  %v3479_v45 = vld [vmem:[%s3768_s9 + $0x318] ss:$36 sps:$4 sm:$0xff]  }
  0x39   : > { %3042 = vmatprep.subr.bf16.mxu0 %v3441_v0  ;;  %v3503_v0 = vld [vmem:[%s3768_s9 + $0xa0] ss:$36 sps:$4 sm:$0xff]  }
  0x3a   : > { %3043 = vmatpush3.bf16.msra.mxu0 %v3442_v2  ;;  %v3509_v2 = vld [vmem:[%s3768_s9 + $0xec] ss:$36 sps:$4 sm:$0xff]  }
  0x3b   : > { %2933 = vmatpush3.bf16.msra.mxu1 %v3404_v47  ;;  %3044 = vmatprep.subr.bf16.mxu0 %v3455_v8  ;;  %v3534_v47 = vld [vmem:[%s4530_s1 + $0x1f8] sm:$0xff]  }
  0x3c   : > { %2934 = vmatprep.subr.bf16.mxu1 %v3411_v48  ;;  %v3535_v48 = vld [vmem:[%s4530_s1 + $0x1b8] sm:$0xff]  }
  0x3d   : > { %v3515_v8 = vld [vmem:[%s3768_s9 + $0x134] ss:$36 sps:$4 sm:$0xff]  }
  0x3e   : > { %1714 = vmatmul.mubr.bf16.gmra.mrb[12].mxu0 %v3409_v49  ;;  %1810 = vmatmul.mubr.bf16.gmra.mrb[12].mxu1 %v3410_v50  ;;  %v3483_v49 = vld [vmem:[%s3768_s9 + $0x24c] ss:$36 sps:$4 sm:$0xff]   ;;  %v3487_v50 = vld [vmem:[%s3768_s9 + $0x14] ss:$36 sps:$4 sm:$0xff]  }
  0x3f   : > { %2935 = vmatpush3.bf16.msra.mxu1 %v3412_v51  ;;  %1721 = vmatprep.mubr.bf16.mxu0 %v3417_v53  ;;  %v3485_v51 = vld [vmem:[%s3768_s9 + $0x10] ss:$36 sps:$4 sm:$0xff]  }
  0x40   : > { %2936 = vmatprep.subr.bf16.mxu1 %v3413_v52  ;;  %1850 = vmatprep.mubr.bf16.mxu1 %v3421_v54  ;;  %v3488_v52 = vld [vmem:[%s3768_s9 + $0x248] ss:$36 sps:$4 sm:$0xff]   ;;  %v3492_v53 = vld [vmem:[%s3768_s9 + $0x294] ss:$36 sps:$4 sm:$0xff]   ;;  %v3494_v54 = vld [vmem:[%s3768_s9 + $0x5c] ss:$36 sps:$4 sm:$0xff]  }
  0x41   : > { %3045 = vmatpush3.bf16.msra.mxu0 %v3457_v10  ;;  %v3517_v10 = vld [vmem:[%s3768_s9 + $0x368] ss:$36 sps:$4 sm:$0xff]  }
  0x42   : > { %3046 = vmatprep.subr.bf16.mxu0 %v3465_v15  ;;  %v3527_v15 = vld [vmem:[%s3768_s9 + $0x178] ss:$36 sps:$4 sm:$0xff]  }
  0x43   : > { %2937 = vmatpush3.bf16.msra.mxu1 %v3415_v57  ;;  %v3496_v57 = vld [vmem:[%s3768_s9 + $0x290] ss:$36 sps:$4 sm:$0xff]  }
  0x44   : > { %3146 = vmatprep.subr.bf16.mxu1 %v3423_v60  ;;  %v3500_v60 = vld [vmem:[%s3768_s9 + $0xa4] ss:$36 sps:$4 sm:$0xff]  }
  0x45   : > { %3047 = vmatpush3.bf16.msra.mxu0 %v3466_v16  ;;  %v3528_v16 = vld [vmem:[%s3768_s9 + $0x3fc] ss:$36 sps:$4 sm:$0xff]  }
  0x46   : > { %1722 = vmatmul.mubr.bf16.gmra.mrb[16].mxu0 %v3422_v59  ;;  %1851 = vmatmul.mubr.bf16.vlgmr.msra.gmra.mrb[16].mxu1 %v3419_v58  ;;  %v3497_v58 = vld [vmem:[%s3768_s9 + $0x58] ss:$36 sps:$4 sm:$0xff]  }
  0x47   : > { %3147 = vmatpush3.bf16.msra.mxu1 %v3424_v61  ;;  %1729 = vmatprep.mubr.bf16.mxu0 %v3425_v62  ;;  %v3498_v59 = vld [vmem:[%s3768_s9 + $0x2dc] ss:$36 sps:$4 sm:$0xff]  }
  0x48   : > { %1858 = vmatprep.mubr.bf16.mxu1 %v3427_v63  ;;  %3148 = vmatprep.subr.bf16.mxu1 %v3439_v1  ;;  %v3536_v61 = vld [vmem:[%s4530_s1 + $0x218] sm:$0xff]   ;;  %v3549_v62 = vld [vmem:[%s4530_s1 + $0x220] sm:$0xff]  }
  0x49   : > { %3048 = vmatprep.subr.bf16.mxu0 %v3481_v24  ;;  %v3502_v63 = vld [vmem:[%s3768_s9 + $0x2d8] ss:$36 sps:$4 sm:$0xff]   ;;  %v3507_v1 = vld [vmem:[%s3768_s9 + $0x324] ss:$36 sps:$4 sm:$0xff]  }
  0x4a   : > { %3049 = vmatpush3.bf16.msra.mxu0 %v3482_v25  ;;  %v3543_v24 = vld [vmem:[%s3768_s9 + $0x254] ss:$36 sps:$4 sm:$0xff]   ;;  %v3547_v25 = vld [vmem:[%s3768_s9 + $0x1c] ss:$36 sps:$4 sm:$0xff]  }
  0x4b   : > { %3149 = vmatpush3.bf16.msra.mxu1 %v3440_v3  ;;  %3282 = vmatprep.subr.bf16.mxu0 %v3491_v29  ;;  %v3562_v3 = vld [vmem:[%s4530_s1 + $0x228] sm:$0xff]  }
  0x4c   : > { %3150 = vmatprep.subr.bf16.mxu1 %v3456_v9  ;;  %v3588_v9 = vld [vmem:[%s4530_s1 + $0x238] sm:$0xff]  }
  0x4e   : > { %1730 = vmatmul.mubr.bf16.gmra.mrb[20].mxu0 %v3429_v4  ;;  %1859 = vmatmul.mubr.bf16.gmra.mrb[20].mxu1 %v3430_v5  ;;  %v3511_v4 = vld [vmem:[%s3768_s9 + $0x320] ss:$36 sps:$4 sm:$0xff]   ;;  %v3512_v5 = vld [vmem:[%s3768_s9 + $0xe8] ss:$36 sps:$4 sm:$0xff]  }
  0x4f   : > { %1737 = vmatprep.mubr.bf16.mxu0 %v3433_v6  ;;  %1866 = vmatprep.mubr.bf16.mxu1 %v3435_v7  ;;  %v3575_v6 = vld [vmem:[%s4530_s1 + $0x230] sm:$0xff]  }
  0x50   : > { %3151 = vmatpush3.bf16.msra.mxu1 %v3458_v11  ;;  %v3513_v7 = vld [vmem:[%s3768_s9 + $0x36c] ss:$36 sps:$4 sm:$0xff]  }
  0x51   : > { %3152 = vmatprep.subr.bf16.mxu1 %v3473_v18  ;;  %v3518_v11 = vld [vmem:[%s3768_s9 + $0x130] ss:$36 sps:$4 sm:$0xff]   ;;  %v3532_v18 = vld [vmem:[%s3768_s9 + $0x3f8] ss:$36 sps:$4 sm:$0xff]  }
  0x54   : > { %3153 = vmatpush3.bf16.msra.mxu1 %v3474_v19  ;;  %v3533_v19 = vld [vmem:[%s3768_s9 + $0x1c0] ss:$36 sps:$4 sm:$0xff]  }
  0x55   : > { %3154 = vmatprep.subr.bf16.mxu1 %v3489_v26  ;;  %v3545_v26 = vld [vmem:[%s3768_s9 + $0x18] ss:$36 sps:$4 sm:$0xff]  }
  0x56   : > { %1738 = vmatmul.mubr.bf16.gmra.mrb[24].mxu0 %v3437_v12  ;;  %1867 = vmatmul.mubr.bf16.gmra.mrb[24].mxu1 %v3438_v13  ;;  %v3522_v12 = vld [vmem:[%s3768_s9 + $0x3b4] ss:$36 sps:$4 sm:$0xff]   ;;  %v3524_v13 = vld [vmem:[%s3768_s9 + $0x17c] ss:$36 sps:$4 sm:$0xff]  }
  0x57   : > { %1745 = vmatprep.mubr.bf16.mxu0 %v3443_v14  ;;  %1874 = vmatprep.mubr.bf16.mxu1 %v3445_v17  ;;  %v3526_v14 = vld [vmem:[%s3768_s9 + $0x3b0] ss:$36 sps:$4 sm:$0xff]   ;;  %v3530_v17 = vld [vmem:[%s3768_s9 + $0x1c4] ss:$36 sps:$4 sm:$0xff]  }
  0x58   : > { %3155 = vmatpush3.bf16.msra.mxu1 %v3490_v28  ;;  %v3550_v28 = vld [vmem:[%s3768_s9 + $0x29c] ss:$36 sps:$4 sm:$0xff]  }
  0x59   : > { %3156 = vmatprep.subr.bf16.mxu1 %v3504_v33  ;;  %v3558_v33 = vld [vmem:[%s3768_s9 + $0xac] ss:$36 sps:$4 sm:$0xff]  }
  0x5c   : > { %3157 = vmatpush3.bf16.msra.mxu1 %v3505_v35  ;;  %v3561_v35 = vld [vmem:[%s3768_s9 + $0xa8] ss:$36 sps:$4 sm:$0xff]  }
  0x5d   : > { %3158 = vmatprep.subr.bf16.mxu1 %v3519_v41  ;;  %v3571_v41 = vld [vmem:[%s3768_s9 + $0x13c] ss:$36 sps:$4 sm:$0xff]  }
  0x5e   : > { %1746 = vmatmul.mubr.bf16.gmra.mrb[28].mxu0 %v3447_v20  ;;  %1875 = vmatmul.mubr.bf16.gmra.mrb[28].mxu1 %v3448_v21  ;;  %v3537_v20 = vld [vmem:[%s3768_s9 + $0x444] ss:$36 sps:$4 sm:$0xff]   ;;  %v3539_v21 = vld [vmem:[%s3768_s9 + $0x20c] ss:$36 sps:$4 sm:$0xff]  }
  0x5f   : > { %1753 = vmatprep.mubr.bf16.mxu0 %v3449_v22  ;;  %1882 = vmatprep.mubr.bf16.mxu1 %v3451_v23  ;;  %v3541_v22 = vld [vmem:[%s3768_s9 + $0x440] ss:$36 sps:$4 sm:$0xff]   ;;  %v3542_v23 = vld [vmem:[%s3768_s9 + $0x208] ss:$36 sps:$4 sm:$0xff]  }
  0x60   : > { %3159 = vmatpush3.bf16.msra.mxu1 %v3520_v42  ;;  %v3573_v42 = vld [vmem:[%s3768_s9 + $0x370] ss:$36 sps:$4 sm:$0xff]  }
  0x61   : > { %3160 = vmatprep.subr.bf16.mxu1 %v3534_v47  ;;  %v3581_v47 = vld [vmem:[%s3768_s9 + $0x180] ss:$36 sps:$4 sm:$0xff]  }
  0x64   : > { %3161 = vmatpush3.bf16.msra.mxu1 %v3535_v48  ;;  %v3582_v48 = vld [vmem:[%s3768_s9 + $0x404] ss:$36 sps:$4 sm:$0xff]  }
  0x66   : > { %1754 = vmatmul.mubr.bf16.gmra.mrb[32].mxu0 %v3453_v27  ;;  %1883 = vmatmul.mubr.bf16.gmra.mrb[32].mxu1 %v3454_v30  ;;  %v3548_v27 = vld [vmem:[%s3768_s9 + $0x250] ss:$36 sps:$4 sm:$0xff]   ;;  %v3554_v30 = vld [vmem:[%s3768_s9 + $0x298] ss:$36 sps:$4 sm:$0xff]  }
  0x67   : > { %1761 = vmatprep.mubr.bf16.mxu0 %v3459_v31  ;;  %1890 = vmatprep.mubr.bf16.mxu1 %v3461_v32  ;;  %v3555_v31 = vld [vmem:[%s3768_s9 + $0x60] ss:$36 sps:$4 sm:$0xff]  }
  0x68   : > { %v3556_v32 = vld [vmem:[%s3768_s9 + $0x2e4] ss:$36 sps:$4 sm:$0xff]  }
  0x6e   : > { %1762 = vmatmul.mubr.bf16.gmra.mrb[36].mxu0 %v3463_v34  ;;  %1891 = vmatmul.mubr.bf16.gmra.mrb[36].mxu1 %v3464_v36  ;;  %v3560_v34 = vld [vmem:[%s3768_s9 + $0x2e0] ss:$36 sps:$4 sm:$0xff]   ;;  %v3563_v36 = vld [vmem:[%s3768_s9 + $0x32c] ss:$36 sps:$4 sm:$0xff]  }
  0x6f   : > { %1769 = vmatprep.mubr.bf16.mxu0 %v3467_v37  ;;  %1898 = vmatprep.mubr.bf16.mxu1 %v3469_v38  ;;  %v3565_v37 = vld [vmem:[%s3768_s9 + $0xf4] ss:$36 sps:$4 sm:$0xff]   ;;  %v3567_v38 = vld [vmem:[%s3768_s9 + $0x328] ss:$36 sps:$4 sm:$0xff]  }
  0x76   : > { %1770 = vmatmul.mubr.bf16.gmra.mrb[40].mxu0 %v3471_v39  ;;  %1899 = vmatmul.mubr.bf16.gmra.mrb[40].mxu1 %v3472_v40  ;;  %v3568_v39 = vld [vmem:[%s3768_s9 + $0xf0] ss:$36 sps:$4 sm:$0xff]  }
  0x77   : > { %1777 = vmatprep.mubr.bf16.mxu0 %v3475_v43  ;;  %1906 = vmatprep.mubr.bf16.mxu1 %v3477_v44  ;;  %v3569_v40 = vld [vmem:[%s3768_s9 + $0x374] ss:$36 sps:$4 sm:$0xff]   ;;  %v3576_v44 = vld [vmem:[%s3768_s9 + $0x3bc] ss:$36 sps:$4 sm:$0xff]  }
  0x78   : > { %v3574_v43 = vld [vmem:[%s3768_s9 + $0x138] ss:$36 sps:$4 sm:$0xff]  }
  0x7e   : > { %1778 = vmatmul.mubr.bf16.gmra.mrb[44].mxu0 %v3479_v45  ;;  %1907 = vmatmul.mubr.bf16.gmra.mrb[44].mxu1 %v3480_v46  ;;  %v3578_v45 = vld [vmem:[%s3768_s9 + $0x184] ss:$36 sps:$4 sm:$0xff]   ;;  %v3580_v46 = vld [vmem:[%s3768_s9 + $0x3b8] ss:$36 sps:$4 sm:$0xff]  }
  0x7f   : > { %1914 = vmatprep.mubr.bf16.mxu1 %v3483_v49  ;;  %2011 = vmatprep.mubr.bf16.mxu0 %v3487_v50  ;;  %v3584_v49 = vld [vmem:[%s3768_s9 + $0x1cc] ss:$36 sps:$4 sm:$0xff]   ;;  %v3586_v50 = vld [vmem:[%s3768_s9 + $0x400] ss:$36 sps:$4 sm:$0xff]  }
  0x86   : > { %1915 = vmatmul.mubr.bf16.gmra.mrb[48].mxu1 %v3488_v52  ;;  %2012 = vmatmul.mubr.bf16.vlgmr.msra.gmra.mrb[48].mxu0 %v3485_v51  ;;  %v3587_v51 = vld [vmem:[%s3768_s9 + $0x1c8] ss:$36 sps:$4 sm:$0xff]  }
  0x87   : > { %3283 = vmatpush3.bf16.msra.mxu0 %v3491_v29  ;;  %1922 = vmatprep.mubr.bf16.mxu1 %v3492_v53  ;;  %v3552_v29 = vld [vmem:[%s3768_s9 + $0x64] ss:$36 sps:$4 sm:$0xff]   ;;  %v3589_v52 = vld [vmem:[%s3768_s9 + $0x44c] ss:$36 sps:$4 sm:$0xff]   ;;  %v3591_v53 = vld [vmem:[%s3768_s9 + $0x214] ss:$36 sps:$4 sm:$0xff]  }
  0x88   : > { %2019 = vmatprep.mubr.bf16.mxu0 %v3494_v54  ;;  %3284 = vmatprep.subr.bf16.mxu0 %v3506_v55 }
  0x8b   : > { %3285 = vmatpush3.bf16.msra.mxu0 %v3506_v55 }
  0x8c   : > { %3286 = vmatprep.subr.bf16.mxu0 %v3521_v56 }
  0x8e   : > { %1923 = vmatmul.mubr.bf16.gmra.mrb[52].mxu1 %v3496_v57  ;;  %2020 = vmatmul.mubr.bf16.gmra.mrb[52].mxu0 %v3497_v58  ;;  %v3593_v58 = vld [vmem:[%s3768_s9 + $0x448] ss:$36 sps:$4 sm:$0xff]  }
  0x8f   : > { %1930 = vmatprep.mubr.bf16.mxu1 %v3498_v59  ;;  %2027 = vmatprep.mubr.bf16.mxu0 %v3500_v60  ;;  %v3594_v59 = vld [vmem:[%s3768_s9 + $0x210] ss:$36 sps:$4 sm:$0xff]  }
  0x90   : > { %3287 = vmatpush3.bf16.msra.mxu0 %v3521_v56 }
  0x91   : > { %3288 = vmatprep.subr.bf16.mxu0 %v3536_v61 }
  0x94   : > { %3289 = vmatpush3.bf16.msra.mxu0 %v3536_v61 }
  0x95   : > { %3290 = vmatprep.subr.bf16.mxu0 %v3549_v62 }
  0x96   : > { %1931 = vmatmul.mubr.bf16.gmra.mrb[56].mxu1 %v3502_v63  ;;  %2028 = vmatmul.mubr.bf16.gmra.mrb[56].mxu0 %v3503_v0  ;;  %v3595_v0 = vld [vmem:[%s3768_s9 + $0x25c] ss:$36 sps:$4 sm:$0xff]  }
  0x97   : > { %1938 = vmatprep.mubr.bf16.mxu1 %v3507_v1  ;;  %2035 = vmatprep.mubr.bf16.mxu0 %v3509_v2  ;;  %v3597_v1 = vld [vmem:[%s3768_s9 + $0x20] ss:$36 sps:$4 sm:$0xff]  }
  0x98   : > { %3291 = vmatpush3.bf16.msra.mxu0 %v3549_v62 }
  0x99   : > { %3292 = vmatprep.subr.bf16.mxu0 %v3562_v3 }
  0x9c   : > { %3293 = vmatpush3.bf16.msra.mxu0 %v3562_v3 }
  0x9d   : > { %3294 = vmatprep.subr.bf16.mxu0 %v3575_v6 }
  0x9e   : > { %1939 = vmatmul.mubr.bf16.gmra.mrb[60].mxu1 %v3511_v4  ;;  %2036 = vmatmul.mubr.bf16.gmra.mrb[60].mxu0 %v3512_v5 }
  0x9f   : > { %1946 = vmatprep.mubr.bf16.mxu1 %v3513_v7  ;;  %2043 = vmatprep.mubr.bf16.mxu0 %v3515_v8 }
  0xa0   : > { %3295 = vmatpush3.bf16.msra.mxu0 %v3575_v6 }
  0xa1   : > { %3296 = vmatprep.subr.bf16.mxu0 %v3588_v9 }
  0xa4   : > { %3297 = vmatpush3.bf16.msra.mxu0 %v3588_v9 }
  0xa6   : > { %1947 = vmatmul.mubr.bf16.gmra.mrb[64].mxu1 %v3517_v10  ;;  %2044 = vmatmul.mubr.bf16.gmra.mrb[64].mxu0 %v3518_v11  ;;  %v3598_v10 = vld [vmem:[%s3768_s9 + $0x258] ss:$36 sps:$4 sm:$0xff]   ;;  %v3599_v11 = vld [vmem:[%s3768_s9 + $0x68] ss:$36 sps:$4 sm:$0xff]  }
  0xa7   : > { %1954 = vmatprep.mubr.bf16.mxu1 %v3522_v12  ;;  %2051 = vmatprep.mubr.bf16.mxu0 %v3524_v13 }
  0xae   : > { %1955 = vmatmul.mubr.bf16.gmra.mrb[68].mxu1 %v3526_v14  ;;  %2052 = vmatmul.mubr.bf16.gmra.mrb[68].mxu0 %v3527_v15 }
  0xaf   : > { %1962 = vmatprep.mubr.bf16.mxu1 %v3528_v16  ;;  %2059 = vmatprep.mubr.bf16.mxu0 %v3530_v17  ;;  %v3600_v16 = vld [vmem:[%s3768_s9 + $0x2a4] ss:$36 sps:$4 sm:$0xff]   ;;  %v3602_v17 = vld [vmem:[%s3768_s9 + $0xb0] ss:$36 sps:$4 sm:$0xff]  }
  0xb6   : > { %1963 = vmatmul.mubr.bf16.gmra.mrb[72].mxu1 %v3532_v18  ;;  %2060 = vmatmul.mubr.bf16.gmra.mrb[72].mxu0 %v3533_v19 }
  0xb7   : > { %1970 = vmatprep.mubr.bf16.mxu1 %v3537_v20  ;;  %2067 = vmatprep.mubr.bf16.mxu0 %v3539_v21 }
  0xbe   : > { %1971 = vmatmul.mubr.bf16.gmra.mrb[76].mxu1 %v3541_v22  ;;  %2068 = vmatmul.mubr.bf16.gmra.mrb[76].mxu0 %v3542_v23 }
  0xbf   : > { %2075 = vmatprep.mubr.bf16.mxu0 %v3543_v24  ;;  %2172 = vmatprep.mubr.bf16.mxu1 %v3547_v25 }
  0xc6   : > { %2076 = vmatmul.mubr.bf16.gmra.mrb[80].mxu0 %v3548_v27  ;;  %2173 = vmatmul.mubr.bf16.vlgmr.msra.gmra.mrb[80].mxu1 %v3545_v26  ;;  %v3603_v26 = vld [vmem:[%s3768_s9 + $0x2a0] ss:$36 sps:$4 sm:$0xff]   ;;  %v3604_v27 = vld [vmem:[%s3768_s9 + $0xf8] ss:$36 sps:$4 sm:$0xff]  }
  0xc7   : > { %2083 = vmatprep.mubr.bf16.mxu0 %v3550_v28  ;;  %2180 = vmatprep.mubr.bf16.mxu1 %v3552_v29 }
  0xce   : > { %2084 = vmatmul.mubr.bf16.gmra.mrb[84].mxu0 %v3554_v30  ;;  %2181 = vmatmul.mubr.bf16.gmra.mrb[84].mxu1 %v3555_v31 }
  0xcf   : > { %2091 = vmatprep.mubr.bf16.mxu0 %v3556_v32  ;;  %2188 = vmatprep.mubr.bf16.mxu1 %v3558_v33  ;;  %v3605_v32 = vld [vmem:[%s3768_s9 + $0x2ec] ss:$36 sps:$4 sm:$0xff]   ;;  %v3607_v33 = vld [vmem:[%s3768_s9 + $0x140] ss:$36 sps:$4 sm:$0xff]  }
  0xd6   : > { %2092 = vmatmul.mubr.bf16.gmra.mrb[88].mxu0 %v3560_v34  ;;  %2189 = vmatmul.mubr.bf16.gmra.mrb[88].mxu1 %v3561_v35 }
  0xd7   : > { %2099 = vmatprep.mubr.bf16.mxu0 %v3563_v36  ;;  %2196 = vmatprep.mubr.bf16.mxu1 %v3565_v37 }
  0xde   : > { %2100 = vmatmul.mubr.bf16.gmra.mrb[92].mxu0 %v3567_v38  ;;  %2197 = vmatmul.mubr.bf16.gmra.mrb[92].mxu1 %v3568_v39 }
  0xdf   : > { %2107 = vmatprep.mubr.bf16.mxu0 %v3569_v40  ;;  %2204 = vmatprep.mubr.bf16.mxu1 %v3571_v41 }
  0xe6   : > { %2108 = vmatmul.mubr.bf16.gmra.mrb[96].mxu0 %v3573_v42  ;;  %2205 = vmatmul.mubr.bf16.gmra.mrb[96].mxu1 %v3574_v43  ;;  %v3608_v42 = vld [vmem:[%s3768_s9 + $0x2e8] ss:$36 sps:$4 sm:$0xff]  }
  0xe7   : > { %2115 = vmatprep.mubr.bf16.mxu0 %v3576_v44  ;;  %2212 = vmatprep.mubr.bf16.mxu1 %v3578_v45  ;;  %v3609_v43 = vld [vmem:[%s3768_s9 + $0x188] ss:$36 sps:$4 sm:$0xff]  }
  0xee   : > { %2116 = vmatmul.mubr.bf16.gmra.mrb[100].mxu0 %v3580_v46  ;;  %2213 = vmatmul.mubr.bf16.gmra.mrb[100].mxu1 %v3581_v47 }
  0xef   : > { %2123 = vmatprep.mubr.bf16.mxu0 %v3582_v48  ;;  %2220 = vmatprep.mubr.bf16.mxu1 %v3584_v49  ;;  %v3610_v48 = vld [vmem:[%s3768_s9 + $0x334] ss:$36 sps:$4 sm:$0xff]  }
  0xf0   : > { %v3612_v49 = vld [vmem:[%s3768_s9 + $0x1d0] ss:$36 sps:$4 sm:$0xff]  }
  0xf6   : > { %2124 = vmatmul.mubr.bf16.gmra.mrb[104].mxu0 %v3586_v50  ;;  %2221 = vmatmul.mubr.bf16.gmra.mrb[104].mxu1 %v3587_v51 }
  0xf7   : > { %2131 = vmatprep.mubr.bf16.mxu0 %v3589_v52  ;;  %2228 = vmatprep.mubr.bf16.mxu1 %v3591_v53 }
  0xf9   : > { %v2898_v54 = vpop.f32.mrb[0].mxu1  ;;  %v2826_v55 = vpop.f32.mrb[0].mxu0 }
  0xfa   : > { %v2899_v56 = vpop.f32.mrb[1].mxu1  ;;  %v2827_v57 = vpop.f32.mrb[1].mxu0 }
  0xfb   : > { %v4071_v60 = vadd.f32 %v2899_v56, %v2898_v54  ;;  %v2901_v61 = vpop.f32.mrb[2].mxu1  ;;  %v4073_v62 = vadd.f32 %v2827_v57, %v2826_v55  ;;  %v2829_v63 = vpop.f32.mrb[2].mxu0  ;;  %v4120_v54 = vld [vmem:[%s4531_s2] ss:$0 sm:$0xff] }
  0xfc   : > { %v2902_v2 = vpop.f32.mrb[3].mxu1  ;;  %v2830_v3 = vpop.f32.mrb[3].mxu0 }
  0xfd   : > { %v4077_v4 = vadd.f32 %v2902_v2, %v2901_v61  ;;  %v4079_v5 = vadd.f32 %v2830_v3, %v2829_v63  ;;  %v3614_v61 = vld [vmem:[%s3768_s9 + $0x218] ss:$36 sps:$4 sm:$0xff]   ;;  %v1692_v63 = vadd.f32 %v4073_v62, %v4120_v54 }
  0xfe   : > { %2132 = vmatmul.mubr.bf16.gmra.mrb[108].mxu0 %v3593_v58  ;;  %2229 = vmatmul.mubr.bf16.gmra.mrb[108].mxu1 %v3594_v59  ;;  %v3613_v59 = vld [vmem:[%s3768_s9 + $0x330] ss:$36 sps:$4 sm:$0xff]  }
  0xff   : > { %2236 = vmatprep.mubr.bf16.mxu1 %v3595_v0  ;;  %3298 = vmatprep.mubr.bf16.mxu0 %v3597_v1 }
 0x101   : > { %v2904_v6 = vpop.f32.mrb[4].mxu1  ;;  %v2832_v7 = vpop.f32.mrb[4].mxu0 }
 0x102   : > { %v2905_v8 = vpop.f32.mrb[5].mxu1  ;;  %v2833_v9 = vpop.f32.mrb[5].mxu0 }
 0x103   : > { %v4083_v12 = vadd.f32 %v2905_v8, %v2904_v6  ;;  %v2907_v13 = vpop.f32.mrb[6].mxu1  ;;  %v4085_v14 = vadd.f32 %v2833_v9, %v2832_v7  ;;  %v2835_v15 = vpop.f32.mrb[6].mxu0  ;;  %v3615_v6 = vld [vmem:[%s3768_s9 + $0x37c] ss:$36 sps:$4 sm:$0xff]  }
 0x104   : > { %v2908_v18 = vpop.f32.mrb[7].mxu1  ;;  %v2836_v19 = vpop.f32.mrb[7].mxu0  ;;  %v3617_v7 = vld [vmem:[%s3768_s9 + $0x260] ss:$36 sps:$4 sm:$0xff]  }
 0x105   : > { %v4089_v20 = vadd.f32 %v2908_v18, %v2907_v13  ;;  %v4091_v21 = vadd.f32 %v2836_v19, %v2835_v15 }
 0x106   : > { %2237 = vmatmul.mubr.bf16.gmra.mrb[112].mxu1 %v3598_v10  ;;  %3299 = vmatmul.mubr.bf16.vlgmr.msra.gmra.mrb[112].mxu0 %v3599_v11  ;;  %v1695_v10 = vadd.f32 %v4079_v5, %v4120_v54  ;;  %v1700_v5 = vadd.f32 %v4085_v14, %v4120_v54 }
 0x107   : > { %2244 = vmatprep.mubr.bf16.mxu1 %v3600_v16  ;;  %3302 = vmatprep.mubr.bf16.mxu0 %v3602_v17 }
 0x109   : > { %v2910_v22 = vpop.f32.mrb[8].mxu1  ;;  %v2838_v23 = vpop.f32.mrb[8].mxu0 }
 0x10a   : > { %v2911_v24 = vpop.f32.mrb[9].mxu1  ;;  %v2839_v25 = vpop.f32.mrb[9].mxu0 }
 0x10b   : > { %v4095_v28 = vadd.f32 %v2911_v24, %v2910_v22  ;;  %v2913_v29 = vpop.f32.mrb[10].mxu1  ;;  %v4097_v30 = vadd.f32 %v2839_v25, %v2838_v23  ;;  %v2841_v31 = vpop.f32.mrb[10].mxu0  ;;  %v3618_v22 = vld [vmem:[%s3768_s9 + $0x378] ss:$36 sps:$4 sm:$0xff]   ;;  %v3619_v23 = vld [vmem:[%s3768_s9 + $0x2a8] ss:$36 sps:$4 sm:$0xff]  }
 0x10c   : > { %v2914_v34 = vpop.f32.mrb[11].mxu1  ;;  %v2842_v35 = vpop.f32.mrb[11].mxu0 }
 0x10d   : > { %v4101_v36 = vadd.f32 %v2914_v34, %v2913_v29  ;;  %v4103_v37 = vadd.f32 %v2842_v35, %v2841_v31  ;;  %v3620_v29 = vld [vmem:[%s3768_s9 + $0x3c4] ss:$36 sps:$4 sm:$0xff]   ;;  %v3622_v31 = vld [vmem:[%s3768_s9 + $0x2f0] ss:$36 sps:$4 sm:$0xff]   ;;  %v1703_v34 = vadd.f32 %v4091_v21, %v4120_v54  ;;  %v1708_v21 = vadd.f32 %v4097_v30, %v4120_v54 }
 0x10e   : > { %2245 = vmatmul.mubr.bf16.gmra.mrb[116].mxu1 %v3603_v26  ;;  %3303 = vmatmul.mubr.bf16.gmra.mrb[116].mxu0 %v3604_v27 }
 0x10f   : > { %2252 = vmatprep.mubr.bf16.mxu1 %v3605_v32  ;;  %3306 = vmatprep.mubr.bf16.mxu0 %v3607_v33 }
 0x111   : > { %v2916_v38 = vpop.f32.mrb[12].mxu1  ;;  %v2844_v39 = vpop.f32.mrb[12].mxu0 }
 0x112   : > { %v2917_v40 = vpop.f32.mrb[13].mxu1  ;;  %v2845_v41 = vpop.f32.mrb[13].mxu0 }
 0x113   : > { %v4107_v44 = vadd.f32 %v2917_v40, %v2916_v38  ;;  %v2919_v45 = vpop.f32.mrb[14].mxu1  ;;  %v4109_v46 = vadd.f32 %v2845_v41, %v2844_v39  ;;  %v2847_v47 = vpop.f32.mrb[14].mxu0 }
 0x114   : > { %v2920_v50 = vpop.f32.mrb[15].mxu1  ;;  %v2848_v51 = vpop.f32.mrb[15].mxu0 }
 0x115   : > { %v4113_v52 = vadd.f32 %v2920_v50, %v2919_v45  ;;  %v4115_v53 = vadd.f32 %v2848_v51, %v2847_v47  ;;  %v3623_v45 = vld [vmem:[%s3768_s9 + $0x3c0] ss:$36 sps:$4 sm:$0xff]   ;;  %v3624_v47 = vld [vmem:[%s3768_s9 + $0x338] ss:$36 sps:$4 sm:$0xff]  }
 0x116   : > { %2253 = vmatmul.mubr.bf16.gmra.mrb[120].mxu1 %v3608_v42  ;;  %3307 = vmatmul.mubr.bf16.gmra.mrb[120].mxu0 %v3609_v43 }
 0x117   : > { %2260 = vmatprep.mubr.bf16.mxu1 %v3610_v48  ;;  %3310 = vmatprep.mubr.bf16.mxu0 %v3612_v49 }
 0x119   : > { %v2938_v55 = vpop.f32.mrb[16].mxu1  ;;  %v2850_v56 = vpop.f32.mrb[16].mxu0 }
 0x11a   : > { %v2939_v57 = vpop.f32.mrb[17].mxu1  ;;  %v2851_v58 = vpop.f32.mrb[17].mxu0 }
 0x11b   : > { %v2940_v0 = vadd.f32 %v2939_v57, %v2938_v55  ;;  %v2941_v1 = vpop.f32.mrb[18].mxu1  ;;  %v4126_v2 = vadd.f32 %v2851_v58, %v2850_v56  ;;  %v2853_v3 = vpop.f32.mrb[18].mxu0  ;;  %v3625_v55 = vld [vmem:[%s3768_s9 + $0x40c] ss:$36 sps:$4 sm:$0xff]   ;;  %v3627_v56 = vld [vmem:[%s3768_s9 + $0x380] ss:$36 sps:$4 sm:$0xff]  }
 0x11c   : > { %v2942_v8 = vpop.f32.mrb[19].mxu1  ;;  %v2854_v9 = vpop.f32.mrb[19].mxu0 }
 0x11d   : > { %v4132_v11 = vadd.f32 %v2940_v0, %v1692_v63  ;;  %v2943_v13 = vadd.f32 %v2942_v8, %v2941_v1  ;;  %v4134_v15 = vadd.f32 %v2854_v9, %v2853_v3  ;;  %v3628_v8 = vld [vmem:[%s3768_s9 + $0x408] ss:$36 sps:$4 sm:$0xff]  }
 0x11e   : > { %2261 = vmatmul.mubr.bf16.gmra.mrb[124].mxu1 %v3613_v59  ;;  %3311 = vmatmul.mubr.bf16.gmra.mrb[124].mxu0 %v3614_v61  ;;  %v1711_v59 = vadd.f32 %v4103_v37, %v4120_v54  ;;  %v3629_v9 = vld [vmem:[%s3768_s9 + $0x3c8] ss:$36 sps:$4 sm:$0xff]   ;;  %v1716_v37 = vadd.f32 %v4109_v46, %v4120_v54 }
 0x11f   : > { %v4136_v62 = vadd.f32 %v2943_v13, %v1695_v10  ;;  %2268 = vmatprep.mubr.bf16.mxu1 %v3615_v6  ;;  %3314 = vmatprep.mubr.bf16.mxu0 %v3617_v7 }
 0x121   : > { %v2944_v16 = vpop.f32.mrb[20].mxu1  ;;  %v2856_v17 = vpop.f32.mrb[20].mxu0 }
 0x122   : > { %v2945_v18 = vpop.f32.mrb[21].mxu1  ;;  %v2857_v19 = vpop.f32.mrb[21].mxu0 }
 0x123   : > { %v2946_v24 = vadd.f32 %v2945_v18, %v2944_v16  ;;  %v2947_v25 = vpop.f32.mrb[22].mxu1  ;;  %v4142_v26 = vadd.f32 %v2857_v19, %v2856_v17  ;;  %v2859_v27 = vpop.f32.mrb[22].mxu0  ;;  %v3630_v18 = vld [vmem:[%s3768_s9 + $0x454] ss:$36 sps:$4 sm:$0xff]  }
 0x124   : > { %v2948_v32 = vpop.f32.mrb[23].mxu1  ;;  %v2860_v33 = vpop.f32.mrb[23].mxu0  ;;  %v3632_v19 = vld [vmem:[%s3768_s9 + $0x410] ss:$36 sps:$4 sm:$0xff]  }
 0x125   : > { %v4148_v35 = vadd.f32 %v2946_v24, %v1700_v5  ;;  %v2949_v38 = vadd.f32 %v2948_v32, %v2947_v25  ;;  %v4150_v39 = vadd.f32 %v2860_v33, %v2859_v27  ;;  %v1719_v5 = vadd.f32 %v4115_v53, %v4120_v54 }
 0x126   : > { %2269 = vmatmul.mubr.bf16.gmra.mrb[128].mxu1 %v3618_v22  ;;  %3315 = vmatmul.mubr.bf16.gmra.mrb[128].mxu0 %v3619_v23  ;;  %v1724_v53 = vadd.f32 %v4126_v2, %v4120_v54 }
 0x127   : > { %v4152_v14 = vadd.f32 %v2949_v38, %v1703_v34  ;;  %2276 = vmatprep.mubr.bf16.mxu1 %v3620_v29  ;;  %3318 = vmatprep.mubr.bf16.mxu0 %v3622_v31  ;;  %v3633_v34 = vld [vmem:[%s3768_s9 + $0x450] ss:$36 sps:$4 sm:$0xff]   ;;  %v3634_v38 = vld [vmem:[%s3768_s9 + $0x458] ss:$36 sps:$4 sm:$0xff]   ;;  %s2590_s9 = sshll.u32 %s4534_s16, 3 }
 0x128   : > { %s4454_s22 = scalar_lea.vmem %s4532_s3, %s2590_s9 }
 0x129   : > { %v2950_v40 = vpop.f32.mrb[24].mxu1  ;;  %v2862_v41 = vpop.f32.mrb[24].mxu0 }
 0x12a   : > { %v2951_v42 = vpop.f32.mrb[25].mxu1  ;;  %v2863_v43 = vpop.f32.mrb[25].mxu0 }
 0x12b   : > { %v2952_v48 = vadd.f32 %v2951_v42, %v2950_v40  ;;  %v2953_v49 = vpop.f32.mrb[26].mxu1  ;;  %v4158_v50 = vadd.f32 %v2863_v43, %v2862_v41  ;;  %v2865_v51 = vpop.f32.mrb[26].mxu0 }
 0x12c   : > { %v2954_v57 = vpop.f32.mrb[27].mxu1  ;;  %v2866_v58 = vpop.f32.mrb[27].mxu0 }
 0x12d   : > { %v4164_v61 = vadd.f32 %v2952_v48, %v1708_v21  ;;  %v2955_v63 = vadd.f32 %v2954_v57, %v2953_v49  ;;  %v4166_v0 = vadd.f32 %v2866_v58, %v2865_v51  ;;  %v1727_v21 = vadd.f32 %v4134_v15, %v4120_v54 }
 0x12e   : > { %2277 = vmatmul.mubr.bf16.gmra.mrb[132].mxu1 %v3623_v45  ;;  %3319 = vmatmul.mubr.bf16.gmra.mrb[132].mxu0 %v3624_v47 }
 0x12f   : > { %v4168_v30 = vadd.f32 %v2955_v63, %v1711_v59  ;;  %2284 = vmatprep.mubr.bf16.mxu1 %v3625_v55  ;;  %3322 = vmatprep.mubr.bf16.mxu0 %v3627_v56  ;;  %v1732_v59 = vadd.f32 %v4142_v26, %v4120_v54 }
 0x131   : > { %v2956_v1 = vpop.f32.mrb[28].mxu1  ;;  %v2868_v3 = vpop.f32.mrb[28].mxu0 }
 0x132   : > { %v2957_v6 = vpop.f32.mrb[29].mxu1  ;;  %v2869_v7 = vpop.f32.mrb[29].mxu0 }
 0x133   : > { %v2958_v10 = vadd.f32 %v2957_v6, %v2956_v1  ;;  %v2959_v13 = vpop.f32.mrb[30].mxu1  ;;  %v4174_v16 = vadd.f32 %v2869_v7, %v2868_v3  ;;  %v2871_v17 = vpop.f32.mrb[30].mxu0 }
 0x134   : > { %v2960_v22 = vpop.f32.mrb[31].mxu1  ;;  %v2872_v23 = vpop.f32.mrb[31].mxu0 }
 0x135   : > { %v4180_v24 = vadd.f32 %v2958_v10, %v1716_v37  ;;  %v2961_v25 = vadd.f32 %v2960_v22, %v2959_v13  ;;  %v4182_v27 = vadd.f32 %v2872_v23, %v2871_v17  ;;  %v1740_v22 = vadd.f32 %v4158_v50, %v4120_v54 }
 0x136   : > { %2285 = vmatmul.mubr.bf16.gmra.mrb[136].mxu1 %v3628_v8  ;;  %3323 = vmatmul.mubr.bf16.gmra.mrb[136].mxu0 %v3629_v9  ;;  %v1735_v8 = vadd.f32 %v4150_v39, %v4120_v54 }
 0x137   : > { %v4184_v46 = vadd.f32 %v2961_v25, %v1719_v5  ;;  %2292 = vmatprep.mubr.bf16.mxu1 %v3630_v18  ;;  %3326 = vmatprep.mubr.bf16.mxu0 %v3632_v19 }
 0x139   : > { %v2962_v29 = vpop.f32.mrb[32].mxu1  ;;  %v2874_v31 = vpop.f32.mrb[32].mxu0 }
 0x13a   : > { %v2963_v32 = vpop.f32.mrb[33].mxu1  ;;  %v2875_v33 = vpop.f32.mrb[33].mxu0 }
 0x13b   : > { %v2964_v40 = vadd.f32 %v2963_v32, %v2962_v29  ;;  %v2965_v41 = vpop.f32.mrb[34].mxu1  ;;  %v4190_v42 = vadd.f32 %v2875_v33, %v2874_v31  ;;  %v2877_v43 = vpop.f32.mrb[34].mxu0  ;;  %v1743_v32 = vadd.f32 %v4166_v0, %v4120_v54 }
 0x13c   : > { %v2966_v45 = vpop.f32.mrb[35].mxu1  ;;  %v2878_v47 = vpop.f32.mrb[35].mxu0 }
 0x13d   : > { %v4194_v48 = vadd.f32 %v2964_v40, %v1724_v53  ;;  %v2967_v49 = vadd.f32 %v2966_v45, %v2965_v41  ;;  %v2879_v51 = vadd.f32 %v2878_v47, %v2877_v43  ;;  %v1748_v45 = vadd.f32 %v4174_v16, %v4120_v54 }
 0x13e   : > { %2293 = vmatmul.mubr.bf16.gmra.mrb[140].mxu1 %v3633_v34  ;;  %3327 = vmatmul.mubr.bf16.gmra.mrb[140].mxu0 %v3634_v38 }
 0x13f   : > { %v4196_v55 = vadd.f32 %v2967_v49, %v1727_v21 }
 0x141   : > { %v2968_v56 = vpop.f32.mrb[36].mxu1  ;;  %v2880_v2 = vpop.f32.mrb[36].mxu0 }
 0x142   : > { %v2969_v57 = vpop.f32.mrb[37].mxu1  ;;  %v2881_v58 = vpop.f32.mrb[37].mxu0 }
 0x143   : > { %v2970_v63 = vadd.f32 %v2969_v57, %v2968_v56  ;;  %v2971_v1 = vpop.f32.mrb[38].mxu1  ;;  %v4200_v3 = vadd.f32 %v2881_v58, %v2880_v2  ;;  %v2883_v15 = vpop.f32.mrb[38].mxu0  ;;  %v1751_v57 = vadd.f32 %v4182_v27, %v4120_v54  ;;  %v1759_v27 = vadd.f32 %v2879_v51, %v4120_v54 }
 0x144   : > { %v2972_v6 = vpop.f32.mrb[39].mxu1  ;;  %v2884_v7 = vpop.f32.mrb[39].mxu0 }
 0x145   : > { %v4204_v9 = vadd.f32 %v2970_v63, %v1732_v59  ;;  %v2973_v37 = vadd.f32 %v2972_v6, %v2971_v1  ;;  %v2885_v10 = vadd.f32 %v2884_v7, %v2883_v15  ;;  %v1764_v51 = vadd.f32 %v4200_v3, %v4120_v54 }
 0x147   : > { %v4206_v13 = vadd.f32 %v2973_v37, %v1735_v8  ;;  %v1756_v8 = vadd.f32 %v4190_v42, %v4120_v54 }
 0x149   : > { %v2974_v17 = vpop.f32.mrb[40].mxu1  ;;  %v2886_v18 = vpop.f32.mrb[40].mxu0 }
 0x14a   : > { %v2975_v19 = vpop.f32.mrb[41].mxu1  ;;  %v2887_v26 = vpop.f32.mrb[41].mxu0 }
 0x14b   : > { %v2976_v23 = vadd.f32 %v2975_v19, %v2974_v17  ;;  %v2977_v5 = vpop.f32.mrb[42].mxu1  ;;  %v4210_v25 = vadd.f32 %v2887_v26, %v2886_v18  ;;  %v2889_v29 = vpop.f32.mrb[42].mxu0 }
 0x14c   : > { %v2978_v31 = vpop.f32.mrb[43].mxu1  ;;  %v2890_v39 = vpop.f32.mrb[43].mxu0 }
 0x14d   : > { %v4214_v33 = vadd.f32 %v2976_v23, %v1740_v22  ;;  %v2979_v34 = vadd.f32 %v2978_v31, %v2977_v5  ;;  %v4216_v38 = vadd.f32 %v2890_v39, %v2889_v29 }
 0x14f   : > { %v4218_v53 = vadd.f32 %v2979_v34, %v1743_v32 }
 0x151   : > { %v2980_v40 = vpop.f32.mrb[44].mxu1  ;;  %v2892_v41 = vpop.f32.mrb[44].mxu0 }
 0x152   : > { %v2981_v50 = vpop.f32.mrb[45].mxu1  ;;  %v2893_v43 = vpop.f32.mrb[45].mxu0 }
 0x153   : > { %v2982_v47 = vadd.f32 %v2981_v50, %v2980_v40  ;;  %v2983_v21 = vpop.f32.mrb[46].mxu1  ;;  %v4222_v49 = vadd.f32 %v2893_v43, %v2892_v41  ;;  %v2895_v56 = vpop.f32.mrb[46].mxu0 }
 0x154   : > { %v2984_v0 = vpop.f32.mrb[47].mxu1  ;;  %v2896_v2 = vpop.f32.mrb[47].mxu0 }
 0x155   : > { %v4226_v58 = vadd.f32 %v2982_v47, %v1748_v45  ;;  %v2985_v59 = vadd.f32 %v2984_v0, %v2983_v21  ;;  %v4228_v63 = vadd.f32 %v2896_v2, %v2895_v56 }
 0x157   : > { %v4230_v1 = vadd.f32 %v2985_v59, %v1751_v57 }
 0x159   : > { %v2986_v15 = vpop.f32.mrb[48].mxu1  ;;  %v3050_v6 = vpop.f32.mrb[48].mxu0 }
 0x15a   : > { %v2987_v16 = vpop.f32.mrb[49].mxu1  ;;  %v3051_v7 = vpop.f32.mrb[49].mxu0 }
 0x15b   : > { %v2988_v37 = vadd.f32 %v2987_v16, %v2986_v15  ;;  %v3052_v17 = vadd.f32 %v3051_v7, %v3050_v6  ;;  %v2989_v18 = vpop.f32.mrb[50].mxu1  ;;  %v3053_v19 = vpop.f32.mrb[50].mxu0 }
 0x15c   : > { %v2990_v26 = vpop.f32.mrb[51].mxu1  ;;  %v3054_v22 = vpop.f32.mrb[51].mxu0 }
 0x15d   : > { %v4235_v23 = vadd.f32 %v2988_v37, %v1756_v8  ;;  %v4238_v5 = vadd.f32 %v3052_v17, %v4132_v11  ;;  %v2991_v29 = vadd.f32 %v2990_v26, %v2989_v18  ;;  %v3055_v31 = vadd.f32 %v3054_v22, %v3053_v19 }
 0x15e   : > { %v1767_v11 = vadd.f32 %v2885_v10, %v4120_v54  ;;  %v1772_v10 = vadd.f32 %v4210_v25, %v4120_v54 }
 0x15f   : > { %v4240_v39 = vadd.f32 %v2991_v29, %v1759_v27  ;;  %v4243_v32 = vadd.f32 %v3055_v31, %v4136_v62 }
 0x161   : > { %v2992_v42 = vpop.f32.mrb[52].mxu1  ;;  %v3056_v34 = vpop.f32.mrb[52].mxu0 }
 0x162   : > { %v2993_v40 = vpop.f32.mrb[53].mxu1  ;;  %v3057_v41 = vpop.f32.mrb[53].mxu0 }
 0x163   : > { %v2994_v50 = vadd.f32 %v2993_v40, %v2992_v42  ;;  %v3058_v43 = vadd.f32 %v3057_v41, %v3056_v34  ;;  %v2995_v45 = vpop.f32.mrb[54].mxu1  ;;  %v3059_v47 = vpop.f32.mrb[54].mxu0 }
 0x164   : > { %v2996_v21 = vpop.f32.mrb[55].mxu1  ;;  %v3060_v56 = vpop.f32.mrb[55].mxu0 }
 0x165   : > { %v4248_v0 = vadd.f32 %v2994_v50, %v1764_v51  ;;  %v4251_v62 = vadd.f32 %v3058_v43, %v4148_v35  ;;  %v2997_v2 = vadd.f32 %v2996_v21, %v2995_v45  ;;  %v3061_v57 = vadd.f32 %v3060_v56, %v3059_v47 }
 0x166   : > { %v1775_v35 = vadd.f32 %v4216_v38, %v4120_v54  ;;  %v1780_v38 = vadd.f32 %v4222_v49, %v4120_v54 }
 0x167   : > { %v4253_v59 = vadd.f32 %v2997_v2, %v1767_v11  ;;  %v4256_v15 = vadd.f32 %v3061_v57, %v4152_v14 }
 0x169   : > { %v2998_v3 = vpop.f32.mrb[56].mxu1  ;;  %v3062_v6 = vpop.f32.mrb[56].mxu0 }
 0x16a   : > { %v2999_v16 = vpop.f32.mrb[57].mxu1  ;;  %v3063_v7 = vpop.f32.mrb[57].mxu0 }
 0x16b   : > { %v3000_v8 = vadd.f32 %v2999_v16, %v2998_v3  ;;  %v3064_v37 = vadd.f32 %v3063_v7, %v3062_v6  ;;  %v3001_v17 = vpop.f32.mrb[58].mxu1  ;;  %v3065_v18 = vpop.f32.mrb[58].mxu0 }
 0x16c   : > { %v3002_v19 = vpop.f32.mrb[59].mxu1  ;;  %v3066_v27 = vpop.f32.mrb[59].mxu0 }
 0x16d   : > { %v4262_v26 = vadd.f32 %v3000_v8, %v1772_v10  ;;  %v4265_v14 = vadd.f32 %v3064_v37, %v4164_v61  ;;  %v3003_v22 = vadd.f32 %v3002_v19, %v3001_v17  ;;  %v3067_v29 = vadd.f32 %v3066_v27, %v3065_v18 }
 0x16e   : > { %v1783_v61 = vadd.f32 %v4228_v63, %v4120_v54  ;;  %v1788_v63 = vadd.f32 %v4071_v60, %v4120_v54 }
 0x16f   : > { %v4267_v31 = vadd.f32 %v3003_v22, %v1775_v35  ;;  %v4270_v25 = vadd.f32 %v3067_v29, %v4168_v30 }
 0x171   : > { %v3004_v42 = vpop.f32.mrb[60].mxu1  ;;  %v3068_v34 = vpop.f32.mrb[60].mxu0 }
 0x172   : > { %v3005_v40 = vpop.f32.mrb[61].mxu1  ;;  %v3069_v41 = vpop.f32.mrb[61].mxu0 }
 0x173   : > { %v3006_v51 = vadd.f32 %v3005_v40, %v3004_v42  ;;  %v3070_v50 = vadd.f32 %v3069_v41, %v3068_v34  ;;  %v3007_v43 = vpop.f32.mrb[62].mxu1  ;;  %v3071_v45 = vpop.f32.mrb[62].mxu0 }
 0x174   : > { %v3008_v47 = vpop.f32.mrb[63].mxu1  ;;  %v3072_v11 = vpop.f32.mrb[63].mxu0 }
 0x175   : > { %v4276_v21 = vadd.f32 %v3006_v51, %v1780_v38  ;;  %v4279_v30 = vadd.f32 %v3070_v50, %v4180_v24  ;;  %v3009_v56 = vadd.f32 %v3008_v47, %v3007_v43  ;;  %v3073_v2 = vadd.f32 %v3072_v11, %v3071_v45 }
 0x176   : > { %v1791_v24 = vadd.f32 %v4077_v4, %v4120_v54  ;;  %v1796_v4 = vadd.f32 %v4083_v12, %v4120_v54 }
 0x177   : > { %v4281_v57 = vadd.f32 %v3009_v56, %v1783_v61  ;;  %v4284_v49 = vadd.f32 %v3073_v2, %v4184_v46 }
 0x179   : > { %v3010_v3 = vpop.f32.mrb[64].mxu1  ;;  %v3074_v6 = vpop.f32.mrb[64].mxu0 }
 0x17a   : > { %v3011_v16 = vpop.f32.mrb[65].mxu1  ;;  %v3075_v7 = vpop.f32.mrb[65].mxu0 }
 0x17b   : > { %v3012_v10 = vadd.f32 %v3011_v16, %v3010_v3  ;;  %v3076_v8 = vadd.f32 %v3075_v7, %v3074_v6  ;;  %v3013_v37 = vpop.f32.mrb[66].mxu1  ;;  %v3077_v17 = vpop.f32.mrb[66].mxu0 }
 0x17c   : > { %v3014_v18 = vpop.f32.mrb[67].mxu1  ;;  %v3078_v35 = vpop.f32.mrb[67].mxu0 }
 0x17d   : > { %v4290_v19 = vadd.f32 %v3012_v10, %v1788_v63  ;;  %v4293_v46 = vadd.f32 %v3076_v8, %v4194_v48  ;;  %v3015_v27 = vadd.f32 %v3014_v18, %v3013_v37  ;;  %v3079_v22 = vadd.f32 %v3078_v35, %v3077_v17 }
 0x17e   : > { %v1799_v48 = vadd.f32 %v4089_v20, %v4120_v54  ;;  %v1804_v20 = vadd.f32 %v4095_v28, %v4120_v54 }
 0x17f   : > { %v4295_v29 = vadd.f32 %v3015_v27, %v1791_v24  ;;  %v4298_v60 = vadd.f32 %v3079_v22, %v4196_v55 }
 0x181   : > { %v3016_v42 = vpop.f32.mrb[68].mxu1  ;;  %v3080_v34 = vpop.f32.mrb[68].mxu0 }
 0x182   : > { %v3017_v40 = vpop.f32.mrb[69].mxu1  ;;  %v3081_v41 = vpop.f32.mrb[69].mxu0 }
 0x183   : > { %v3018_v38 = vadd.f32 %v3017_v40, %v3016_v42  ;;  %v3082_v51 = vadd.f32 %v3081_v41, %v3080_v34  ;;  %v3019_v50 = vpop.f32.mrb[70].mxu1  ;;  %v3083_v43 = vpop.f32.mrb[70].mxu0 }
 0x184   : > { %v3020_v45 = vpop.f32.mrb[71].mxu1  ;;  %v3084_v61 = vpop.f32.mrb[71].mxu0 }
 0x185   : > { %v4304_v47 = vadd.f32 %v3018_v38, %v1796_v4  ;;  %v4307_v55 = vadd.f32 %v3082_v51, %v4204_v9  ;;  %v3021_v11 = vadd.f32 %v3020_v45, %v3019_v50  ;;  %v3085_v56 = vadd.f32 %v3084_v61, %v3083_v43 }
 0x186   : > { %v1807_v9 = vadd.f32 %v4101_v36, %v4120_v54  ;;  %v1812_v36 = vadd.f32 %v4107_v44, %v4120_v54 }
 0x187   : > { %v4309_v2 = vadd.f32 %v3021_v11, %v1799_v48  ;;  %v4312_v12 = vadd.f32 %v3085_v56, %v4206_v13 }
 0x189   : > { %v3022_v3 = vpop.f32.mrb[72].mxu1  ;;  %v3086_v6 = vpop.f32.mrb[72].mxu0 }
 0x18a   : > { %v3023_v16 = vpop.f32.mrb[73].mxu1  ;;  %v3087_v7 = vpop.f32.mrb[73].mxu0 }
 0x18b   : > { %v3024_v63 = vadd.f32 %v3023_v16, %v3022_v3  ;;  %v3088_v10 = vadd.f32 %v3087_v7, %v3086_v6  ;;  %v3025_v8 = vpop.f32.mrb[74].mxu1  ;;  %v3089_v37 = vpop.f32.mrb[74].mxu0 }
 0x18c   : > { %v3026_v17 = vpop.f32.mrb[75].mxu1  ;;  %v3090_v24 = vpop.f32.mrb[75].mxu0 }
 0x18d   : > { %v4318_v18 = vadd.f32 %v3024_v63, %v1804_v20  ;;  %v4321_v13 = vadd.f32 %v3088_v10, %v4214_v33  ;;  %v3027_v35 = vadd.f32 %v3026_v17, %v3025_v8  ;;  %v3091_v27 = vadd.f32 %v3090_v24, %v3089_v37 }
 0x18e   : > { %v1815_v33 = vadd.f32 %v4113_v52, %v4120_v54 }
 0x18f   : > { %v4323_v22 = vadd.f32 %v3027_v35, %v1807_v9  ;;  %v4326_v28 = vadd.f32 %v3091_v27, %v4218_v53 }
 0x191   : > { %v3028_v42 = vpop.f32.mrb[76].mxu1  ;;  %v3092_v34 = vpop.f32.mrb[76].mxu0 }
 0x192   : > { %v3029_v40 = vpop.f32.mrb[77].mxu1  ;;  %v3093_v41 = vpop.f32.mrb[77].mxu0 }
 0x193   : > { %v3030_v4 = vadd.f32 %v3029_v40, %v3028_v42  ;;  %v3094_v38 = vadd.f32 %v3093_v41, %v3092_v34  ;;  %v3031_v51 = vpop.f32.mrb[78].mxu1  ;;  %v3095_v50 = vpop.f32.mrb[78].mxu0 }
 0x194   : > { %v3032_v43 = vpop.f32.mrb[79].mxu1  ;;  %v3096_v48 = vpop.f32.mrb[79].mxu0 }
 0x195   : > { %v4332_v45 = vadd.f32 %v3030_v4, %v1812_v36  ;;  %v4335_v53 = vadd.f32 %v3094_v38, %v4226_v58  ;;  %v3033_v61 = vadd.f32 %v3032_v43, %v3031_v51  ;;  %v3097_v11 = vadd.f32 %v3096_v48, %v3095_v50 }
 0x197   : > { %v4337_v56 = vadd.f32 %v3033_v61, %v1815_v33  ;;  %v4340_v44 = vadd.f32 %v3097_v11, %v4230_v1 }
 0x199   : > { %v3098_v3 = vpop.f32.mrb[80].mxu0  ;;  %v3162_v6 = vpop.f32.mrb[80].mxu1 }
 0x19a   : > { %v3099_v16 = vpop.f32.mrb[81].mxu0  ;;  %v3163_v7 = vpop.f32.mrb[81].mxu1 }
 0x19b   : > { %v3100_v20 = vadd.f32 %v3099_v16, %v3098_v3  ;;  %v3164_v52 = vadd.f32 %v3163_v7, %v3162_v6  ;;  %v3101_v54 = vpop.f32.mrb[82].mxu0  ;;  %v3165_v63 = vpop.f32.mrb[82].mxu1 }
 0x19c   : > { %v3102_v10 = vpop.f32.mrb[83].mxu0  ;;  %v3166_v8 = vpop.f32.mrb[83].mxu1 }
 0x19d   : > { %v4343_v58 = vadd.f32 %v3100_v20, %v4235_v23  ;;  %v3103_v37 = vadd.f32 %v3102_v10, %v3101_v54  ;;  %v3167_v9 = vadd.f32 %v3166_v8, %v3165_v63  ;;  %v4346_v17 = vadd.f32 %v3164_v52, %v4238_v5 }
 0x19f   : > { %v4349_v1 = vadd.f32 %v3103_v37, %v4240_v39  ;;  %v4352_v24 = vadd.f32 %v3167_v9, %v4243_v32 }
 0x1a1   : > { %v3104_v35 = vpop.f32.mrb[84].mxu0  ;;  %v3168_v27 = vpop.f32.mrb[84].mxu1 }
 0x1a2   : > { %v3105_v42 = vpop.f32.mrb[85].mxu0  ;;  %v3169_v34 = vpop.f32.mrb[85].mxu1 }
 0x1a3   : > { %v3106_v40 = vadd.f32 %v3105_v42, %v3104_v35  ;;  %v3170_v41 = vadd.f32 %v3169_v34, %v3168_v27  ;;  %v3107_v36 = vpop.f32.mrb[86].mxu0  ;;  %v3171_v23 = vpop.f32.mrb[86].mxu1 }
 0x1a4   : > { %v3108_v4 = vpop.f32.mrb[87].mxu0  ;;  %v3172_v38 = vpop.f32.mrb[87].mxu1 }
 0x1a5   : > { %v4355_v51 = vadd.f32 %v3106_v40, %v4248_v0  ;;  %v3109_v5 = vadd.f32 %v3108_v4, %v3107_v36  ;;  %v3173_v50 = vadd.f32 %v3172_v38, %v3171_v23  ;;  %v4358_v39 = vadd.f32 %v3170_v41, %v4251_v62 }
 0x1a7   : > { %v4361_v32 = vadd.f32 %v3109_v5, %v4253_v59  ;;  %v4364_v33 = vadd.f32 %v3173_v50, %v4256_v15 }
 0x1a9   : > { %v3110_v43 = vpop.f32.mrb[88].mxu0  ;;  %v3174_v48 = vpop.f32.mrb[88].mxu1 }
 0x1aa   : > { %v3111_v61 = vpop.f32.mrb[89].mxu0  ;;  %v3175_v11 = vpop.f32.mrb[89].mxu1 }
 0x1ab   : > { %v3112_v3 = vadd.f32 %v3111_v61, %v3110_v43  ;;  %v3176_v6 = vadd.f32 %v3175_v11, %v3174_v48  ;;  %v3113_v16 = vpop.f32.mrb[90].mxu0  ;;  %v3177_v0 = vpop.f32.mrb[90].mxu1 }
 0x1ac   : > { %v3114_v7 = vpop.f32.mrb[91].mxu0  ;;  %v3178_v20 = vpop.f32.mrb[91].mxu1 }
 0x1ad   : > { %v4367_v52 = vadd.f32 %v3112_v3, %v4262_v26  ;;  %v3115_v62 = vadd.f32 %v3114_v7, %v3113_v16  ;;  %v3179_v54 = vadd.f32 %v3178_v20, %v3177_v0  ;;  %v4370_v59 = vadd.f32 %v3176_v6, %v4265_v14 }
 0x1af   : > { %v4373_v15 = vadd.f32 %v3115_v62, %v4267_v31  ;;  %v4376_v63 = vadd.f32 %v3179_v54, %v4270_v25 }
 0x1b1   : > { %v3116_v10 = vpop.f32.mrb[92].mxu0  ;;  %v3180_v8 = vpop.f32.mrb[92].mxu1 }
 0x1b2   : > { %v3117_v37 = vpop.f32.mrb[93].mxu0  ;;  %v3181_v9 = vpop.f32.mrb[93].mxu1 }
 0x1b3   : > { %v3118_v35 = vadd.f32 %v3117_v37, %v3116_v10  ;;  %v3182_v27 = vadd.f32 %v3181_v9, %v3180_v8  ;;  %v3119_v42 = vpop.f32.mrb[94].mxu0  ;;  %v3183_v26 = vpop.f32.mrb[94].mxu1 }
 0x1b4   : > { %v3120_v34 = vpop.f32.mrb[95].mxu0  ;;  %v3184_v40 = vpop.f32.mrb[95].mxu1 }
 0x1b5   : > { %v4379_v41 = vadd.f32 %v3118_v35, %v4276_v21  ;;  %v3121_v14 = vadd.f32 %v3120_v34, %v3119_v42  ;;  %v3185_v36 = vadd.f32 %v3184_v40, %v3183_v26  ;;  %v4382_v31 = vadd.f32 %v3182_v27, %v4279_v30 }
 0x1b7   : > { %v4385_v25 = vadd.f32 %v3121_v14, %v4281_v57  ;;  %v4388_v23 = vadd.f32 %v3185_v36, %v4284_v49 }
 0x1b9   : > { %v3122_v4 = vpop.f32.mrb[96].mxu0  ;;  %v3186_v38 = vpop.f32.mrb[96].mxu1 }
 0x1ba   : > { %v3123_v5 = vpop.f32.mrb[97].mxu0  ;;  %v3187_v50 = vpop.f32.mrb[97].mxu1 }
 0x1bb   : > { %v3124_v43 = vadd.f32 %v3123_v5, %v3122_v4  ;;  %v3188_v48 = vadd.f32 %v3187_v50, %v3186_v38  ;;  %v3125_v61 = vpop.f32.mrb[98].mxu0  ;;  %v3189_v21 = vpop.f32.mrb[98].mxu1 }
 0x1bc   : > { %v3126_v11 = vpop.f32.mrb[99].mxu0  ;;  %v3190_v3 = vpop.f32.mrb[99].mxu1 }
 0x1bd   : > { %v4391_v6 = vadd.f32 %v3124_v43, %v4290_v19  ;;  %v3127_v30 = vadd.f32 %v3126_v11, %v3125_v61  ;;  %v3191_v16 = vadd.f32 %v3190_v3, %v3189_v21  ;;  %v4394_v57 = vadd.f32 %v3188_v48, %v4293_v46 }
 0x1bf   : > { %v4397_v49 = vadd.f32 %v3127_v30, %v4295_v29  ;;  %v4400_v0 = vadd.f32 %v3191_v16, %v4298_v60 }
 0x1c1   : > { %v3128_v7 = vpop.f32.mrb[100].mxu0  ;;  %v3192_v20 = vpop.f32.mrb[100].mxu1 }
 0x1c2   : > { %v3129_v62 = vpop.f32.mrb[101].mxu0  ;;  %v3193_v54 = vpop.f32.mrb[101].mxu1 }
 0x1c3   : > { %v3130_v10 = vadd.f32 %v3129_v62, %v3128_v7  ;;  %v3194_v8 = vadd.f32 %v3193_v54, %v3192_v20  ;;  %v3131_v37 = vpop.f32.mrb[102].mxu0  ;;  %v3195_v19 = vpop.f32.mrb[102].mxu1 }
 0x1c4   : > { %v3132_v9 = vpop.f32.mrb[103].mxu0  ;;  %v3196_v35 = vpop.f32.mrb[103].mxu1 }
 0x1c5   : > { %v4403_v27 = vadd.f32 %v3130_v10, %v4304_v47  ;;  %v3133_v46 = vadd.f32 %v3132_v9, %v3131_v37  ;;  %v3197_v42 = vadd.f32 %v3196_v35, %v3195_v19  ;;  %v4406_v29 = vadd.f32 %v3194_v8, %v4307_v55 }
 0x1c7   : > { %v4409_v60 = vadd.f32 %v3133_v46, %v4309_v2  ;;  %v4412_v26 = vadd.f32 %v3197_v42, %v4312_v12 }
 0x1c9   : > { %v3134_v34 = vpop.f32.mrb[104].mxu0  ;;  %v3198_v40 = vpop.f32.mrb[104].mxu1 }
 0x1ca   : > { %v3135_v14 = vpop.f32.mrb[105].mxu0  ;;  %v3199_v36 = vpop.f32.mrb[105].mxu1 }
 0x1cb   : > { %v3136_v4 = vadd.f32 %v3135_v14, %v3134_v34  ;;  %v3200_v38 = vadd.f32 %v3199_v36, %v3198_v40  ;;  %v3137_v5 = vpop.f32.mrb[106].mxu0  ;;  %v3201_v47 = vpop.f32.mrb[106].mxu1 }
 0x1cc   : > { %v3138_v50 = vpop.f32.mrb[107].mxu0  ;;  %v3202_v43 = vpop.f32.mrb[107].mxu1 }
 0x1cd   : > { %v4415_v48 = vadd.f32 %v3136_v4, %v4318_v18  ;;  %v3139_v55 = vadd.f32 %v3138_v50, %v3137_v5  ;;  %v3203_v61 = vadd.f32 %v3202_v43, %v3201_v47  ;;  %v4418_v2 = vadd.f32 %v3200_v38, %v4321_v13 }
 0x1cf   : > { %v4421_v12 = vadd.f32 %v3139_v55, %v4323_v22  ;;  %v4424_v21 = vadd.f32 %v3203_v61, %v4326_v28 }
 0x1d1   : > { %v3140_v11 = vpop.f32.mrb[108].mxu0  ;;  %v3204_v3 = vpop.f32.mrb[108].mxu1 }
 0x1d2   : > { %v3141_v30 = vpop.f32.mrb[109].mxu0  ;;  %v3205_v16 = vpop.f32.mrb[109].mxu1 }
 0x1d3   : > { %v3142_v7 = vadd.f32 %v3141_v30, %v3140_v11  ;;  %v3206_v20 = vadd.f32 %v3205_v16, %v3204_v3  ;;  %v3143_v62 = vpop.f32.mrb[110].mxu0  ;;  %v3207_v18 = vpop.f32.mrb[110].mxu1 }
 0x1d4   : > { %v3144_v54 = vpop.f32.mrb[111].mxu0  ;;  %v3208_v10 = vpop.f32.mrb[111].mxu1 }
 0x1d5   : > { %v4427_v8 = vadd.f32 %v3142_v7, %v4332_v45  ;;  %v3145_v13 = vadd.f32 %v3144_v54, %v3143_v62  ;;  %v3209_v37 = vadd.f32 %v3208_v10, %v3207_v18  ;;  %v4430_v22 = vadd.f32 %v3206_v20, %v4335_v53 }
 0x1d7   : > { %v4433_v28 = vadd.f32 %v3145_v13, %v4337_v56  ;;  %v4436_v19 = vadd.f32 %v3209_v37, %v4340_v44 }
 0x1d9   : > { %v3210_v9 = vpop.f32.mrb[112].mxu1  ;;  %v3300_v35 = vpop.f32.mrb[112].mxu0 }
 0x1da   : > { %v2344_v46 = vadd.f32 %v3300_v35, %v4358_v39  ;;  %v3211_v42 = vpop.f32.mrb[113].mxu1  ;;  %v2335_v34 = vpop.f32.mrb[113].mxu0 }
 0x1db   : > { %v3212_v45 = vadd.f32 %v3211_v42, %v3210_v9  ;;  %v2336_v40 = vadd.f32 %v2335_v34, %v4346_v17  ;;  %v3213_v14 = vpop.f32.mrb[114].mxu1  ;;  %v3301_v36 = vpop.f32.mrb[114].mxu0 }
 0x1dc   : > { %3635 = vtanh.f32 %v2344_v46  ;;  %v2347_v53 = vadd.f32 %v3301_v36, %v4364_v33  ;;  %v3214_v56 = vpop.f32.mrb[115].mxu1  ;;  %v2338_v4 = vpop.f32.mrb[115].mxu0 }
 0x1dd   : > { %3637 = vtanh.f32 %v2336_v40  ;;  %v3215_v44 = vadd.f32 %v3214_v56, %v3213_v14  ;;  %v2339_v38 = vadd.f32 %v2338_v4, %v4352_v24  ;;  %v4443_v5 = vadd.f32 %v3212_v45, %v4343_v58 }
 0x1de   : > { %3639 = vtanh.f32 %v2347_v53 }
 0x1df   : > { %3641 = vtanh.f32 %v2339_v38  ;;  %v4446_v39 = vadd.f32 %v3215_v44, %v4349_v1 }
 0x1e1   : > { %v3216_v17 = vpop.f32.mrb[116].mxu1  ;;  %v3304_v47 = vpop.f32.mrb[116].mxu0 }
 0x1e2   : > { %v2360_v50 = vadd.f32 %v3304_v47, %v4382_v31  ;;  %v3217_v33 = vpop.f32.mrb[117].mxu1  ;;  %v2351_v43 = vpop.f32.mrb[117].mxu0 }
 0x1e3   : > { %v3218_v55 = vadd.f32 %v3217_v33, %v3216_v17  ;;  %v2352_v61 = vadd.f32 %v2351_v43, %v4370_v59  ;;  %v3219_v11 = vpop.f32.mrb[118].mxu1  ;;  %v3305_v24 = vpop.f32.mrb[118].mxu0 }
 0x1e4   : > { %3643 = vtanh.f32 %v2360_v50  ;;  %v2363_v58 = vadd.f32 %v3305_v24, %v4388_v23  ;;  %v3220_v1 = vpop.f32.mrb[119].mxu1  ;;  %v2354_v31 = vpop.f32.mrb[119].mxu0 }
 0x1e5   : > { %3645 = vtanh.f32 %v2352_v61  ;;  %v3221_v3 = vadd.f32 %v3220_v1, %v3219_v11  ;;  %v2355_v59 = vadd.f32 %v2354_v31, %v4376_v63  ;;  %v4459_v30 = vadd.f32 %v3218_v55, %v4355_v51 }
 0x1e6   : > { %v3636_v16 = vpop.eup %3635  ;;  %3647 = vtanh.f32 %v2363_v58 }
 0x1e7   : > { %v3638_v7 = vpop.eup %3637  ;;  %2496 = vst [vmem:[%s4454_s22 + $0x10] sm:$0xff] %v3636_v16  ;;  %3649 = vtanh.f32 %v2355_v59  ;;  %v4463_v20 = vadd.f32 %v3221_v3, %v4361_v32 }
 0x1e8   : > { %v3640_v23 = vpop.eup %3639  ;;  %2494 = vst [vmem:[%s4454_s22] sm:$0xff] %v3638_v7 }
 0x1e9   : > { %v3642_v62 = vpop.eup %3641  ;;  %2497 = vst [vmem:[%s4454_s22 + $0x18] sm:$0xff] %v3640_v23  ;;  %v3222_v18 = vpop.f32.mrb[120].mxu1 }
 0x1ea   : > { %v3308_v54 = vpop.f32.mrb[120].mxu0  ;;  %2495 = vst [vmem:[%s4454_s22 + $0x8] sm:$0xff] %v3642_v62  ;;  %v3223_v10 = vpop.f32.mrb[121].mxu1 }
 0x1eb   : > { %v2376_v63 = vadd.f32 %v3308_v54, %v4406_v29  ;;  %v2367_v51 = vpop.f32.mrb[121].mxu0  ;;  %v3224_v13 = vadd.f32 %v3223_v10, %v3222_v18  ;;  %v3225_v9 = vpop.f32.mrb[122].mxu1 }
 0x1ec   : > { %v2368_v37 = vadd.f32 %v2367_v51, %v4394_v57  ;;  %v3309_v35 = vpop.f32.mrb[122].mxu0  ;;  %v3226_v46 = vpop.f32.mrb[123].mxu1 }
 0x1ed   : > { %3651 = vtanh.f32 %v2376_v63  ;;  %v2379_v32 = vadd.f32 %v3309_v35, %v4412_v26  ;;  %v2370_v42 = vpop.f32.mrb[123].mxu0  ;;  %v3227_v34 = vadd.f32 %v3226_v46, %v3225_v9  ;;  %v4473_v45 = vadd.f32 %v3224_v13, %v4367_v52 }
 0x1ee   : > { %3653 = vtanh.f32 %v2368_v37  ;;  %v2371_v29 = vadd.f32 %v2370_v42, %v4400_v0  ;;  %v3644_v40 = vpop.eup %3643 }
 0x1ef   : > { %3655 = vtanh.f32 %v2379_v32  ;;  %v3646_v57 = vpop.eup %3645  ;;  %2500 = vst [vmem:[%s4454_s22 + $0x30] sm:$0xff] %v3644_v40  ;;  %v4477_v14 = vadd.f32 %v3227_v34, %v4373_v15 }
 0x1f0   : > { %3657 = vtanh.f32 %v2371_v29  ;;  %v3648_v26 = vpop.eup %3647  ;;  %2498 = vst [vmem:[%s4454_s22 + $0x20] sm:$0xff] %v3646_v57 }
 0x1f1   : > { %v3650_v36 = vpop.eup %3649  ;;  %2501 = vst [vmem:[%s4454_s22 + $0x38] sm:$0xff] %v3648_v26  ;;  %v3228_v53 = vpop.f32.mrb[124].mxu1 }
 0x1f2   : > { %v3312_v56 = vpop.f32.mrb[124].mxu0  ;;  %2499 = vst [vmem:[%s4454_s22 + $0x28] sm:$0xff] %v3650_v36  ;;  %v3229_v4 = vpop.f32.mrb[125].mxu1 }
 0x1f3   : > { %v2392_v0 = vadd.f32 %v3312_v56, %v4430_v22  ;;  %v2383_v52 = vpop.f32.mrb[125].mxu0  ;;  %v3230_v44 = vadd.f32 %v3229_v4, %v3228_v53  ;;  %v3231_v17 = vpop.f32.mrb[126].mxu1 }
 0x1f4   : > { %v2384_v38 = vadd.f32 %v2383_v52, %v4418_v2  ;;  %v3313_v47 = vpop.f32.mrb[126].mxu0  ;;  %v3232_v50 = vpop.f32.mrb[127].mxu1 }
 0x1f5   : > { %3659 = vtanh.f32 %v2392_v0  ;;  %v2395_v15 = vadd.f32 %v3313_v47, %v4436_v19  ;;  %v2386_v33 = vpop.f32.mrb[127].mxu0  ;;  %v3233_v43 = vadd.f32 %v3232_v50, %v3231_v17  ;;  %v2263_v55 = vadd.f32 %v3230_v44, %v4379_v41 }
 0x1f6   : > { %3661 = vtanh.f32 %v2384_v38  ;;  %v2387_v22 = vadd.f32 %v2386_v33, %v4424_v21 }
 0x1f7   : > { %v3652_v61 = vpop.eup %3651  ;;  %3663 = vtanh.f32 %v2395_v15  ;;  %v2266_v2 = vadd.f32 %v3233_v43, %v4385_v25 }
 0x1f8   : > { %v3654_v11 = vpop.eup %3653  ;;  %2504 = vst [vmem:[%s4454_s22 + $0x50] sm:$0xff] %v3652_v61  ;;  %3665 = vtanh.f32 %v2387_v22 }
 0x1f9   : > { %v3656_v24 = vpop.eup %3655  ;;  %2502 = vst [vmem:[%s4454_s22 + $0x40] sm:$0xff] %v3654_v11  ;;  %v3234_v58 = vpop.f32.mrb[128].mxu1 }
 0x1fa   : > { %v3658_v19 = vpop.eup %3657  ;;  %2505 = vst [vmem:[%s4454_s22 + $0x58] sm:$0xff] %v3656_v24  ;;  %v3316_v1 = vpop.f32.mrb[128].mxu0 }
 0x1fb   : > { %2503 = vst [vmem:[%s4454_s22 + $0x48] sm:$0xff] %v3658_v19  ;;  %v2408_v31 = vadd.f32 %v3316_v1, %v4459_v30  ;;  %v3235_v3 = vpop.f32.mrb[129].mxu1  ;;  %v2399_v21 = vpop.f32.mrb[129].mxu0 }
 0x1fc   : > { %v3236_v41 = vadd.f32 %v3235_v3, %v3234_v58  ;;  %v2400_v59 = vadd.f32 %v2399_v21, %v4443_v5  ;;  %v3237_v16 = vpop.f32.mrb[130].mxu1  ;;  %v3317_v7 = vpop.f32.mrb[130].mxu0 }
 0x1fd   : > { %3667 = vtanh.f32 %v2408_v31  ;;  %v2411_v25 = vadd.f32 %v3317_v7, %v4463_v20  ;;  %v3238_v23 = vpop.f32.mrb[131].mxu1  ;;  %v2402_v62 = vpop.f32.mrb[131].mxu0 }
 0x1fe   : > { %3669 = vtanh.f32 %v2400_v59  ;;  %v3239_v18 = vadd.f32 %v3238_v23, %v3237_v16  ;;  %v2403_v30 = vadd.f32 %v2402_v62, %v4446_v39  ;;  %v2271_v54 = vadd.f32 %v3236_v41, %v4391_v6 }
 0x1ff   : > { %v3660_v63 = vpop.eup %3659  ;;  %3671 = vtanh.f32 %v2411_v25 }
 0x200   : > { %v3662_v10 = vpop.eup %3661  ;;  %2508 = vst [vmem:[%s4454_s22 + $0x70] sm:$0xff] %v3660_v63  ;;  %3673 = vtanh.f32 %v2403_v30  ;;  %v2274_v5 = vadd.f32 %v3239_v18, %v4397_v49 }
 0x201   : > { %v3664_v51 = vpop.eup %3663  ;;  %2506 = vst [vmem:[%s4454_s22 + $0x60] sm:$0xff] %v3662_v10  ;;  %v3240_v13 = vpop.f32.mrb[132].mxu1 }
 0x202   : > { %v3666_v20 = vpop.eup %3665  ;;  %2509 = vst [vmem:[%s4454_s22 + $0x78] sm:$0xff] %v3664_v51  ;;  %v3320_v37 = vpop.f32.mrb[132].mxu0 }
 0x203   : > { %2507 = vst [vmem:[%s4454_s22 + $0x68] sm:$0xff] %v3666_v20  ;;  %v2424_v9 = vadd.f32 %v3320_v37, %v2263_v55  ;;  %v3241_v35 = vpop.f32.mrb[133].mxu1  ;;  %v2415_v32 = vpop.f32.mrb[133].mxu0 }
 0x204   : > { %v3242_v39 = vadd.f32 %v3241_v35, %v3240_v13  ;;  %v2416_v6 = vadd.f32 %v2415_v32, %v4473_v45  ;;  %v3243_v46 = vpop.f32.mrb[134].mxu1  ;;  %v3321_v42 = vpop.f32.mrb[134].mxu0 }
 0x205   : > { %3675 = vtanh.f32 %v2424_v9  ;;  %v2427_v34 = vadd.f32 %v3321_v42, %v2266_v2  ;;  %v3244_v49 = vpop.f32.mrb[135].mxu1  ;;  %v2418_v29 = vpop.f32.mrb[135].mxu0 }
 0x206   : > { %3677 = vtanh.f32 %v2416_v6  ;;  %v3245_v40 = vadd.f32 %v3244_v49, %v3243_v46  ;;  %v2419_v57 = vadd.f32 %v2418_v29, %v4477_v14  ;;  %v2279_v26 = vadd.f32 %v3242_v39, %v4403_v27 }
 0x207   : > { %v3668_v36 = vpop.eup %3667  ;;  %3679 = vtanh.f32 %v2427_v34 }
 0x208   : > { %v3670_v53 = vpop.eup %3669  ;;  %2512 = vst [vmem:[%s4454_s22 + $0x90] sm:$0xff] %v3668_v36  ;;  %3681 = vtanh.f32 %v2419_v57  ;;  %v2282_v45 = vadd.f32 %v3245_v40, %v4409_v60 }
 0x209   : > { %v3672_v56 = vpop.eup %3671  ;;  %2510 = vst [vmem:[%s4454_s22 + $0x80] sm:$0xff] %v3670_v53  ;;  %v3246_v4 = vpop.f32.mrb[136].mxu1 }
 0x20a   : > { %v3674_v0 = vpop.eup %3673  ;;  %2513 = vst [vmem:[%s4454_s22 + $0x98] sm:$0xff] %v3672_v56  ;;  %v3324_v52 = vpop.f32.mrb[136].mxu0 }
 0x20b   : > { %2511 = vst [vmem:[%s4454_s22 + $0x88] sm:$0xff] %v3674_v0  ;;  %v2440_v44 = vadd.f32 %v3324_v52, %v2279_v26  ;;  %v3247_v38 = vpop.f32.mrb[137].mxu1  ;;  %v2431_v17 = vpop.f32.mrb[137].mxu0 }
 0x20c   : > { %v3248_v14 = vadd.f32 %v3247_v38, %v3246_v4  ;;  %v2432_v27 = vadd.f32 %v2431_v17, %v2271_v54  ;;  %v3249_v47 = vpop.f32.mrb[138].mxu1  ;;  %v3325_v15 = vpop.f32.mrb[138].mxu0 }
 0x20d   : > { %3683 = vtanh.f32 %v2440_v44  ;;  %v2443_v50 = vadd.f32 %v3325_v15, %v2282_v45  ;;  %v3250_v60 = vpop.f32.mrb[139].mxu1  ;;  %v2434_v33 = vpop.f32.mrb[139].mxu0 }
 0x20e   : > { %3685 = vtanh.f32 %v2432_v27  ;;  %v3251_v43 = vadd.f32 %v3250_v60, %v3249_v47  ;;  %v2435_v22 = vadd.f32 %v2434_v33, %v2274_v5  ;;  %v2287_v55 = vadd.f32 %v3248_v14, %v4415_v48 }
 0x20f   : > { %v3676_v61 = vpop.eup %3675  ;;  %3687 = vtanh.f32 %v2443_v50 }
 0x210   : > { %v3678_v11 = vpop.eup %3677  ;;  %2516 = vst [vmem:[%s4454_s22 + $0xb0] sm:$0xff] %v3676_v61  ;;  %3689 = vtanh.f32 %v2435_v22  ;;  %v2290_v2 = vadd.f32 %v3251_v43, %v4421_v12 }
 0x211   : > { %v3680_v24 = vpop.eup %3679  ;;  %2514 = vst [vmem:[%s4454_s22 + $0xa0] sm:$0xff] %v3678_v11  ;;  %v3252_v58 = vpop.f32.mrb[140].mxu1 }
 0x212   : > { %v3682_v19 = vpop.eup %3681  ;;  %2517 = vst [vmem:[%s4454_s22 + $0xb8] sm:$0xff] %v3680_v24  ;;  %v3328_v1 = vpop.f32.mrb[140].mxu0 }
 0x213   : > { %2515 = vst [vmem:[%s4454_s22 + $0xa8] sm:$0xff] %v3682_v19  ;;  %v3253_v31 = vpop.f32.mrb[141].mxu1  ;;  %v2447_v3 = vpop.f32.mrb[141].mxu0 }
 0x214   : > { %v3254_v21 = vadd.f32 %v3253_v31, %v3252_v58  ;;  %v2448_v41 = vadd.f32 %v2447_v3, %v2287_v55  ;;  %v3255_v48 = vpop.f32.mrb[142].mxu1  ;;  %v3329_v59 = vpop.f32.mrb[142].mxu0 }
 0x215   : > { %v3256_v16 = vpop.f32.mrb[143].mxu1  ;;  %v2450_v7 = vpop.f32.mrb[143].mxu0 }
 0x216   : > { %v2295_v12 = vadd.f32 %v3254_v21, %v4427_v8  ;;  %3691 = vtanh.f32 %v2448_v41  ;;  %v3257_v25 = vadd.f32 %v3256_v16, %v3255_v48  ;;  %v2451_v23 = vadd.f32 %v2450_v7, %v2290_v2 }
 0x217   : > { %v3684_v62 = vpop.eup %3683 }
 0x218   : > { %v3686_v18 = vpop.eup %3685  ;;  %2520 = vst [vmem:[%s4454_s22 + $0xd0] sm:$0xff] %v3684_v62  ;;  %v2456_v30 = vadd.f32 %v3328_v1, %v2295_v12  ;;  %v2298_v54 = vadd.f32 %v3257_v25, %v4433_v28  ;;  %3693 = vtanh.f32 %v2451_v23 }
 0x219   : > { %v3688_v63 = vpop.eup %3687  ;;  %2518 = vst [vmem:[%s4454_s22 + $0xc0] sm:$0xff] %v3686_v18 }
 0x21a   : > { %v3690_v10 = vpop.eup %3689  ;;  %2521 = vst [vmem:[%s4454_s22 + $0xd8] sm:$0xff] %v3688_v63  ;;  %3695 = vtanh.f32 %v2456_v30  ;;  %v2459_v8 = vadd.f32 %v3329_v59, %v2298_v54 }
 0x21b   : > { %2519 = vst [vmem:[%s4454_s22 + $0xc8] sm:$0xff] %v3690_v10 }
 0x21c   : > { %3697 = vtanh.f32 %v2459_v8 }
 0x220   : > { %v3692_v5 = vpop.eup %3691 }
 0x221   : > { %2522 = vst [vmem:[%s4454_s22 + $0xe0] sm:$0xff] %v3692_v5 }
 0x222   : > { %v3694_v51 = vpop.eup %3693 }
 0x223   : > { %2523 = vst [vmem:[%s4454_s22 + $0xe8] sm:$0xff] %v3694_v51 }
 0x224   : > { %v3696_v20 = vpop.eup %3695 }
 0x225   : > { %2524 = vst [vmem:[%s4454_s22 + $0xf0] sm:$0xff] %v3696_v20 }
 0x226   : > { %v3698_v13 = vpop.eup %3697 }
 0x227   : > { %2525 = vst [vmem:[%s4454_s22 + $0xf8] sm:$0xff] %v3698_v13 }
 0x228 PF: > { %s13_s12 = sadd.s32 1, %s3705_s12  }
 0x229   : > { %p10_p4 = scmp.ge.s32.totalorder %s13_s12, 4  }
 0x22b   :  { %12 = sbr.rel (!%p10_p4) target bundleno = 1 (0x1), region = 62 }

</bundles_post_ra>
